<compile_context>
chip_gen: v5e
topology: v5e:2x2
jax: 0.10.0
libtpu: 0.0.40
codegen_flags: <defaults>
</compile_context>

<pallas_src>
import math

import jax
import jax.numpy as jnp
from jax import lax
from jax.experimental import pallas as pl
from jax.experimental.pallas import tpu as pltpu

C = 64                 # hidden channel width
KTAPS = 9              # 3x3 taps
NUM_RELU_LAYERS = 19   # conv1 + 18 hidden layers (each conv -> relu)


def _vdsr_fused_kernel(x_ref, w_ref, w2_ref, o_ref, abuf_ref, p_ref):
    """Full VDSR forward for one batch element, everything resident in VMEM.

    x_ref    : (1, H, W)        f32   input image (also the residual)
    w_ref    : (19, 9*C, C)     bf16  stacked im2col weights (conv1 embedded at layer 0)
    w2_ref   : (9, C)           f32   conv2 weights, tap-major
    o_ref    : (1, H, W)        f32   output
    abuf_ref : (H+2, W+2, C)    bf16  padded activation buffer (halo stays zero)
    p_ref    : (H*W, 9*C)       bf16  im2col scratch
    """
    _, H, W = o_ref.shape
    HW = H * W

    # Seed the activation buffer: image in channel 0 of the interior, zeros
    # everywhere else.  The 1-pixel halo stays zero for every layer, which is
    # exactly the padding=1 zero padding of each conv in the reference model.
    abuf_ref[...] = jnp.zeros((H + 2, W + 2, C), jnp.bfloat16)
    abuf_ref[1:H + 1, 1:W + 1, 0:1] = x_ref[0][..., None].astype(jnp.bfloat16)

    # 19 x (3x3 same-conv + ReLU); weights indexed dynamically from the VMEM stack.
    def layer_body(li, carry):
        # Build the im2col operand (HW, 9*C); K is tap-major then cin, matching
        # the (3,3,cin,cout) -> (9*cin, cout) weight reshape done in the wrapper.
        for t in range(KTAPS):
            ky, kx = divmod(t, 3)
            patch = abuf_ref[ky:ky + H, kx:kx + W, :]            # (H, W, C) bf16
            p_ref[:, t * C:(t + 1) * C] = patch.reshape(HW, C)
        acc = jnp.dot(p_ref[...], w_ref[li],                     # one K=576 MXU matmul
                      preferred_element_type=jnp.float32)
        acc = jnp.maximum(acc, 0.0)                               # fused ReLU
        abuf_ref[1:H + 1, 1:W + 1, :] = acc.reshape(H, W, C).astype(jnp.bfloat16)
        return carry

    lax.fori_loop(0, NUM_RELU_LAYERS, layer_body, 0)

    # conv2 (64 -> 1): an N=1 matmul wastes the MXU, so multiply-accumulate the
    # 9 taps on the VPU in f32 and do a single cross-lane (XLU) reduce at the end.
    acc2 = jnp.zeros((H, W, C), jnp.float32)
    for t in range(KTAPS):
        ky, kx = divmod(t, 3)
        tap = abuf_ref[ky:ky + H, kx:kx + W, :].astype(jnp.float32)   # (H, W, C)
        acc2 = acc2 + tap * w2_ref[t, :]                              # broadcast (C,)

    # Fused residual add + single store.
    o_ref[0] = jnp.sum(acc2, axis=-1) + x_ref[0]


def init_vdsr_params(key):
    """Matches VDSR.__init__: weight ~ N(0, sqrt(2/(k*k*out_channels))), no biases."""
    keys = jax.random.split(key, 20)
    std64 = math.sqrt(2.0 / (3 * 3 * 64))
    w1 = jax.random.normal(keys[0], (3, 3, 1, 64), jnp.float32) * std64
    layer_ws = [jax.random.normal(keys[1 + i], (3, 3, 64, 64), jnp.float32) * std64
                for i in range(18)]
    std1 = math.sqrt(2.0 / (3 * 3 * 1))
    w2 = jax.random.normal(keys[19], (3, 3, 64, 1), jnp.float32) * std1
    return w1, layer_ws, w2


def pack_vdsr_params(w1, layer_ws, w2):
    """One-time packing of weights for the fused kernel."""
    # conv1 (3,3,1,C) embedded into a (9*C, C) im2col weight at cin == 0; the other
    # cin rows only ever multiply activation channels that are identically zero.
    w1e = jnp.zeros((KTAPS, C, C), jnp.float32).at[:, 0, :].set(w1.reshape(KTAPS, C))
    stack = [w1e.reshape(KTAPS * C, C)]
    stack += [w.reshape(KTAPS * C, C) for w in layer_ws]
    w_all = jnp.stack(stack, axis=0).astype(jnp.bfloat16)   # (19, 576, 64) ~ 1.4 MiB
    w2r = w2.reshape(KTAPS, C).astype(jnp.float32)          # (9, 64)
    return w_all, w2r


@jax.jit
def vdsr_forward(x_nchw, w_all, w2r):
    """residual = x; out = relu(conv1(x)); 18x relu(conv(out)); conv2; out + residual."""
    N, _, H, W = x_nchw.shape
    HW = H * W
    x2d = x_nchw[:, 0, :, :]                                    # (N, H, W)

    flops = N * (NUM_RELU_LAYERS * 2 * HW * (KTAPS * C) * C + 2 * HW * KTAPS * C)
    bytes_accessed = 2 * x2d.size * 4 + w_all.size * 2 + w2r.size * 4

    out = pl.pallas_call(
        _vdsr_fused_kernel,
        out_shape=jax.ShapeDtypeStruct((N, H, W), jnp.float32),
        grid=(N,),
        in_specs=[
            pl.BlockSpec((1, H, W), lambda n: (n, 0, 0)),
            pl.BlockSpec((NUM_RELU_LAYERS, KTAPS * C, C), lambda n: (0, 0, 0)),
            pl.BlockSpec((KTAPS, C), lambda n: (0, 0)),
        ],
        out_specs=pl.BlockSpec((1, H, W), lambda n: (n, 0, 0)),
        scratch_shapes=[
            pltpu.VMEM((H + 2, W + 2, C), jnp.bfloat16),      # resident padded activation
            pltpu.VMEM((HW, KTAPS * C), jnp.bfloat16),        # im2col buffer
        ],
        compiler_params=pltpu.CompilerParams(
            dimension_semantics=("parallel",),
            vmem_limit_bytes=32 * 1024 * 1024),
        cost_estimate=pl.CostEstimate(
            flops=flops, transcendentals=0, bytes_accessed=bytes_accessed),
    )(x2d, w_all, w2r)

    return out.reshape(N, 1, H, W)


if __name__ == "__main__":
    key = jax.random.PRNGKey(0)
    k_param, k_input = jax.random.split(key)

    w1, layer_ws, w2 = init_vdsr_params(k_param)
    w_all, w2r = pack_vdsr_params(w1, layer_ws, w2)

    # Small input consistent with the module: NCHW, single (Y) channel.
    x = jax.random.normal(k_input, (2, 1, 16, 16), jnp.float32)

    out = vdsr_forward(x, w_all, w2r)
    jax.block_until_ready(out)

    assert out.shape == x.shape, (out.shape, x.shape)
    assert out.dtype == jnp.float32
    print("KERNEL_OK")
</pallas_src>

<mosaic_0001>
module attributes {stable_mosaic.version = 11 : i64} {
  func.func @_vdsr_fused_kernel(%arg0: i32, %arg1: memref<1x16x16xf32, #tpu.memory_space<vmem>>, %arg2: memref<19x576x64xbf16, #tpu.memory_space<vmem>>, %arg3: memref<9x64xf32, #tpu.memory_space<vmem>>, %arg4: memref<1x16x16xf32, #tpu.memory_space<vmem>>, %arg5: memref<18x18x64xbf16, #tpu.memory_space<vmem>>, %arg6: memref<256x576xbf16, #tpu.memory_space<vmem>>) attributes {dimension_semantics = [#tpu.dimension_semantics<parallel>], iteration_bounds = array<i64: 2>, scalar_prefetch = 0 : i64, scratch_operands = 2 : i64, tpu.core_type = #tpu.core_type<tc>, window_params = [{transform_indices = @transform_0, window_bounds = array<i64: 1, 16, 16>}, {pipeline_mode = #tpu.pipeline_mode<synchronous>, transform_indices = @transform_1, window_bounds = array<i64: 19, 576, 64>}, {pipeline_mode = #tpu.pipeline_mode<synchronous>, transform_indices = @transform_2, window_bounds = array<i64: 9, 64>}, {transform_indices = @transform_3, window_bounds = array<i64: 1, 16, 16>}]} {
    %cst = arith.constant 0.000000e+00 : bf16
    %0 = vector.broadcast %cst : bf16 to vector<18x18x64xbf16>
    %c0 = arith.constant 0 : index
    %c0_0 = arith.constant 0 : index
    %c0_1 = arith.constant 0 : index
    %1 = vector.load %arg5[%c0, %c0_0, %c0_1] : memref<18x18x64xbf16, #tpu.memory_space<vmem>>, vector<18x18x64xbf16>
    tpu.vector_store %arg5[%c0, %c0_0, %c0_1], %0 {strides = array<i32>} : memref<18x18x64xbf16, #tpu.memory_space<vmem>>, vector<18x18x64xbf16>,
    %c0_2 = arith.constant 0 : index
    %c0_3 = arith.constant 0 : index
    %c0_4 = arith.constant 0 : index
    %2 = vector.load %arg1[%c0_2, %c0_3, %c0_4] : memref<1x16x16xf32, #tpu.memory_space<vmem>>, vector<1x16x16xf32>
    %3 = vector.shape_cast %2 : vector<1x16x16xf32> to vector<16x16xf32>
    %4 = vector.shape_cast %3 : vector<16x16xf32> to vector<16x16x1xf32>
    %5 = arith.truncf %4 : vector<16x16x1xf32> to vector<16x16x1xbf16>
    %c1 = arith.constant 1 : index
    %c1_5 = arith.constant 1 : index
    %c0_6 = arith.constant 0 : index
    %6 = vector.load %arg5[%c1, %c1_5, %c0_6] : memref<18x18x64xbf16, #tpu.memory_space<vmem>>, vector<16x16x1xbf16>
    tpu.vector_store %arg5[%c1, %c1_5, %c0_6], %5 {strides = array<i32>} : memref<18x18x64xbf16, #tpu.memory_space<vmem>>, vector<16x16x1xbf16>,
    %c0_i32 = arith.constant 0 : i32
    %c19_i32 = arith.constant 19 : i32
    %7 = arith.addi %c0_i32, %c19_i32 : i32
    %c1_i32 = arith.constant 1 : i32
    scf.for %arg7 = %c0_i32 to %7 step %c1_i32  : i32 {
      %c0_54 = arith.constant 0 : index
      %c0_55 = arith.constant 0 : index
      %c0_56 = arith.constant 0 : index
      %88 = vector.load %arg5[%c0_54, %c0_55, %c0_56] : memref<18x18x64xbf16, #tpu.memory_space<vmem>>, vector<16x16x64xbf16>
      %89 = vector.shape_cast %88 : vector<16x16x64xbf16> to vector<256x64xbf16>
      %c0_57 = arith.constant 0 : index
      %c0_58 = arith.constant 0 : index
      %90 = vector.load %arg6[%c0_57, %c0_58] : memref<256x576xbf16, #tpu.memory_space<vmem>>, vector<256x64xbf16>
      tpu.vector_store %arg6[%c0_57, %c0_58], %89 {strides = array<i32>} : memref<256x576xbf16, #tpu.memory_space<vmem>>, vector<256x64xbf16>,
      %c0_59 = arith.constant 0 : index
      %c1_60 = arith.constant 1 : index
      %c0_61 = arith.constant 0 : index
      %91 = vector.load %arg5[%c0_59, %c1_60, %c0_61] : memref<18x18x64xbf16, #tpu.memory_space<vmem>>, vector<16x16x64xbf16>
      %92 = vector.shape_cast %91 : vector<16x16x64xbf16> to vector<256x64xbf16>
      %c0_62 = arith.constant 0 : index
      %c64 = arith.constant 64 : index
      %93 = vector.load %arg6[%c0_62, %c64] : memref<256x576xbf16, #tpu.memory_space<vmem>>, vector<256x64xbf16>
      tpu.vector_store %arg6[%c0_62, %c64], %92 {strides = array<i32>} : memref<256x576xbf16, #tpu.memory_space<vmem>>, vector<256x64xbf16>,
      %c0_63 = arith.constant 0 : index
      %c2_64 = arith.constant 2 : index
      %c0_65 = arith.constant 0 : index
      %94 = vector.load %arg5[%c0_63, %c2_64, %c0_65] : memref<18x18x64xbf16, #tpu.memory_space<vmem>>, vector<16x16x64xbf16>
      %95 = vector.shape_cast %94 : vector<16x16x64xbf16> to vector<256x64xbf16>
      %c0_66 = arith.constant 0 : index
      %c128 = arith.constant 128 : index
      %96 = vector.load %arg6[%c0_66, %c128] : memref<256x576xbf16, #tpu.memory_space<vmem>>, vector<256x64xbf16>
      tpu.vector_store %arg6[%c0_66, %c128], %95 {strides = array<i32>} : memref<256x576xbf16, #tpu.memory_space<vmem>>, vector<256x64xbf16>,
      %c1_67 = arith.constant 1 : index
      %c0_68 = arith.constant 0 : index
      %c0_69 = arith.constant 0 : index
      %97 = vector.load %arg5[%c1_67, %c0_68, %c0_69] : memref<18x18x64xbf16, #tpu.memory_space<vmem>>, vector<16x16x64xbf16>
      %98 = vector.shape_cast %97 : vector<16x16x64xbf16> to vector<256x64xbf16>
      %c0_70 = arith.constant 0 : index
      %c192 = arith.constant 192 : index
      %99 = vector.load %arg6[%c0_70, %c192] : memref<256x576xbf16, #tpu.memory_space<vmem>>, vector<256x64xbf16>
      tpu.vector_store %arg6[%c0_70, %c192], %98 {strides = array<i32>} : memref<256x576xbf16, #tpu.memory_space<vmem>>, vector<256x64xbf16>,
      %c1_71 = arith.constant 1 : index
      %c1_72 = arith.constant 1 : index
      %c0_73 = arith.constant 0 : index
      %100 = vector.load %arg5[%c1_71, %c1_72, %c0_73] : memref<18x18x64xbf16, #tpu.memory_space<vmem>>, vector<16x16x64xbf16>
      %101 = vector.shape_cast %100 : vector<16x16x64xbf16> to vector<256x64xbf16>
      %c0_74 = arith.constant 0 : index
      %c256 = arith.constant 256 : index
      %102 = vector.load %arg6[%c0_74, %c256] : memref<256x576xbf16, #tpu.memory_space<vmem>>, vector<256x64xbf16>
      tpu.vector_store %arg6[%c0_74, %c256], %101 {strides = array<i32>} : memref<256x576xbf16, #tpu.memory_space<vmem>>, vector<256x64xbf16>,
      %c1_75 = arith.constant 1 : index
      %c2_76 = arith.constant 2 : index
      %c0_77 = arith.constant 0 : index
      %103 = vector.load %arg5[%c1_75, %c2_76, %c0_77] : memref<18x18x64xbf16, #tpu.memory_space<vmem>>, vector<16x16x64xbf16>
      %104 = vector.shape_cast %103 : vector<16x16x64xbf16> to vector<256x64xbf16>
      %c0_78 = arith.constant 0 : index
      %c320 = arith.constant 320 : index
      %105 = vector.load %arg6[%c0_78, %c320] : memref<256x576xbf16, #tpu.memory_space<vmem>>, vector<256x64xbf16>
      tpu.vector_store %arg6[%c0_78, %c320], %104 {strides = array<i32>} : memref<256x576xbf16, #tpu.memory_space<vmem>>, vector<256x64xbf16>,
      %c2_79 = arith.constant 2 : index
      %c0_80 = arith.constant 0 : index
      %c0_81 = arith.constant 0 : index
      %106 = vector.load %arg5[%c2_79, %c0_80, %c0_81] : memref<18x18x64xbf16, #tpu.memory_space<vmem>>, vector<16x16x64xbf16>
      %107 = vector.shape_cast %106 : vector<16x16x64xbf16> to vector<256x64xbf16>
      %c0_82 = arith.constant 0 : index
      %c384 = arith.constant 384 : index
      %108 = vector.load %arg6[%c0_82, %c384] : memref<256x576xbf16, #tpu.memory_space<vmem>>, vector<256x64xbf16>
      tpu.vector_store %arg6[%c0_82, %c384], %107 {strides = array<i32>} : memref<256x576xbf16, #tpu.memory_space<vmem>>, vector<256x64xbf16>,
      %c2_83 = arith.constant 2 : index
      %c1_84 = arith.constant 1 : index
      %c0_85 = arith.constant 0 : index
      %109 = vector.load %arg5[%c2_83, %c1_84, %c0_85] : memref<18x18x64xbf16, #tpu.memory_space<vmem>>, vector<16x16x64xbf16>
      %110 = vector.shape_cast %109 : vector<16x16x64xbf16> to vector<256x64xbf16>
      %c0_86 = arith.constant 0 : index
      %c448 = arith.constant 448 : index
      %111 = vector.load %arg6[%c0_86, %c448] : memref<256x576xbf16, #tpu.memory_space<vmem>>, vector<256x64xbf16>
      tpu.vector_store %arg6[%c0_86, %c448], %110 {strides = array<i32>} : memref<256x576xbf16, #tpu.memory_space<vmem>>, vector<256x64xbf16>,
      %c2_87 = arith.constant 2 : index
      %c2_88 = arith.constant 2 : index
      %c0_89 = arith.constant 0 : index
      %112 = vector.load %arg5[%c2_87, %c2_88, %c0_89] : memref<18x18x64xbf16, #tpu.memory_space<vmem>>, vector<16x16x64xbf16>
      %113 = vector.shape_cast %112 : vector<16x16x64xbf16> to vector<256x64xbf16>
      %c0_90 = arith.constant 0 : index
      %c512 = arith.constant 512 : index
      %114 = vector.load %arg6[%c0_90, %c512] : memref<256x576xbf16, #tpu.memory_space<vmem>>, vector<256x64xbf16>
      tpu.vector_store %arg6[%c0_90, %c512], %113 {strides = array<i32>} : memref<256x576xbf16, #tpu.memory_space<vmem>>, vector<256x64xbf16>,
      %c0_91 = arith.constant 0 : index
      %c0_92 = arith.constant 0 : index
      %115 = vector.load %arg6[%c0_91, %c0_92] : memref<256x576xbf16, #tpu.memory_space<vmem>>, vector<256x576xbf16>
      %116 = arith.index_cast %arg7 : i32 to index
      %c0_93 = arith.constant 0 : index
      %c0_94 = arith.constant 0 : index
      %117 = vector.load %arg2[%116, %c0_93, %c0_94] : memref<19x576x64xbf16, #tpu.memory_space<vmem>>, vector<1x576x64xbf16>
      %118 = vector.shape_cast %117 : vector<1x576x64xbf16> to vector<576x64xbf16>
      %cst_95 = arith.constant dense<0.000000e+00> : vector<256x64xf32>
      %119 = tpu.matmul %115, %118, %cst_95 {dimension_numbers = #tpu.dot_dimension_numbers<[1], [0], [0], [1], [0, 0, 1, 1], [], []>} : vector<256x576xbf16>, vector<576x64xbf16>, vector<256x64xf32> -> vector<256x64xf32>
      %cst_96 = arith.constant 0.000000e+00 : f32
      %120 = vector.broadcast %cst_96 : f32 to vector<256x64xf32>
      %121 = arith.maximumf %119, %120 : vector<256x64xf32>
      %122 = vector.shape_cast %121 : vector<256x64xf32> to vector<16x16x64xf32>
      %123 = arith.truncf %122 : vector<16x16x64xf32> to vector<16x16x64xbf16>
      %c1_97 = arith.constant 1 : index
      %c1_98 = arith.constant 1 : index
      %c0_99 = arith.constant 0 : index
      %124 = vector.load %arg5[%c1_97, %c1_98, %c0_99] : memref<18x18x64xbf16, #tpu.memory_space<vmem>>, vector<16x16x64xbf16>
      tpu.vector_store %arg5[%c1_97, %c1_98, %c0_99], %123 {strides = array<i32>} : memref<18x18x64xbf16, #tpu.memory_space<vmem>>, vector<16x16x64xbf16>,
    }
    %c19_i32_7 = arith.constant 19 : i32
    %cst_8 = arith.constant 0.000000e+00 : f32
    %8 = vector.broadcast %cst_8 : f32 to vector<16x16x64xf32>
    %c0_9 = arith.constant 0 : index
    %c0_10 = arith.constant 0 : index
    %c0_11 = arith.constant 0 : index
    %9 = vector.load %arg5[%c0_9, %c0_10, %c0_11] : memref<18x18x64xbf16, #tpu.memory_space<vmem>>, vector<16x16x64xbf16>
    %10 = arith.extf %9 : vector<16x16x64xbf16> to vector<16x16x64xf32>
    %c0_12 = arith.constant 0 : index
    %c0_13 = arith.constant 0 : index
    %11 = vector.load %arg3[%c0_12, %c0_13] : memref<9x64xf32, #tpu.memory_space<vmem>>, vector<1x64xf32>
    %12 = vector.shape_cast %11 : vector<1x64xf32> to vector<64xf32>
    %13 = vector.shape_cast %12 : vector<64xf32> to vector<1x1x64xf32>
    %14 = vector.broadcast %13 : vector<1x1x64xf32> to vector<16x16x64xf32>
    %15 = arith.mulf %10, %14 : vector<16x16x64xf32>
    %16 = arith.addf %8, %15 : vector<16x16x64xf32>
    %c0_14 = arith.constant 0 : index
    %c1_15 = arith.constant 1 : index
    %c0_16 = arith.constant 0 : index
    %17 = vector.load %arg5[%c0_14, %c1_15, %c0_16] : memref<18x18x64xbf16, #tpu.memory_space<vmem>>, vector<16x16x64xbf16>
    %18 = arith.extf %17 : vector<16x16x64xbf16> to vector<16x16x64xf32>
    %c1_17 = arith.constant 1 : index
    %c0_18 = arith.constant 0 : index
    %19 = vector.load %arg3[%c1_17, %c0_18] : memref<9x64xf32, #tpu.memory_space<vmem>>, vector<1x64xf32>
    %20 = vector.shape_cast %19 : vector<1x64xf32> to vector<64xf32>
    %21 = vector.shape_cast %20 : vector<64xf32> to vector<1x1x64xf32>
    %22 = vector.broadcast %21 : vector<1x1x64xf32> to vector<16x16x64xf32>
    %23 = arith.mulf %18, %22 : vector<16x16x64xf32>
    %24 = arith.addf %16, %23 : vector<16x16x64xf32>
    %c0_19 = arith.constant 0 : index
    %c2 = arith.constant 2 : index
    %c0_20 = arith.constant 0 : index
    %25 = vector.load %arg5[%c0_19, %c2, %c0_20] : memref<18x18x64xbf16, #tpu.memory_space<vmem>>, vector<16x16x64xbf16>
    %26 = arith.extf %25 : vector<16x16x64xbf16> to vector<16x16x64xf32>
    %c2_21 = arith.constant 2 : index
    %c0_22 = arith.constant 0 : index
    %27 = vector.load %arg3[%c2_21, %c0_22] : memref<9x64xf32, #tpu.memory_space<vmem>>, vector<1x64xf32>
    %28 = vector.shape_cast %27 : vector<1x64xf32> to vector<64xf32>
    %29 = vector.shape_cast %28 : vector<64xf32> to vector<1x1x64xf32>
    %30 = vector.broadcast %29 : vector<1x1x64xf32> to vector<16x16x64xf32>
    %31 = arith.mulf %26, %30 : vector<16x16x64xf32>
    %32 = arith.addf %24, %31 : vector<16x16x64xf32>
    %c1_23 = arith.constant 1 : index
    %c0_24 = arith.constant 0 : index
    %c0_25 = arith.constant 0 : index
    %33 = vector.load %arg5[%c1_23, %c0_24, %c0_25] : memref<18x18x64xbf16, #tpu.memory_space<vmem>>, vector<16x16x64xbf16>
    %34 = arith.extf %33 : vector<16x16x64xbf16> to vector<16x16x64xf32>
    %c3 = arith.constant 3 : index
    %c0_26 = arith.constant 0 : index
    %35 = vector.load %arg3[%c3, %c0_26] : memref<9x64xf32, #tpu.memory_space<vmem>>, vector<1x64xf32>
    %36 = vector.shape_cast %35 : vector<1x64xf32> to vector<64xf32>
    %37 = vector.shape_cast %36 : vector<64xf32> to vector<1x1x64xf32>
    %38 = vector.broadcast %37 : vector<1x1x64xf32> to vector<16x16x64xf32>
    %39 = arith.mulf %34, %38 : vector<16x16x64xf32>
    %40 = arith.addf %32, %39 : vector<16x16x64xf32>
    %c1_27 = arith.constant 1 : index
    %c1_28 = arith.constant 1 : index
    %c0_29 = arith.constant 0 : index
    %41 = vector.load %arg5[%c1_27, %c1_28, %c0_29] : memref<18x18x64xbf16, #tpu.memory_space<vmem>>, vector<16x16x64xbf16>
    %42 = arith.extf %41 : vector<16x16x64xbf16> to vector<16x16x64xf32>
    %c4 = arith.constant 4 : index
    %c0_30 = arith.constant 0 : index
    %43 = vector.load %arg3[%c4, %c0_30] : memref<9x64xf32, #tpu.memory_space<vmem>>, vector<1x64xf32>
    %44 = vector.shape_cast %43 : vector<1x64xf32> to vector<64xf32>
    %45 = vector.shape_cast %44 : vector<64xf32> to vector<1x1x64xf32>
    %46 = vector.broadcast %45 : vector<1x1x64xf32> to vector<16x16x64xf32>
    %47 = arith.mulf %42, %46 : vector<16x16x64xf32>
    %48 = arith.addf %40, %47 : vector<16x16x64xf32>
    %c1_31 = arith.constant 1 : index
    %c2_32 = arith.constant 2 : index
    %c0_33 = arith.constant 0 : index
    %49 = vector.load %arg5[%c1_31, %c2_32, %c0_33] : memref<18x18x64xbf16, #tpu.memory_space<vmem>>, vector<16x16x64xbf16>
    %50 = arith.extf %49 : vector<16x16x64xbf16> to vector<16x16x64xf32>
    %c5 = arith.constant 5 : index
    %c0_34 = arith.constant 0 : index
    %51 = vector.load %arg3[%c5, %c0_34] : memref<9x64xf32, #tpu.memory_space<vmem>>, vector<1x64xf32>
    %52 = vector.shape_cast %51 : vector<1x64xf32> to vector<64xf32>
    %53 = vector.shape_cast %52 : vector<64xf32> to vector<1x1x64xf32>
    %54 = vector.broadcast %53 : vector<1x1x64xf32> to vector<16x16x64xf32>
    %55 = arith.mulf %50, %54 : vector<16x16x64xf32>
    %56 = arith.addf %48, %55 : vector<16x16x64xf32>
    %c2_35 = arith.constant 2 : index
    %c0_36 = arith.constant 0 : index
    %c0_37 = arith.constant 0 : index
    %57 = vector.load %arg5[%c2_35, %c0_36, %c0_37] : memref<18x18x64xbf16, #tpu.memory_space<vmem>>, vector<16x16x64xbf16>
    %58 = arith.extf %57 : vector<16x16x64xbf16> to vector<16x16x64xf32>
    %c6 = arith.constant 6 : index
    %c0_38 = arith.constant 0 : index
    %59 = vector.load %arg3[%c6, %c0_38] : memref<9x64xf32, #tpu.memory_space<vmem>>, vector<1x64xf32>
    %60 = vector.shape_cast %59 : vector<1x64xf32> to vector<64xf32>
    %61 = vector.shape_cast %60 : vector<64xf32> to vector<1x1x64xf32>
    %62 = vector.broadcast %61 : vector<1x1x64xf32> to vector<16x16x64xf32>
    %63 = arith.mulf %58, %62 : vector<16x16x64xf32>
    %64 = arith.addf %56, %63 : vector<16x16x64xf32>
    %c2_39 = arith.constant 2 : index
    %c1_40 = arith.constant 1 : index
    %c0_41 = arith.constant 0 : index
    %65 = vector.load %arg5[%c2_39, %c1_40, %c0_41] : memref<18x18x64xbf16, #tpu.memory_space<vmem>>, vector<16x16x64xbf16>
    %66 = arith.extf %65 : vector<16x16x64xbf16> to vector<16x16x64xf32>
    %c7 = arith.constant 7 : index
    %c0_42 = arith.constant 0 : index
    %67 = vector.load %arg3[%c7, %c0_42] : memref<9x64xf32, #tpu.memory_space<vmem>>, vector<1x64xf32>
    %68 = vector.shape_cast %67 : vector<1x64xf32> to vector<64xf32>
    %69 = vector.shape_cast %68 : vector<64xf32> to vector<1x1x64xf32>
    %70 = vector.broadcast %69 : vector<1x1x64xf32> to vector<16x16x64xf32>
    %71 = arith.mulf %66, %70 : vector<16x16x64xf32>
    %72 = arith.addf %64, %71 : vector<16x16x64xf32>
    %c2_43 = arith.constant 2 : index
    %c2_44 = arith.constant 2 : index
    %c0_45 = arith.constant 0 : index
    %73 = vector.load %arg5[%c2_43, %c2_44, %c0_45] : memref<18x18x64xbf16, #tpu.memory_space<vmem>>, vector<16x16x64xbf16>
    %74 = arith.extf %73 : vector<16x16x64xbf16> to vector<16x16x64xf32>
    %c8 = arith.constant 8 : index
    %c0_46 = arith.constant 0 : index
    %75 = vector.load %arg3[%c8, %c0_46] : memref<9x64xf32, #tpu.memory_space<vmem>>, vector<1x64xf32>
    %76 = vector.shape_cast %75 : vector<1x64xf32> to vector<64xf32>
    %77 = vector.shape_cast %76 : vector<64xf32> to vector<1x1x64xf32>
    %78 = vector.broadcast %77 : vector<1x1x64xf32> to vector<16x16x64xf32>
    %79 = arith.mulf %74, %78 : vector<16x16x64xf32>
    %80 = arith.addf %72, %79 : vector<16x16x64xf32>
    %cst_47 = arith.constant dense<0.000000e+00> : vector<16x16xf32>
    %81 = vector.multi_reduction <add>, %80, %cst_47 [2] : vector<16x16x64xf32> to vector<16x16xf32>
    %c0_48 = arith.constant 0 : index
    %c0_49 = arith.constant 0 : index
    %c0_50 = arith.constant 0 : index
    %82 = vector.load %arg1[%c0_48, %c0_49, %c0_50] : memref<1x16x16xf32, #tpu.memory_space<vmem>>, vector<1x16x16xf32>
    %83 = vector.shape_cast %82 : vector<1x16x16xf32> to vector<16x16xf32>
    %84 = arith.addf %81, %83 : vector<16x16xf32>
    %c0_51 = arith.constant 0 : index
    %c0_52 = arith.constant 0 : index
    %c0_53 = arith.constant 0 : index
    %85 = vector.load %arg4[%c0_51, %c0_52, %c0_53] : memref<1x16x16xf32, #tpu.memory_space<vmem>>, vector<1x16x16xf32>
    %86 = vector.shape_cast %85 : vector<1x16x16xf32> to vector<16x16xf32>
    %87 = vector.shape_cast %84 : vector<16x16xf32> to vector<1x16x16xf32>
    tpu.vector_store %arg4[%c0_51, %c0_52, %c0_53], %87 {strides = array<i32>} : memref<1x16x16xf32, #tpu.memory_space<vmem>>, vector<1x16x16xf32>,
    return
  }
  func.func @transform_0(%arg0: i32) -> (i32, i32, i32) {
    %c0_i32 = arith.constant 0 : i32
    %c0_i32_0 = arith.constant 0 : i32
    %c0_i32_1 = arith.constant 0 : i32
    return %arg0, %c0_i32, %c0_i32_0 : i32, i32, i32
  }
  func.func @transform_1(%arg0: i32) -> (i32, i32, i32) {
    %c0_i32 = arith.constant 0 : i32
    %c0_i32_0 = arith.constant 0 : i32
    %c0_i32_1 = arith.constant 0 : i32
    %c0_i32_2 = arith.constant 0 : i32
    return %c0_i32, %c0_i32_0, %c0_i32_1 : i32, i32, i32
  }
  func.func @transform_2(%arg0: i32) -> (i32, i32) {
    %c0_i32 = arith.constant 0 : i32
    %c0_i32_0 = arith.constant 0 : i32
    %c0_i32_1 = arith.constant 0 : i32
    return %c0_i32, %c0_i32_0 : i32, i32
  }
  func.func @transform_3(%arg0: i32) -> (i32, i32, i32) {
    %c0_i32 = arith.constant 0 : i32
    %c0_i32_0 = arith.constant 0 : i32
    %c0_i32_1 = arith.constant 0 : i32
    return %arg0, %c0_i32, %c0_i32_0 : i32, i32, i32
  }
}

</mosaic_0001>

<bundles_post_ra>
// kernel: vdsr_forward.1
= control target key start
LH: loop header
LB: loop body
LE: loop exit
PB: predicated region body
PF: predicated region fallthrough
CT: control target
= control target key end

     0   :  { %8 = vsyncpa [#allocation5], 0  ;;  %s12847_s0 = inlined_call_operand.vmem [shape: f32[2,16,16], index: 0, kind: input, shape index: {}]   ;;  %s12848_s1 = inlined_call_operand.vmem [shape: bf16[19,576,64], index: 1, kind: input, shape index: {}]   ;;  %s12849_s2 = inlined_call_operand.vmem [shape: f32[9,64], index: 2, kind: input, shape index: {}]   ;;  %s12850_s3 = inlined_call_operand.hbm [shape: f32[2,16,16], index: 3, kind: output, shape index: {}]  }
   0x1   :  { %10 = vsyncpa [#allocation5 + $0x1], 0  ;;  %s9309_s12 = smov 0   ;;  %s9311_s13 = smov 0  }
   0x2   :  { %s9313_s14 = smov 0   ;;  %s9315_s15 = smov 0  }
   0x3 LB: > { %s9330_s16 = sadd.s32 4294967295, %s9279_s15   ;;  %s8222_s17 = sadd.s32 4294967294, %s9279_s15   ;;  %s9279_s15 = sphi %s9315_s15, %s12925_s15   ;;  %s9275_s14 = sphi %s9313_s14, %s12924_s14   ;;  %s9271_s13 = sphi %s9311_s13, %s12923_s13   ;;  %s9267_s12 = sphi %s9309_s12, %s12922_s12  }
   0x4   : > { %s9334_s18 = sadd.s32 1, %s9279_s15   ;;  %s91_s19 = sadd.s32 1, %s9275_s14 }
   0x5   : > { %s88_s20 = ssub.s32 %s9279_s15, %s9334_s18  ;;  %p101_p0 = scmp.ne.s32.totalorder %s9275_s14, %s9271_s13 }
   0x6   : > { %p89_p1 = scmp.eq.s32.totalorder %s88_s20, 0  ;;  %p102_p2 = scmp.eq.s32.totalorder %s9330_s16, 1 }
   0x7   : > { %p107_p3 = scmp.ne.s32.totalorder %s9271_s13, %s9267_s12  ;;  %p108_p4 = scmp.eq.s32.totalorder %s8222_s17, 1 }
   0x8   : > { %s9345_s21 = scalar_select %p89_p1, %s9275_s14, %s91_s19  }
   0x9   : > { %p9347_p5 = por %p102_p2, %p101_p0  ;;  %p9351_p6 = por %p108_p4, %p107_p3 }
   0xa   : > { %p8225_p7 = scmp.ge.s32.totalorder %s9279_s15, 1  ;;  %p140_p8 = scmp.lt.s32.totalorder %s9279_s15, 3 }
   0xc   : > { %p141_p9 = pnand %p8225_p7, %p140_p8 }
   0xe   : > { %144 = sbr.rel (%p141_p9) target bundleno = 1615 (0x64f), region = 32 }
  0x13   : > { %v12851_v0 = vlaneseq  ;;  %p164_p10 = scmp.lt.s32.totalorder %s9330_s16, 1  ;;  %vm170_vm0 = vcmask 519168   ;;  %v12852_v26 = vmov 0   ;;  %s161_s29 = sand.u32 1, %s9271_s13   ;;  %vm792_vm1 = vcmask 3072  }
  0x14   : > { %187 = vst.msk [vmem:[#allocation2 + $0x3c] sm:$0xf] %vm170_vm0, %v12852_v26  ;;  %s9452_s30 = sshll.u32 %s161_s29, 4  ;;  %vm173_vm2 = vcmask 516096   ;;  %vm793_vm3 = vsmask.f32 7938 }
  0x15   : > { %v9359_v1 = vshrl.u32 %v12851_v0, 7  ;;  %s165_s24 = scalar_select %p164_p10, %s9330_s16, 1  ;;  %190 = vst.msk [vmem:[#allocation2 + $0x48] sm:$0xf] %vm170_vm0, %v12852_v26  ;;  %vm9474_vm4 = vmand %vm792_vm1, %vm793_vm3  ;;  %vm468_vm5 = vsmask.f32 256 }
  0x16   : > { %171 = vst.msk [vmem:[#allocation2] sm:$0xf] %vm170_vm0, %v12852_v26  ;;  %vm469_vm6 = vsmask.f32 4368  ;;  %vm800_vm7 = vcmask 0   ;;  %s9711_s4 = scalar_lea.vmem [#allocation4], %s9452_s30 }
  0x17   : > { %12876 = vst [vmem:[#allocation7_spill] sm:$0xff] %v9359_v1  ;;  %9081 = vset.pattern.permute.xlu1 %v9359_v1  ;;  %s8763_s25 = sshll.u32 %s165_s24, 4  ;;  %9087 = vset.pattern.permute.xlu2 %v9359_v1  ;;  %v9373_v15 = vadd.s32 8, %v9359_v1  ;;  %vm9510_vm8 = vmor %vm468_vm5, %vm469_vm6  ;;  %s9713_s5 = smov 0  }
  0x18   : > { %s9367_s28 = scalar_lea.vmem %s12847_s0, %s8763_s25  ;;  %9075 = vset.pattern.permute.xlu0 %v9359_v1  ;;  %172 = vst.msk [vmem:[#allocation2 + $0x4] sm:$0xf] %vm170_vm0, %v12852_v26  ;;  %vm9520_vm9 = vmand %vm800_vm7, %vm468_vm5 }
  0x19   : > { %v226_v2 = vld [vmem:[%s9367_s28] sm:$0xff]  ;;  %v227_v11 = vld [vmem:[%s9367_s28 + $0x8] sm:$0xff]  ;;  %12877 = vst [vmem:[#allocation8_spill] sm:$0xff] %v9373_v15 }
  0x1a   : > { %v254_v3 = vperm.slane %v226_v2, 2  ;;  %v267_v4 = vperm.slane %v226_v2, 3  ;;  %v280_v5 = vperm.slane %v226_v2, 4  ;;  %v293_v6 = vperm.slane %v226_v2, 5  ;;  %175 = vst.msk [vmem:[#allocation2 + $0xc] sm:$0xf] %vm170_vm0, %v12852_v26 }
  0x1b   : > { %v228_v7 = vperm.slane %v226_v2, 0  ;;  %v241_v8 = vperm.slane %v226_v2, 1  ;;  %v332_v13 = vperm.slane %v227_v11, 0  ;;  %v345_v14 = vperm.slane %v227_v11, 1  ;;  %176 = vst.msk [vmem:[#allocation2 + $0x10] sm:$0xf] %vm170_vm0, %v12852_v26 }
  0x1c   : > { %v9082_v9 = vpack.i.bf16 %v267_v4, %v254_v3  ;;  %v9088_v10 = vpack.i.bf16 %v293_v6, %v280_v5  ;;  %v306_v17 = vperm.slane %v226_v2, 6  ;;  %v319_v18 = vperm.slane %v226_v2, 7  ;;  %178 = vst.msk [vmem:[#allocation2 + $0x18] sm:$0xf] %vm170_vm0, %v12852_v26  ;;  %v826_v41 = vld [vmem:[#allocation2 + $0x3c] sm:$0xf] }
  0x1d   : > { %v9076_v12 = vpack.i.bf16 %v241_v8, %v228_v7  ;;  %v9116_v16 = vpack.i.bf16 %v345_v14, %v332_v13  ;;  %v384_v20 = vperm.slane %v227_v11, 4  ;;  %v397_v21 = vperm.slane %v227_v11, 5  ;;  %179 = vst.msk [vmem:[#allocation2 + $0x1c] sm:$0xf] %vm170_vm0, %v12852_v26  ;;  %v833_v42 = vld [vmem:[#allocation2 + $0x48] sm:$0xf] }
  0x1e   : > { %v9111_v19 = vpack.i.bf16 %v319_v18, %v306_v17  ;;  %v358_v23 = vperm.slane %v227_v11, 2  ;;  %v371_v24 = vperm.slane %v227_v11, 3  ;;  %181 = vst.msk [vmem:[#allocation2 + $0x24] sm:$0xf] %vm170_vm0, %v12852_v26  ;;  %v410_v27 = vperm.slane %v227_v11, 6 }
  0x1f   : > { %9083 = vperm.xlu1 %9081, %v9082_v9   ;;  %9089 = vperm.xlu2 %9087, %v9088_v10   ;;  %v9149_v22 = vpack.i.bf16 %v397_v21, %v384_v20  ;;  %182 = vst.msk [vmem:[#allocation2 + $0x28] sm:$0xf] %vm170_vm0, %v12852_v26  ;;  %v423_v28 = vperm.slane %v227_v11, 7 }
  0x20   : > { %9077 = vperm.xlu0 %9075, %v9076_v12   ;;  %v9134_v25 = vpack.i.bf16 %v371_v24, %v358_v23  ;;  %184 = vst.msk [vmem:[#allocation2 + $0x30] sm:$0xf] %vm170_vm0, %v12852_v26 }
  0x21   : > { %185 = vst.msk [vmem:[#allocation2 + $0x34] sm:$0xf] %vm170_vm0, %v12852_v26  ;;  %v9161_v29 = vpack.i.bf16 %v423_v28, %v410_v27 }
  0x22   : > { %188 = vst.msk [vmem:[#allocation2 + $0x40] sm:$0xf] %vm170_vm0, %v12852_v26 }
  0x23   : > { %191 = vst.msk [vmem:[#allocation2 + $0x4c] sm:$0xf] %vm170_vm0, %v12852_v26 }
  0x24   : > { %193 = vst.msk [vmem:[#allocation2 + $0x54] sm:$0xf] %vm170_vm0, %v12852_v26 }
  0x25   : > { %194 = vst.msk [vmem:[#allocation2 + $0x58] sm:$0xf] %vm170_vm0, %v12852_v26 }
  0x26   : > { %196 = vst.msk [vmem:[#allocation2 + $0x60] sm:$0xf] %vm170_vm0, %v12852_v26 }
  0x27   : > { %9093 = vset.pattern.permute.xlu1 %v9373_v15  ;;  %9105 = vset.pattern.permute.xlu2 %v9373_v15  ;;  %197 = vst.msk [vmem:[#allocation2 + $0x64] sm:$0xf] %vm170_vm0, %v12852_v26 }
  0x28   : > { %9117 = vperm.xlu0 %9075, %v9116_v16   ;;  %199 = vst.msk [vmem:[#allocation2 + $0x6c] sm:$0xf] %vm170_vm0, %v12852_v26 }
  0x29   : > { %200 = vst.msk [vmem:[#allocation2 + $0x70] sm:$0xf] %vm170_vm0, %v12852_v26 }
  0x2a   : > { %202 = vst.msk [vmem:[#allocation2 + $0x78] sm:$0xf] %vm170_vm0, %v12852_v26 }
  0x2b   : > { %203 = vst.msk [vmem:[#allocation2 + $0x7c] sm:$0xf] %vm170_vm0, %v12852_v26 }
  0x2c   : > { %205 = vst.msk [vmem:[#allocation2 + $0x84] sm:$0xf] %vm170_vm0, %v12852_v26 }
  0x2d   : > { %206 = vst.msk [vmem:[#allocation2 + $0x88] sm:$0xf] %vm170_vm0, %v12852_v26 }
  0x2e   : > { %208 = vst.msk [vmem:[#allocation2 + $0x90] sm:$0xf] %vm170_vm0, %v12852_v26 }
  0x2f   : > { %9095 = vperm.xlu1 %9093, %v9082_v9   ;;  %9107 = vperm.xlu2 %9105, %v9088_v10   ;;  %209 = vst.msk [vmem:[#allocation2 + $0x94] sm:$0xf] %vm170_vm0, %v12852_v26 }
  0x30   : > { %9121 = vset.pattern.permute.xlu0 %v9373_v15  ;;  %211 = vst.msk [vmem:[#allocation2 + $0x9c] sm:$0xf] %vm170_vm0, %v12852_v26 }
  0x31   : > { %212 = vst.msk [vmem:[#allocation2 + $0xa0] sm:$0xf] %vm170_vm0, %v12852_v26 }
  0x32   : > { %214 = vst.msk [vmem:[#allocation2 + $0xa8] sm:$0xf] %vm170_vm0, %v12852_v26 }
  0x33   : > { %215 = vst.msk [vmem:[#allocation2 + $0xac] sm:$0xf] %vm170_vm0, %v12852_v26 }
  0x34   : > { %217 = vst.msk [vmem:[#allocation2 + $0xb4] sm:$0xf] %vm170_vm0, %v12852_v26 }
  0x35   : > { %218 = vst.msk [vmem:[#allocation2 + $0xb8] sm:$0xf] %vm170_vm0, %v12852_v26 }
  0x36   : > { %220 = vst.msk [vmem:[#allocation2 + $0xc0] sm:$0xf] %vm170_vm0, %v12852_v26 }
  0x37   : > { %9099 = vset.pattern.permute.xlu1 %v9359_v1  ;;  %9112 = vperm.xlu2 %9105, %v9111_v19   ;;  %221 = vst.msk [vmem:[#allocation2 + $0xc4] sm:$0xf] %vm170_vm0, %v12852_v26 }
  0x38   : > { %9123 = vperm.xlu0 %9121, %v9076_v12   ;;  %223 = vst.msk [vmem:[#allocation2 + $0xcc] sm:$0xf] %vm170_vm0, %v12852_v26 }
  0x39   : > { %224 = vst.msk [vmem:[#allocation2 + $0xd0] sm:$0xf] %vm170_vm0, %v12852_v26 }
  0x3a   : > { %189 = vst.msk [vmem:[#allocation2 + $0x44] sm:$0x1] %vm173_vm2, %v12852_v26 }
  0x3b   : > { %192 = vst.msk [vmem:[#allocation2 + $0x50] sm:$0x1] %vm173_vm2, %v12852_v26 }
  0x3c   : > { %174 = vst.msk [vmem:[#allocation2 + $0x8] sm:$0x1] %vm173_vm2, %v12852_v26 }
  0x3d   : > { %177 = vst.msk [vmem:[#allocation2 + $0x14] sm:$0x1] %vm173_vm2, %v12852_v26 }
  0x3e   : > { %180 = vst.msk [vmem:[#allocation2 + $0x20] sm:$0x1] %vm173_vm2, %v12852_v26 }
  0x3f   : > { %9101 = vperm.xlu1 %9099, %v9111_v19   ;;  %9133 = vset.pattern.permute.xlu2 %v9359_v1  ;;  %183 = vst.msk [vmem:[#allocation2 + $0x2c] sm:$0x1] %vm173_vm2, %v12852_v26 }
  0x40   : > { %9150 = vperm.xlu0 %9121, %v9149_v22   ;;  %186 = vst.msk [vmem:[#allocation2 + $0x38] sm:$0x1] %vm173_vm2, %v12852_v26 }
  0x41   : > { %195 = vst.msk [vmem:[#allocation2 + $0x5c] sm:$0x1] %vm173_vm2, %v12852_v26  ;;  %v830_v5 = vld [vmem:[#allocation2 + $0x44] sm:$0x1] }
  0x42   : > { %198 = vst.msk [vmem:[#allocation2 + $0x68] sm:$0x1] %vm173_vm2, %v12852_v26  ;;  %v837_v63 = vld [vmem:[#allocation2 + $0x50] sm:$0x1] }
  0x43   : > { %201 = vst.msk [vmem:[#allocation2 + $0x74] sm:$0x1] %vm173_vm2, %v12852_v26 }
  0x44   : > { %204 = vst.msk [vmem:[#allocation2 + $0x80] sm:$0x1] %vm173_vm2, %v12852_v26 }
  0x45   : > { %207 = vst.msk [vmem:[#allocation2 + $0x8c] sm:$0x1] %vm173_vm2, %v12852_v26 }
  0x46   : > { %210 = vst.msk [vmem:[#allocation2 + $0x98] sm:$0x1] %vm173_vm2, %v12852_v26 }
  0x47   : > { %9127 = vset.pattern.permute.xlu1 %v9373_v15  ;;  %9135 = vperm.xlu2 %9133, %v9134_v25   ;;  %213 = vst.msk [vmem:[#allocation2 + $0xa4] sm:$0x1] %vm173_vm2, %v12852_v26 }
  0x48   : > { %216 = vst.msk [vmem:[#allocation2 + $0xb0] sm:$0x1] %vm173_vm2, %v12852_v26 }
  0x49   : > { %219 = vst.msk [vmem:[#allocation2 + $0xbc] sm:$0x1] %vm173_vm2, %v12852_v26 }
  0x4a   : > { %222 = vst.msk [vmem:[#allocation2 + $0xc8] sm:$0x1] %vm173_vm2, %v12852_v26 }
  0x4b   : > { %225 = vst.msk [vmem:[#allocation2 + $0xd4] sm:$0x1] %vm173_vm2, %v12852_v26 }
  0x4f   : > { %9129 = vperm.xlu1 %9127, %v9116_v16   ;;  %9145 = vperm.xlu2 %9133, %v9149_v22  }
  0x57   : > { %9140 = vperm.xlu1 %9127, %v9134_v25   ;;  %9160 = vset.pattern.permute.xlu2 %v9373_v15 }
  0x5f   : > { %9154 = vset.pattern.permute.xlu1 %v9359_v1  ;;  %9162 = vperm.xlu2 %9160, %v9161_v29  }
  0x67   : > { %9156 = vperm.xlu1 %9154, %v9161_v29  }
  0x79   : > { %v9090_v30 = vpop.permute.xlu2 %9089 }
  0x7a   : > { %v9092_v31 = vunpack.i.h.bf16 %v9090_v30  ;;  %v9091_v32 = vunpack.i.l.bf16 %v9090_v30 }
  0x7c   : > { %v446_v33 = vpack.c.bf16 %v9092_v31, %v9092_v31  ;;  %v444_v34 = vpack.c.bf16 %v9091_v32, %v9091_v32 }
  0x7e   : > { %v557_v35 = vshrl.u32 %v446_v33, 16  ;;  %v560_v36 = vshll.u32 %v446_v33, 16  ;;  %v540_v37 = vshrl.u32 %v444_v34, 16  ;;  %v543_v38 = vshll.u32 %v444_v34, 16  ;;  %v812_v34 = vld [vmem:[#allocation2 + $0x24] sm:$0xf] }
  0x80   : > { %v9460_v39 = vrot.slane %v557_v35, 7  ;;  %v9462_v40 = vrot.slane %v540_v37, 7  ;;  %v819_v35 = vld [vmem:[#allocation2 + $0x30] sm:$0xf] }
  0x82   : > { %v562_v43 = vor.u32 %v560_v36, %v9460_v39  ;;  %v545_v44 = vor.u32 %v543_v38, %v9462_v40  ;;  %v563_v57 = vrot.slane %v9460_v39, 4  ;;  %v546_v60 = vrot.slane %v9462_v40, 4  ;;  %v844_v40 = vld [vmem:[#allocation2 + $0x5c] sm:$0x1] }
  0x84   : > { %v834_v46 = vsel %vm9474_vm4, %v562_v43, %v833_v42  ;;  %v827_v47 = vsel %vm9474_vm4, %v545_v44, %v826_v41  ;;  %v851_v41 = vld [vmem:[#allocation2 + $0x68] sm:$0x1] }
  0x85   : > { %835 = vst [vmem:[#allocation2 + $0x48] sm:$0xf] %v834_v46 }
  0x86   : > { %828 = vst [vmem:[#allocation2 + $0x3c] sm:$0xf] %v827_v47 }
  0x89   : > { %v9108_v48 = vpop.permute.xlu2 %9107 }
  0x8a   : > { %v9110_v49 = vunpack.i.h.bf16 %v9108_v48  ;;  %v9109_v50 = vunpack.i.l.bf16 %v9108_v48 }
  0x8c   : > { %v447_v51 = vpack.c.bf16 %v9110_v49, %v9110_v49  ;;  %v445_v52 = vpack.c.bf16 %v9109_v50, %v9109_v50 }
  0x8e   : > { %v565_v53 = vshrl.u32 %v447_v51, 16  ;;  %v568_v54 = vshll.u32 %v447_v51, 16  ;;  %v548_v55 = vshrl.u32 %v445_v52, 16  ;;  %v551_v56 = vshll.u32 %v445_v52, 16 }
  0x90   : > { %v567_v58 = vrot.slane %v565_v53, 7  ;;  %v550_v59 = vrot.slane %v548_v55, 7 }
  0x91   : > { %v9084_v61 = vpop.permute.xlu1 %9083  ;;  %v9113_v2 = vpop.permute.xlu2 %9112 }
  0x92   : > { %v9086_v3 = vunpack.i.h.bf16 %v9084_v61  ;;  %v9085_v4 = vunpack.i.l.bf16 %v9084_v61  ;;  %v570_v6 = vor.u32 %v568_v54, %v567_v58  ;;  %v572_v7 = vrot.slane %v567_v58, 4  ;;  %v9078_v8 = vpop.permute.xlu0 %9077 }
  0x93   : > { %v553_v10 = vor.u32 %v551_v56, %v550_v59  ;;  %v555_v11 = vrot.slane %v550_v59, 4  ;;  %v9115_v12 = vunpack.i.h.bf16 %v9113_v2  ;;  %v9114_v13 = vunpack.i.l.bf16 %v9113_v2  ;;  %v805_v2 = vld [vmem:[#allocation2 + $0x18] sm:$0xf] }
  0x94   : > { %v442_v14 = vpack.c.bf16 %v9086_v3, %v9086_v3  ;;  %v440_v16 = vpack.c.bf16 %v9085_v4, %v9085_v4  ;;  %v838_v17 = vsel %vm9520_vm9, %v572_v7, %v837_v63  ;;  %v571_v18 = vsel %vm9510_vm8, %v563_v57, %v570_v6 }
  0x95   : > { %839 = vst [vmem:[#allocation2 + $0x50] sm:$0x1] %v838_v17  ;;  %v554_v19 = vsel %vm9510_vm8, %v546_v60, %v553_v10  ;;  %v831_v20 = vsel %vm9520_vm9, %v555_v11, %v830_v5  ;;  %v9534_v21 = vpack.c.bf16 %v9115_v12, %v9115_v12  ;;  %v9536_v22 = vpack.c.bf16 %v9114_v13, %v9114_v13  ;;  %v795_v11 = vld [vmem:[#allocation2 + $0xc] sm:$0xf] }
  0x96   : > { %v523_v23 = vshrl.u32 %v442_v14, 16  ;;  %v506_v24 = vshrl.u32 %v440_v16, 16  ;;  %829 = vst.msk [vmem:[#allocation2 + $0x40] sm:$0xf] %vm792_vm1, %v554_v19  ;;  %v526_v25 = vshll.u32 %v442_v14, 16  ;;  %v509_v27 = vshll.u32 %v440_v16, 16 }
  0x97   : > { %832 = vst [vmem:[#allocation2 + $0x44] sm:$0x1] %v831_v20  ;;  %v599_v28 = vshrl.u32 %v9534_v21, 16  ;;  %v582_v29 = vshrl.u32 %v9536_v22, 16  ;;  %v9080_v32 = vunpack.i.h.bf16 %v9078_v8  ;;  %v9079_v33 = vunpack.i.l.bf16 %v9078_v8  ;;  %v854_v20 = vld [vmem:[#allocation2 + $0x6c] sm:$0xf] }
  0x98   : > { %v9541_v30 = vrot.slane %v523_v23, 7  ;;  %v9543_v31 = vrot.slane %v506_v24, 7  ;;  %836 = vst.msk [vmem:[#allocation2 + $0x4c] sm:$0xf] %vm792_vm1, %v571_v18  ;;  %v861_v23 = vld [vmem:[#allocation2 + $0x78] sm:$0xf] }
  0x99   : > { %v9546_v36 = vrot.slane %v599_v28, 7  ;;  %v9548_v37 = vrot.slane %v582_v29, 7  ;;  %v438_v47 = vpack.c.bf16 %v9080_v32, %v9080_v32  ;;  %v436_v48 = vpack.c.bf16 %v9079_v33, %v9079_v33 }
  0x9a   : > { %v528_v38 = vor.u32 %v526_v25, %v9541_v30  ;;  %v511_v39 = vor.u32 %v509_v27, %v9543_v31  ;;  %v9118_v49 = vpop.permute.xlu0 %9117  ;;  %v602_v33 = vshll.u32 %v9534_v21, 16 }
  0x9b   : > { %v606_v42 = vrot.slane %v9546_v36, 4  ;;  %v589_v43 = vrot.slane %v9548_v37, 4  ;;  %v9120_v52 = vunpack.i.h.bf16 %v9118_v49  ;;  %v9119_v53 = vunpack.i.l.bf16 %v9118_v49 }
  0x9c   : > { %v820_v44 = vsel %vm9474_vm4, %v528_v38, %v819_v35  ;;  %v813_v46 = vsel %vm9474_vm4, %v511_v39, %v812_v34  ;;  %v489_v54 = vshrl.u32 %v438_v47, 16  ;;  %v492_v55 = vshll.u32 %v438_v47, 16  ;;  %v816_v34 = vld [vmem:[#allocation2 + $0x2c] sm:$0x1]  ;;  %v823_v35 = vld [vmem:[#allocation2 + $0x38] sm:$0x1] }
  0x9d   : > { %821 = vst [vmem:[#allocation2 + $0x30] sm:$0xf] %v820_v44  ;;  %v852_v50 = vsel %vm9520_vm9, %v606_v42, %v851_v41  ;;  %v845_v51 = vsel %vm9520_vm9, %v589_v43, %v844_v40  ;;  %v472_v56 = vshrl.u32 %v436_v48, 16  ;;  %v475_v57 = vshll.u32 %v436_v48, 16 }
  0x9e   : > { %814 = vst [vmem:[#allocation2 + $0x24] sm:$0xf] %v813_v46  ;;  %v454_v58 = vpack.c.bf16 %v9120_v52, %v9120_v52  ;;  %v452_v59 = vpack.c.bf16 %v9119_v53, %v9119_v53  ;;  %v9562_v60 = vrot.slane %v489_v54, 7  ;;  %v529_v47 = vrot.slane %v9541_v30, 4 }
  0x9f   : > { %853 = vst [vmem:[#allocation2 + $0x68] sm:$0x1] %v852_v50  ;;  %v9564_v61 = vrot.slane %v472_v56, 7  ;;  %v512_v48 = vrot.slane %v9543_v31, 4 }
  0xa0   : > { %846 = vst [vmem:[#allocation2 + $0x5c] sm:$0x1] %v845_v51  ;;  %v625_v3 = vshrl.u32 %v454_v58, 16  ;;  %v628_v4 = vshll.u32 %v454_v58, 16  ;;  %v608_v5 = vshrl.u32 %v452_v59, 16  ;;  %v611_v6 = vshll.u32 %v452_v59, 16 }
  0xa1   : > { %v9096_v63 = vpop.permute.xlu1 %9095  ;;  %v9136_v7 = vpop.permute.xlu2 %9135  ;;  %v494_v12 = vor.u32 %v492_v55, %v9562_v60  ;;  %v477_v13 = vor.u32 %v475_v57, %v9564_v61 }
  0xa2   : > { %v9098_v8 = vunpack.i.h.bf16 %v9096_v63  ;;  %v9097_v10 = vunpack.i.l.bf16 %v9096_v63  ;;  %v9568_v14 = vrot.slane %v625_v3, 7  ;;  %v9570_v16 = vrot.slane %v608_v5, 7 }
  0xa3   : > { %v806_v19 = vsel %vm9474_vm4, %v494_v12, %v805_v2  ;;  %v9138_v24 = vunpack.i.h.bf16 %v9136_v7  ;;  %v796_v25 = vsel %vm9474_vm4, %v477_v13, %v795_v11  ;;  %v9137_v46 = vunpack.i.l.bf16 %v9136_v7 }
  0xa4   : > { %v443_v17 = vpack.c.bf16 %v9098_v8, %v9098_v8  ;;  %v441_v18 = vpack.c.bf16 %v9097_v10, %v9097_v10  ;;  %807 = vst [vmem:[#allocation2 + $0x18] sm:$0xf] %v806_v19  ;;  %v630_v27 = vor.u32 %v628_v4, %v9568_v14  ;;  %v613_v28 = vor.u32 %v611_v6, %v9570_v16  ;;  %v875_v4 = vld [vmem:[#allocation2 + $0x90] sm:$0xf] }
  0xa5   : > { %797 = vst [vmem:[#allocation2 + $0xc] sm:$0xf] %v796_v25  ;;  %v458_v41 = vpack.c.bf16 %v9138_v24, %v9138_v24  ;;  %v456_v57 = vpack.c.bf16 %v9137_v46, %v9137_v46  ;;  %v585_v3 = vshll.u32 %v9536_v22, 16 }
  0xa6   : > { %v531_v29 = vshrl.u32 %v443_v17, 16  ;;  %v514_v32 = vshrl.u32 %v441_v18, 16  ;;  %v534_v38 = vshll.u32 %v443_v17, 16  ;;  %v862_v39 = vsel %vm9474_vm4, %v630_v27, %v861_v23 }
  0xa7   : > { %v855_v40 = vsel %vm9474_vm4, %v613_v28, %v854_v20  ;;  %v517_v44 = vshll.u32 %v441_v18, 16  ;;  %863 = vst [vmem:[#allocation2 + $0x78] sm:$0xf] %v862_v39  ;;  %v659_v49 = vshrl.u32 %v458_v41, 16  ;;  %v662_v50 = vshll.u32 %v458_v41, 16 }
  0xa8   : > { %v533_v42 = vrot.slane %v531_v29, 7  ;;  %v516_v43 = vrot.slane %v514_v32, 7  ;;  %856 = vst [vmem:[#allocation2 + $0x6c] sm:$0xf] %v855_v40  ;;  %v642_v7 = vshrl.u32 %v456_v57, 16  ;;  %v645_v8 = vshll.u32 %v456_v57, 16 }
  0xa9   : > { %v9585_v56 = vrot.slane %v659_v49, 7  ;;  %v9146_v63 = vpop.permute.xlu2 %9145  ;;  %v495_v17 = vrot.slane %v9562_v60, 4  ;;  %v868_v18 = vld [vmem:[#allocation2 + $0x84] sm:$0xf]  ;;  %v478_v23 = vrot.slane %v9564_v61, 4 }
  0xaa   : > { %v536_v51 = vor.u32 %v534_v38, %v533_v42  ;;  %v538_v52 = vrot.slane %v533_v42, 4  ;;  %v519_v53 = vor.u32 %v517_v44, %v516_v43  ;;  %v521_v54 = vrot.slane %v516_v43, 4  ;;  %v9124_v55 = vpop.permute.xlu0 %9123  ;;  %v802_v42 = vld [vmem:[#allocation2 + $0x14] sm:$0x1] }
  0xab   : > { %v9126_v58 = vunpack.i.h.bf16 %v9124_v55  ;;  %v9125_v59 = vunpack.i.l.bf16 %v9124_v55  ;;  %v664_v6 = vor.u32 %v662_v50, %v9585_v56  ;;  %v9148_v12 = vunpack.i.h.bf16 %v9146_v63 }
  0xac   : > { %v824_v2 = vsel %vm9520_vm9, %v538_v52, %v823_v35  ;;  %v520_v30 = vsel %vm9510_vm8, %v512_v48, %v519_v53  ;;  %v817_v31 = vsel %vm9520_vm9, %v521_v54, %v816_v34  ;;  %v537_v5 = vsel %vm9510_vm8, %v529_v47, %v536_v51  ;;  %v809_v48 = vld [vmem:[#allocation2 + $0x20] sm:$0x1] }
  0xad   : > { %825 = vst [vmem:[#allocation2 + $0x38] sm:$0x1] %v824_v2  ;;  %v439_v10 = vpack.c.bf16 %v9126_v58, %v9126_v58  ;;  %v437_v11 = vpack.c.bf16 %v9125_v59, %v9125_v59  ;;  %v9147_v13 = vunpack.i.l.bf16 %v9146_v63  ;;  %v876_v19 = vsel %vm9474_vm4, %v664_v6, %v875_v4  ;;  %v840_v2 = vld [vmem:[#allocation2 + $0x54] sm:$0xf]  ;;  %v889_v6 = vld [vmem:[#allocation2 + $0xa8] sm:$0xf] }
  0xae   : > { %815 = vst.msk [vmem:[#allocation2 + $0x28] sm:$0xf] %vm792_vm1, %v520_v30  ;;  %v9601_v20 = vrot.slane %v642_v7, 7  ;;  %v462_v34 = vpack.c.bf16 %v9148_v12, %v9148_v12  ;;  %v604_v51 = vor.u32 %v602_v33, %v9546_v36 }
  0xaf   : > { %818 = vst [vmem:[#allocation2 + $0x2c] sm:$0x1] %v817_v31  ;;  %v497_v24 = vshrl.u32 %v439_v10, 16  ;;  %v500_v25 = vshll.u32 %v439_v10, 16  ;;  %v480_v27 = vshrl.u32 %v437_v11, 16  ;;  %v483_v32 = vshll.u32 %v437_v11, 16 }
  0xb0   : > { %822 = vst.msk [vmem:[#allocation2 + $0x34] sm:$0xf] %vm792_vm1, %v537_v5  ;;  %v647_v29 = vor.u32 %v645_v8, %v9601_v20  ;;  %v460_v60 = vpack.c.bf16 %v9147_v13, %v9147_v13  ;;  %v693_v43 = vshrl.u32 %v462_v34, 16  ;;  %v696_v61 = vshll.u32 %v462_v34, 16  ;;  %v847_v10 = vld [vmem:[#allocation2 + $0x60] sm:$0xf] }
  0xb1   : > { %v9102_v28 = vpop.permute.xlu1 %9101  ;;  %877 = vst [vmem:[#allocation2 + $0x90] sm:$0xf] %v876_v19  ;;  %v499_v39 = vrot.slane %v497_v24, 7  ;;  %v482_v40 = vrot.slane %v480_v27, 7  ;;  %v587_v8 = vor.u32 %v585_v3, %v9548_v37 }
  0xb2   : > { %v9104_v35 = vunpack.i.h.bf16 %v9102_v28  ;;  %v9103_v38 = vunpack.i.l.bf16 %v9102_v28  ;;  %v869_v41 = vsel %vm9474_vm4, %v647_v29, %v868_v18  ;;  %v676_v44 = vshrl.u32 %v460_v60, 16  ;;  %v9151_v63 = vpop.permute.xlu0 %9150 }
  0xb3   : > { %870 = vst [vmem:[#allocation2 + $0x84] sm:$0xf] %v869_v41  ;;  %v502_v49 = vor.u32 %v500_v25, %v499_v39  ;;  %v504_v50 = vrot.slane %v499_v39, 4  ;;  %v485_v52 = vor.u32 %v483_v32, %v482_v40  ;;  %v487_v53 = vrot.slane %v482_v40, 4 }
  0xb4   : > { %v450_v46 = vpack.c.bf16 %v9104_v35, %v9104_v35  ;;  %v448_v47 = vpack.c.bf16 %v9103_v38, %v9103_v38  ;;  %v9611_v54 = vrot.slane %v693_v43, 7  ;;  %v9613_v59 = vrot.slane %v676_v44, 7 }
  0xb5   : > { %v810_v31 = vsel %vm9520_vm9, %v504_v50, %v809_v48  ;;  %v486_v4 = vsel %vm9510_vm8, %v478_v23, %v485_v52  ;;  %v803_v21 = vsel %vm9520_vm9, %v487_v53, %v802_v42  ;;  %v503_v5 = vsel %vm9510_vm8, %v495_v17, %v502_v49  ;;  %v882_v17 = vld [vmem:[#allocation2 + $0x9c] sm:$0xf] }
  0xb6   : > { %v591_v55 = vshrl.u32 %v450_v46, 16  ;;  %v594_v57 = vshll.u32 %v450_v46, 16  ;;  %v574_v58 = vshrl.u32 %v448_v47, 16  ;;  %v577_v30 = vshll.u32 %v448_v47, 16  ;;  %811 = vst [vmem:[#allocation2 + $0x20] sm:$0x1] %v810_v31 }
  0xb7   : > { %v698_v7 = vor.u32 %v696_v61, %v9611_v54  ;;  %799 = vst.msk [vmem:[#allocation2 + $0x10] sm:$0xf] %vm792_vm1, %v486_v4  ;;  %v679_v11 = vshll.u32 %v460_v60, 16  ;;  %v9153_v12 = vunpack.i.h.bf16 %v9151_v63  ;;  %v9152_v13 = vunpack.i.l.bf16 %v9151_v63  ;;  %v893_v47 = vld [vmem:[#allocation2 + $0xb0] sm:$0x1] }
  0xb8   : > { %v593_v36 = vrot.slane %v591_v55, 7  ;;  %v576_v33 = vrot.slane %v574_v58, 7  ;;  %804 = vst [vmem:[#allocation2 + $0x14] sm:$0x1] %v803_v21  ;;  %v699_v43 = vrot.slane %v9611_v54, 4  ;;  %v682_v61 = vrot.slane %v9613_v59, 4 }
  0xb9   : > { %808 = vst.msk [vmem:[#allocation2 + $0x1c] sm:$0xf] %vm792_vm1, %v503_v5  ;;  %v890_v25 = vsel %vm9474_vm4, %v698_v7, %v889_v6  ;;  %v681_v22 = vor.u32 %v679_v11, %v9613_v59  ;;  %v463_v37 = vpack.c.bf16 %v9153_v12, %v9153_v12  ;;  %v461_v3 = vpack.c.bf16 %v9152_v13, %v9152_v13  ;;  %v9163_v27 = vpop.permute.xlu2 %9162  ;;  %v907_v7 = vld [vmem:[#allocation2 + $0xc8] sm:$0x1] }
  0xba   : > { %v596_v18 = vor.u32 %v594_v57, %v593_v36  ;;  %v597_v19 = vrot.slane %v593_v36, 4  ;;  %v579_v23 = vor.u32 %v577_v30, %v576_v33  ;;  %v580_v24 = vrot.slane %v576_v33, 4  ;;  %891 = vst [vmem:[#allocation2 + $0xa8] sm:$0xf] %v890_v25 }
  0xbb   : > { %v701_v60 = vshrl.u32 %v463_v37, 16  ;;  %v704_v35 = vshll.u32 %v463_v37, 16  ;;  %v684_v38 = vshrl.u32 %v461_v3, 16  ;;  %v883_v39 = vsel %vm9474_vm4, %v681_v22, %v882_v17  ;;  %v865_v17 = vld [vmem:[#allocation2 + $0x80] sm:$0x1] }
  0xbc   : > { %v605_v28 = vsel %vm9510_vm8, %v597_v19, %v604_v51  ;;  %v848_v29 = vsel %vm9474_vm4, %v596_v18, %v847_v10  ;;  %v841_v32 = vsel %vm9474_vm4, %v579_v23, %v840_v2  ;;  %v588_v34 = vsel %vm9510_vm8, %v580_v24, %v587_v8  ;;  %884 = vst [vmem:[#allocation2 + $0x9c] sm:$0xf] %v883_v39  ;;  %v886_v51 = vld [vmem:[#allocation2 + $0xa4] sm:$0x1]  ;;  %v900_v19 = vld [vmem:[#allocation2 + $0xbc] sm:$0x1] }
  0xbd   : > { %849 = vst [vmem:[#allocation2 + $0x60] sm:$0xf] %v848_v29  ;;  %v687_v40 = vshll.u32 %v461_v3, 16  ;;  %v9165_v41 = vunpack.i.h.bf16 %v9163_v27  ;;  %v9164_v42 = vunpack.i.l.bf16 %v9163_v27  ;;  %v703_v44 = vrot.slane %v701_v60, 7  ;;  %v858_v24 = vld [vmem:[#allocation2 + $0x74] sm:$0x1] }
  0xbe   : > { %850 = vst.msk [vmem:[#allocation2 + $0x64] sm:$0xf] %vm792_vm1, %v605_v28  ;;  %v686_v46 = vrot.slane %v684_v38, 7  ;;  %v614_v23 = vrot.slane %v9570_v16, 4 }
  0xbf   : > { %842 = vst [vmem:[#allocation2 + $0x54] sm:$0xf] %v841_v32  ;;  %v9646_v48 = vpack.c.bf16 %v9165_v41, %v9165_v41  ;;  %v9648_v49 = vpack.c.bf16 %v9164_v42, %v9164_v42  ;;  %v706_v52 = vor.u32 %v704_v35, %v703_v44  ;;  %v708_v53 = vrot.slane %v703_v44, 4 }
  0xc0   : > { %843 = vst.msk [vmem:[#allocation2 + $0x58] sm:$0xf] %vm792_vm1, %v588_v34  ;;  %v689_v55 = vor.u32 %v687_v40, %v686_v46  ;;  %v691_v57 = vrot.slane %v686_v46, 4  ;;  %v631_v32 = vrot.slane %v9568_v14, 4 }
  0xc1   : > { %v9130_v50 = vpop.permute.xlu1 %9129  ;;  %v735_v59 = vshrl.u32 %v9646_v48, 16  ;;  %v707_v63 = vsel %vm9510_vm8, %v699_v43, %v706_v52  ;;  %v894_v2 = vsel %vm9520_vm9, %v708_v53, %v893_v47  ;;  %v718_v36 = vshrl.u32 %v9648_v49, 16  ;;  %v879_v52 = vld [vmem:[#allocation2 + $0x98] sm:$0x1]  ;;  %v872_v53 = vld [vmem:[#allocation2 + $0x8c] sm:$0x1] }
  0xc2   : > { %v9132_v58 = vunpack.i.h.bf16 %v9130_v50  ;;  %v9131_v54 = vunpack.i.l.bf16 %v9130_v50  ;;  %v690_v30 = vsel %vm9510_vm8, %v682_v61, %v689_v55  ;;  %892 = vst.msk [vmem:[#allocation2 + $0xac] sm:$0xf] %vm792_vm1, %v707_v63  ;;  %v887_v21 = vsel %vm9520_vm9, %v691_v57, %v886_v51 }
  0xc3   : > { %895 = vst [vmem:[#allocation2 + $0xb0] sm:$0x1] %v894_v2  ;;  %v9661_v33 = vrot.slane %v735_v59, 7  ;;  %v9665_v10 = vrot.slane %v718_v36, 7  ;;  %v665_v50 = vrot.slane %v9585_v56, 4  ;;  %v648_v51 = vrot.slane %v9601_v20, 4 }
  0xc4   : > { %v455_v31 = vpack.c.bf16 %v9132_v58, %v9132_v58  ;;  %v453_v4 = vpack.c.bf16 %v9131_v54, %v9131_v54  ;;  %885 = vst.msk [vmem:[#allocation2 + $0xa0] sm:$0xf] %vm792_vm1, %v690_v30  ;;  %v738_v36 = vshll.u32 %v9646_v48, 16 }
  0xc5   : > { %888 = vst [vmem:[#allocation2 + $0xa4] sm:$0x1] %v887_v21  ;;  %v742_v8 = vrot.slane %v9661_v33, 4  ;;  %v725_v37 = vrot.slane %v9665_v10, 4 }
  0xc6   : > { %v633_v5 = vshrl.u32 %v455_v31, 16  ;;  %v616_v6 = vshrl.u32 %v453_v4, 16  ;;  %v636_v12 = vshll.u32 %v455_v31, 16  ;;  %v619_v18 = vshll.u32 %v453_v4, 16 }
  0xc7   : > { %v908_v22 = vsel %vm9520_vm9, %v742_v8, %v907_v7  ;;  %v901_v16 = vsel %vm9520_vm9, %v725_v37, %v900_v19  ;;  %v721_v7 = vshll.u32 %v9648_v49, 16  ;;  %v903_v19 = vld [vmem:[#allocation2 + $0xc0] sm:$0xf] }
  0xc8   : > { %v635_v11 = vrot.slane %v633_v5, 7  ;;  %v618_v13 = vrot.slane %v616_v6, 7  ;;  %909 = vst [vmem:[#allocation2 + $0xc8] sm:$0x1] %v908_v22 }
  0xc9   : > { %v9141_v25 = vpop.permute.xlu1 %9140  ;;  %902 = vst [vmem:[#allocation2 + $0xbc] sm:$0x1] %v901_v16  ;;  %v723_v22 = vor.u32 %v721_v7, %v9665_v10 }
  0xca   : > { %v638_v3 = vor.u32 %v636_v12, %v635_v11  ;;  %v640_v27 = vrot.slane %v635_v11, 4  ;;  %v621_v28 = vor.u32 %v619_v18, %v618_v13  ;;  %v623_v29 = vrot.slane %v618_v13, 4  ;;  %v896_v18 = vld [vmem:[#allocation2 + $0xb4] sm:$0xf] }
  0xcb   : > { %v9143_v34 = vunpack.i.h.bf16 %v9141_v25  ;;  %v9142_v60 = vunpack.i.l.bf16 %v9141_v25  ;;  %v740_v13 = vor.u32 %v738_v36, %v9661_v33 }
  0xcc   : > { %v866_v35 = vsel %vm9520_vm9, %v640_v27, %v865_v17  ;;  %v622_v38 = vsel %vm9510_vm8, %v614_v23, %v621_v28  ;;  %v859_v39 = vsel %vm9520_vm9, %v623_v29, %v858_v24  ;;  %v639_v40 = vsel %vm9510_vm8, %v631_v32, %v638_v3 }
  0xcd   : > { %867 = vst [vmem:[#allocation2 + $0x80] sm:$0x1] %v866_v35  ;;  %v459_v14 = vpack.c.bf16 %v9143_v34, %v9143_v34  ;;  %v457_v41 = vpack.c.bf16 %v9142_v60, %v9142_v60 }
  0xce   : > { %857 = vst.msk [vmem:[#allocation2 + $0x70] sm:$0xf] %vm792_vm1, %v622_v38 }
  0xcf   : > { %860 = vst [vmem:[#allocation2 + $0x74] sm:$0x1] %v859_v39  ;;  %v667_v42 = vshrl.u32 %v459_v14, 16  ;;  %v650_v43 = vshrl.u32 %v457_v41, 16  ;;  %v670_v44 = vshll.u32 %v459_v14, 16  ;;  %v653_v47 = vshll.u32 %v457_v41, 16 }
  0xd0   : > { %864 = vst.msk [vmem:[#allocation2 + $0x7c] sm:$0xf] %vm792_vm1, %v639_v40 }
  0xd1   : > { %v669_v61 = vrot.slane %v667_v42, 7  ;;  %v652_v46 = vrot.slane %v650_v43, 7 }
  0xd3   : > { %v672_v55 = vor.u32 %v670_v44, %v669_v61  ;;  %v674_v57 = vrot.slane %v669_v61, 4  ;;  %v655_v58 = vor.u32 %v653_v47, %v652_v46  ;;  %v657_v54 = vrot.slane %v652_v46, 4 }
  0xd5   : > { %v673_v59 = vsel %vm9510_vm8, %v665_v50, %v672_v55  ;;  %v880_v63 = vsel %vm9520_vm9, %v674_v57, %v879_v52  ;;  %v656_v2 = vsel %vm9510_vm8, %v648_v51, %v655_v58  ;;  %v873_v56 = vsel %vm9520_vm9, %v657_v54, %v872_v53 }
  0xd6   : > { %878 = vst.msk [vmem:[#allocation2 + $0x94] sm:$0xf] %vm792_vm1, %v673_v59 }
  0xd7   : > { %881 = vst [vmem:[#allocation2 + $0x98] sm:$0x1] %v880_v63 }
  0xd8   : > { %871 = vst.msk [vmem:[#allocation2 + $0x88] sm:$0xf] %vm792_vm1, %v656_v2 }
  0xd9   : > { %874 = vst [vmem:[#allocation2 + $0x8c] sm:$0x1] %v873_v56  ;;  %v9157_v20 = vpop.permute.xlu1 %9156 }
  0xda   : > { %v9159_v30 = vunpack.i.h.bf16 %v9157_v20  ;;  %v9158_v31 = vunpack.i.l.bf16 %v9157_v20 }
  0xdc   : > { %v466_v4 = vpack.c.bf16 %v9159_v30, %v9159_v30  ;;  %v464_v21 = vpack.c.bf16 %v9158_v31, %v9158_v31 }
  0xde   : > { %v727_v5 = vshrl.u32 %v466_v4, 16  ;;  %v710_v6 = vshrl.u32 %v464_v21, 16  ;;  %v730_v11 = vshll.u32 %v466_v4, 16  ;;  %v713_v9 = vshll.u32 %v464_v21, 16 }
  0xe0   : > { %v729_v8 = vrot.slane %v727_v5, 7  ;;  %v712_v12 = vrot.slane %v710_v6, 7 }
  0xe2   : > { %v732_v23 = vor.u32 %v730_v11, %v729_v8  ;;  %v733_v24 = vrot.slane %v729_v8, 4  ;;  %v715_v17 = vor.u32 %v713_v9, %v712_v12  ;;  %v716_v25 = vrot.slane %v712_v12, 4 }
  0xe4   : > { %v741_v48 = vsel %vm9510_vm8, %v733_v24, %v740_v13  ;;  %v904_v49 = vsel %vm9474_vm4, %v732_v23, %v903_v19  ;;  %v897_v37 = vsel %vm9474_vm4, %v715_v17, %v896_v18  ;;  %v724_v33 = vsel %vm9510_vm8, %v716_v25, %v723_v22 }
  0xe5   : > { %905 = vst [vmem:[#allocation2 + $0xc0] sm:$0xf] %v904_v49 }
  0xe6   : > { %906 = vst.msk [vmem:[#allocation2 + $0xc4] sm:$0xf] %vm792_vm1, %v741_v48 }
  0xe7   : > { %898 = vst [vmem:[#allocation2 + $0xb4] sm:$0xf] %v897_v37 }
  0xe8   : > { %899 = vst.msk [vmem:[#allocation2 + $0xb8] sm:$0xf] %vm792_vm1, %v724_v33 }
  0xe9 LB: >> { %v1016_v45 = vld [vmem:[#allocation2 + $0x90] sm:$0xf]  ;;  %v1017_v10 = vld [vmem:[#allocation2 + $0x94] sm:$0xf]  ;;  %vm1028_vm10 = vsmask.f32 3328  ;;  %vm10734_vm6 = vmand %vm170_vm0, %vm793_vm3  ;;  %s9283_s5 = sphi %s9713_s5, %s915_s5  }
  0xea   : >> { %vm1029_vm11 = vsmask.f32 7440  ;;  %v1320_v3 = vshrl.u32 %v1016_v45, 16  ;;  %v1323_v27 = vshll.u32 %v1016_v45, 16  ;;  %v1329_v28 = vshll.u32 %v1017_v10, 16  ;;  %s9286_s6 = smov 64   ;;  %vm10762_vm7 = vmand %vm173_vm2, %vm468_vm5 }
  0xeb   : >> { %v1004_v29 = vld [vmem:[#allocation2 + $0x60] sm:$0xf]  ;;  %v1005_v32 = vld [vmem:[#allocation2 + $0x64] sm:$0xf]  ;;  %v1333_v34 = vshrl.u32 %v1017_v10, 16  ;;  %vm9720_vm12 = vmor %vm1028_vm10, %vm1029_vm11  ;;  %s8844_s7 = smul.u32 288, %s9283_s5 }
  0xec   : >> { %v1322_v60 = vrot.slane %v1320_v3, 4  ;;  %v1325_v16 = vrot.slane %v1323_v27, 5  ;;  %v1331_v35 = vrot.slane %v1329_v28, 5  ;;  %v1224_v38 = vshrl.u32 %v1004_v29, 16  ;;  %v1018_v39 = vld [vmem:[#allocation2 + $0x98] sm:$0x1] }
  0xed   : >> { %v1227_v40 = vshll.u32 %v1004_v29, 16  ;;  %v1233_v14 = vshll.u32 %v1005_v32, 16  ;;  %v1335_v41 = vrot.slane %v1333_v34, 4  ;;  %v1339_v42 = vshll.u32 %v1018_v39, 16  ;;  %v1006_v43 = vld [vmem:[#allocation2 + $0x68] sm:$0x1]  ;;  %s9811_s10 = scalar_lea.vmem %s12848_s1, %s8844_s7 }
  0xee   : >> { %v1326_v61 = vor.u32 %v1325_v16, %v1322_v60  ;;  %v1226_v44 = vrot.slane %v1224_v38, 4  ;;  %v1237_v46 = vshrl.u32 %v1005_v32, 16  ;;  %v992_v47 = vld [vmem:[#allocation2 + $0x30] sm:$0xf]  ;;  %v1243_v55 = vshll.u32 %v1006_v43, 16  ;;  %s915_s5 = sadd.s32 1, %s9283_s5  }
  0xef   : >> { %v1229_v51 = vrot.slane %v1227_v40, 5  ;;  %v1235_v52 = vrot.slane %v1233_v14, 5  ;;  %v1336_v53 = vor.u32 %v1335_v41, %v1331_v35  ;;  %v993_v57 = vld [vmem:[#allocation2 + $0x34] sm:$0xf]  ;;  %v1341_v54 = vrot.slane %v1339_v42, 5  ;;  %p912_p11 = scmp.ge.s32.totalorder %s915_s5, 19  }
  0xf0   : >> { %v1327_v58 = vrot.slane %v1326_v61, 4  ;;  %v1239_v59 = vrot.slane %v1237_v46, 4  ;;  %v1128_v63 = vshrl.u32 %v992_v47, 16  ;;  %v981_v2 = vld [vmem:[#allocation2 + $0x4] sm:$0xf]  ;;  %v1131_v30 = vshll.u32 %v992_v47, 16 }
  0xf1   : >> { %v1230_v56 = vor.u32 %v1229_v51, %v1226_v44  ;;  %v1337_v20 = vrot.slane %v1336_v53, 4  ;;  %v1137_v31 = vshll.u32 %v993_v57, 16  ;;  %v1041_v5 = vshll.u32 %v981_v2, 16  ;;  %v980_v6 = vld [vmem:[#allocation2] sm:$0xf]  ;;  %s8150_s8 = sshll.u32 (%p912_p11), %s9711_s4, 4  ;;  %s8151_s8 = int_to_ptr.vmem [resolvable:$true] %s8150_s8 }
  0xf2   : >> { %v1332_v4 = vsel %vm9720_vm12, %v1327_v58, %v1331_v35  ;;  %v1240_v21 = vor.u32 %v1239_v59, %v1235_v52  ;;  %v1130_v36 = vrot.slane %v1128_v63, 4  ;;  %v1245_v8 = vrot.slane %v1243_v55, 5  ;;  %v982_v12 = vld [vmem:[#allocation2 + $0x8] sm:$0x1]  ;;  %v994_v23 = vld [vmem:[#allocation2 + $0x38] sm:$0x1] }
  0xf3   : >> { %1463 = vrot.lane.b32.xlu1 %v1332_v4, %s9286_s6  ;;  %v1231_v7 = vrot.slane %v1230_v56, 4  ;;  %v1133_v11 = vrot.slane %v1131_v30, 5  ;;  %v1342_v9 = vsel %vm9720_vm12, %v1337_v20, %v1341_v54  ;;  %v1139_v13 = vrot.slane %v1137_v31, 5  ;;  %v1019_v48 = vld [vmem:[#allocation2 + $0x9c] sm:$0xf]  ;;  %s9233_s20 = scalar_lea.hbm (%p912_p11), %s12850_s3, 32 }
  0xf4   : >> { %v9729_v18 = vrot.slane %v1041_v5, 5  ;;  %v1045_v19 = vshrl.u32 %v981_v2, 16  ;;  %v1032_v25 = vshrl.u32 %v980_v6, 16  ;;  %v1035_v22 = vshll.u32 %v980_v6, 16  ;;  %v1008_v16 = vld [vmem:[#allocation2 + $0x70] sm:$0xf] }
  0xf5   : >> { %v1236_v24 = vsel %vm9720_vm12, %v1231_v7, %v1235_v52  ;;  %v1134_v17 = vor.u32 %v1133_v11, %v1130_v36  ;;  %v1241_v49 = vrot.slane %v1240_v21, 4  ;;  %v1051_v33 = vshll.u32 %v982_v12, 16  ;;  %v1020_v46 = vld [vmem:[#allocation2 + $0xa0] sm:$0xf]  ;;  %v1007_v53 = vld [vmem:[#allocation2 + $0x6c] sm:$0xf] }
  0xf6   : >> { %1447 = vrot.lane.b32.xlu0 %v1236_v24, %s9286_s6  ;;  %v1047_v37 = vrot.slane %v1045_v19, 4  ;;  %v1141_v45 = vshrl.u32 %v993_v57, 16  ;;  %v1034_v3 = vrot.slane %v1032_v25, 4  ;;  %v1037_v27 = vrot.slane %v1035_v22, 5  ;;  %v996_v52 = vld [vmem:[#allocation2 + $0x40] sm:$0xf] }
  0xf7   : >> { %v1135_v10 = vrot.slane %v1134_v17, 4  ;;  %v1147_v28 = vshll.u32 %v994_v23, 16  ;;  %v1344_v34 = vshrl.u32 %v1019_v48, 16  ;;  %v1347_v60 = vshll.u32 %v1019_v48, 16  ;;  %v1009_v55 = vld [vmem:[#allocation2 + $0x74] sm:$0x1] }
  0xf8   : >> { %v1048_v29 = vor.u32 %v1047_v37, %v9729_v18  ;;  %v1143_v32 = vrot.slane %v1141_v45, 4  ;;  %v1246_v38 = vsel %vm9720_vm12, %v1241_v49, %v1245_v8  ;;  %v1053_v39 = vrot.slane %v1051_v33, 5  ;;  %v995_v56 = vld [vmem:[#allocation2 + $0x3c] sm:$0xf]  ;;  %v1010_v24 = vld [vmem:[#allocation2 + $0x78] sm:$0xf] }
  0xf9   : >> { %v1140_v35 = vsel %vm9720_vm12, %v1135_v10, %v1139_v13  ;;  %v1038_v40 = vor.u32 %v1037_v27, %v1034_v3  ;;  %v1149_v42 = vrot.slane %v1147_v28, 5  ;;  %v1257_v43 = vshll.u32 %v1008_v16, 16  ;;  %v997_v17 = vld [vmem:[#allocation2 + $0x44] sm:$0x1]  ;;  %v1849_v26 = vld [vmem:[#allocation2 + $0xc0] sm:$0xf] }
  0xfa   : >> { %1431 = vrot.lane.b32.xlu2 %v1140_v35, %s9286_s6  ;;  %v1144_v14 = vor.u32 %v1143_v32, %v1139_v13  ;;  %v1049_v41 = vrot.slane %v1048_v29, 4  ;;  %v1261_v61 = vshrl.u32 %v1008_v16, 16  ;;  %v1346_v47 = vrot.slane %v1344_v34, 4  ;;  %v1021_v22 = vld [vmem:[#allocation2 + $0xa4] sm:$0x1] }
  0xfb   : >> { %1465 = vrot.lane.b32.xlu1 %v1342_v9, %s9286_s6  ;;  %v1349_v51 = vrot.slane %v1347_v60, 5  ;;  %v1259_v57 = vrot.slane %v1257_v43, 5  ;;  %v1039_v59 = vrot.slane %v1038_v40, 4  ;;  %v1353_v2 = vshll.u32 %v1020_v46, 16  ;;  %v983_v35 = vld [vmem:[#allocation2 + $0xc] sm:$0xf] }
  0xfc   : >> { %v1145_v44 = vrot.slane %v1144_v14, 4  ;;  %v1263_v58 = vrot.slane %v1261_v61, 4  ;;  %v1054_v54 = vsel %vm9720_vm12, %v1049_v41, %v1053_v39  ;;  %v1161_v30 = vshll.u32 %v996_v52, 16  ;;  %v1011_v41 = vld [vmem:[#allocation2 + $0x7c] sm:$0xf] }
  0xfd   : >> { %v1350_v20 = vor.u32 %v1349_v51, %v1346_v47  ;;  %v1165_v31 = vshrl.u32 %v996_v52, 16  ;;  %v1248_v4 = vshrl.u32 %v1007_v53, 16  ;;  %v1267_v21 = vshll.u32 %v1009_v55, 16  ;;  %v1568_v1 = vld [vmem:[#allocation2 + $0x60] sm:$0xe] }
  0xfe   : >> { %1449 = vrot.lane.b32.xlu0 %v1246_v38, %s9286_s6  ;;  %v1150_v63 = vsel %vm9720_vm12, %v1145_v44, %v1149_v42  ;;  %v1251_v36 = vshll.u32 %v1007_v53, 16  ;;  %v1264_v5 = vor.u32 %v1263_v58, %v1259_v57  ;;  %v1152_v6 = vshrl.u32 %v995_v56, 16  ;;  %v1023_v53 = vld [vmem:[#allocation2 + $0xac] sm:$0xf]  ;;  %v985_v58 = vld [vmem:[#allocation2 + $0x14] sm:$0x1] }
  0xff   : >> { %v1155_v7 = vshll.u32 %v995_v56, 16  ;;  %v1250_v8 = vrot.slane %v1248_v4, 4  ;;  %v1044_v11 = vsel %vm9720_vm12, %v1039_v59, %v9729_v18  ;;  %v1351_v9 = vrot.slane %v1350_v20, 4  ;;  %v984_v18 = vld [vmem:[#allocation2 + $0x10] sm:$0xf] }
 0x100   : >> { %v1253_v12 = vrot.slane %v1251_v36, 5  ;;  %v1355_v13 = vrot.slane %v1353_v2, 5  ;;  %v9751_v19 = vrot.slane %v1161_v30, 5  ;;  %v1167_v23 = vrot.slane %v1165_v31, 4  ;;  %v1022_v30 = vld [vmem:[#allocation2 + $0xa8] sm:$0xf] }
 0x101   : >> { %v1265_v48 = vrot.slane %v1264_v5, 4  ;;  %v1269_v49 = vrot.slane %v1267_v21, 5  ;;  %v1154_v37 = vrot.slane %v1152_v6, 4  ;;  %v1157_v33 = vrot.slane %v1155_v7, 5 }
 0x102   : >> { %1433 = vrot.lane.b32.xlu2 %v1150_v63, %s9286_s6  ;;  %v1254_v25 = vor.u32 %v1253_v12, %v1250_v8  ;;  %v1272_v10 = vshrl.u32 %v1010_v24, 16  ;;  %v1275_v3 = vshll.u32 %v1010_v24, 16  ;;  %v1357_v27 = vshrl.u32 %v1020_v46, 16 }
 0x103   : >> { %1417 = vrot.lane.b32.xlu1 %v1054_v54, %s9286_s6  ;;  %v1356_v28 = vsel %vm9720_vm12, %v1351_v9, %v1355_v13  ;;  %v1168_v29 = vor.u32 %v1167_v23, %v9751_v19  ;;  %v1171_v32 = vshll.u32 %v997_v17, 16  ;;  %v1363_v34 = vshll.u32 %v1021_v22, 16  ;;  %v1024_v23 = vld [vmem:[#allocation2 + $0xb0] sm:$0x1] }
 0x104   : >> { %v1255_v45 = vrot.slane %v1254_v25, 4  ;;  %v1359_v16 = vrot.slane %v1357_v27, 4  ;;  %v1270_v38 = vsel %vm9720_vm12, %v1265_v48, %v1269_v49  ;;  %v1158_v39 = vor.u32 %v1157_v33, %v1154_v37  ;;  %v1012_v48 = vld [vmem:[#allocation2 + $0x80] sm:$0x1]  ;;  %v986_v37 = vld [vmem:[#allocation2 + $0x18] sm:$0xf] }
 0x105   : >> { %v1065_v40 = vshll.u32 %v984_v18, 16  ;;  %v1069_v14 = vshrl.u32 %v984_v18, 16  ;;  %v1274_v42 = vrot.slane %v1272_v10, 4  ;;  %v1277_v43 = vrot.slane %v1275_v3, 5 }
 0x106   : >> { %1415 = vrot.lane.b32.xlu0 %v1044_v11, %s9286_s6  ;;  %v1260_v60 = vsel %vm9720_vm12, %v1255_v45, %v1259_v57  ;;  %v1360_v61 = vor.u32 %v1359_v16, %v1355_v13  ;;  %v1365_v44 = vrot.slane %v1363_v34, 5  ;;  %v1169_v46 = vrot.slane %v1168_v29, 4  ;;  %v998_v45 = vld [vmem:[#allocation2 + $0x48] sm:$0xf]  ;;  %v999_v29 = vld [vmem:[#allocation2 + $0x4c] sm:$0xf] }
 0x107   : >> { %v1173_v47 = vrot.slane %v1171_v32, 5  ;;  %v1056_v51 = vshrl.u32 %v983_v35, 16  ;;  %v1059_v55 = vshll.u32 %v983_v35, 16  ;;  %v1281_v57 = vshll.u32 %v1011_v41, 16 }
 0x108   : >> { %v1361_v52 = vrot.slane %v1360_v61, 4  ;;  %v1067_v54 = vrot.slane %v1065_v40, 5  ;;  %v1071_v59 = vrot.slane %v1069_v14, 4  ;;  %v1159_v2 = vrot.slane %v1158_v39, 4 }
 0x109   : >> { %v1058_v63 = vrot.slane %v1056_v51, 4  ;;  %v1278_v56 = vor.u32 %v1277_v43, %v1274_v42  ;;  %v1061_v31 = vrot.slane %v1059_v55, 5  ;;  %v1174_v4 = vsel %vm9720_vm12, %v1169_v46, %v1173_v47  ;;  %v987_v43 = vld [vmem:[#allocation2 + $0x1c] sm:$0xf] }
 0x10a   : >> { %1451 = vrot.lane.b32.xlu2 %v1260_v60, %s9286_s6  ;;  %v1366_v20 = vsel %vm9720_vm12, %v1361_v52, %v1365_v44  ;;  %v1377_v21 = vshll.u32 %v1023_v53, 16  ;;  %v1381_v36 = vshrl.u32 %v1023_v53, 16  ;;  %v1075_v5 = vshll.u32 %v985_v58, 16 }
 0x10b   : >> { %1467 = vrot.lane.b32.xlu1 %v1356_v28, %s9286_s6  ;;  %v1062_v6 = vor.u32 %v1061_v31, %v1058_v63  ;;  %v1283_v7 = vrot.slane %v1281_v57, 5  ;;  %v1072_v8 = vor.u32 %v1071_v59, %v1067_v54  ;;  %v1368_v11 = vshrl.u32 %v1022_v30, 16  ;;  %v1014_v57 = vld [vmem:[#allocation2 + $0x88] sm:$0xf] }
 0x10c   : >> { %v1371_v12 = vshll.u32 %v1022_v30, 16  ;;  %v1164_v9 = vsel %vm9720_vm12, %v1159_v2, %v9751_v19  ;;  %v1279_v13 = vrot.slane %v1278_v56, 4  ;;  %v1285_v17 = vshrl.u32 %v1011_v41, 16 }
 0x10d   : >> { %v1063_v24 = vrot.slane %v1062_v6, 4  ;;  %v9773_v25 = vrot.slane %v1377_v21, 5  ;;  %v1383_v22 = vrot.slane %v1381_v36, 4  ;;  %v1077_v49 = vrot.slane %v1075_v5, 5 }
 0x10e   : >> { %1453 = vrot.lane.b32.xlu0 %v1270_v38, %s9286_s6  ;;  %v1287_v33 = vrot.slane %v1285_v17, 4  ;;  %v1073_v10 = vrot.slane %v1072_v8, 4  ;;  %v1387_v3 = vshll.u32 %v1024_v23, 16  ;;  %v1370_v18 = vrot.slane %v1368_v11, 4  ;;  %v1015_v8 = vld [vmem:[#allocation2 + $0x8c] sm:$0x1] }
 0x10f   : >> { %v1373_v27 = vrot.slane %v1371_v12, 5  ;;  %v1284_v19 = vsel %vm9720_vm12, %v1279_v13, %v1283_v7  ;;  %v1068_v28 = vsel %vm9720_vm12, %v1063_v24, %v1067_v54  ;;  %v1291_v34 = vshll.u32 %v1012_v48, 16  ;;  %v1000_v54 = vld [vmem:[#allocation2 + $0x50] sm:$0x1]  ;;  %v988_v23 = vld [vmem:[#allocation2 + $0x20] sm:$0x1] }
 0x110   : >> { %v1288_v32 = vor.u32 %v1287_v33, %v1283_v7  ;;  %v1384_v60 = vor.u32 %v1383_v22, %v9773_v25  ;;  %v1080_v16 = vshrl.u32 %v986_v37, 16  ;;  %v1083_v35 = vshll.u32 %v986_v37, 16  ;;  %v1025_v37 = vld [vmem:[#allocation2 + $0xb4] sm:$0xf] }
 0x111   : >> { %v1176_v38 = vshrl.u32 %v998_v45, 16  ;;  %v1179_v39 = vshll.u32 %v998_v45, 16  ;;  %v1078_v40 = vsel %vm9720_vm12, %v1073_v10, %v1077_v49  ;;  %v1374_v14 = vor.u32 %v1373_v27, %v1370_v18  ;;  %v1001_v10 = vld [vmem:[#allocation2 + $0x54] sm:$0xf] }
 0x112   : >> { %1469 = vrot.lane.b32.xlu2 %v1366_v20, %s9286_s6  ;;  %v1185_v41 = vshll.u32 %v999_v29, 16  ;;  %v1189_v42 = vshrl.u32 %v999_v29, 16  ;;  %v1289_v61 = vrot.slane %v1288_v32, 4  ;;  %v1293_v44 = vrot.slane %v1291_v34, 5  ;;  %v1013_v20 = vld [vmem:[#allocation2 + $0x84] sm:$0xf] }
 0x113   : >> { %1437 = vrot.lane.b32.xlu1 %v1174_v4, %s9286_s6  ;;  %v1178_v46 = vrot.slane %v1176_v38, 4  ;;  %v1181_v47 = vrot.slane %v1179_v39, 5  ;;  %v1385_v51 = vrot.slane %v1384_v60, 4  ;;  %v1389_v52 = vrot.slane %v1387_v3, 5 }
 0x114   : >> { %v1082_v53 = vrot.slane %v1080_v16, 4  ;;  %v1085_v55 = vrot.slane %v1083_v35, 5  ;;  %v1089_v58 = vshll.u32 %v987_v43, 16  ;;  %v1187_v59 = vrot.slane %v1185_v41, 5 }
 0x115   : >> { %v1191_v63 = vrot.slane %v1189_v42, 4  ;;  %v1375_v2 = vrot.slane %v1374_v14, 4  ;;  %v1294_v56 = vsel %vm9720_vm12, %v1289_v61, %v1293_v44  ;;  %v1182_v30 = vor.u32 %v1181_v47, %v1178_v46  ;;  %v1002_v42 = vld [vmem:[#allocation2 + $0x58] sm:$0xf] }
 0x116   : >> { %1435 = vrot.lane.b32.xlu0 %v1164_v9, %s9286_s6  ;;  %v1093_v31 = vshrl.u32 %v987_v43, 16  ;;  %v1390_v4 = vsel %vm9720_vm12, %v1385_v51, %v1389_v52  ;;  %v1086_v21 = vor.u32 %v1085_v55, %v1082_v53  ;;  %v1305_v36 = vshll.u32 %v1014_v57, 16  ;;  %v990_v55 = vld [vmem:[#allocation2 + $0x28] sm:$0xf] }
 0x117   : >> { %v1309_v5 = vshrl.u32 %v1014_v57, 16  ;;  %v1195_v6 = vshll.u32 %v1000_v54, 16  ;;  %v1192_v7 = vor.u32 %v1191_v63, %v1187_v59  ;;  %v1296_v11 = vshrl.u32 %v1013_v20, 16  ;;  %v8852_v63 = vld [vmem:[%s9811_s10 + $0x38] sm:$0xff] }
 0x118   : >> { %v1299_v12 = vshll.u32 %v1013_v20, 16  ;;  %v1380_v9 = vsel %vm9720_vm12, %v1375_v2, %v9773_v25  ;;  %v1183_v13 = vrot.slane %v1182_v30, 4  ;;  %v1095_v24 = vrot.slane %v1093_v31, 4  ;;  %v989_v20 = vld [vmem:[#allocation2 + $0x24] sm:$0xf]  ;;  %9000 = vmatpush.bf16.msra.mxu1 %v8852_v63  ;;  %9001 = vmatpush.bf16.msra.mxu2 %v8852_v63 }
 0x119   : >> { %v1087_v17 = vrot.slane %v1086_v21, 4  ;;  %v1091_v22 = vrot.slane %v1089_v58, 5  ;;  %v9795_v48 = vrot.slane %v1305_v36, 5  ;;  %v1311_v49 = vrot.slane %v1309_v5, 4  ;;  %v1027_v58 = vld [vmem:[#allocation2 + $0xbc] sm:$0x1]  ;;  %9002 = vmatpush.bf16.msra.mxu3 %v8852_v63  ;;  %4576 = vmatpush.bf16.msra.mxu0 %v8852_v63 }
 0x11a   : >> { %1419 = vrot.lane.b32.xlu2 %v1068_v28, %s9286_s6  ;;  %v1197_v33 = vrot.slane %v1195_v6, 5  ;;  %v1315_v45 = vshll.u32 %v1015_v8, 16  ;;  %v1193_v3 = vrot.slane %v1192_v7, 4  ;;  %v1298_v18 = vrot.slane %v1296_v11, 4  ;;  %v1026_v28 = vld [vmem:[#allocation2 + $0xb8] sm:$0xf] }
 0x11b   : >> { %1455 = vrot.lane.b32.xlu1 %v1284_v19, %s9286_s6  ;;  %v1301_v27 = vrot.slane %v1299_v12, 5  ;;  %v1099_v19 = vshll.u32 %v988_v23, 16  ;;  %v1188_v25 = vsel %vm9720_vm12, %v1183_v13, %v1187_v59  ;;  %v1096_v29 = vor.u32 %v1095_v24, %v1091_v22  ;;  %v2507_v63 = vld [vmem:[#allocation2 + $0xc] sm:$0xe] }
 0x11c   : >> { %v1392_v32 = vshrl.u32 %v1025_v37, 16  ;;  %v1395_v34 = vshll.u32 %v1025_v37, 16  ;;  %v1092_v60 = vsel %vm9720_vm12, %v1087_v17, %v1091_v22  ;;  %v1312_v16 = vor.u32 %v1311_v49, %v9795_v48  ;;  %v1003_v37 = vld [vmem:[#allocation2 + $0x5c] sm:$0x1] }
 0x11d   : >> { %v1200_v35 = vshrl.u32 %v1001_v10, 16  ;;  %v1203_v38 = vshll.u32 %v1001_v10, 16  ;;  %v1198_v39 = vsel %vm9720_vm12, %v1193_v3, %v1197_v33  ;;  %v1401_v14 = vshll.u32 %v1026_v28, 16  ;;  %v8851_v33 = vld [vmem:[%s9811_s10 + $0x30] sm:$0xff]  ;;  %v2908_v10 = vld [vmem:[#allocation2 + $0x18] sm:$0xf] }
 0x11e   : >> { %1421 = vrot.lane.b32.xlu0 %v1078_v40, %s9286_s6  ;;  %v1302_v40 = vor.u32 %v1301_v27, %v1298_v18  ;;  %v1405_v41 = vshrl.u32 %v1026_v28, 16  ;;  %v1097_v43 = vrot.slane %v1096_v29, 4  ;;  %v1101_v61 = vrot.slane %v1099_v19, 5  ;;  %9003 = vmatpush.bf16.msra.mxu1 %v8851_v33  ;;  %v924_v19 = vld [vmem:[#allocation2 + $0x30] sm:$0xf] }
 0x11f   : >> { %v1394_v44 = vrot.slane %v1392_v32, 4  ;;  %v1397_v46 = vrot.slane %v1395_v34, 5  ;;  %v1313_v47 = vrot.slane %v1312_v16, 4  ;;  %v1317_v51 = vrot.slane %v1315_v45, 5  ;;  %956 = vst.msk [vmem:[#allocation3 + $0xa0] sm:$0xf] %vm170_vm0, %v924_v19  ;;  %9004 = vmatpush.bf16.msra.mxu2 %v8851_v33  ;;  %9005 = vmatpush.bf16.msra.mxu3 %v8851_v33 }
 0x120   : >> { %v1202_v52 = vrot.slane %v1200_v35, 4  ;;  %v1205_v53 = vrot.slane %v1203_v38, 5  ;;  %v1209_v57 = vshll.u32 %v1002_v42, 16  ;;  %v1403_v54 = vrot.slane %v1401_v14, 5  ;;  %4577 = vmatpush.bf16.msra.mxu0 %v8851_v33  ;;  %v1820_v19 = vld [vmem:[#allocation2 + $0x10] sm:$0xf] }
 0x121   : >> { %v1407_v59 = vrot.slane %v1405_v41, 4  ;;  %v1303_v2 = vrot.slane %v1302_v40, 4  ;;  %v1398_v30 = vor.u32 %v1397_v46, %v1394_v44  ;;  %v1213_v31 = vshrl.u32 %v1002_v42, 16  ;;  %v2909_v40 = vld [vmem:[#allocation2 + $0x1c] sm:$0xf]  ;;  %v8849_v46 = vld [vmem:[%s9811_s10 + $0x20] sm:$0xff] }
 0x122   : >> { %1457 = vrot.lane.b32.xlu2 %v1294_v56, %s9286_s6  ;;  %v1102_v56 = vsel %vm9720_vm12, %v1097_v43, %v1101_v61  ;;  %v1206_v21 = vor.u32 %v1205_v53, %v1202_v52  ;;  %v1113_v36 = vshll.u32 %v990_v55, 16  ;;  %v1117_v5 = vshrl.u32 %v990_v55, 16  ;;  %v925_v52 = vld [vmem:[#allocation2 + $0x34] sm:$0xf]  ;;  %v2508_v55 = vld [vmem:[#allocation2 + $0x10] sm:$0xf] }
 0x123   : >> { %1473 = vrot.lane.b32.xlu1 %v1390_v4, %s9286_s6  ;;  %v1318_v4 = vsel %vm9720_vm12, %v1313_v47, %v1317_v51  ;;  %v1411_v6 = vshll.u32 %v1027_v58, 16  ;;  %v1211_v7 = vrot.slane %v1209_v57, 5  ;;  %v1408_v8 = vor.u32 %v1407_v59, %v1403_v54  ;;  %v8848_v51 = vld [vmem:[%s9811_s10 + $0x18] sm:$0xff]  ;;  %957 = vst.msk [vmem:[#allocation3 + $0xb4] sm:$0xf] %vm170_vm0, %v925_v52 }
 0x124   : >> { %v1104_v11 = vshrl.u32 %v989_v20, 16  ;;  %v1308_v12 = vsel %vm9720_vm12, %v1303_v2, %v9795_v48  ;;  %v1107_v13 = vshll.u32 %v989_v20, 16  ;;  %v1399_v23 = vrot.slane %v1398_v30, 4  ;;  %v8850_v48 = vld [vmem:[%s9811_s10 + $0x28] sm:$0xff]  ;;  %v917_v52 = vld [vmem:[#allocation2 + $0x4] sm:$0xf] }
 0x125   : >> { %v1215_v24 = vrot.slane %v1213_v31, 4  ;;  %v1207_v17 = vrot.slane %v1206_v21, 4  ;;  %v9824_v22 = vrot.slane %v1113_v36, 5  ;;  %v1119_v49 = vrot.slane %v1117_v5, 4  ;;  %9006 = vmatpush.bf16.msra.mxu1 %v8850_v48  ;;  %9007 = vmatpush.bf16.msra.mxu2 %v8850_v48  ;;  %v2509_v21 = vld [vmem:[#allocation2 + $0x14] sm:$0x1] }
 0x126   : >> { %1471 = vrot.lane.b32.xlu0 %v1380_v9, %s9286_s6  ;;  %v991_v9 = vld [vmem:[#allocation2 + $0x2c] sm:$0x1]  ;;  %v1413_v45 = vrot.slane %v1411_v6, 5  ;;  %v1409_v3 = vrot.slane %v1408_v8, 4  ;;  %v1106_v27 = vrot.slane %v1104_v11, 4  ;;  %v1404_v28 = vsel %vm9720_vm12, %v1399_v23, %v1403_v54  ;;  %9008 = vmatpush.bf16.msra.mxu3 %v8850_v48  ;;  %v8847_v5 = vld [vmem:[%s9811_s10 + $0x10] sm:$0xff] }
 0x127   : >> { %v1123_v18 = vshll.u32 %v991_v9, 16  ;;  %v1216_v29 = vor.u32 %v1215_v24, %v1211_v7  ;;  %v1219_v32 = vshll.u32 %v1003_v37, 16  ;;  %v1212_v34 = vsel %vm9720_vm12, %v1207_v17, %v1211_v7  ;;  %4578 = vmatpush.bf16.msra.mxu0 %v8850_v48  ;;  %v2910_v36 = vld [vmem:[#allocation2 + $0x20] sm:$0x1]  ;;  %v2911_v6 = vld [vmem:[#allocation2 + $0x24] sm:$0xf] }
 0x128   : >> { %v2957_v16 = vshrl.u32 %v2908_v10, 16  ;;  %v2960_v35 = vshll.u32 %v2908_v10, 16  ;;  %v1414_v38 = vsel %vm9720_vm12, %v1409_v3, %v1413_v45  ;;  %v2966_v47 = vshll.u32 %v2909_v40, 16  ;;  %v940_v11 = vld [vmem:[#allocation2 + $0x90] sm:$0xf]  ;;  %v8846_v37 = vld [vmem:[%s9811_s10 + $0x8] sm:$0xff] }
 0x129   : >> { %v1217_v14 = vrot.slane %v1216_v29, 4  ;;  %v1221_v41 = vrot.slane %v1219_v32, 5  ;;  %v1125_v43 = vrot.slane %v1123_v18, 5  ;;  %9009 = vmatpush.bf16.msra.mxu1 %v8849_v46  ;;  %v2970_v58 = vshrl.u32 %v2909_v40, 16  ;;  %9010 = vmatpush.bf16.msra.mxu2 %v8849_v46  ;;  %972 = vst.msk [vmem:[#allocation3 + $0x1e0] sm:$0xf] %vm170_vm0, %v940_v11 }
 0x12a   : >> { %1439 = vrot.lane.b32.xlu2 %v1188_v25, %s9286_s6  ;;  %v1109_v25 = vrot.slane %v1107_v13, 5  ;;  %v2959_v61 = vrot.slane %v2957_v16, 4  ;;  %v2962_v44 = vrot.slane %v2960_v35, 5  ;;  %9011 = vmatpush.bf16.msra.mxu3 %v8849_v46  ;;  %v2968_v2 = vrot.slane %v2966_v47, 5  ;;  %v932_v24 = vld [vmem:[#allocation2 + $0x60] sm:$0xf] }
 0x12b   : >> { %1423 = vrot.lane.b32.xlu1 %v1092_v60, %s9286_s6  ;;  %v1120_v60 = vor.u32 %v1119_v49, %v9824_v22  ;;  %v1222_v57 = vsel %vm9720_vm12, %v1217_v14, %v1221_v41  ;;  %4579 = vmatpush.bf16.msra.mxu0 %v8849_v46  ;;  %vm1640_vm13 = vcmask 1042432   ;;  %vm1641_vm14 = vcmask 1046532   ;;  %964 = vst.msk [vmem:[#allocation3 + $0x140] sm:$0xf] %vm170_vm0, %v932_v24  ;;  %v2912_v48 = vld [vmem:[#allocation2 + $0x28] sm:$0xf] }
 0x12c   : >> { %v2963_v59 = vor.u32 %v2962_v44, %v2959_v61  ;;  %v8245_v30 = vrot.slane %v2507_v63, 9  ;;  %v2972_v31 = vrot.slane %v2970_v58, 4  ;;  %vm9855_vm15 = vmor %vm1640_vm13, %vm1641_vm14  ;;  %v2976_v23 = vshll.u32 %v2910_v36, 16  ;;  %v933_v32 = vld [vmem:[#allocation2 + $0x64] sm:$0xf] }
 0x12d   : >> { %v1121_v42 = vrot.slane %v1120_v60, 4  ;;  %9012 = vmatpush.bf16.msra.mxu1 %v8848_v51  ;;  %9013 = vmatpush.bf16.msra.mxu2 %v8848_v51  ;;  %v2984_v49 = vshll.u32 %v2911_v6, 16  ;;  %v2990_v16 = vshll.u32 %v2912_v48, 16  ;;  %v2510_v35 = vld [vmem:[#allocation2 + $0x18] sm:$0xe]  ;;  %vm1511_vm1 = vcmask 1043968  }
 0x12e   : >> { %1441 = vrot.lane.b32.xlu0 %v1198_v39, %s9286_s6  ;;  %v1110_v39 = vor.u32 %v1109_v25, %v1106_v27  ;;  %9014 = vmatpush.bf16.msra.mxu3 %v8848_v51  ;;  %v2973_v13 = vor.u32 %v2972_v31, %v2968_v2  ;;  %v2978_v10 = vrot.slane %v2976_v23, 5  ;;  %v8845_v27 = vld [vmem:[%s9811_s10] sm:$0xff]  ;;  %v2511_v25 = vld [vmem:[#allocation2 + $0x1c] sm:$0xf]  ;;  %965 = vst.msk [vmem:[#allocation3 + $0x154] sm:$0xf] %vm170_vm0, %v933_v32 }
 0x12f   : >> { %v1126_v54 = vsel %vm9720_vm12, %v1121_v42, %v1125_v43  ;;  %4580 = vmatpush.bf16.msra.mxu0 %v8848_v51  ;;  %v2986_v18 = vrot.slane %v2984_v49, 5  ;;  %v8246_v40 = vrot.slane %v2510_v35, 9  ;;  %v2992_v43 = vrot.slane %v2990_v16, 5  ;;  %v2512_v61 = vld [vmem:[#allocation2 + $0x20] sm:$0x1] }
 0x130   : >> { %v1111_v53 = vrot.slane %v1110_v39, 4  ;;  %v2974_v45 = vrot.slane %v2973_v13, 4  ;;  %v1819_v39 = vld [vmem:[#allocation2 + $0xc] sm:$0xf]  ;;  %v2914_v46 = vld [vmem:[#allocation2 + $0x30] sm:$0xf] }
 0x131   : >> { %9015 = vmatpush.bf16.msra.mxu1 %v8847_v5  ;;  %9016 = vmatpush.bf16.msra.mxu2 %v8847_v5  ;;  %v2913_v44 = vld [vmem:[#allocation2 + $0x2c] sm:$0x1]  ;;  %v3005_v63 = vshrl.u32 %v2914_v46, 16  ;;  %949 = vst.msk [vmem:[#allocation3 + $0x14] sm:$0xf] %vm170_vm0, %v917_v52  ;;  %vm4527_vm4 = vcmask 523264  }
 0x132   : >> { %1425 = vrot.lane.b32.xlu2 %v1102_v56, %s9286_s6  ;;  %v2605_v56 = vrot.slane %v2508_v55, 5  ;;  %v1116_v20 = vsel %vm9720_vm12, %v1111_v53, %v9824_v22  ;;  %v2981_v22 = vshrl.u32 %v2911_v6, 16  ;;  %9017 = vmatpush.bf16.msra.mxu3 %v8847_v5  ;;  %v2979_v29 = vsel %vm9720_vm12, %v2974_v45, %v2978_v10  ;;  %v934_v51 = vld [vmem:[#allocation2 + $0x6c] sm:$0xf]  ;;  %v943_v6 = vld [vmem:[#allocation2 + $0xa0] sm:$0xf] }
 0x133   : >> { %1461 = vrot.lane.b32.xlu1 %v1318_v4, %s9286_s6  ;;  %v2964_v4 = vrot.slane %v2963_v59, 4  ;;  %4581 = vmatpush.bf16.msra.mxu0 %v8847_v5  ;;  %v2615_v53 = vrot.slane %v2512_v61, 5  ;;  %v3000_v58 = vshll.u32 %v2913_v44, 16  ;;  %966 = vst.msk [vmem:[#allocation3 + $0x168] sm:$0xf] %vm170_vm0, %v934_v51  ;;  %vm5781_vm9 = vcmask (%p912_p11), 1046528  }
 0x134   : >> { %v2607_v8 = vrot.slane %v2605_v56, 4  ;;  %v2606_v9 = vsel %vm9855_vm15, %v8245_v30, %v2605_v56  ;;  %v2983_v3 = vrot.slane %v2981_v22, 4  ;;  %v1822_v5 = vld [vmem:[#allocation2 + $0x1c] sm:$0xf]  ;;  %975 = vst.msk [vmem:[#allocation3 + $0x21c] sm:$0xf] %vm170_vm0, %v943_v6 }
 0x135   : >> { %v2969_v17 = vsel %vm9720_vm12, %v2964_v4, %v2968_v2  ;;  %9018 = vmatpush.bf16.msra.mxu1 %v8846_v37  ;;  %9019 = vmatpush.bf16.msra.mxu2 %v8846_v37  ;;  %v3008_v2 = vshll.u32 %v2914_v46, 16  ;;  %v3002_v30 = vrot.slane %v3000_v58, 5  ;;  %v2915_v4 = vld [vmem:[#allocation2 + $0x34] sm:$0xf]  ;;  %v2514_v24 = vld [vmem:[#allocation2 + $0x28] sm:$0xf] }
 0x136   : >> { %1459 = vrot.lane.b32.xlu0 %v1308_v12, %s9286_s6  ;;  %v2608_v12 = vrot.slane %v2509_v21, 5  ;;  %9020 = vmatpush.bf16.msra.mxu3 %v8846_v37  ;;  %v2987_v60 = vor.u32 %v2986_v18, %v2983_v3  ;;  %v3007_v21 = vrot.slane %v3005_v63, 4  ;;  %v3014_v11 = vshll.u32 %v2915_v4, 16  ;;  %v2515_v22 = vld [vmem:[#allocation2 + $0x2c] sm:$0x1] }
 0x137   : >> { %4582 = vmatpush.bf16.msra.mxu0 %v8846_v37  ;;  %v3010_v36 = vrot.slane %v3008_v2, 5  ;;  %v3018_v13 = vshrl.u32 %v2915_v4, 16  ;;  %v2917_v37 = vld [vmem:[#allocation2 + $0x3c] sm:$0xf]  ;;  %v2619_v45 = vrot.slane %v2514_v24, 5  ;;  %vm8064_vm2 = vcmask (%p912_p11), 130112  }
 0x138   : >> { %v2609_v33 = vsel %vm9855_vm15, %v2607_v8, %v2608_v12  ;;  %v2988_v42 = vrot.slane %v2987_v60, 4  ;;  %v942_v8 = vld [vmem:[#allocation2 + $0x9c] sm:$0xf]  ;;  %v3032_v60 = vshll.u32 %v2917_v37, 16  ;;  %v918_v16 = vld [vmem:[#allocation2 + $0xc] sm:$0xf] }
 0x139   : >> { %9021 = vmatpush.bf16.msra.mxu1 %v8845_v27  ;;  %9022 = vmatpush.bf16.msra.mxu2 %v8845_v27  ;;  %v3011_v23 = vor.u32 %v3010_v36, %v3007_v21  ;;  %974 = vst.msk [vmem:[#allocation3 + $0x208] sm:$0xf] %vm170_vm0, %v942_v8  ;;  %v3020_v3 = vrot.slane %v3018_v13, 4  ;;  %v927_v35 = vld [vmem:[#allocation2 + $0x40] sm:$0xf]  ;;  %v8868_v2 = vld [vmem:[%s9811_s10 + $0xb8] sm:$0xff] }
 0x13a   : >> { %1475 = vrot.lane.b32.xlu2 %v1404_v28, %s9286_s6  ;;  %v941_v28 = vld [vmem:[#allocation2 + $0x94] sm:$0xf]  ;;  %9023 = vmatpush.bf16.msra.mxu3 %v8845_v27  ;;  %v2993_v59 = vsel %vm9720_vm12, %v2988_v42, %v2992_v43  ;;  %950 = vst.msk [vmem:[#allocation3 + $0x28] sm:$0xf] %vm170_vm0, %v918_v16  ;;  %v3034_v44 = vrot.slane %v3032_v60, 5  ;;  %v8876_v8 = vld [vmem:[%s9811_s10 + $0xf8] sm:$0xff] }
 0x13b   : >> { %1443 = vrot.lane.b32.xlu1 %v1212_v34, %s9286_s6  ;;  %973 = vst.msk [vmem:[#allocation3 + $0x1f4] sm:$0xf] %vm170_vm0, %v941_v28  ;;  %v2994_v34 = vshrl.u32 %v2912_v48, 16  ;;  %4583 = vmatpush.bf16.msra.mxu0 %v8845_v27  ;;  %v3012_v18 = vrot.slane %v3011_v23, 4  ;;  %v3016_v27 = vrot.slane %v3014_v11, 5  ;;  %v8860_v23 = vld [vmem:[%s9811_s10 + $0x78] sm:$0xff] }
 0x13c   : >> { %959 = vst.msk [vmem:[#allocation3 + $0xdc] sm:$0xf] %vm170_vm0, %v927_v35  ;;  %v2918_v46 = vld [vmem:[#allocation2 + $0x40] sm:$0xf]  ;;  %v919_v4 = vld [vmem:[#allocation2 + $0x10] sm:$0xf] }
 0x13d   : >> { %v2996_v14 = vrot.slane %v2994_v34, 4  ;;  %v3029_v34 = vshrl.u32 %v2917_v37, 16  ;;  %v3038_v58 = vshll.u32 %v2918_v46, 16  ;;  %v2518_v36 = vld [vmem:[#allocation2 + $0x38] sm:$0x1]  ;;  %4754 = vmatpush.bf16.msrb.mxu2 %v8868_v2  ;;  %4665 = vmatpush.bf16.msrb.mxu1 %v8860_v23  ;;  %v8858_v23 = vld [vmem:[%s9811_s10 + $0x68] sm:$0xff] }
 0x13e   : >> { %1477 = vrot.lane.b32.xlu0 %v1414_v38, %s9286_s6  ;;  %v2612_v38 = vrot.slane %v2511_v25, 5  ;;  %v2916_v25 = vld [vmem:[#allocation2 + $0x38] sm:$0x1]  ;;  %v2920_v6 = vld [vmem:[#allocation2 + $0x48] sm:$0xf]  ;;  %4843 = vmatpush.bf16.msrb.mxu3 %v8876_v8  ;;  %vm8111_vm3 = vcmask (%p912_p11), 1041409  }
 0x13f   : >> { %v3031_v61 = vrot.slane %v3029_v34, 4  ;;  %v1823_v11 = vld [vmem:[#allocation2 + $0x24] sm:$0xf]  ;;  %951 = vst.msk [vmem:[#allocation3 + $0x3c] sm:$0xf] %vm170_vm0, %v919_v4  ;;  %vm8113_vm5 = vcmask (%p912_p11), 1042434  }
 0x140   : >> { %v2614_v47 = vrot.slane %v2612_v38, 4  ;;  %v2613_v55 = vsel %vm9855_vm15, %v8246_v40, %v2612_v38  ;;  %v2621_v38 = vrot.slane %v2619_v45, 4  ;;  %v3021_v40 = vor.u32 %v3020_v3, %v3016_v27  ;;  %v2919_v24 = vld [vmem:[#allocation2 + $0x44] sm:$0x1]  ;;  %v944_v34 = vld [vmem:[#allocation2 + $0xa8] sm:$0xf] }
 0x141   : >> { %v3035_v63 = vor.u32 %v3034_v44, %v3031_v61  ;;  %976 = vst.msk [vmem:[#allocation3 + $0x230] sm:$0xf] %vm170_vm0, %v944_v34  ;;  %v2521_v8 = vld [vmem:[#allocation2 + $0x44] sm:$0x1]  ;;  %v939_v34 = vld [vmem:[#allocation2 + $0x88] sm:$0xf] }
 0x142   : >> { %1445 = vrot.lane.b32.xlu2 %v1222_v57, %s9286_s6  ;;  %v2997_v57 = vor.u32 %v2996_v14, %v2992_v43  ;;  %v2616_v56 = vsel %vm9855_vm15, %v2614_v47, %v2615_v53  ;;  %v3024_v14 = vshll.u32 %v2916_v25, 16  ;;  %v3017_v43 = vsel %vm9720_vm12, %v3012_v18, %v3016_v27  ;;  %v2517_v47 = vld [vmem:[#allocation2 + $0x34] sm:$0xf]  ;;  %v928_v25 = vld [vmem:[#allocation2 + $0x48] sm:$0xf] }
 0x143   : >> { %1429 = vrot.lane.b32.xlu1 %v1126_v54, %s9286_s6  ;;  %v916_v54 = vld [vmem:[#allocation2] sm:$0xf]  ;;  %v3022_v52 = vrot.slane %v3021_v40, 4  ;;  %960 = vst.msk [vmem:[#allocation3 + $0xf0] sm:$0xf] %vm170_vm0, %v928_v25  ;;  %v8875_v40 = vld [vmem:[%s9811_s10 + $0xf0] sm:$0xff] }
 0x144   : >> { %948 = vst.msk [vmem:[#allocation3] sm:$0xf] %vm170_vm0, %v916_v54  ;;  %v3026_v53 = vrot.slane %v3024_v14, 5  ;;  %v2626_v54 = vrot.slane %v2517_v47, 5  ;;  %v8880_v14 = vld [vmem:[%s9811_s10 + $0x118] sm:$0xff]  ;;  %4844 = vmatpush.bf16.msrb.mxu3 %v8875_v40  ;;  %v8865_v25 = vld [vmem:[%s9811_s10 + $0xa0] sm:$0xff] }
 0x145   : >> { %4936 = vmatpush.bf16.msrb.mxu0 %v8880_v14  ;;  %971 = vst.msk [vmem:[#allocation3 + $0x1cc] sm:$0xf] %vm170_vm0, %v939_v34  ;;  %v2924_v14 = vld [vmem:[#allocation2 + $0x58] sm:$0xf]  ;;  %v2012_v34 = vld [vmem:[#allocation2 + $0x10] sm:$0xf] }
 0x146   : >> { %1427 = vrot.lane.b32.xlu0 %v1116_v20, %s9286_s6  ;;  %v2998_v20 = vrot.slane %v2997_v57, 4  ;;  %vm8117_vm10 = vcmask (%p912_p11), 1044484   ;;  %vm8119_vm11 = vcmask (%p912_p11), 1045509   ;;  %vm8123_vm13 = vcmask (%p912_p11), 1047559  }
 0x147   : > { %vm8134_vm14 = vcmask (%p912_p11), 130048  }
 0x148   : >> { %v3003_v12 = vsel %vm9720_vm12, %v2998_v20, %v3002_v30  ;;  %v3042_v20 = vshrl.u32 %v2918_v46, 16  ;;  %v3027_v30 = vsel %vm9720_vm12, %v3022_v52, %v3026_v53  ;;  %v8859_v46 = vld [vmem:[%s9811_s10 + $0x70] sm:$0xff] }
 0x149   : >> { %4666 = vmatpush.bf16.msrb.mxu1 %v8859_v46 }
 0x14a   : >> { %2715 = vrot.lane.b32.xlu2 %v2606_v9, %s9286_s6  ;;  %v935_v9 = vld [vmem:[#allocation2 + $0x70] sm:$0xf] }
 0x14b   : >> { %3340 = vrot.lane.b32.xlu1 %v2969_v17, %s9286_s6  ;;  %v2513_v17 = vld [vmem:[#allocation2 + $0x24] sm:$0xe]  ;;  %967 = vst.msk [vmem:[#allocation3 + $0x17c] sm:$0xf] %vm170_vm0, %v935_v9  ;;  %v3040_v9 = vrot.slane %v3038_v58, 5 }
 0x14c   : >> { %v8247_v10 = vrot.slane %v2513_v17, 9  ;;  %v3044_v17 = vrot.slane %v3042_v20, 4  ;;  %v920_v20 = vld [vmem:[#allocation2 + $0x18] sm:$0xf] }
 0x14d   : >> { %952 = vst.msk [vmem:[#allocation3 + $0x50] sm:$0xf] %vm170_vm0, %v920_v20  ;;  %4667 = vmatpush.bf16.msrb.mxu1 %v8858_v23  ;;  %v3090_v20 = vshrl.u32 %v2924_v14, 16 }
 0x14e   : >> { %2717 = vrot.lane.b32.xlu0 %v2609_v33, %s9286_s6  ;;  %v1821_v33 = vld [vmem:[#allocation2 + $0x18] sm:$0xf] }
 0x152   : >> { %3342 = vrot.lane.b32.xlu2 %v2979_v29, %s9286_s6  ;;  %v2622_v29 = vrot.slane %v2515_v22, 5  ;;  %v2628_v22 = vrot.slane %v2626_v54, 4 }
 0x153   : >> { %1885 = vrot.lane.b32.xlu1 %v1820_v19, %s9286_s6 }
 0x154   : >> { %v1432_v41 = vpop.permute.xlu2 %1431  ;;  %v2623_v51 = vsel %vm9855_vm15, %v2621_v38, %v2622_v29  ;;  %v3045_v29 = vor.u32 %v3044_v17, %v3040_v9 }
 0x155   : >> { %1520 = vst.msk [vmem:[#allocation3 + $0xa0] sm:$0xf] %vm1511_vm1, %v1432_v41  ;;  %v926_v41 = vld [vmem:[#allocation2 + $0x3c] sm:$0xf] }
 0x156   : >> { %1883 = vrot.lane.b32.xlu0 %v1819_v39, %s9286_s6  ;;  %v2620_v39 = vsel %vm9855_vm15, %v8247_v10, %v2619_v45  ;;  %958 = vst.msk [vmem:[#allocation3 + $0xc8] sm:$0xf] %vm170_vm0, %v926_v41  ;;  %v3056_v45 = vshll.u32 %v2920_v6, 16  ;;  %v2921_v41 = vld [vmem:[#allocation2 + $0x4c] sm:$0xf]  ;;  %v3046_v61 = vrot.slane %v3045_v29, 4 }
 0x157   : >> { %v3066_v2 = vshrl.u32 %v2921_v41, 16 }
 0x159   : >> { %v3068_v17 = vrot.slane %v3066_v2, 4  ;;  %v8864_v2 = vld [vmem:[%s9811_s10 + $0x98] sm:$0xff] }
 0x15a   : >> { %2719 = vrot.lane.b32.xlu2 %v2613_v55, %s9286_s6 }
 0x15b   : >> { %3344 = vrot.lane.b32.xlu1 %v2993_v59, %s9286_s6  ;;  %v1824_v59 = vld [vmem:[#allocation2 + $0x28] sm:$0xf] }
 0x15c   : >> { %v1434_v31 = vpop.permute.xlu2 %1433  ;;  %v8360_v49 = vld [vmem:[#allocation3 + $0xa0] sm:$0xf] }
 0x15d   : >> { %1521 = vst.msk [vmem:[#allocation3 + $0xb4] sm:$0xf] %vm1511_vm1, %v1434_v31  ;;  %v936_v31 = vld [vmem:[#allocation2 + $0x78] sm:$0xf] }
 0x15e   : >> { %2721 = vrot.lane.b32.xlu0 %v2616_v56, %s9286_s6  ;;  %v937_v56 = vld [vmem:[#allocation2 + $0x7c] sm:$0xf]  ;;  %968 = vst.msk [vmem:[#allocation3 + $0x190] sm:$0xf] %vm170_vm0, %v936_v31 }
 0x15f   : >> { %969 = vst.msk [vmem:[#allocation3 + $0x1a4] sm:$0xf] %vm170_vm0, %v937_v56 }
 0x162   : >> { %3346 = vrot.lane.b32.xlu2 %v3003_v12, %s9286_s6  ;;  %v3036_v12 = vrot.slane %v3035_v63, 4  ;;  %v921_v63 = vld [vmem:[#allocation2 + $0x1c] sm:$0xf] }
 0x163   : >> { %1889 = vrot.lane.b32.xlu1 %v1822_v5, %s9286_s6  ;;  %v2516_v5 = vld [vmem:[#allocation2 + $0x30] sm:$0xe]  ;;  %953 = vst.msk [vmem:[#allocation3 + $0x64] sm:$0xf] %vm170_vm0, %v921_v63  ;;  %v9987_v63 = vld [vmem:[#allocation2 + $0x50] sm:$0x1] }
 0x164   : >> { %v8786_v48 = vld [vmem:[#allocation3 + $0xb0] sm:$0xf0]  ;;  %v1452_v19 = vpop.permute.xlu2 %1451  ;;  %v8248_v13 = vrot.slane %v2516_v5, 9  ;;  %v3041_v38 = vsel %vm9720_vm12, %v3036_v12, %v3040_v9  ;;  %v2923_v9 = vld [vmem:[#allocation2 + $0x54] sm:$0xf] }
 0x165   : >> { %v1464_v28 = vpop.permute.xlu1 %1463  ;;  %v8361_v32 = vor.u32 %v8786_v48, %v8360_v49  ;;  %1530 = vst.msk [vmem:[#allocation3 + $0x168] sm:$0xf] %vm1511_vm1, %v1452_v19  ;;  %v2629_v49 = vrot.slane %v2518_v36, 5  ;;  %v3048_v48 = vshll.u32 %v2919_v24, 16  ;;  %v8867_v19 = vld [vmem:[%s9811_s10 + $0xb0] sm:$0xff] }
 0x166   : >> { %1887 = vrot.lane.b32.xlu0 %v1821_v33, %s9286_s6  ;;  %1536 = vst.msk [vmem:[#allocation3 + $0x1e0] sm:$0xf] %vm1511_vm1, %v1464_v28  ;;  %v3053_v33 = vshrl.u32 %v2920_v6, 16  ;;  %v2627_v28 = vsel %vm9855_vm15, %v8248_v13, %v2626_v54  ;;  %4755 = vmatpush.bf16.msrb.mxu2 %v8867_v19  ;;  %v1826_v54 = vld [vmem:[#allocation2 + $0x34] sm:$0xf] }
 0x167   : >> { %4604 = vmatmul.bf16.vlgmr.msra.gmra.mxu1 %v8361_v32  ;;  %v945_v32 = vld [vmem:[#allocation2 + $0xac] sm:$0xf]  ;;  %v3050_v44 = vrot.slane %v3048_v48, 5  ;;  %v2519_v36 = vld [vmem:[#allocation2 + $0x3c] sm:$0xe] }
 0x168   : >> { %v1448_v42 = vpop.permute.xlu0 %1447  ;;  %977 = vst.msk [vmem:[#allocation3 + $0x244] sm:$0xf] %vm170_vm0, %v945_v32  ;;  %v3055_v47 = vrot.slane %v3053_v33, 4  ;;  %v1825_v6 = vld [vmem:[#allocation2 + $0x30] sm:$0xf]  ;;  %v8249_v13 = vrot.slane %v2519_v36, 9 }
 0x169   : >> { %1528 = vst.msk [vmem:[#allocation3 + $0x140] sm:$0xf] %vm1511_vm1, %v1448_v42  ;;  %v9943_v42 = vld [vmem:[#allocation2 + $0x40] sm:$0xf]  ;;  %v3051_v56 = vsel %vm9720_vm12, %v3046_v61, %v3050_v44  ;;  %v2922_v24 = vld [vmem:[#allocation2 + $0x50] sm:$0x1] }
 0x16a   : >> { %2723 = vrot.lane.b32.xlu2 %v2620_v39, %s9286_s6  ;;  %v2633_v58 = vrot.slane %v9943_v42, 5  ;;  %v2636_v33 = vrot.slane %v2521_v8, 5  ;;  %v3072_v19 = vshll.u32 %v2922_v24, 16  ;;  %v8879_v42 = vld [vmem:[%s9811_s10 + $0x110] sm:$0xff] }
 0x16b   : >> { %3348 = vrot.lane.b32.xlu1 %v3017_v43, %s9286_s6  ;;  %v2630_v43 = vsel %vm9855_vm15, %v2628_v22, %v2629_v49  ;;  %4937 = vmatpush.bf16.msrb.mxu0 %v8879_v42 }
 0x16c   : >> { %v1470_v55 = vpop.permute.xlu2 %1469  ;;  %v2634_v29 = vsel %vm9855_vm15, %v8249_v13, %v2633_v58 }
 0x16d   : >> { %v1466_v57 = vpop.permute.xlu1 %1465  ;;  %1539 = vst.msk [vmem:[#allocation3 + $0x21c] sm:$0xf] %vm1511_vm1, %v1470_v55  ;;  %v8520_v3 = vld [vmem:[#allocation3 + $0x1e0] sm:$0xf] }
 0x16e   : >> { %2725 = vrot.lane.b32.xlu0 %v2623_v51, %s9286_s6  ;;  %1537 = vst.msk [vmem:[#allocation3 + $0x1f4] sm:$0xf] %vm1511_vm1, %v1466_v57  ;;  %v3058_v51 = vrot.slane %v3056_v45, 5  ;;  %v3062_v57 = vshll.u32 %v2921_v41, 16  ;;  %v8873_v41 = vld [vmem:[%s9811_s10 + $0xe0] sm:$0xff] }
 0x170   : >> { %v1450_v21 = vpop.permute.xlu0 %1449  ;;  %v8440_v16 = vld [vmem:[#allocation3 + $0x140] sm:$0xf]  ;;  %v3064_v49 = vrot.slane %v3062_v57, 5 }
 0x171   : >> { %1529 = vst.msk [vmem:[#allocation3 + $0x154] sm:$0xf] %vm1511_vm1, %v1450_v21  ;;  %v3059_v21 = vor.u32 %v3058_v51, %v3055_v47  ;;  %v3074_v47 = vrot.slane %v3072_v19, 5  ;;  %v8857_v51 = vld [vmem:[%s9811_s10 + $0x60] sm:$0xff] }
 0x172   : >> { %3350 = vrot.lane.b32.xlu2 %v3027_v30, %s9286_s6  ;;  %v929_v30 = vld [vmem:[#allocation2 + $0x4c] sm:$0xf]  ;;  %v3069_v32 = vor.u32 %v3068_v17, %v3064_v49  ;;  %4668 = vmatpush.bf16.msrb.mxu1 %v8857_v51  ;;  %v8871_v51 = vld [vmem:[%s9811_s10 + $0xd0] sm:$0xff] }
 0x173   : >> { %1893 = vrot.lane.b32.xlu1 %v1824_v59, %s9286_s6  ;;  %v8866_v59 = vld [vmem:[%s9811_s10 + $0xa8] sm:$0xff]  ;;  %961 = vst.msk [vmem:[#allocation3 + $0x104] sm:$0xf] %vm170_vm0, %v929_v30  ;;  %v3060_v22 = vrot.slane %v3059_v21, 4  ;;  %v947_v21 = vld [vmem:[#allocation2 + $0xb8] sm:$0xf] }
 0x174   : >> { %v1420_v37 = vpop.permute.xlu2 %1419  ;;  %4756 = vmatpush.bf16.msrb.mxu2 %v8866_v59  ;;  %v8831_v12 = vld [vmem:[#allocation3 + $0x218] sm:$0xf0]  ;;  %v3070_v46 = vrot.slane %v3069_v32, 4  ;;  %v1828_v59 = vld [vmem:[#allocation2 + $0x40] sm:$0xf] }
 0x175   : >> { %v1418_v10 = vpop.permute.xlu1 %1417  ;;  %v8826_v18 = vld [vmem:[#allocation3 + $0x1f0] sm:$0xf0]  ;;  %1514 = vst.msk [vmem:[#allocation3 + $0x28] sm:$0xf] %vm1511_vm1, %v1420_v37  ;;  %v2635_v37 = vrot.slane %v2633_v58, 4  ;;  %v8863_v32 = vld [vmem:[%s9811_s10 + $0x90] sm:$0xff] }
 0x176   : >> { %1891 = vrot.lane.b32.xlu0 %v1823_v11, %s9286_s6  ;;  %1513 = vst.msk [vmem:[#allocation3 + $0x14] sm:$0xf] %vm1511_vm1, %v1418_v10  ;;  %v8521_v27 = vor.u32 %v8826_v18, %v8520_v3  ;;  %v8874_v11 = vld [vmem:[%s9811_s10 + $0xe8] sm:$0xff]  ;;  %v3077_v18 = vshrl.u32 %v2923_v9, 16 }
 0x177   : >> { %4845 = vmatpush.bf16.msrb.mxu3 %v8874_v11  ;;  %v2926_v11 = vld [vmem:[#allocation2 + $0x60] sm:$0xf]  ;;  %979 = vst.msk [vmem:[#allocation3 + $0x26c] sm:$0xf] %vm170_vm0, %v947_v21  ;;  %v2526_v21 = vld [vmem:[#allocation2 + $0x58] sm:$0xf] }
 0x178   : >> { %v1416_v60 = vpop.permute.xlu0 %1415  ;;  %v8806_v35 = vld [vmem:[#allocation3 + $0x150] sm:$0xf0]  ;;  %4644 = vmatmul.bf16.vlgmr.msra.gmra.mxu3 %v8521_v27  ;;  %v3080_v27 = vshll.u32 %v2923_v9, 16  ;;  %4757 = vmatpush.bf16.msrb.mxu2 %v8865_v25  ;;  %v3079_v61 = vrot.slane %v3077_v18, 4  ;;  %v1827_v9 = vld [vmem:[#allocation2 + $0x3c] sm:$0xf] }
 0x179   : >> { %1512 = vst.msk [vmem:[#allocation3] sm:$0xf] %vm1511_vm1, %v1416_v60  ;;  %v8441_v39 = vor.u32 %v8806_v35, %v8440_v16  ;;  %v938_v60 = vld [vmem:[#allocation2 + $0x84] sm:$0xf]  ;;  %v8460_v35 = vld [vmem:[#allocation3 + $0x168] sm:$0xf] }
 0x17a   : >> { %2727 = vrot.lane.b32.xlu2 %v2627_v28, %s9286_s6  ;;  %v946_v28 = vld [vmem:[#allocation2 + $0xb4] sm:$0xf]  ;;  %970 = vst.msk [vmem:[#allocation3 + $0x1b8] sm:$0xf] %vm170_vm0, %v938_v60  ;;  %v3082_v44 = vrot.slane %v3080_v27, 5  ;;  %v3104_v19 = vshll.u32 %v2926_v11, 16 }
 0x17b   : >> { %4624 = vmatmul.bf16.vlgmr.msra.gmra.mxu2 %v8441_v39  ;;  %3352 = vrot.lane.b32.xlu1 %v3041_v38, %s9286_s6  ;;  %978 = vst.msk [vmem:[#allocation3 + $0x258] sm:$0xf] %vm170_vm0, %v946_v28  ;;  %v3065_v39 = vsel %vm9720_vm12, %v3060_v22, %v3064_v49  ;;  %v2643_v22 = vrot.slane %v9987_v63, 5  ;;  %v8856_v49 = vld [vmem:[%s9811_s10 + $0x58] sm:$0xff]  ;;  %v2011_v18 = vld [vmem:[#allocation2 + $0xc] sm:$0xf] }
 0x17c   : >> { %v1458_v52 = vpop.permute.xlu2 %1457  ;;  %4846 = vmatpush.bf16.msrb.mxu3 %v8873_v41  ;;  %v3083_v30 = vor.u32 %v3082_v44, %v3079_v61  ;;  %4758 = vmatpush.bf16.msrb.mxu2 %v8864_v2  ;;  %v2060_v25 = vshrl.u32 %v2011_v18, 16  ;;  %v8300_v28 = vld [vmem:[#allocation3 + $0x28] sm:$0xf]  ;;  %v2063_v60 = vshll.u32 %v2011_v18, 16  ;;  %v2069_v61 = vshll.u32 %v2012_v34, 16  ;;  %v8855_v63 = vld [vmem:[%s9811_s10 + $0x50] sm:$0xff] }
 0x17d   : >> { %v1468_v53 = vpop.permute.xlu1 %1467  ;;  %v8766_v55 = vld [vmem:[#allocation3 + $0x10] sm:$0xf0]  ;;  %1533 = vst.msk [vmem:[#allocation3 + $0x1a4] sm:$0xf] %vm1511_vm1, %v1458_v52  ;;  %v3086_v52 = vshll.u32 %v2924_v14, 16  ;;  %4669 = vmatpush.bf16.msrb.mxu1 %v8856_v49  ;;  %v2647_v49 = vrot.slane %v2526_v21, 5 }
 0x17e   : >> { %2729 = vrot.lane.b32.xlu0 %v2630_v43, %s9286_s6  ;;  %1538 = vst.msk [vmem:[#allocation3 + $0x208] sm:$0xf] %vm1511_vm1, %v1468_v53  ;;  %v2637_v43 = vsel %vm9855_vm15, %v2635_v37, %v2636_v33  ;;  %v2523_v53 = vld [vmem:[#allocation2 + $0x4c] sm:$0xf]  ;;  %v3084_v17 = vrot.slane %v3083_v30, 4  ;;  %v3092_v37 = vrot.slane %v3090_v20, 4 }
 0x17f   : >> { %v3088_v13 = vrot.slane %v3086_v52, 5  ;;  %v922_v14 = vld [vmem:[#allocation2 + $0x24] sm:$0xf]  ;;  %v8878_v52 = vld [vmem:[%s9811_s10 + $0x108] sm:$0xff]  ;;  %v2071_v30 = vrot.slane %v2069_v61, 5 }
 0x180   : >> { %v1454_v31 = vpop.permute.xlu0 %1453  ;;  %v8280_v4 = vld [vmem:[#allocation3] sm:$0xf]  ;;  %4759 = vmatpush.bf16.msrb.mxu2 %v8863_v32  ;;  %954 = vst.msk [vmem:[#allocation3 + $0x78] sm:$0xf] %vm170_vm0, %v922_v14  ;;  %4938 = vmatpush.bf16.msrb.mxu0 %v8878_v52 }
 0x181   : >> { %1531 = vst.msk [vmem:[#allocation3 + $0x17c] sm:$0xf] %vm1511_vm1, %v1454_v31  ;;  %v8281_v5 = vor.u32 %v8766_v55, %v8280_v4  ;;  %v3075_v31 = vsel %vm9720_vm12, %v3070_v46, %v3074_v47  ;;  %v930_v4 = vld [vmem:[#allocation2 + $0x54] sm:$0xf]  ;;  %v3089_v46 = vsel %vm9720_vm12, %v3084_v17, %v3088_v13  ;;  %v10011_v47 = vld [vmem:[#allocation2 + $0x64] sm:$0xf]  ;;  %4670 = vmatpush.bf16.msrb.mxu1 %v8855_v63 }
 0x182   : >> { %3354 = vrot.lane.b32.xlu2 %v3051_v56, %s9286_s6  ;;  %v931_v56 = vld [vmem:[#allocation2 + $0x58] sm:$0xf]  ;;  %962 = vst.msk [vmem:[#allocation3 + $0x118] sm:$0xf] %vm170_vm0, %v930_v4  ;;  %v3110_v2 = vshll.u32 %v10011_v47, 16 }
 0x183   : >> { %4584 = vmatmul.bf16.vlgmr.msra.gmra.mxu0 %v8281_v5  ;;  %1897 = vrot.lane.b32.xlu1 %v1826_v54, %s9286_s6  ;;  %v2522_v54 = vld [vmem:[#allocation2 + $0x48] sm:$0xe]  ;;  %963 = vst.msk [vmem:[#allocation3 + $0x12c] sm:$0xf] %vm170_vm0, %v931_v56  ;;  %v2844_v18 = vld [vmem:[#allocation2 + $0x18] sm:$0xf] }
 0x184   : >> { %v1440_v45 = vpop.permute.xlu2 %1439  ;;  %v8250_v23 = vrot.slane %v2522_v54, 9  ;;  %v8816_v24 = vld [vmem:[#allocation3 + $0x1a0] sm:$0xf0]  ;;  %2876 = vst.msk [vmem:[#allocation3 + $0xc] sm:$0xf] %vm170_vm0, %v2844_v18 }
 0x185   : >> { %v1438_v10 = vpop.permute.xlu1 %1437  ;;  %v8540_v3 = vld [vmem:[#allocation3 + $0x208] sm:$0xf]  ;;  %1524 = vst.msk [vmem:[#allocation3 + $0xf0] sm:$0xf] %vm1511_vm1, %v1440_v45 }
 0x186   : >> { %1895 = vrot.lane.b32.xlu0 %v1825_v6, %s9286_s6  ;;  %1523 = vst.msk [vmem:[#allocation3 + $0xdc] sm:$0xf] %vm1511_vm1, %v1438_v10  ;;  %v8541_v48 = vor.u32 %v8831_v12, %v8540_v3  ;;  %v2640_v6 = vrot.slane %v2523_v53, 5  ;;  %v8872_v12 = vld [vmem:[%s9811_s10 + $0xd8] sm:$0xff]  ;;  %v3101_v10 = vshrl.u32 %v2926_v11, 16 }
 0x187   : >> { %4847 = vmatpush.bf16.msrb.mxu3 %v8872_v12  ;;  %v2925_v3 = vld [vmem:[#allocation2 + $0x5c] sm:$0x1]  ;;  %v1830_v11 = vld [vmem:[#allocation2 + $0x4c] sm:$0xf] }
 0x188   : >> { %v1436_v16 = vpop.permute.xlu0 %1435  ;;  %v8811_v38 = vld [vmem:[#allocation3 + $0x178] sm:$0xf0]  ;;  %4649 = vmatmul.bf16.gmra.mxu3 %v8541_v48  ;;  %v2642_v33 = vrot.slane %v2640_v6, 4 }
 0x189   : >> { %1522 = vst.msk [vmem:[#allocation3 + $0xc8] sm:$0xf] %vm1511_vm1, %v1436_v16  ;;  %v8461_v40 = vor.u32 %v8811_v38, %v8460_v35  ;;  %v3093_v35 = vor.u32 %v3092_v37, %v3088_v13  ;;  %v3096_v38 = vshll.u32 %v2925_v3, 16  ;;  %v10032_v13 = vld [vmem:[#allocation2 + $0x6c] sm:$0xf]  ;;  %v10039_v3 = vrot.slane %v3110_v2, 5 }
 0x18a   : >> { %2731 = vrot.lane.b32.xlu2 %v2634_v29, %s9286_s6  ;;  %v2641_v29 = vsel %vm9855_vm15, %v8250_v23, %v2640_v6  ;;  %v2644_v53 = vsel %vm9855_vm15, %v2642_v33, %v2643_v22  ;;  %v8862_v23 = vld [vmem:[%s9811_s10 + $0x88] sm:$0xff]  ;;  %v3128_v14 = vshll.u32 %v10032_v13, 16  ;;  %v1545_v2 = vld [vmem:[#allocation2 + $0x4] sm:$0xf] }
 0x18b   : >> { %4629 = vmatmul.bf16.gmra.mxu2 %v8461_v40  ;;  %3356 = vrot.lane.b32.xlu1 %v3065_v39, %s9286_s6  ;;  %v2062_v39 = vrot.slane %v2060_v25, 4  ;;  %v923_v40 = vld [vmem:[#allocation2 + $0x28] sm:$0xf]  ;;  %v3094_v54 = vrot.slane %v3093_v35, 4  ;;  %v2013_v25 = vld [vmem:[#allocation2 + $0x14] sm:$0x1] }
 0x18c   : >> { %v1426_v55 = vpop.permute.xlu2 %1425  ;;  %955 = vst.msk [vmem:[#allocation3 + $0x8c] sm:$0xf] %vm170_vm0, %v923_v40  ;;  %4848 = vmatpush.bf16.msrb.mxu3 %v8871_v51  ;;  %4760 = vmatpush.bf16.msrb.mxu2 %v8862_v23  ;;  %v2079_v32 = vshll.u32 %v2013_v25, 16  ;;  %v2649_v35 = vrot.slane %v2647_v49, 4  ;;  %v3125_v40 = vshrl.u32 %v10032_v13, 16 }
 0x18d   : >> { %v1456_v57 = vpop.permute.xlu1 %1455  ;;  %v8791_v58 = vld [vmem:[#allocation3 + $0xd8] sm:$0xf0]  ;;  %1517 = vst.msk [vmem:[#allocation3 + $0x64] sm:$0xf] %vm1511_vm1, %v1426_v55  ;;  %v1544_v23 = vld [vmem:[#allocation2] sm:$0xe] }
 0x18e   : >> { %2733 = vrot.lane.b32.xlu0 %v2637_v43, %s9286_s6  ;;  %1532 = vst.msk [vmem:[#allocation3 + $0x190] sm:$0xf] %vm1511_vm1, %v1456_v57  ;;  %v2065_v43 = vrot.slane %v2063_v60, 5  ;;  %v3103_v57 = vrot.slane %v3101_v10, 4  ;;  %v2928_v60 = vld [vmem:[#allocation2 + $0x68] sm:$0x1] }
 0x18f   : >> { %v2081_v61 = vrot.slane %v2079_v32, 5  ;;  %v3120_v52 = vshll.u32 %v2928_v60, 16  ;;  %v1832_v60 = vld [vmem:[#allocation2 + $0x58] sm:$0xf] }
 0x190   : >> { %v1422_v36 = vpop.permute.xlu0 %1421  ;;  %v8380_v5 = vld [vmem:[#allocation3 + $0xc8] sm:$0xf]  ;;  %v2066_v55 = vor.u32 %v2065_v43, %v2062_v39  ;;  %v10048_v39 = vld [vmem:[#allocation2 + $0x70] sm:$0xf] }
 0x191   : >> { %1515 = vst.msk [vmem:[#allocation3 + $0x3c] sm:$0xf] %vm1511_vm1, %v1422_v36  ;;  %v8381_v8 = vor.u32 %v8791_v58, %v8380_v5  ;;  %v3106_v58 = vrot.slane %v3104_v19, 5  ;;  %v10022_v36 = vld [vmem:[#allocation2 + $0x5c] sm:$0x1] }
 0x192   : >> { %3358 = vrot.lane.b32.xlu2 %v3075_v31, %s9286_s6  ;;  %v2067_v20 = vrot.slane %v2066_v55, 4  ;;  %v2073_v31 = vshrl.u32 %v2012_v34, 16  ;;  %v8854_v34 = vld [vmem:[%s9811_s10 + $0x48] sm:$0xff]  ;;  %v2014_v55 = vld [vmem:[#allocation2 + $0x18] sm:$0xf] }
 0x193   : >> { %4609 = vmatmul.bf16.gmra.mxu1 %v8381_v8  ;;  %1901 = vrot.lane.b32.xlu1 %v1828_v59, %s9286_s6  ;;  %v3098_v59 = vrot.slane %v3096_v38, 5  ;;  %v2525_v8 = vld [vmem:[#allocation2 + $0x54] sm:$0xe]  ;;  %v3107_v12 = vor.u32 %v3106_v58, %v3103_v57  ;;  %v2087_v63 = vshll.u32 %v2014_v55, 16 }
 0x194   : >> { %v1476_v45 = vpop.permute.xlu2 %1475  ;;  %v2072_v6 = vsel %vm9720_vm12, %v2067_v20, %v2071_v30  ;;  %v2075_v37 = vrot.slane %v2073_v31, 4  ;;  %v10037_v10 = vld [vmem:[#allocation3 + $0x60] sm:$0xf0]  ;;  %v8251_v19 = vrot.slane %v2525_v8, 9  ;;  %4671 = vmatpush.bf16.msrb.mxu1 %v8854_v34  ;;  %v3134_v31 = vshll.u32 %v10048_v39, 16  ;;  %v8869_v8 = vld [vmem:[%s9811_s10 + $0xc0] sm:$0xff] }
 0x195   : >> { %v1474_v27 = vpop.permute.xlu1 %1473  ;;  %v8480_v48 = vld [vmem:[#allocation3 + $0x190] sm:$0xf]  ;;  %1542 = vst.msk [vmem:[#allocation3 + $0x258] sm:$0xf] %vm1511_vm1, %v1476_v45 }
 0x196   : >> { %1899 = vrot.lane.b32.xlu0 %v1827_v9, %s9286_s6  ;;  %1541 = vst.msk [vmem:[#allocation3 + $0x244] sm:$0xf] %vm1511_vm1, %v1474_v27  ;;  %v8481_v16 = vor.u32 %v8816_v24, %v8480_v48  ;;  %v3099_v9 = vsel %vm9720_vm12, %v3094_v54, %v3098_v59  ;;  %v2845_v24 = vld [vmem:[#allocation2 + $0x1c] sm:$0xf]  ;;  %v1829_v45 = vld [vmem:[#allocation2 + $0x48] sm:$0xf]  ;;  %v2648_v51 = vsel %vm9855_vm15, %v8251_v19, %v2647_v49 }
 0x197   : >> { %2475 = vst.msk [vmem:[#allocation3 + $0x8] sm:$0xf] %vm170_vm0, %v2072_v6  ;;  %v8870_v27 = vld [vmem:[%s9811_s10 + $0xc8] sm:$0xff]  ;;  %v2650_v48 = vrot.slane %v10022_v36, 5  ;;  %v2015_v54 = vld [vmem:[#allocation2 + $0x1c] sm:$0xf] }
 0x198   : >> { %v1472_v41 = vpop.permute.xlu0 %1471  ;;  %v8771_v42 = vld [vmem:[#allocation3 + $0x38] sm:$0xf0]  ;;  %2877 = vst.msk [vmem:[#allocation3 + $0x20] sm:$0xf] %vm170_vm0, %v2845_v24  ;;  %4849 = vmatpush.bf16.msrb.mxu3 %v8870_v27  ;;  %v2084_v59 = vshrl.u32 %v2014_v55, 16  ;;  %v2093_v6 = vshll.u32 %v2015_v54, 16 }
 0x199   : >> { %1540 = vst.msk [vmem:[#allocation3 + $0x230] sm:$0xf] %vm1511_vm1, %v1472_v41  ;;  %v8301_v44 = vor.u32 %v8771_v42, %v8300_v28  ;;  %v2076_v28 = vor.u32 %v2075_v37, %v2071_v30  ;;  %v8229_v49 = vrot.slane %v1544_v23, 9  ;;  %v8877_v37 = vld [vmem:[%s9811_s10 + $0x100] sm:$0xff]  ;;  %v2097_v27 = vshrl.u32 %v2015_v54, 16 }
 0x19a   : >> { %2735 = vrot.lane.b32.xlu2 %v2641_v29, %s9286_s6  ;;  %v3108_v29 = vrot.slane %v3107_v12, 4  ;;  %v2086_v36 = vrot.slane %v2084_v59, 4  ;;  %v3122_v12 = vrot.slane %v3120_v52, 5  ;;  %v10075_v19 = vld [vmem:[#allocation2 + $0x68] sm:$0x1]  ;;  %4939 = vmatpush.bf16.msrb.mxu0 %v8877_v37 }
 0x19b   : >> { %4589 = vmatmul.bf16.gmra.mxu0 %v8301_v44  ;;  %4634 = vmatmul.bf16.gmra.mxu2 %v8481_v16  ;;  %v3114_v16 = vshrl.u32 %v10011_v47, 16  ;;  %v2077_v41 = vrot.slane %v2076_v28, 4  ;;  %v8400_v47 = vld [vmem:[#allocation3 + $0xf0] sm:$0xf]  ;;  %v2095_v28 = vrot.slane %v2093_v6, 5  ;;  %v2099_v34 = vrot.slane %v2097_v27, 4 }
 0x19c   : >> { %3360 = vrot.lane.b32.xlu1 %v3089_v46, %s9286_s6  ;;  %v1446_v56 = vpop.permute.xlu2 %1445  ;;  %v3113_v30 = vsel %vm9720_vm12, %v3108_v29, %v10039_v3  ;;  %4850 = vmatpush.bf16.msrb.mxu3 %v8869_v8  ;;  %v2932_v52 = vld [vmem:[#allocation2 + $0x78] sm:$0xf]  ;;  %v2846_v54 = vld [vmem:[#allocation2 + $0x24] sm:$0xf]  ;;  %v2016_v59 = vld [vmem:[#allocation2 + $0x20] sm:$0x1] }
 0x19d   : >> { %v1424_v4 = vpop.permute.xlu1 %1423  ;;  %1527 = vst.msk [vmem:[#allocation3 + $0x12c] sm:$0xf] %vm1511_vm1, %v1446_v56  ;;  %v8836_v5 = vld [vmem:[#allocation3 + $0x240] sm:$0xf0]  ;;  %v3116_v44 = vrot.slane %v3114_v16, 4  ;;  %v2082_v57 = vsel %vm9720_vm12, %v2077_v41, %v2081_v61  ;;  %v10082_v16 = vrot.slane %v3134_v31, 5 }
 0x19e   : >> { %2737 = vrot.lane.b32.xlu0 %v2644_v53, %s9286_s6  ;;  %1516 = vst.msk [vmem:[#allocation3 + $0x50] sm:$0xf] %vm1511_vm1, %v1424_v4  ;;  %v8861_v53 = vld [vmem:[%s9811_s10 + $0x80] sm:$0xff]  ;;  %v1645_v4 = vrot.slane %v1545_v2, 5  ;;  %v3468_v8 = vld [vmem:[#allocation2 + $0x18] sm:$0xe] }
 0x19f   : >> { %v3117_v58 = vor.u32 %v3116_v44, %v10039_v3  ;;  %2476 = vst.msk [vmem:[#allocation3 + $0x1c] sm:$0xf] %vm170_vm0, %v2082_v57  ;;  %4761 = vmatpush.bf16.msrb.mxu2 %v8861_v53  ;;  %v2529_v3 = vld [vmem:[#allocation2 + $0x64] sm:$0xf]  ;;  %v2657_v44 = vrot.slane %v10075_v19, 5  ;;  %v2100_v53 = vor.u32 %v2099_v34, %v2095_v28 }
 0x1a0   : >> { %v1442_v17 = vpop.permute.xlu0 %1441  ;;  %v8560_v22 = vld [vmem:[#allocation3 + $0x230] sm:$0xf]  ;;  %v1647_v13 = vrot.slane %v1645_v4, 4  ;;  %v2654_v61 = vrot.slane %v2529_v3, 5  ;;  %2878 = vst.msk [vmem:[#allocation3 + $0x34] sm:$0xf] %vm170_vm0, %v2846_v54 }
 0x1a1   : >> { %1525 = vst.msk [vmem:[#allocation3 + $0x104] sm:$0xf] %vm1511_vm1, %v1442_v17  ;;  %v8561_v33 = vor.u32 %v8836_v5, %v8560_v22  ;;  %v2089_v5 = vrot.slane %v2087_v63, 5  ;;  %v3118_v24 = vrot.slane %v3117_v58, 4  ;;  %v2847_v57 = vld [vmem:[#allocation2 + $0x28] sm:$0xf] }
 0x1a2   : >> { %3362 = vrot.lane.b32.xlu2 %v3099_v9, %s9286_s6  ;;  %v1546_v9 = vld [vmem:[#allocation2 + $0x8] sm:$0x1]  ;;  %v3138_v58 = vshrl.u32 %v10048_v39, 16  ;;  %2879 = vst.msk [vmem:[#allocation3 + $0x48] sm:$0xf] %vm170_vm0, %v2847_v57  ;;  %v2656_v2 = vrot.slane %v2654_v61, 4 }
 0x1a3   : >> { %4654 = vmatmul.bf16.gmra.mxu3 %v8561_v33  ;;  %v2090_v17 = vor.u32 %v2089_v5, %v2086_v36  ;;  %v1648_v22 = vrot.slane %v1546_v9, 5  ;;  %v8853_v33 = vld [vmem:[%s9811_s10 + $0x40] sm:$0xff]  ;;  %v2103_v39 = vshll.u32 %v2016_v59, 16  ;;  %v8580_v5 = vld [vmem:[#allocation3 + $0x258] sm:$0xf] }
 0x1a4   : >> { %1905 = vrot.lane.b32.xlu1 %v1830_v11, %s9286_s6  ;;  %v2716_v38 = vpop.permute.xlu2 %2715  ;;  %v2651_v11 = vsel %vm9855_vm15, %v2649_v35, %v2650_v48  ;;  %4672 = vmatpush.bf16.msrb.mxu1 %v8853_v33  ;;  %v3123_v35 = vsel %vm9720_vm12, %v3118_v24, %v3122_v12  ;;  %v3470_v9 = vld [vmem:[#allocation2 + $0x20] sm:$0x1]  ;;  %v3140_v24 = vrot.slane %v3138_v58, 4  ;;  %v2931_v33 = vld [vmem:[#allocation2 + $0x74] sm:$0x1] }
 0x1a5   : >> { %v1462_v42 = vpop.permute.xlu1 %1461  ;;  %v8320_v43 = vld [vmem:[#allocation3 + $0x50] sm:$0xf]  ;;  %2811 = vst.msk [vmem:[#allocation3 + $0x8] sm:$0xf] %vm1511_vm1, %v2716_v38  ;;  %v2091_v25 = vrot.slane %v2090_v17, 4  ;;  %v1649_v29 = vsel %vm9855_vm15, %v1647_v13, %v1648_v22  ;;  %v2105_v12 = vrot.slane %v2103_v39, 5 }
 0x1a6   : >> { %1903 = vrot.lane.b32.xlu0 %v1829_v45, %s9286_s6  ;;  %1535 = vst.msk [vmem:[#allocation3 + $0x1cc] sm:$0xf] %vm1511_vm1, %v1462_v42  ;;  %v8321_v46 = vor.u32 %v10037_v10, %v8320_v43  ;;  %v3127_v45 = vrot.slane %v3125_v40, 4  ;;  %v3130_v10 = vrot.slane %v3128_v14, 5  ;;  %v1646_v40 = vsel %vm9855_vm15, %v8229_v49, %v1645_v4  ;;  %v2528_v14 = vld [vmem:[#allocation2 + $0x60] sm:$0xe] }
 0x1a7   : >> { %v2096_v38 = vsel %vm9720_vm12, %v2091_v25, %v2095_v28  ;;  %1788 = vst.msk [vmem:[#allocation3 + $0x18] sm:$0xf] %vm170_vm0, %v1649_v29  ;;  %v8252_v55 = vrot.slane %v2528_v14, 9  ;;  %v8261_v13 = vrot.slane %v3468_v8, 9  ;;  %v3569_v37 = vrot.slane %v3470_v9, 5 }
 0x1a8   : >> { %v1460_v56 = vpop.permute.xlu0 %1459  ;;  %v8796_v20 = vld [vmem:[#allocation3 + $0x100] sm:$0xf0]  ;;  %v3131_v43 = vor.u32 %v3130_v10, %v3127_v45  ;;  %2477 = vst.msk [vmem:[#allocation3 + $0x30] sm:$0xf] %vm170_vm0, %v2096_v38  ;;  %v3141_v25 = vor.u32 %v3140_v24, %v10082_v16  ;;  %v3144_v28 = vshll.u32 %v2931_v33, 16  ;;  %v2658_v29 = vsel %vm9855_vm15, %v2656_v2, %v2657_v44 }
 0x1a9   : >> { %1534 = vst.msk [vmem:[#allocation3 + $0x1b8] sm:$0xf] %vm1511_vm1, %v1460_v56  ;;  %v8401_v21 = vor.u32 %v8796_v20, %v8400_v47  ;;  %v1831_v47 = vld [vmem:[#allocation2 + $0x54] sm:$0xf]  ;;  %v3149_v20 = vshrl.u32 %v2932_v52, 16  ;;  %v2655_v6 = vsel %vm9855_vm15, %v8252_v55, %v2654_v61 }
 0x1aa   : >> { %2739 = vrot.lane.b32.xlu2 %v2648_v51, %s9286_s6  ;;  %v8801_v51 = vld [vmem:[#allocation3 + $0x128] sm:$0xf0]  ;;  %1787 = vst.msk [vmem:[#allocation3 + $0x4] sm:$0xf] %vm170_vm0, %v1646_v40  ;;  %v3132_v63 = vrot.slane %v3131_v43, 4  ;;  %v3146_v40 = vrot.slane %v3144_v28, 5 }
 0x1ab   : >> { %4594 = vmatmul.bf16.gmra.mxu0 %v8321_v46  ;;  %4614 = vmatmul.bf16.gmra.mxu1 %v8401_v21  ;;  %v2101_v21 = vrot.slane %v2100_v53, 4  ;;  %v10114_v27 = vld [vmem:[#allocation2 + $0x7c] sm:$0xf]  ;;  %v2017_v34 = vld [vmem:[#allocation2 + $0x24] sm:$0xf] }
 0x1ac   : >> { %3364 = vrot.lane.b32.xlu1 %v3113_v30, %s9286_s6  ;;  %v3343_v18 = vpop.permute.xlu2 %3342  ;;  %v3152_v30 = vshll.u32 %v2932_v52, 16  ;;  %v3137_v49 = vsel %vm9720_vm12, %v3132_v63, %v10082_v16  ;;  %v3142_v16 = vrot.slane %v3141_v25, 4  ;;  %v2108_v14 = vshrl.u32 %v2017_v34, 16  ;;  %v1549_v55 = vld [vmem:[#allocation2 + $0x14] sm:$0x1] }
 0x1ad   : >> { %v1444_v48 = vpop.permute.xlu1 %1443  ;;  %3437 = vst.msk [vmem:[#allocation3 + $0x20] sm:$0xf] %vm1511_vm1, %v3343_v18  ;;  %v8821_v32 = vld [vmem:[#allocation3 + $0x1c8] sm:$0xf0]  ;;  %v2106_v10 = vsel %vm9720_vm12, %v2101_v21, %v2105_v12  ;;  %v3158_v52 = vshll.u32 %v10114_v27, 16 }
 0x1ae   : >> { %2741 = vrot.lane.b32.xlu0 %v2651_v11, %s9286_s6  ;;  %1526 = vst.msk [vmem:[#allocation3 + $0x118] sm:$0xf] %vm1511_vm1, %v1444_v48  ;;  %v3469_v11 = vld [vmem:[#allocation2 + $0x1c] sm:$0xf]  ;;  %v3151_v48 = vrot.slane %v3149_v20, 4  ;;  %v3154_v19 = vrot.slane %v3152_v30, 5  ;;  %v3147_v53 = vsel %vm9720_vm12, %v3142_v16, %v3146_v40 }
 0x1af   : >> { %v3566_v23 = vrot.slane %v3469_v11, 5  ;;  %2478 = vst.msk [vmem:[#allocation3 + $0x44] sm:$0xf] %vm170_vm0, %v2106_v10  ;;  %v1547_v58 = vld [vmem:[#allocation2 + $0xc] sm:$0xe]  ;;  %v1655_v20 = vrot.slane %v1549_v55, 5 }
 0x1b0   : >> { %v1478_v41 = vpop.permute.xlu0 %1477  ;;  %v8500_v42 = vld [vmem:[#allocation3 + $0x1b8] sm:$0xf]  ;;  %v1834_v63 = vld [vmem:[#allocation2 + $0x64] sm:$0xf]  ;;  %v3155_v2 = vor.u32 %v3154_v19, %v3151_v48  ;;  %v8230_v30 = vrot.slane %v1547_v58, 9  ;;  %v10138_v9 = vrot.slane %v3158_v52, 5 }
 0x1b1   : >> { %1543 = vst.msk [vmem:[#allocation3 + $0x26c] sm:$0xf] %vm1511_vm1, %v1478_v41  ;;  %v8501_v46 = vor.u32 %v8821_v32, %v8500_v42  ;;  %v3567_v3 = vsel %vm9855_vm15, %v8261_v13, %v3566_v23  ;;  %v3568_v18 = vrot.slane %v3566_v23, 4  ;;  %v2111_v41 = vshll.u32 %v2017_v34, 16  ;;  %v2935_v11 = vld [vmem:[#allocation2 + $0x84] sm:$0xf] }
 0x1b2   : >> { %3366 = vrot.lane.b32.xlu2 %v3123_v35, %s9286_s6  ;;  %3708 = vst.msk [vmem:[#allocation3 + $0x10] sm:$0xf] %vm170_vm0, %v3567_v3  ;;  %v10124_v35 = vld [vmem:[#allocation2 + $0x70] sm:$0xf]  ;;  %v2533_v13 = vld [vmem:[#allocation2 + $0x74] sm:$0x1] }
 0x1b3   : >> { %4639 = vmatmul.bf16.gmra.mxu2 %v8501_v46  ;;  %v3570_v32 = vsel %vm9855_vm15, %v3568_v18, %v3569_v37  ;;  %v2110_v46 = vrot.slane %v2108_v14, 4  ;;  %v2661_v21 = vrot.slane %v10124_v35, 5  ;;  %v3173_v33 = vshrl.u32 %v2935_v11, 16  ;;  %v10148_v3 = vld [vmem:[#allocation2 + $0x88] sm:$0xf] }
 0x1b4   : >> { %1909 = vrot.lane.b32.xlu1 %v1832_v60, %s9286_s6  ;;  %v2720_v56 = vpop.permute.xlu2 %2719  ;;  %v2018_v60 = vld [vmem:[#allocation2 + $0x28] sm:$0xf]  ;;  %3709 = vst.msk [vmem:[#allocation3 + $0x24] sm:$0xf] %vm170_vm0, %v3570_v32  ;;  %v8288_v19 = vld [vmem:[#allocation3 + $0x8] sm:$0xf] }
 0x1b5   : >> { %v1430_v31 = vpop.permute.xlu1 %1429  ;;  %v8420_v4 = vld [vmem:[#allocation3 + $0x118] sm:$0xf]  ;;  %2813 = vst.msk [vmem:[#allocation3 + $0x30] sm:$0xf] %vm1511_vm1, %v2720_v56  ;;  %v2117_v61 = vshll.u32 %v2018_v60, 16  ;;  %v2121_v44 = vshrl.u32 %v2018_v60, 16 }
 0x1b6   : >> { %1907 = vrot.lane.b32.xlu0 %v1831_v47, %s9286_s6  ;;  %1519 = vst.msk [vmem:[#allocation3 + $0x8c] sm:$0xf] %vm1511_vm1, %v1430_v31  ;;  %v8421_v36 = vor.u32 %v8801_v51, %v8420_v4  ;;  %v2113_v47 = vrot.slane %v2111_v41, 5  ;;  %v1548_v51 = vld [vmem:[#allocation2 + $0x10] sm:$0xf]  ;;  %v2663_v18 = vrot.slane %v2661_v21, 4 }
 0x1b7   : >> { %v1652_v57 = vrot.slane %v1548_v51, 5  ;;  %v1833_v4 = vld [vmem:[#allocation2 + $0x60] sm:$0xf]  ;;  %v2123_v12 = vrot.slane %v2121_v44, 4  ;;  %v2664_v28 = vrot.slane %v2533_v13, 5  ;;  %v3176_v32 = vshll.u32 %v2935_v11, 16 }
 0x1b8   : >> { %v1428_v17 = vpop.permute.xlu0 %1427  ;;  %v8841_v22 = vld [vmem:[#allocation3 + $0x268] sm:$0xf0]  ;;  %v2114_v56 = vor.u32 %v2113_v47, %v2110_v46  ;;  %v10155_v35 = vrot.slane %v3173_v33, 4  ;;  %v2849_v16 = vld [vmem:[#allocation2 + $0x34] sm:$0xf] }
 0x1b9   : >> { %1518 = vst.msk [vmem:[#allocation3 + $0x78] sm:$0xf] %vm1511_vm1, %v1428_v17  ;;  %v8581_v45 = vor.u32 %v8841_v22, %v8580_v5  ;;  %v1654_v39 = vrot.slane %v1652_v57, 4  ;;  %v1653_v8 = vsel %vm9855_vm15, %v8230_v30, %v1652_v57  ;;  %v8290_v17 = vld [vmem:[#allocation3 + $0x1c] sm:$0xf0]  ;;  %v3156_v22 = vrot.slane %v3155_v2, 4 }
 0x1ba   : >> { %2743 = vrot.lane.b32.xlu2 %v2655_v6, %s9286_s6  ;;  %v2115_v5 = vrot.slane %v2114_v56, 4  ;;  %v2119_v6 = vrot.slane %v2117_v61, 5  ;;  %1789 = vst.msk [vmem:[#allocation3 + $0x2c] sm:$0xf] %vm170_vm0, %v1653_v8  ;;  %v2848_v41 = vld [vmem:[#allocation2 + $0x30] sm:$0xf]  ;;  %v2665_v51 = vsel %vm9855_vm15, %v2663_v18, %v2664_v28 }
 0x1bb   : >> { %4619 = vmatmul.bf16.gmra.mxu1 %v8421_v36  ;;  %4659 = vmatmul.bf16.gmra.mxu3 %v8581_v45  ;;  %v2531_v36 = vld [vmem:[#allocation2 + $0x6c] sm:$0xe]  ;;  %v1656_v23 = vsel %vm9855_vm15, %v1654_v39, %v1655_v20  ;;  %v3161_v14 = vsel %vm9720_vm12, %v3156_v22, %v10138_v9  ;;  %v8768_v61 = vld [vmem:[#allocation3 + $0x20] sm:$0xf0]  ;;  %2881 = vst.msk [vmem:[#allocation3 + $0x70] sm:$0xf] %vm170_vm0, %v2849_v16 }
 0x1bc   : >> { %3368 = vrot.lane.b32.xlu1 %v3137_v49, %s9286_s6  ;;  %v3347_v38 = vpop.permute.xlu2 %3346  ;;  %v8253_v24 = vrot.slane %v2531_v36, 9  ;;  %v2120_v49 = vsel %vm9720_vm12, %v2115_v5, %v2119_v6  ;;  %1790 = vst.msk [vmem:[#allocation3 + $0x40] sm:$0xf] %vm170_vm0, %v1656_v23  ;;  %v2124_v48 = vor.u32 %v2123_v12, %v2119_v6  ;;  %v3471_v47 = vld [vmem:[#allocation2 + $0x24] sm:$0xe]  ;;  %v3178_v52 = vrot.slane %v3176_v32, 5 }
 0x1bd   : >> { %v3341_v42 = vpop.permute.xlu1 %3340  ;;  %v8781_v43 = vld [vmem:[#allocation3 + $0x88] sm:$0xf0]  ;;  %3439 = vst.msk [vmem:[#allocation3 + $0x48] sm:$0xf] %vm1511_vm1, %v3347_v38  ;;  %v3182_v38 = vshll.u32 %v10148_v3, 16  ;;  %v8262_v55 = vrot.slane %v3471_v47, 9 }
 0x1be   : >> { %2745 = vrot.lane.b32.xlu0 %v2658_v29, %s9286_s6  ;;  %3436 = vst.msk [vmem:[#allocation3 + $0xc] sm:$0xf] %vm1511_vm1, %v3341_v42  ;;  %v2662_v29 = vsel %vm9855_vm15, %v8253_v24, %v2661_v21  ;;  %v2019_v42 = vld [vmem:[#allocation2 + $0x2c] sm:$0x1]  ;;  %v2125_v44 = vrot.slane %v2124_v48, 4  ;;  %v3162_v20 = vshrl.u32 %v10114_v27, 16  ;;  %v3179_v12 = vor.u32 %v3178_v52, %v10155_v35 }
 0x1bf   : >> { %2479 = vst.msk [vmem:[#allocation3 + $0x58] sm:$0xf] %vm170_vm0, %v2120_v49  ;;  %v2127_v46 = vshll.u32 %v2019_v42, 16  ;;  %v1836_v5 = vld [vmem:[#allocation2 + $0x70] sm:$0xf]  ;;  %v10180_v13 = vrot.slane %v3182_v38, 5 }
 0x1c0   : >> { %v2718_v54 = vpop.permute.xlu0 %2717  ;;  %v8340_v59 = vld [vmem:[#allocation3 + $0x78] sm:$0xf]  ;;  %2880 = vst.msk [vmem:[#allocation3 + $0x5c] sm:$0xf] %vm170_vm0, %v2848_v41  ;;  %v10176_v6 = vld [vmem:[#allocation2 + $0x7c] sm:$0xf] }
 0x1c1   : >> { %2812 = vst.msk [vmem:[#allocation3 + $0x1c] sm:$0xf] %vm1511_vm1, %v2718_v54  ;;  %v8341_v31 = vor.u32 %v8781_v43, %v8340_v59  ;;  %v8296_v43 = vld [vmem:[#allocation3 + $0x10] sm:$0xf]  ;;  %v2129_v58 = vrot.slane %v2127_v46, 5  ;;  %v3164_v27 = vrot.slane %v3162_v20, 4 }
 0x1c2   : >> { %3370 = vrot.lane.b32.xlu2 %v3147_v53, %s9286_s6  ;;  %v3472_v53 = vld [vmem:[#allocation2 + $0x28] sm:$0xf]  ;;  %v3473_v54 = vld [vmem:[#allocation2 + $0x2c] sm:$0x1]  ;;  %v8297_v36 = vor.u32 %v8768_v61, %v8296_v43  ;;  %v10186_v49 = vld [vmem:[#allocation2 + $0x80] sm:$0x1] }
 0x1c3   : >> { %4599 = vmatmul.bf16.gmra.mxu0 %v8341_v31  ;;  %v3573_v59 = vrot.slane %v3472_v53, 5  ;;  %v3576_v56 = vrot.slane %v3473_v54, 5  ;;  %v2130_v31 = vsel %vm9720_vm12, %v2125_v44, %v2129_v58  ;;  %v1835_v22 = vld [vmem:[#allocation2 + $0x6c] sm:$0xf]  ;;  %v2020_v33 = vld [vmem:[#allocation2 + $0x30] sm:$0xf] }
 0x1c4   : >> { %1913 = vrot.lane.b32.xlu1 %v1834_v63, %s9286_s6  ;;  %v2724_v37 = vpop.permute.xlu2 %2723  ;;  %v2934_v63 = vld [vmem:[#allocation2 + $0x80] sm:$0x1]  ;;  %2480 = vst.msk [vmem:[#allocation3 + $0x6c] sm:$0xf] %vm170_vm0, %v2130_v31  ;;  %v2132_v18 = vshrl.u32 %v2020_v33, 16  ;;  %v2135_v48 = vshll.u32 %v2020_v33, 16 }
 0x1c5   : >> { %v1886_v45 = vpop.permute.xlu1 %1885  ;;  %v8765_v10 = vld [vmem:[#allocation3 + $0xc] sm:$0xf]  ;;  %2815 = vst.msk [vmem:[#allocation3 + $0x58] sm:$0xf] %vm1511_vm1, %v2724_v37  ;;  %v3575_v21 = vrot.slane %v3573_v59, 4  ;;  %v3168_v39 = vshll.u32 %v2934_v63, 16  ;;  %v3165_v37 = vor.u32 %v3164_v27, %v10138_v9 }
 0x1c6   : >> { %1911 = vrot.lane.b32.xlu0 %v1833_v4, %s9286_s6  ;;  %1980 = vst.msk [vmem:[#allocation3 + $0x18] sm:$0xf] %vm1511_vm1, %v1886_v45  ;;  %v8293_v25 = vor.u32 %v8765_v10, %v8290_v17  ;;  %v3574_v4 = vsel %vm9855_vm15, %v8262_v55, %v3573_v59  ;;  %v2021_v45 = vld [vmem:[#allocation2 + $0x34] sm:$0xf]  ;;  %v8310_v10 = vld [vmem:[#allocation3 + $0x44] sm:$0xf0] }
 0x1c7   : >> { %v3577_v23 = vsel %vm9855_vm15, %v3575_v21, %v3576_v56  ;;  %3710 = vst.msk [vmem:[#allocation3 + $0x38] sm:$0xf] %vm170_vm0, %v3574_v4  ;;  %v3170_v24 = vrot.slane %v3168_v39, 5  ;;  %v2668_v28 = vrot.slane %v10176_v6, 5  ;;  %v1551_v32 = vld [vmem:[#allocation2 + $0x1c] sm:$0xf] }
 0x1c8   : >> { %v1884_v34 = vpop.permute.xlu0 %1883  ;;  %v8767_v60 = vld [vmem:[#allocation3 + $0x18] sm:$0xf0]  ;;  %3711 = vst.msk [vmem:[#allocation3 + $0x4c] sm:$0xf] %vm170_vm0, %v3577_v23  ;;  %v3180_v9 = vrot.slane %v3179_v12, 4  ;;  %v2137_v35 = vrot.slane %v2135_v48, 5 }
 0x1c9   : >> { %1979 = vst.msk [vmem:[#allocation3 + $0x4] sm:$0xf] %vm1511_vm1, %v1884_v34  ;;  %v8289_v40 = vor.u32 %v8767_v60, %v8288_v19  ;;  %v2141_v19 = vshll.u32 %v2021_v45, 16  ;;  %v1552_v34 = vld [vmem:[#allocation2 + $0x20] sm:$0x1]  ;;  %v2134_v60 = vrot.slane %v2132_v18, 4 }
 0x1ca   : >> { %2747 = vrot.lane.b32.xlu2 %v2662_v29, %s9286_s6  ;;  %v3166_v29 = vrot.slane %v3165_v37, 4  ;;  %v1659_v16 = vrot.slane %v1551_v32, 5  ;;  %v1662_v61 = vrot.slane %v1552_v34, 5  ;;  %v8308_v46 = vld [vmem:[#allocation3 + $0x30] sm:$0xf]  ;;  %v2671_v47 = vrot.slane %v10186_v49, 5 }
 0x1cb   : >> { %4762 = vmatmul.bf16.vlgmr.msrb.gmra.mxu2 %v8289_v40  ;;  %4851 = vmatmul.bf16.vlgmr.msrb.gmra.mxu3 %v8293_v25  ;;  %v2145_v25 = vshrl.u32 %v2021_v45, 16  ;;  %v1550_v40 = vld [vmem:[#allocation2 + $0x18] sm:$0xe]  ;;  %v2143_v43 = vrot.slane %v2141_v19, 5  ;;  %v2938_v59 = vld [vmem:[#allocation2 + $0x90] sm:$0xf]  ;;  %v3185_v21 = vsel %vm9720_vm12, %v3180_v9, %v10180_v13 }
 0x1cc   : >> { %3372 = vrot.lane.b32.xlu1 %v3161_v14, %s9286_s6  ;;  %v3351_v57 = vpop.permute.xlu2 %3350  ;;  %v3171_v42 = vsel %vm9720_vm12, %v3166_v29, %v3170_v24  ;;  %v8231_v44 = vrot.slane %v1550_v40, 9  ;;  %v1661_v52 = vrot.slane %v1659_v16, 4  ;;  %v2534_v54 = vld [vmem:[#allocation2 + $0x78] sm:$0xe]  ;;  %v3186_v63 = vshrl.u32 %v10148_v3, 16 }
 0x1cd   : >> { %v3345_v2 = vpop.permute.xlu1 %3344  ;;  %3441 = vst.msk [vmem:[#allocation3 + $0x70] sm:$0xf] %vm1511_vm1, %v3351_v57  ;;  %v8282_v30 = vld [vmem:[#allocation3 + $0x14] sm:$0xf0]  ;;  %v2147_v53 = vrot.slane %v2145_v25, 4  ;;  %v2670_v57 = vrot.slane %v2668_v28, 4 }
 0x1ce   : >> { %2749 = vrot.lane.b32.xlu0 %v2665_v51, %s9286_s6  ;;  %3438 = vst.msk [vmem:[#allocation3 + $0x34] sm:$0xf] %vm1511_vm1, %v3345_v2  ;;  %v2138_v51 = vor.u32 %v2137_v35, %v2134_v60  ;;  %v1660_v58 = vsel %vm9855_vm15, %v8231_v44, %v1659_v16  ;;  %v8254_v31 = vrot.slane %v2534_v54, 9  ;;  %v10209_v39 = vld [vmem:[#allocation2 + $0x94] sm:$0xf]  ;;  %v3197_v6 = vshrl.u32 %v2938_v59, 16 }
 0x1cf   : >> { %1791 = vst.msk [vmem:[#allocation3 + $0x54] sm:$0xf] %vm170_vm0, %v1660_v58  ;;  %v8316_v3 = vld [vmem:[#allocation3 + $0x38] sm:$0xf]  ;;  %v10214_v27 = vld [vmem:[#allocation2 + $0x88] sm:$0xf] }
 0x1d0   : >> { %v2722_v8 = vpop.permute.xlu0 %2721  ;;  %v8764_v11 = vld [vmem:[#allocation3 + $0x4] sm:$0xf]  ;;  %v2139_v20 = vrot.slane %v2138_v51, 4  ;;  %v2669_v12 = vsel %vm9855_vm15, %v8254_v31, %v2668_v28  ;;  %v3200_v23 = vshll.u32 %v2938_v59, 16  ;;  %v3188_v24 = vrot.slane %v3186_v63, 4 }
 0x1d1   : >> { %2814 = vst.msk [vmem:[#allocation3 + $0x44] sm:$0xf] %vm1511_vm1, %v2722_v8  ;;  %v8285_v17 = vor.u32 %v8764_v11, %v8282_v30  ;;  %v1663_v30 = vsel %vm9855_vm15, %v1661_v52, %v1662_v61  ;;  %v2672_v8 = vsel %vm9855_vm15, %v2670_v57, %v2671_v47  ;;  %v8773_v11 = vld [vmem:[#allocation3 + $0x48] sm:$0xf0]  ;;  %v3206_v45 = vshll.u32 %v10209_v39, 16 }
 0x1d2   : >> { %3374 = vrot.lane.b32.xlu2 %v3171_v42, %s9286_s6  ;;  %1792 = vst.msk [vmem:[#allocation3 + $0x68] sm:$0xf] %vm170_vm0, %v1663_v30  ;;  %v3202_v33 = vrot.slane %v3200_v23, 5  ;;  %v2851_v18 = vld [vmem:[#allocation2 + $0x40] sm:$0xf]  ;;  %v8317_v28 = vor.u32 %v8773_v11, %v8316_v3  ;;  %v3189_v60 = vor.u32 %v3188_v24, %v10180_v13 }
 0x1d3   : >> { %4673 = vmatmul.bf16.vlgmr.msrb.gmra.mxu1 %v8285_v17  ;;  %8742 = vmatmul.msk.bf16.vlgmr.msrb.gmra.mxu0 %vm4527_vm4, %v8297_v36  ;;  %v2148_v36 = vor.u32 %v2147_v53, %v2143_v43  ;;  %v3199_v17 = vrot.slane %v3197_v6, 4  ;;  %v2850_v25 = vld [vmem:[#allocation2 + $0x3c] sm:$0xf]  ;;  %2883 = vst.msk [vmem:[#allocation3 + $0x98] sm:$0xf] %vm170_vm0, %v2851_v18  ;;  %v10234_v42 = vrot.slane %v3206_v45, 5 }
 0x1d4   : >> { %1917 = vrot.lane.b32.xlu1 %v1836_v5, %s9286_s6  ;;  %v2728_v38 = vpop.permute.xlu2 %2727  ;;  %v2144_v5 = vsel %vm9720_vm12, %v2139_v20, %v2143_v43  ;;  %v1838_v29 = vld [vmem:[#allocation2 + $0x7c] sm:$0xf]  ;;  %v2022_v34 = vld [vmem:[#allocation2 + $0x38] sm:$0x1]  ;;  %v3474_v9 = vld [vmem:[#allocation2 + $0x30] sm:$0xe] }
 0x1d5   : >> { %v1890_v14 = vpop.permute.xlu1 %1889  ;;  %v8770_v41 = vld [vmem:[#allocation3 + $0x34] sm:$0xf]  ;;  %2481 = vst.msk [vmem:[#allocation3 + $0x80] sm:$0xf] %vm170_vm0, %v2144_v5  ;;  %v2149_v48 = vrot.slane %v2148_v36, 4  ;;  %v3203_v32 = vor.u32 %v3202_v33, %v3199_v17  ;;  %v2151_v16 = vshll.u32 %v2022_v34, 16 }
 0x1d6   : >> { %1915 = vrot.lane.b32.xlu0 %v1835_v22, %s9286_s6  ;;  %1982 = vst.msk [vmem:[#allocation3 + $0x40] sm:$0xf] %vm1511_vm1, %v1890_v14  ;;  %v8313_v55 = vor.u32 %v8770_v41, %v8310_v10  ;;  %v10223_v22 = vld [vmem:[#allocation2 + $0x8c] sm:$0x1]  ;;  %v2675_v10 = vrot.slane %v10214_v27, 5  ;;  %v8263_v40 = vrot.slane %v3474_v9, 9 }
 0x1d7   : >> { %2817 = vst.msk [vmem:[#allocation3 + $0x80] sm:$0xf] %vm1511_vm1, %v2728_v38  ;;  %v1837_v41 = vld [vmem:[#allocation2 + $0x78] sm:$0xf]  ;;  %v2678_v43 = vrot.slane %v10223_v22, 5  ;;  %v2153_v44 = vrot.slane %v2151_v16, 5 }
 0x1d8   : >> { %v1888_v2 = vpop.permute.xlu0 %1887  ;;  %v8772_v56 = vld [vmem:[#allocation3 + $0x40] sm:$0xf0]  ;;  %v3475_v61 = vld [vmem:[#allocation2 + $0x34] sm:$0xf]  ;;  %2882 = vst.msk [vmem:[#allocation3 + $0x84] sm:$0xf] %vm170_vm0, %v2850_v25 }
 0x1d9   : >> { %1981 = vst.msk [vmem:[#allocation3 + $0x2c] sm:$0xf] %vm1511_vm1, %v1888_v2  ;;  %v8309_v4 = vor.u32 %v8772_v56, %v8308_v46  ;;  %v3476_v46 = vld [vmem:[#allocation2 + $0x38] sm:$0x1]  ;;  %v3580_v13 = vrot.slane %v3475_v61, 5  ;;  %v3204_v47 = vrot.slane %v3203_v32, 4  ;;  %v2154_v58 = vsel %vm9720_vm12, %v2149_v48, %v2153_v44 }
 0x1da   : >> { %2751 = vrot.lane.b32.xlu2 %v2669_v12, %s9286_s6  ;;  %v2677_v51 = vrot.slane %v2675_v10, 4  ;;  %v3583_v52 = vrot.slane %v3476_v46, 5  ;;  %v2937_v53 = vld [vmem:[#allocation2 + $0x8c] sm:$0x1]  ;;  %v8330_v57 = vld [vmem:[#allocation3 + $0x6c] sm:$0xf0] }
 0x1db   : >> { %4767 = vmatmul.bf16.gmra.mxu2 %v8309_v4  ;;  %4856 = vmatmul.bf16.gmra.mxu3 %v8313_v55  ;;  %v3190_v55 = vrot.slane %v3189_v60, 4  ;;  %v3581_v54 = vsel %vm9855_vm15, %v8263_v40, %v3580_v13  ;;  %v3582_v59 = vrot.slane %v3580_v13, 4  ;;  %v3192_v63 = vshll.u32 %v2937_v53, 16  ;;  %v2023_v2 = vld [vmem:[#allocation2 + $0x3c] sm:$0xf] }
 0x1dc   : >> { %3376 = vrot.lane.b32.xlu1 %v3185_v21, %s9286_s6  ;;  %v3355_v49 = vpop.permute.xlu2 %3354  ;;  %2482 = vst.msk [vmem:[#allocation3 + $0x94] sm:$0xf] %vm170_vm0, %v2154_v58  ;;  %v2024_v31 = vld [vmem:[#allocation2 + $0x40] sm:$0xf]  ;;  %v8328_v4 = vld [vmem:[#allocation3 + $0x58] sm:$0xf]  ;;  %v3209_v33 = vsel %vm9720_vm12, %v3204_v47, %v10234_v42  ;;  %v2679_v48 = vsel %vm9855_vm15, %v2677_v51, %v2678_v43 }
 0x1dd   : >> { %v3349_v37 = vpop.permute.xlu1 %3348  ;;  %v8302_v19 = vld [vmem:[#allocation3 + $0x3c] sm:$0xf0]  ;;  %3443 = vst.msk [vmem:[#allocation3 + $0x98] sm:$0xf] %vm1511_vm1, %v3355_v49  ;;  %v3584_v21 = vsel %vm9855_vm15, %v3582_v59, %v3583_v52  ;;  %v3194_v36 = vrot.slane %v3192_v63, 5  ;;  %v2156_v3 = vshrl.u32 %v2023_v2, 16 }
 0x1de   : >> { %2753 = vrot.lane.b32.xlu0 %v2672_v8, %s9286_s6  ;;  %3440 = vst.msk [vmem:[#allocation3 + $0x5c] sm:$0xf] %vm1511_vm1, %v3349_v37  ;;  %v1554_v5 = vld [vmem:[#allocation2 + $0x28] sm:$0xf]  ;;  %v2159_v8 = vshll.u32 %v2023_v2, 16  ;;  %v2165_v11 = vshll.u32 %v2024_v31, 16 }
 0x1df   : >> { %3712 = vst.msk [vmem:[#allocation3 + $0x60] sm:$0xf] %vm170_vm0, %v3581_v54  ;;  %v1555_v12 = vld [vmem:[#allocation2 + $0x2c] sm:$0x1]  ;;  %v3195_v17 = vsel %vm9720_vm12, %v3190_v55, %v3194_v36  ;;  %v2158_v22 = vrot.slane %v2156_v3, 4  ;;  %v1666_v49 = vrot.slane %v1554_v5, 5 }
 0x1e0   : >> { %v2726_v35 = vpop.permute.xlu0 %2725  ;;  %v8769_v38 = vld [vmem:[#allocation3 + $0x2c] sm:$0xf]  ;;  %3713 = vst.msk [vmem:[#allocation3 + $0x74] sm:$0xf] %vm170_vm0, %v3584_v21  ;;  %v2161_v45 = vrot.slane %v2159_v8, 5  ;;  %v1669_v18 = vrot.slane %v1555_v12, 5 }
 0x1e1   : >> { %2816 = vst.msk [vmem:[#allocation3 + $0x6c] sm:$0xf] %vm1511_vm1, %v2726_v35  ;;  %v8305_v14 = vor.u32 %v8769_v38, %v8302_v19  ;;  %v1668_v19 = vrot.slane %v1666_v49, 4  ;;  %v1553_v25 = vld [vmem:[#allocation2 + $0x24] sm:$0xe]  ;;  %v2167_v32 = vrot.slane %v2165_v11, 5 }
 0x1e2   : >> { %3378 = vrot.lane.b32.xlu2 %v3195_v17, %s9286_s6  ;;  %v8232_v34 = vrot.slane %v1553_v25, 9  ;;  %v2537_v9 = vld [vmem:[#allocation2 + $0x84] sm:$0xe]  ;;  %v3210_v60 = vshrl.u32 %v10209_v39, 16  ;;  %v2941_v16 = vld [vmem:[#allocation2 + $0x9c] sm:$0xf] }
 0x1e3   : >> { %4678 = vmatmul.bf16.gmra.mxu1 %v8305_v14  ;;  %8743 = vmatmul.msk.bf16.gmra.mxu0 %vm4527_vm4, %v8317_v28  ;;  %v2169_v28 = vshrl.u32 %v2024_v31, 16  ;;  %v1670_v35 = vsel %vm9855_vm15, %v1668_v19, %v1669_v18  ;;  %v8255_v38 = vrot.slane %v2537_v9, 9  ;;  %v10268_v40 = vld [vmem:[#allocation2 + $0xa0] sm:$0xf]  ;;  %v3221_v39 = vshrl.u32 %v2941_v16, 16 }
 0x1e4   : >> { %1921 = vrot.lane.b32.xlu1 %v1838_v29, %s9286_s6  ;;  %v10246_v56 = vpop.permute.xlu2 %2731  ;;  %v2162_v29 = vor.u32 %v2161_v45, %v2158_v22  ;;  %1794 = vst.msk [vmem:[#allocation3 + $0x90] sm:$0xf] %vm170_vm0, %v1670_v35  ;;  %v1667_v46 = vsel %vm9855_vm15, %v8232_v34, %v1666_v49  ;;  %v3224_v51 = vshll.u32 %v2941_v16, 16  ;;  %v3230_v52 = vshll.u32 %v10268_v40, 16  ;;  %v1840_v55 = vld [vmem:[#allocation2 + $0x88] sm:$0xf] }
 0x1e5   : >> { %v1894_v20 = vpop.permute.xlu1 %1893  ;;  %v8775_v30 = vld [vmem:[#allocation3 + $0x5c] sm:$0xf]  ;;  %v2676_v47 = vsel %vm9855_vm15, %v8255_v38, %v2675_v10  ;;  %1793 = vst.msk [vmem:[#allocation3 + $0x7c] sm:$0xf] %vm170_vm0, %v1667_v46  ;;  %v3223_v58 = vrot.slane %v3221_v39, 4  ;;  %v3212_v54 = vrot.slane %v3210_v60, 4 }
 0x1e6   : >> { %1919 = vrot.lane.b32.xlu0 %v1837_v41, %s9286_s6  ;;  %1984 = vst.msk [vmem:[#allocation3 + $0x68] sm:$0xf] %vm1511_vm1, %v1894_v20  ;;  %v8333_v6 = vor.u32 %v8775_v30, %v8330_v57  ;;  %v2171_v41 = vrot.slane %v2169_v28, 4  ;;  %v2163_v44 = vrot.slane %v2162_v29, 4  ;;  %v8336_v13 = vld [vmem:[#allocation3 + $0x60] sm:$0xf] }
 0x1e7   : >> { %v8778_v53 = vld [vmem:[#allocation3 + $0x70] sm:$0xf0]  ;;  %v3226_v27 = vrot.slane %v3224_v51, 5  ;;  %v1839_v30 = vld [vmem:[#allocation2 + $0x84] sm:$0xf]  ;;  %v10290_v3 = vrot.slane %v3230_v52, 5  ;;  %v3213_v12 = vor.u32 %v3212_v54, %v10234_v42 }
 0x1e8   : >> { %v1892_v23 = vpop.permute.xlu0 %1891  ;;  %v8777_v24 = vld [vmem:[#allocation3 + $0x68] sm:$0xf0]  ;;  %v2168_v57 = vsel %vm9720_vm12, %v2163_v44, %v2167_v32  ;;  %v8337_v2 = vor.u32 %v8778_v53, %v8336_v13  ;;  %v2172_v20 = vor.u32 %v2171_v41, %v2167_v32  ;;  %v10286_v31 = vld [vmem:[#allocation2 + $0x94] sm:$0xf]  ;;  %v8350_v21 = vld [vmem:[#allocation3 + $0x94] sm:$0xf0] }
 0x1e9   : >> { %1983 = vst.msk [vmem:[#allocation3 + $0x54] sm:$0xf] %vm1511_vm1, %v1892_v23  ;;  %v8329_v37 = vor.u32 %v8777_v24, %v8328_v4  ;;  %v2542_v4 = vld [vmem:[#allocation2 + $0x98] sm:$0x1]  ;;  %v3227_v36 = vor.u32 %v3226_v27, %v3223_v58  ;;  %v2682_v5 = vrot.slane %v10286_v31, 5  ;;  %v3214_v38 = vrot.slane %v3213_v12, 4 }
 0x1ea   : >> { %2483 = vst.msk [vmem:[#allocation3 + $0xa8] sm:$0xf] %vm170_vm0, %v2168_v57  ;;  %2755 = vrot.lane.b32.xlu2 %v2676_v47, %s9286_s6  ;;  %v2852_v8 = vld [vmem:[#allocation2 + $0x48] sm:$0xf]  ;;  %v2025_v11 = vld [vmem:[#allocation2 + $0x44] sm:$0x1] }
 0x1eb   : >> { %4772 = vmatmul.bf16.gmra.mxu2 %v8329_v37  ;;  %4861 = vmatmul.bf16.gmra.mxu3 %v8333_v6  ;;  %2819 = vst.msk [vmem:[#allocation3 + $0xa8] sm:$0xf] %vm1511_vm1, %v10246_v56  ;;  %v2853_v6 = vld [vmem:[#allocation2 + $0x4c] sm:$0xf]  ;;  %v3228_v23 = vrot.slane %v3227_v36, 4  ;;  %v2685_v56 = vrot.slane %v2542_v4, 5 }
 0x1ec   : >> { %3380 = vrot.lane.b32.xlu1 %v3209_v33, %s9286_s6  ;;  %v3359_v14 = vpop.permute.xlu2 %3358  ;;  %2885 = vst.msk [vmem:[#allocation3 + $0xc0] sm:$0xf] %vm170_vm0, %v2853_v6  ;;  %v2173_v24 = vrot.slane %v2172_v20, 4  ;;  %v2175_v17 = vshll.u32 %v2025_v11, 16  ;;  %v3477_v33 = vld [vmem:[#allocation2 + $0x3c] sm:$0xe] }
 0x1ed   : >> { %v3353_v43 = vpop.permute.xlu1 %3352  ;;  %v8322_v61 = vld [vmem:[#allocation3 + $0x64] sm:$0xf0]  ;;  %3445 = vst.msk [vmem:[#allocation3 + $0xc0] sm:$0xf] %vm1511_vm1, %v3359_v14  ;;  %v8348_v42 = vld [vmem:[#allocation3 + $0x80] sm:$0xf]  ;;  %v3233_v41 = vsel %vm9720_vm12, %v3228_v23, %v10290_v3 }
 0x1ee   : >> { %2757 = vrot.lane.b32.xlu0 %v2679_v48, %s9286_s6  ;;  %3442 = vst.msk [vmem:[#allocation3 + $0x84] sm:$0xf] %vm1511_vm1, %v3353_v43  ;;  %v2684_v45 = vrot.slane %v2682_v5, 4  ;;  %v2177_v18 = vrot.slane %v2175_v17, 5  ;;  %v3478_v48 = vld [vmem:[#allocation2 + $0x40] sm:$0xf] }
 0x1ef   : >> { %2884 = vst.msk [vmem:[#allocation3 + $0xac] sm:$0xf] %vm170_vm0, %v2852_v8  ;;  %v3479_v25 = vld [vmem:[#allocation2 + $0x44] sm:$0x1]  ;;  %v8264_v28 = vrot.slane %v3477_v33, 9  ;;  %v3587_v29 = vrot.slane %v3478_v48, 5 }
 0x1f0   : >> { %v2730_v59 = vpop.permute.xlu0 %2729  ;;  %v8774_v63 = vld [vmem:[#allocation3 + $0x54] sm:$0xf]  ;;  %v2940_v32 = vld [vmem:[#allocation2 + $0x98] sm:$0x1]  ;;  %v2178_v60 = vsel %vm9720_vm12, %v2173_v24, %v2177_v18  ;;  %v3590_v35 = vrot.slane %v3479_v25, 5  ;;  %v2686_v39 = vsel %vm9855_vm15, %v2684_v45, %v2685_v56  ;;  %v3234_v11 = vshrl.u32 %v10268_v40, 16 }
 0x1f1   : >> { %2818 = vst.msk [vmem:[#allocation3 + $0x94] sm:$0xf] %vm1511_vm1, %v2730_v59  ;;  %v8325_v10 = vor.u32 %v8774_v63, %v8322_v61  ;;  %v3216_v16 = vshll.u32 %v2940_v32, 16  ;;  %v3588_v43 = vsel %vm9855_vm15, %v8264_v28, %v3587_v29  ;;  %v3589_v61 = vrot.slane %v3587_v29, 4  ;;  %v2026_v46 = vld [vmem:[#allocation2 + $0x48] sm:$0xf] }
 0x1f2   : >> { %2484 = vst.msk [vmem:[#allocation3 + $0xbc] sm:$0xf] %vm170_vm0, %v2178_v60  ;;  %v2027_v47 = vld [vmem:[#allocation2 + $0x4c] sm:$0xf]  ;;  %v2180_v51 = vshrl.u32 %v2026_v46, 16  ;;  %v2183_v52 = vshll.u32 %v2026_v46, 16 }
 0x1f3   : >> { %4683 = vmatmul.bf16.gmra.mxu1 %v8325_v10  ;;  %8744 = vmatmul.msk.bf16.gmra.mxu0 %vm4527_vm4, %v8337_v2  ;;  %v3218_v44 = vrot.slane %v3216_v16, 5  ;;  %v3591_v13 = vsel %vm9855_vm15, %v3589_v61, %v3590_v35  ;;  %3714 = vst.msk [vmem:[#allocation3 + $0x88] sm:$0xf] %vm170_vm0, %v3588_v43  ;;  %v1557_v57 = vld [vmem:[#allocation2 + $0x34] sm:$0xf]  ;;  %v2193_v54 = vshrl.u32 %v2027_v47, 16  ;;  %v10346_v16 = vpop.f32.mrf.mxu1 }
 0x1f4   : >> { %1925 = vrot.lane.b32.xlu1 %v1840_v55, %s9286_s6  ;;  %v10298_v22 = vpop.permute.xlu2 %2735  ;;  %3715 = vst.msk [vmem:[#allocation3 + $0x9c] sm:$0xf] %vm170_vm0, %v3591_v13  ;;  %v2189_v55 = vshll.u32 %v2027_v47, 16  ;;  %v2182_v2 = vrot.slane %v2180_v51, 4  ;;  %v2185_v27 = vrot.slane %v2183_v52, 5 }
 0x1f5   : >> { %v1898_v49 = vpop.permute.xlu1 %1897  ;;  %v8780_v37 = vld [vmem:[#allocation3 + $0x84] sm:$0xf]  ;;  %v3219_v53 = vsel %vm9720_vm12, %v3214_v38, %v3218_v44  ;;  %v1558_v20 = vld [vmem:[#allocation2 + $0x38] sm:$0x1]  ;;  %v1842_v36 = vld [vmem:[#allocation2 + $0x94] sm:$0xf] }
 0x1f6   : >> { %1923 = vrot.lane.b32.xlu0 %v1839_v30, %s9286_s6  ;;  %1986 = vst.msk [vmem:[#allocation3 + $0x90] sm:$0xf] %vm1511_vm1, %v1898_v49  ;;  %v8353_v19 = vor.u32 %v8780_v37, %v8350_v21  ;;  %3382 = vrot.lane.b32.xlu2 %v3219_v53, %s9286_s6  ;;  %v2191_v10 = vrot.slane %v2189_v55, 5  ;;  %v1673_v30 = vrot.slane %v1557_v57, 5  ;;  %v1676_v4 = vrot.slane %v1558_v20, 5 }
 0x1f7   : >> { %v2195_v21 = vrot.slane %v2193_v54, 4  ;;  %v2186_v6 = vor.u32 %v2185_v27, %v2182_v2  ;;  %v1556_v8 = vld [vmem:[#allocation2 + $0x30] sm:$0xe]  ;;  %v2944_v18 = vld [vmem:[#allocation2 + $0xa8] sm:$0xf] }
 0x1f8   : >> { %v1896_v34 = vpop.permute.xlu0 %1895  ;;  %v8782_v9 = vld [vmem:[#allocation3 + $0x90] sm:$0xf0]  ;;  %v1675_v56 = vrot.slane %v1673_v30, 4  ;;  %v8233_v24 = vrot.slane %v1556_v8, 9  ;;  %v2540_v17 = vld [vmem:[#allocation2 + $0x90] sm:$0xe] }
 0x1f9   : >> { %1985 = vst.msk [vmem:[#allocation3 + $0x7c] sm:$0xf] %vm1511_vm1, %v1896_v34  ;;  %v8349_v14 = vor.u32 %v8782_v9, %v8348_v42  ;;  %v2196_v49 = vor.u32 %v2195_v21, %v2191_v10  ;;  %v1841_v33 = vld [vmem:[#allocation2 + $0x90] sm:$0xf]  ;;  %v2187_v42 = vrot.slane %v2186_v6, 4  ;;  %v8256_v45 = vrot.slane %v2540_v17, 9 }
 0x1fa   : >> { %v1677_v25 = vsel %vm9855_vm15, %v1675_v56, %v1676_v4  ;;  %v8370_v40 = vld [vmem:[#allocation3 + $0xbc] sm:$0xf0]  ;;  %v10334_v28 = vld [vmem:[#allocation2 + $0xac] sm:$0xf]  ;;  %v3245_v29 = vshrl.u32 %v2944_v18, 16  ;;  %v3248_v32 = vshll.u32 %v2944_v18, 16 }
 0x1fb   : >> { %4777 = vmatmul.bf16.gmra.mxu2 %v8349_v14  ;;  %4866 = vmatmul.bf16.gmra.mxu3 %v8353_v19  ;;  %v8356_v19 = vld [vmem:[#allocation3 + $0x88] sm:$0xf]  ;;  %v8783_v34 = vld [vmem:[#allocation3 + $0x98] sm:$0xf0]  ;;  %v2192_v9 = vsel %vm9720_vm12, %v2187_v42, %v2191_v10  ;;  %1796 = vst.msk [vmem:[#allocation3 + $0xb8] sm:$0xf] %vm170_vm0, %v1677_v25  ;;  %v2683_v60 = vsel %vm9855_vm15, %v8256_v45, %v2682_v5  ;;  %v10362_v47 = vpop.f32.mrf.mxu3 }
 0x1fc   : >> { %3384 = vrot.lane.b32.xlu1 %v3233_v41, %s9286_s6  ;;  %v10323_v58 = vpop.permute.xlu2 %3362  ;;  %v3254_v35 = vshll.u32 %v10334_v28, 16  ;;  %v10344_v38 = vrot.slane %v2196_v49, 4  ;;  %v8357_v14 = vor.u32 %v8783_v34, %v8356_v19  ;;  %2485 = vst.msk [vmem:[#allocation3 + $0xd0] sm:$0xf] %vm170_vm0, %v2192_v9  ;;  %v1674_v41 = vsel %vm9855_vm15, %v8233_v24, %v1673_v30  ;;  %v10352_v31 = vld [vmem:[#allocation2 + $0xa0] sm:$0xf] }
 0x1fd   : >> { %v3357_v59 = vpop.permute.xlu1 %3356  ;;  %v8342_v63 = vld [vmem:[#allocation3 + $0x8c] sm:$0xf0]  ;;  %v3247_v43 = vrot.slane %v3245_v29, 4  ;;  %v3250_v61 = vrot.slane %v3248_v32, 5  ;;  %2821 = vst.msk [vmem:[#allocation3 + $0xd0] sm:$0xf] %vm1511_vm1, %v10298_v22  ;;  %v10394_v32 = vpop.f32.mrf.mxu1 }
 0x1fe   : >> { %2761 = vrot.lane.b32.xlu0 %v2686_v39, %s9286_s6  ;;  %3444 = vst.msk [vmem:[#allocation3 + $0xac] sm:$0xf] %vm1511_vm1, %v3357_v59  ;;  %v10330_v48 = vpop.f32.mrf.mxu2  ;;  %2759 = vrot.lane.b32.xlu2 %v2683_v60, %s9286_s6  ;;  %v10357_v46 = vrot.slane %v3254_v35, 5  ;;  %v2689_v39 = vrot.slane %v10352_v31, 5  ;;  %v8368_v51 = vld [vmem:[#allocation3 + $0xa8] sm:$0xf] }
 0x1ff   : >> { %v3251_v22 = vor.u32 %v3250_v61, %v3247_v43  ;;  %v2545_v52 = vld [vmem:[#allocation2 + $0xa4] sm:$0x1]  ;;  %v2855_v53 = vld [vmem:[#allocation2 + $0x58] sm:$0xf]  ;;  %1795 = vst.msk [vmem:[#allocation3 + $0xa4] sm:$0xf] %vm170_vm0, %v1674_v41 }
 0x200   : >> { %v2734_v12 = vpop.permute.xlu0 %2733  ;;  %v8779_v23 = vld [vmem:[#allocation3 + $0x7c] sm:$0xf]  ;;  %v2691_v57 = vrot.slane %v2689_v39, 4  ;;  %v2692_v54 = vrot.slane %v2545_v52, 5  ;;  %2887 = vst.msk [vmem:[#allocation3 + $0xe8] sm:$0xf] %vm170_vm0, %v2855_v53 }
 0x201   : >> { %2820 = vst.msk [vmem:[#allocation3 + $0xbc] sm:$0xf] %vm1511_vm1, %v2734_v12  ;;  %v8345_v37 = vor.u32 %v8779_v23, %v8342_v63  ;;  %v2854_v59 = vld [vmem:[#allocation2 + $0x54] sm:$0xf]  ;;  %v10370_v63 = vpop.f32.mrf.mxu0  ;;  %v3252_v20 = vrot.slane %v3251_v22, 4  ;;  %v3236_v10 = vrot.slane %v3234_v11, 4 }
 0x202   : >> { %v2028_v4 = vld [vmem:[#allocation2 + $0x50] sm:$0x1]  ;;  %v3480_v21 = vld [vmem:[#allocation2 + $0x48] sm:$0xe]  ;;  %3447 = vst.msk [vmem:[#allocation3 + $0xe8] sm:$0xf] %vm1511_vm1, %v10323_v58  ;;  %v2693_v11 = vsel %vm9855_vm15, %v2691_v57, %v2692_v54 }
 0x203   : >> { %4688 = vmatmul.bf16.gmra.mxu1 %v8345_v37  ;;  %8745 = vmatmul.msk.bf16.gmra.mxu0 %vm4527_vm4, %v8357_v14  ;;  %v2199_v6 = vshll.u32 %v2028_v4, 16  ;;  %v3481_v8 = vld [vmem:[#allocation2 + $0x4c] sm:$0xf]  ;;  %v8265_v12 = vrot.slane %v3480_v21, 9  ;;  %v3237_v23 = vor.u32 %v3236_v10, %v10290_v3  ;;  %2886 = vst.msk [vmem:[#allocation3 + $0xd4] sm:$0xf] %vm170_vm0, %v2854_v59  ;;  %v10401_v43 = vpop.f32.mrf.mxu3 }
 0x204   : >> { %1929 = vrot.lane.b32.xlu1 %v1842_v36, %s9286_s6  ;;  %v10360_v13 = vpop.permute.xlu2 %2739  ;;  %v3257_v36 = vsel %vm9720_vm12, %v3252_v20, %v10357_v46  ;;  %v3482_v56 = vld [vmem:[#allocation2 + $0x50] sm:$0x1]  ;;  %v3594_v24 = vrot.slane %v3481_v8, 5  ;;  %v2943_v37 = vld [vmem:[#allocation2 + $0xa4] sm:$0x1] }
 0x205   : >> { %v1902_v5 = vpop.permute.xlu1 %1901  ;;  %v8785_v44 = vld [vmem:[#allocation3 + $0xac] sm:$0xf]  ;;  %v2201_v49 = vrot.slane %v2199_v6, 5  ;;  %v3597_v58 = vrot.slane %v3482_v56, 5  ;;  %v3238_v45 = vrot.slane %v3237_v23, 4  ;;  %v3240_v18 = vshll.u32 %v2943_v37, 16 }
 0x206   : >> { %1927 = vrot.lane.b32.xlu0 %v1841_v33, %s9286_s6  ;;  %1988 = vst.msk [vmem:[#allocation3 + $0xb8] sm:$0xf] %vm1511_vm1, %v1902_v5  ;;  %v8373_v55 = vor.u32 %v8785_v44, %v8370_v40  ;;  %v10383_v17 = vpop.f32.mrf.mxu2  ;;  %v3258_v33 = vshrl.u32 %v10334_v28, 16  ;;  %v3595_v3 = vsel %vm9855_vm15, %v8265_v12, %v3594_v24  ;;  %v3596_v42 = vrot.slane %v3594_v24, 4  ;;  %v2029_v29 = vld [vmem:[#allocation2 + $0x54] sm:$0xf] }
 0x207   : >> { %v2202_v25 = vsel %vm9720_vm12, %v10344_v38, %v2201_v49  ;;  %3716 = vst.msk [vmem:[#allocation3 + $0xb0] sm:$0xf] %vm170_vm0, %v3595_v3  ;;  %v3242_v9 = vrot.slane %v3240_v18, 5  ;;  %v1844_v60 = vld [vmem:[#allocation2 + $0xa0] sm:$0xf]  ;;  %v2204_v14 = vshrl.u32 %v2029_v29, 16 }
 0x208   : >> { %v1900_v2 = vpop.permute.xlu0 %1899  ;;  %v8787_v27 = vld [vmem:[#allocation3 + $0xb8] sm:$0xf0]  ;;  %v3598_v34 = vsel %vm9855_vm15, %v3596_v42, %v3597_v58  ;;  %v2030_v35 = vld [vmem:[#allocation2 + $0x58] sm:$0xf]  ;;  %2486 = vst.msk [vmem:[#allocation3 + $0xe4] sm:$0xf] %vm170_vm0, %v2202_v25 }
 0x209   : >> { %1987 = vst.msk [vmem:[#allocation3 + $0xa4] sm:$0xf] %vm1511_vm1, %v1900_v2  ;;  %v8369_v30 = vor.u32 %v8787_v27, %v8368_v51  ;;  %v2207_v5 = vshll.u32 %v2029_v29, 16  ;;  %v2213_v44 = vshll.u32 %v2030_v35, 16  ;;  %v3243_v22 = vsel %vm9720_vm12, %v3238_v45, %v3242_v9  ;;  %v1560_v53 = vld [vmem:[#allocation2 + $0x40] sm:$0xf]  ;;  %v10407_v57 = vpop.f32.mrf.mxu0 }
 0x20a   : >> { %v2206_v52 = vrot.slane %v2204_v14, 4  ;;  %3717 = vst.msk [vmem:[#allocation3 + $0xc4] sm:$0xf] %vm170_vm0, %v3598_v34  ;;  %3386 = vrot.lane.b32.xlu2 %v3243_v22, %s9286_s6  ;;  %v1561_v2 = vld [vmem:[#allocation2 + $0x44] sm:$0x1]  ;;  %v1680_v20 = vrot.slane %v1560_v53, 5 }
 0x20b   : >> { %4782 = vmatmul.bf16.gmra.mxu2 %v8369_v30  ;;  %4871 = vmatmul.bf16.gmra.mxu3 %v8373_v55  ;;  %v2217_v55 = vshrl.u32 %v2030_v35, 16  ;;  %v2209_v54 = vrot.slane %v2207_v5, 5  ;;  %v2215_v59 = vrot.slane %v2213_v44, 5  ;;  %v1843_v27 = vld [vmem:[#allocation2 + $0x9c] sm:$0xf]  ;;  %v1683_v10 = vrot.slane %v1561_v2, 5 }
 0x20c   : >> { %3388 = vrot.lane.b32.xlu1 %v3257_v36, %s9286_s6  ;;  %v10399_v41 = vpop.permute.xlu2 %3366  ;;  %v1559_v30 = vld [vmem:[#allocation2 + $0x3c] sm:$0xe]  ;;  %v8390_v36 = vld [vmem:[#allocation3 + $0xe4] sm:$0xf0]  ;;  %v1682_v23 = vrot.slane %v1680_v20, 4 }
 0x20d   : >> { %v8362_v40 = vld [vmem:[#allocation3 + $0xb4] sm:$0xf0]  ;;  %v2210_v4 = vor.u32 %v2209_v54, %v2206_v52  ;;  %v8234_v21 = vrot.slane %v1559_v30, 9  ;;  %v2543_v6 = vld [vmem:[#allocation2 + $0x9c] sm:$0xe]  ;;  %v2219_v8 = vrot.slane %v2217_v55, 4  ;;  %v10438_v52 = vpop.f32.mrf.mxu3 }
 0x20e   : >> { %2765 = vrot.lane.b32.xlu0 %v2693_v11, %s9286_s6  ;;  %v3361_v19 = vpop.permute.xlu1 %3360  ;;  %v8376_v12 = vld [vmem:[#allocation3 + $0xb0] sm:$0xf]  ;;  %v8257_v11 = vrot.slane %v2543_v6, 9  ;;  %v2947_v56 = vld [vmem:[#allocation2 + $0xb4] sm:$0xf]  ;;  %v10412_v24 = vpop.f32.mrf.mxu2 }
 0x20f   : >> { %3446 = vst.msk [vmem:[#allocation3 + $0xd4] sm:$0xf] %vm1511_vm1, %v3361_v19  ;;  %v2211_v49 = vrot.slane %v2210_v4, 4  ;;  %v1681_v37 = vsel %vm9855_vm15, %v8234_v21, %v1680_v20  ;;  %v8388_v3 = vld [vmem:[#allocation3 + $0xd0] sm:$0xf]  ;;  %v3269_v18 = vshrl.u32 %v2947_v56, 16  ;;  %v2220_v19 = vor.u32 %v2219_v8, %v2215_v59 }
 0x210   : >> { %v2738_v38 = vpop.permute.xlu0 %2737  ;;  %v8784_v61 = vld [vmem:[#allocation3 + $0xa4] sm:$0xf]  ;;  %v10417_v45 = vld [vmem:[#allocation2 + $0xb8] sm:$0xf]  ;;  %v10419_v25 = vpop.f32.mrf.mxu1  ;;  %1797 = vst.msk [vmem:[#allocation3 + $0xcc] sm:$0xf] %vm170_vm0, %v1681_v37  ;;  %v2690_v34 = vsel %vm9855_vm15, %v8257_v11, %v2689_v39 }
 0x211   : >> { %2822 = vst.msk [vmem:[#allocation3 + $0xe4] sm:$0xf] %vm1511_vm1, %v2738_v38  ;;  %v8365_v51 = vor.u32 %v8784_v61, %v8362_v40  ;;  %v1684_v40 = vsel %vm9855_vm15, %v1682_v23, %v1683_v10  ;;  %v3272_v9 = vshll.u32 %v2947_v56, 16  ;;  %v2216_v35 = vsel %vm9720_vm12, %v2211_v49, %v2215_v59  ;;  %v8788_v44 = vld [vmem:[#allocation3 + $0xc0] sm:$0xf0] }
 0x212   : >> { %1798 = vst.msk [vmem:[#allocation3 + $0xe0] sm:$0xf] %vm170_vm0, %v1684_v40  ;;  %v3271_v61 = vrot.slane %v3269_v18, 4  ;;  %v3278_v5 = vshll.u32 %v10417_v45, 16  ;;  %v8377_v53 = vor.u32 %v8788_v44, %v8376_v12  ;;  %2763 = vrot.lane.b32.xlu2 %v2690_v34, %s9286_s6  ;;  %v2548_v59 = vld [vmem:[#allocation2 + $0xb0] sm:$0x1] }
 0x213   : >> { %4693 = vmatmul.bf16.gmra.mxu1 %v8365_v51  ;;  %2487 = vst.msk [vmem:[#allocation3 + $0xf8] sm:$0xf] %vm170_vm0, %v2216_v35  ;;  %v3274_v51 = vrot.slane %v3272_v9, 5  ;;  %v2221_v2 = vrot.slane %v2220_v19, 4  ;;  %v2699_v10 = vrot.slane %v2548_v59, 5  ;;  %v3260_v19 = vrot.slane %v3258_v33, 4 }
 0x214   : >> { %1933 = vrot.lane.b32.xlu1 %v1844_v60, %s9286_s6  ;;  %v10428_v60 = vld [vmem:[#allocation2 + $0xac] sm:$0xf]  ;;  %v10436_v22 = vpop.permute.xlu2 %2743  ;;  %2823 = vst.msk [vmem:[#allocation3 + $0xf8] sm:$0xf] %vm1511_vm1, %v10360_v13  ;;  %v10445_v54 = vrot.slane %v3278_v5, 5  ;;  %8746 = vmatmul.msk.bf16.gmra.mxu0 %vm4527_vm4, %v8377_v53 }
 0x215   : >> { %v2696_v39 = vrot.slane %v10428_v60, 5  ;;  %v2857_v30 = vld [vmem:[#allocation2 + $0x64] sm:$0xf]  ;;  %v2856_v13 = vld [vmem:[#allocation2 + $0x60] sm:$0xf]  ;;  %v10481_v59 = vpop.f32.mrf.mxu3 }
 0x216   : >> { %1931 = vrot.lane.b32.xlu0 %v1843_v27, %s9286_s6  ;;  %v1906_v58 = vpop.permute.xlu1 %1905  ;;  %v8790_v42 = vld [vmem:[#allocation3 + $0xd4] sm:$0xf]  ;;  %v3275_v27 = vor.u32 %v3274_v51, %v3271_v61  ;;  %v2031_v4 = vld [vmem:[#allocation2 + $0x5c] sm:$0x1]  ;;  %2889 = vst.msk [vmem:[#allocation3 + $0x110] sm:$0xf] %vm170_vm0, %v2857_v30  ;;  %v3261_v61 = vor.u32 %v3260_v19, %v10357_v46 }
 0x217   : >> { %v8393_v29 = vor.u32 %v8790_v42, %v8390_v36  ;;  %1990 = vst.msk [vmem:[#allocation3 + $0xe0] sm:$0xf] %vm1511_vm1, %v1906_v58  ;;  %v2698_v20 = vrot.slane %v2696_v39, 4  ;;  %v2223_v6 = vshll.u32 %v2031_v4, 16  ;;  %v3483_v8 = vld [vmem:[#allocation2 + $0x54] sm:$0xe] }
 0x218   : >> { %v1904_v14 = vpop.permute.xlu0 %1903  ;;  %v8792_v38 = vld [vmem:[#allocation3 + $0xe0] sm:$0xf0]  ;;  %v10442_v55 = vpop.f32.mrf.mxu0  ;;  %v3276_v21 = vrot.slane %v3275_v27, 4  ;;  %3449 = vst.msk [vmem:[#allocation3 + $0x110] sm:$0xf] %vm1511_vm1, %v10399_v41  ;;  %v8266_v58 = vrot.slane %v3483_v8, 9 }
 0x219   : >> { %v8389_v31 = vor.u32 %v8792_v38, %v8388_v3  ;;  %1989 = vst.msk [vmem:[#allocation3 + $0xcc] sm:$0xf] %vm1511_vm1, %v1904_v14  ;;  %v2700_v36 = vsel %vm9855_vm15, %v2698_v20, %v2699_v10  ;;  %v3484_v23 = vld [vmem:[#allocation2 + $0x58] sm:$0xf]  ;;  %v3485_v11 = vld [vmem:[#allocation2 + $0x5c] sm:$0x1]  ;;  %v10462_v3 = vpop.f32.mrf.mxu2  ;;  %v10468_v40 = vpop.f32.mrf.mxu1 }
 0x21a   : >> { %v3281_v56 = vsel %vm9720_vm12, %v3276_v21, %v10445_v54  ;;  %2888 = vst.msk [vmem:[#allocation3 + $0xfc] sm:$0xf] %vm170_vm0, %v2856_v13  ;;  %v2225_v49 = vrot.slane %v2223_v6, 5  ;;  %v3601_v37 = vrot.slane %v3484_v23, 5  ;;  %v3604_v41 = vrot.slane %v3485_v11, 5 }
 0x21b   : >> { %4787 = vmatmul.bf16.gmra.mxu2 %v8389_v31  ;;  %4876 = vmatmul.bf16.gmra.mxu3 %v8393_v29  ;;  %v2946_v18 = vld [vmem:[#allocation2 + $0xb0] sm:$0x1]  ;;  %v1845_v14 = vld [vmem:[#allocation2 + $0xa8] sm:$0xf]  ;;  %v2032_v5 = vld [vmem:[#allocation2 + $0x60] sm:$0xf] }
 0x21c   : >> { %3392 = vrot.lane.b32.xlu1 %v3281_v56, %s9286_s6  ;;  %v2226_v29 = vsel %vm9720_vm12, %v2221_v2, %v2225_v49  ;;  %v3602_v34 = vsel %vm9855_vm15, %v8266_v58, %v3601_v37  ;;  %v3603_v9 = vrot.slane %v3601_v37, 4  ;;  %v3264_v35 = vshll.u32 %v2946_v18, 16  ;;  %v1846_v31 = vld [vmem:[#allocation2 + $0xac] sm:$0xf]  ;;  %v10479_v53 = vpop.permute.xlu2 %3370  ;;  %12888 = vst [vmem:[#allocation9_spill] sm:$0xff] %v10481_v59 }
 0x21d   : >> { %2488 = vst.msk [vmem:[#allocation3 + $0x10c] sm:$0xf] %vm170_vm0, %v2226_v29  ;;  %v2228_v51 = vshrl.u32 %v2032_v5, 16  ;;  %v3262_v46 = vrot.slane %v3261_v61, 4  ;;  %v2033_v20 = vld [vmem:[#allocation2 + $0x64] sm:$0xf] }
 0x21e   : >> { %2769 = vrot.lane.b32.xlu0 %v2700_v36, %s9286_s6  ;;  %v3365_v12 = vpop.permute.xlu1 %3364  ;;  %v8382_v38 = vld [vmem:[#allocation3 + $0xdc] sm:$0xf0]  ;;  %v3605_v33 = vsel %vm9855_vm15, %v3603_v9, %v3604_v41  ;;  %v3266_v44 = vrot.slane %v3264_v35, 5  ;;  %3718 = vst.msk [vmem:[#allocation3 + $0xd8] sm:$0xf] %vm170_vm0, %v3602_v34  ;;  %v2231_v10 = vshll.u32 %v2032_v5, 16 }
 0x21f   : >> { %3448 = vst.msk [vmem:[#allocation3 + $0xfc] sm:$0xf] %vm1511_vm1, %v3365_v12  ;;  %v2230_v30 = vrot.slane %v2228_v51, 4  ;;  %v2237_v13 = vshll.u32 %v2033_v20, 16  ;;  %v1563_v4 = vld [vmem:[#allocation2 + $0x4c] sm:$0xf] }
 0x220   : >> { %v2742_v42 = vpop.permute.xlu0 %2741  ;;  %v8789_v28 = vld [vmem:[#allocation3 + $0xcc] sm:$0xf]  ;;  %v10483_v2 = vpop.f32.mrf.mxu0  ;;  %3719 = vst.msk [vmem:[#allocation3 + $0xec] sm:$0xf] %vm170_vm0, %v3605_v33  ;;  %v3267_v21 = vsel %vm9720_vm12, %v3262_v46, %v3266_v44  ;;  %v2233_v36 = vrot.slane %v2231_v10, 5  ;;  %v1687_v8 = vrot.slane %v1563_v4, 5 }
 0x221   : >> { %2824 = vst.msk [vmem:[#allocation3 + $0x10c] sm:$0xf] %vm1511_vm1, %v2742_v42  ;;  %v8385_v27 = vor.u32 %v8789_v28, %v8382_v38  ;;  %v1564_v6 = vld [vmem:[#allocation2 + $0x50] sm:$0x1]  ;;  %v1562_v12 = vld [vmem:[#allocation2 + $0x48] sm:$0xe]  ;;  %3390 = vrot.lane.b32.xlu2 %v3267_v21, %s9286_s6  ;;  %v10501_v28 = vpop.f32.mrf.mxu2 }
 0x222   : >> { %v10491_v23 = vrot.slane %v2237_v13, 5  ;;  %v1690_v11 = vrot.slane %v1564_v6, 5  ;;  %v8235_v49 = vrot.slane %v1562_v12, 9  ;;  %v2241_v58 = vshrl.u32 %v2033_v20, 16  ;;  %v8408_v18 = vld [vmem:[#allocation3 + $0xf8] sm:$0xf] }
 0x223   : >> { %4698 = vmatmul.bf16.gmra.mxu1 %v8385_v27  ;;  %v2234_v37 = vor.u32 %v2233_v36, %v2230_v30  ;;  %v1689_v42 = vrot.slane %v1687_v8, 4  ;;  %v8410_v29 = vld [vmem:[#allocation3 + $0x10c] sm:$0xf0]  ;;  %v3282_v34 = vshrl.u32 %v10417_v45, 16  ;;  %v2950_v61 = vld [vmem:[#allocation2 + $0xc0] sm:$0xf] }
 0x224   : >> { %1937 = vrot.lane.b32.xlu1 %v1846_v31, %s9286_s6  ;;  %v1688_v9 = vsel %vm9855_vm15, %v8235_v49, %v1687_v8  ;;  %v2546_v38 = vld [vmem:[#allocation2 + $0xa8] sm:$0xe]  ;;  %v10499_v5 = vld [vmem:[#allocation2 + $0xc4] sm:$0xf]  ;;  %v3293_v46 = vshrl.u32 %v2950_v61, 16  ;;  %v3296_v20 = vshll.u32 %v2950_v61, 16  ;;  %v10521_v49 = vpop.permute.xlu2 %2747 }
 0x225   : >> { %v2235_v33 = vrot.slane %v2234_v37, 4  ;;  %v1691_v44 = vsel %vm9855_vm15, %v1689_v42, %v1690_v11  ;;  %1799 = vst.msk [vmem:[#allocation3 + $0xf4] sm:$0xf] %vm170_vm0, %v1688_v9  ;;  %v8258_v45 = vrot.slane %v2546_v38, 9  ;;  %v8396_v51 = vld [vmem:[#allocation3 + $0xd8] sm:$0xf] }
 0x226   : >> { %1935 = vrot.lane.b32.xlu0 %v1845_v14, %s9286_s6  ;;  %v1910_v56 = vpop.permute.xlu1 %1909  ;;  %v8795_v19 = vld [vmem:[#allocation3 + $0xfc] sm:$0xf]  ;;  %1800 = vst.msk [vmem:[#allocation3 + $0x108] sm:$0xf] %vm170_vm0, %v1691_v44  ;;  %v10507_v30 = vpop.f32.mrf.mxu3  ;;  %v3302_v21 = vshll.u32 %v10499_v5, 16  ;;  %v2243_v36 = vrot.slane %v2241_v58, 4 }
 0x227   : >> { %v8413_v14 = vor.u32 %v8795_v19, %v8410_v29  ;;  %v8793_v10 = vld [vmem:[#allocation3 + $0xe8] sm:$0xf0]  ;;  %12889 = vst [vmem:[#allocation10_spill] sm:$0xff] %v10507_v30  ;;  %v2240_v13 = vsel %vm9720_vm12, %v2235_v33, %v10491_v23  ;;  %v2697_v4 = vsel %vm9855_vm15, %v8258_v45, %v2696_v39  ;;  %v3295_v8 = vrot.slane %v3293_v46, 4  ;;  %v10519_v11 = vld [vmem:[#allocation2 + $0xb8] sm:$0xf] }
 0x228   : >> { %v1908_v41 = vpop.permute.xlu0 %1907  ;;  %v10497_v35 = vpop.f32.mrf.mxu1  ;;  %v8797_v31 = vld [vmem:[#allocation3 + $0x108] sm:$0xf0]  ;;  %1992 = vst.msk [vmem:[#allocation3 + $0x108] sm:$0xf] %vm1511_vm1, %v1910_v56  ;;  %v8397_v6 = vor.u32 %v8793_v10, %v8396_v51  ;;  %v3298_v12 = vrot.slane %v3296_v20, 5  ;;  %v10527_v56 = vrot.slane %v3302_v21, 5  ;;  %v2244_v37 = vor.u32 %v2243_v36, %v10491_v23 }
 0x229   : >> { %v8409_v27 = vor.u32 %v8797_v31, %v8408_v18  ;;  %2489 = vst.msk [vmem:[#allocation3 + $0x120] sm:$0xf] %vm170_vm0, %v2240_v13  ;;  %v10525_v60 = vpop.f32.mrf.mxu0  ;;  %v2551_v39 = vld [vmem:[#allocation2 + $0xbc] sm:$0x1]  ;;  %v2703_v58 = vrot.slane %v10519_v11, 5  ;;  %2767 = vrot.lane.b32.xlu2 %v2697_v4, %s9286_s6 }
 0x22a   : >> { %2825 = vst.msk [vmem:[#allocation3 + $0x120] sm:$0xf] %vm1511_vm1, %v10436_v22  ;;  %8747 = vmatmul.msk.bf16.gmra.mxu0 %vm4527_vm4, %v8397_v6  ;;  %v3299_v42 = vor.u32 %v3298_v12, %v3295_v8  ;;  %v2706_v18 = vrot.slane %v2551_v39, 5  ;;  %v2859_v19 = vld [vmem:[#allocation2 + $0x70] sm:$0xf]  ;;  %v3284_v22 = vrot.slane %v3282_v34, 4 }
 0x22b   : >> { %4881 = vmatmul.bf16.gmra.mxu3 %v8413_v14  ;;  %4792 = vmatmul.bf16.gmra.mxu2 %v8409_v27  ;;  %1991 = vst.msk [vmem:[#allocation3 + $0xf4] sm:$0xf] %vm1511_vm1, %v1908_v41  ;;  %v2705_v9 = vrot.slane %v2703_v58, 4  ;;  %v2858_v14 = vld [vmem:[#allocation2 + $0x6c] sm:$0xf]  ;;  %v2245_v34 = vrot.slane %v2244_v37, 4  ;;  %v10550_v27 = vpop.f32.mrf.mxu2 }
 0x22c   : >> { %2891 = vst.msk [vmem:[#allocation3 + $0x138] sm:$0xf] %vm170_vm0, %v2859_v19  ;;  %v3300_v61 = vrot.slane %v3299_v42, 4  ;;  %v2034_v23 = vld [vmem:[#allocation2 + $0x68] sm:$0x1]  ;;  %v3285_v41 = vor.u32 %v3284_v22, %v10445_v54  ;;  %v3306_v6 = vshrl.u32 %v10499_v5, 16  ;;  %v10563_v5 = vpop.permute.xlu2 %3374 }
 0x22d   : >> { %3451 = vst.msk [vmem:[#allocation3 + $0x138] sm:$0xf] %vm1511_vm1, %v10479_v53  ;;  %v2707_v33 = vsel %vm9855_vm15, %v2705_v9, %v2706_v18  ;;  %v2247_v44 = vshll.u32 %v2034_v23, 16  ;;  %v3486_v31 = vld [vmem:[#allocation2 + $0x60] sm:$0xe] }
 0x22e   : >> { %v3369_v29 = vpop.permute.xlu1 %3368  ;;  %2890 = vst.msk [vmem:[#allocation3 + $0x124] sm:$0xf] %vm170_vm0, %v2858_v14  ;;  %v3305_v45 = vsel %vm9720_vm12, %v3300_v61, %v10527_v56  ;;  %2773 = vrot.lane.b32.xlu0 %v2707_v33, %s9286_s6  ;;  %v3487_v54 = vld [vmem:[#allocation2 + $0x64] sm:$0xf]  ;;  %v3488_v20 = vld [vmem:[#allocation2 + $0x68] sm:$0x1]  ;;  %v10554_v8 = vpop.f32.mrf.mxu3 }
 0x22f   : >> { %3450 = vst.msk [vmem:[#allocation3 + $0x124] sm:$0xf] %vm1511_vm1, %v3369_v29  ;;  %v8402_v51 = vld [vmem:[#allocation3 + $0x104] sm:$0xf0]  ;;  %3396 = vrot.lane.b32.xlu1 %v3305_v45, %s9286_s6  ;;  %v2249_v46 = vrot.slane %v2247_v44, 5  ;;  %v8267_v10 = vrot.slane %v3486_v31, 9 }
 0x230   : >> { %v2746_v38 = vpop.permute.xlu0 %2745  ;;  %v10548_v53 = vpop.f32.mrf.mxu1  ;;  %v3608_v13 = vrot.slane %v3487_v54, 5  ;;  %v3611_v4 = vrot.slane %v3488_v20, 5  ;;  %v2949_v21 = vld [vmem:[#allocation2 + $0xbc] sm:$0x1]  ;;  %v3286_v36 = vrot.slane %v3285_v41, 4  ;;  %12890 = vst [vmem:[#allocation11_spill] sm:$0xff] %v10554_v8 }
 0x231   : >> { %v2250_v12 = vsel %vm9720_vm12, %v2245_v34, %v2249_v46  ;;  %v3288_v18 = vshll.u32 %v2949_v21, 16  ;;  %v1847_v19 = vld [vmem:[#allocation2 + $0xb4] sm:$0xf]  ;;  %v1848_v22 = vld [vmem:[#allocation2 + $0xb8] sm:$0xf]  ;;  %v10566_v23 = vpop.f32.mrf.mxu0 }
 0x232   : >> { %v8794_v39 = vld [vmem:[#allocation3 + $0xf4] sm:$0xf]  ;;  %v3609_v37 = vsel %vm9855_vm15, %v8267_v10, %v3608_v13  ;;  %v3610_v42 = vrot.slane %v3608_v13, 4  ;;  %2490 = vst.msk [vmem:[#allocation3 + $0x134] sm:$0xf] %vm170_vm0, %v2250_v12 }
 0x233   : >> { %v8405_v29 = vor.u32 %v8794_v39, %v8402_v51  ;;  %v2035_v9 = vld [vmem:[#allocation2 + $0x6c] sm:$0xf]  ;;  %v2036_v14 = vld [vmem:[#allocation2 + $0x70] sm:$0xf]  ;;  %2826 = vst.msk [vmem:[#allocation3 + $0x134] sm:$0xf] %vm1511_vm1, %v2746_v38 }
 0x234   : >> { %v3612_v41 = vsel %vm9855_vm15, %v3610_v42, %v3611_v4  ;;  %v3290_v33 = vrot.slane %v3288_v18, 5  ;;  %v2252_v34 = vshrl.u32 %v2035_v9, 16  ;;  %v2255_v44 = vshll.u32 %v2035_v9, 16  ;;  %3720 = vst.msk [vmem:[#allocation3 + $0x100] sm:$0xf] %vm170_vm0, %v3609_v37 }
 0x235   : >> { %4703 = vmatmul.bf16.gmra.mxu1 %v8405_v29  ;;  %v2261_v45 = vshll.u32 %v2036_v14, 16  ;;  %v1566_v51 = vld [vmem:[#allocation2 + $0x58] sm:$0xf]  ;;  %v2265_v54 = vshrl.u32 %v2036_v14, 16  ;;  %3721 = vst.msk [vmem:[#allocation3 + $0x114] sm:$0xf] %vm170_vm0, %v3612_v41 }
 0x236   : >> { %v10561_v61 = vpop.permute.xlu1 %1913  ;;  %v3291_v38 = vsel %vm9720_vm12, %v3286_v36, %v3290_v33  ;;  %v2254_v46 = vrot.slane %v2252_v34, 4  ;;  %v2257_v20 = vrot.slane %v2255_v44, 5  ;;  %v1567_v10 = vld [vmem:[#allocation2 + $0x5c] sm:$0x1]  ;;  %1939 = vrot.lane.b32.xlu0 %v1847_v19, %s9286_s6  ;;  %v1694_v4 = vrot.slane %v1566_v51, 5  ;;  %v10579_v37 = vpop.f32.mrf.mxu2 }
 0x237   : >> { %3394 = vrot.lane.b32.xlu2 %v3291_v38, %s9286_s6  ;;  %v2263_v13 = vrot.slane %v2261_v45, 5  ;;  %v1697_v21 = vrot.slane %v1567_v10, 5  ;;  %v1565_v12 = vld [vmem:[#allocation2 + $0x54] sm:$0xe]  ;;  %v2267_v39 = vrot.slane %v2265_v54, 4  ;;  %1941 = vrot.lane.b32.xlu1 %v1848_v22, %s9286_s6  ;;  %v10583_v34 = vrot.slane %v3306_v6, 4 }
 0x238   : >> { %v10570_v31 = vpop.permute.xlu0 %1911  ;;  %v2258_v42 = vor.u32 %v2257_v20, %v2254_v46  ;;  %v8236_v18 = vrot.slane %v1565_v12, 9  ;;  %v8800_v29 = vld [vmem:[#allocation3 + $0x124] sm:$0xf]  ;;  %v1696_v36 = vrot.slane %v1694_v4, 4  ;;  %v10581_v9 = vpop.f32.mrf.mxu1  ;;  %v8428_v14 = vld [vmem:[#allocation3 + $0x120] sm:$0xf] }
 0x239   : >> { %v8430_v41 = vld [vmem:[#allocation3 + $0x134] sm:$0xf0]  ;;  %v2549_v33 = vld [vmem:[#allocation2 + $0xb4] sm:$0xe]  ;;  %v2953_v22 = vld [vmem:[#allocation2 + $0xcc] sm:$0xf] }
 0x23a   : >> { %v2259_v19 = vrot.slane %v2258_v42, 4  ;;  %v1695_v44 = vsel %vm9855_vm15, %v8236_v18, %v1694_v4  ;;  %v8433_v45 = vor.u32 %v8800_v29, %v8430_v41  ;;  %v8259_v51 = vrot.slane %v2549_v33, 9  ;;  %v10587_v54 = vld [vmem:[#allocation2 + $0xd0] sm:$0xf]  ;;  %v8802_v20 = vld [vmem:[#allocation3 + $0x130] sm:$0xf0] }
 0x23b   : >> { %v1698_v46 = vsel %vm9855_vm15, %v1696_v36, %v1697_v21  ;;  %1801 = vst.msk [vmem:[#allocation3 + $0x11c] sm:$0xf] %vm170_vm0, %v1695_v44  ;;  %v3317_v10 = vshrl.u32 %v2953_v22, 16  ;;  %v3320_v6 = vshll.u32 %v2953_v22, 16  ;;  %v2268_v42 = vor.u32 %v2267_v39, %v2263_v13  ;;  %v8416_v0 = vld [vmem:[#allocation3 + $0x100] sm:$0xf] }
 0x23c   : >> { %v2264_v4 = vsel %vm9720_vm12, %v2259_v19, %v2263_v13  ;;  %1802 = vst.msk [vmem:[#allocation3 + $0x130] sm:$0xf] %vm170_vm0, %v1698_v46  ;;  %v8429_v18 = vor.u32 %v8802_v20, %v8428_v14  ;;  %4886 = vmatmul.bf16.gmra.mxu3 %v8433_v45  ;;  %v2704_v21 = vsel %vm9855_vm15, %v8259_v51, %v2703_v58  ;;  %v3326_v29 = vshll.u32 %v10587_v54, 16  ;;  %v8798_v39 = vld [vmem:[#allocation3 + $0x110] sm:$0xf0]  ;;  %v10607_v19 = vpop.permute.xlu2 %2751 }
 0x23d   : >> { %2491 = vst.msk [vmem:[#allocation3 + $0x148] sm:$0xf] %vm170_vm0, %v2264_v4  ;;  %v3319_v33 = vrot.slane %v3317_v10, 4  ;;  %v3322_v13 = vrot.slane %v3320_v6, 5  ;;  %v8417_v14 = vor.u32 %v8798_v39, %v8416_v0  ;;  %v10611_v11 = vld [vmem:[#allocation2 + $0xc4] sm:$0xf]  ;;  %v3309_v10 = vor.u32 %v10583_v34, %v10527_v56 }
 0x23e   : >> { %v10589_v38 = vpop.f32.mrf.mxu3  ;;  %v3373_v12 = vpop.permute.xlu1 %3372  ;;  %2827 = vst.msk [vmem:[#allocation3 + $0x148] sm:$0xf] %vm1511_vm1, %v10521_v49  ;;  %4797 = vmatmul.bf16.gmra.mxu2 %v8429_v18  ;;  %v10616_v44 = vrot.slane %v3326_v29, 5  ;;  %v2554_v45 = vld [vmem:[#allocation2 + $0xc8] sm:$0x1]  ;;  %v12854_v51 = vrot.slane %v10611_v11, 5 }
 0x23f   : >> { %12891 = vst [vmem:[#allocation12_spill] sm:$0xff] %v10589_v38  ;;  %2771 = vrot.lane.b32.xlu2 %v2704_v21, %s9286_s6  ;;  %v3323_v58 = vor.u32 %v3322_v13, %v3319_v33  ;;  %8748 = vmatmul.msk.bf16.gmra.mxu0 %vm4527_vm4, %v8417_v14  ;;  %v2713_v0 = vrot.slane %v2554_v45, 5  ;;  %v2861_v49 = vld [vmem:[#allocation2 + $0x7c] sm:$0xf]  ;;  %v2269_v22 = vrot.slane %v2268_v42, 4  ;;  %v10627_v6 = vpop.f32.mrf.mxu2 }
 0x240   : >> { %v10602_v36 = vpop.permute.xlu0 %2749  ;;  %v10604_v41 = vpop.f32.mrf.mxu0  ;;  %1994 = vst.msk [vmem:[#allocation3 + $0x130] sm:$0xf] %vm1511_vm1, %v10561_v61  ;;  %v2712_v61 = vrot.slane %v12854_v51, 4  ;;  %v2860_v20 = vld [vmem:[#allocation2 + $0x78] sm:$0xf] }
 0x241   : >> { %1993 = vst.msk [vmem:[#allocation3 + $0x11c] sm:$0xf] %vm1511_vm1, %v10570_v31  ;;  %v3324_v46 = vrot.slane %v3323_v58, 4  ;;  %v2037_v4 = vld [vmem:[#allocation2 + $0x74] sm:$0x1]  ;;  %v10639_v56 = vpop.f32.mrf.mxu1 }
 0x242   : >> { %2893 = vst.msk [vmem:[#allocation3 + $0x160] sm:$0xf] %vm170_vm0, %v2861_v49  ;;  %v3489_v31 = vld [vmem:[#allocation2 + $0x6c] sm:$0xe]  ;;  %v2714_v21 = vsel %vm9855_vm15, %v2712_v61, %v2713_v0  ;;  %v2271_v29 = vshll.u32 %v2037_v4, 16  ;;  %v3330_v61 = vshrl.u32 %v10587_v54, 16 }
 0x243   : >> { %3453 = vst.msk [vmem:[#allocation3 + $0x160] sm:$0xf] %vm1511_vm1, %v10563_v5  ;;  %v3329_v42 = vsel %vm9720_vm12, %v3324_v46, %v10616_v44  ;;  %v3490_v34 = vld [vmem:[#allocation2 + $0x70] sm:$0xf]  ;;  %v8268_v39 = vrot.slane %v3489_v31, 9  ;;  %2777 = vrot.lane.b32.xlu0 %v2714_v21, %s9286_s6  ;;  %v3310_v46 = vrot.slane %v3309_v10, 4 }
 0x244   : >> { %2892 = vst.msk [vmem:[#allocation3 + $0x14c] sm:$0xf] %vm170_vm0, %v2860_v20  ;;  %3400 = vrot.lane.b32.xlu1 %v3329_v42, %s9286_s6  ;;  %v3491_v5 = vld [vmem:[#allocation2 + $0x74] sm:$0x1]  ;;  %v3615_v13 = vrot.slane %v3490_v34, 5  ;;  %v2273_v45 = vrot.slane %v2271_v29, 5 }
 0x245   : >> { %3452 = vst.msk [vmem:[#allocation3 + $0x14c] sm:$0xf] %vm1511_vm1, %v3373_v12  ;;  %v3618_v0 = vrot.slane %v3491_v5, 5  ;;  %v2952_v49 = vld [vmem:[#allocation2 + $0xc8] sm:$0x1]  ;;  %v10656_v5 = vpop.permute.xlu2 %3378 }
 0x246   : >> { %v10631_v18 = vpop.f32.mrf.mxu3  ;;  %v10641_v33 = vpop.permute.xlu1 %1917  ;;  %v3616_v4 = vsel %vm9855_vm15, %v8268_v39, %v3615_v13  ;;  %v3617_v31 = vrot.slane %v3615_v13, 4  ;;  %v3312_v42 = vshll.u32 %v2952_v49, 16  ;;  %v2274_v12 = vsel %vm9720_vm12, %v2269_v22, %v2273_v45  ;;  %v1850_v34 = vld [vmem:[#allocation2 + $0xc4] sm:$0xf]  ;;  %v2038_v29 = vld [vmem:[#allocation2 + $0x78] sm:$0xf] }
 0x247   : >> { %12892 = vst [vmem:[#allocation13_spill] sm:$0xff] %v10631_v18  ;;  %v8422_v20 = vld [vmem:[#allocation3 + $0x12c] sm:$0xf0]  ;;  %v2039_v13 = vld [vmem:[#allocation2 + $0x7c] sm:$0xf]  ;;  %v2276_v49 = vshrl.u32 %v2038_v29, 16 }
 0x248   : >> { %v10646_v14 = vpop.permute.xlu0 %1915  ;;  %v10648_v58 = vpop.f32.mrf.mxu0  ;;  %v8799_v21 = vld [vmem:[#allocation3 + $0x11c] sm:$0xf]  ;;  %3722 = vst.msk [vmem:[#allocation3 + $0x128] sm:$0xf] %vm170_vm0, %v3616_v4  ;;  %v3619_v10 = vsel %vm9855_vm15, %v3617_v31, %v3618_v0  ;;  %v3314_v39 = vrot.slane %v3312_v42, 5  ;;  %v2279_v22 = vshll.u32 %v2038_v29, 16 }
 0x249   : >> { %2492 = vst.msk [vmem:[#allocation3 + $0x15c] sm:$0xf] %vm170_vm0, %v2274_v12  ;;  %v8425_v54 = vor.u32 %v8799_v21, %v8422_v20  ;;  %v2285_v45 = vshll.u32 %v2039_v13, 16  ;;  %v1569_v4 = vld [vmem:[#allocation2 + $0x64] sm:$0xf]  ;;  %v2278_v12 = vrot.slane %v2276_v49, 4 }
 0x24a   : >> { %2828 = vst.msk [vmem:[#allocation3 + $0x15c] sm:$0xf] %vm1511_vm1, %v10602_v36  ;;  %v3315_v51 = vsel %vm9720_vm12, %v3310_v46, %v3314_v39  ;;  %v1570_v20 = vld [vmem:[#allocation2 + $0x68] sm:$0x1]  ;;  %v1701_v21 = vrot.slane %v1569_v4, 5  ;;  %v2281_v31 = vrot.slane %v2279_v22, 5 }
 0x24b   : >> { %4708 = vmatmul.bf16.gmra.mxu1 %v8425_v54  ;;  %3723 = vst.msk [vmem:[#allocation3 + $0x13c] sm:$0xf] %vm170_vm0, %v3619_v10  ;;  %3398 = vrot.lane.b32.xlu2 %v3315_v51, %s9286_s6  ;;  %v1704_v42 = vrot.slane %v1570_v20, 5  ;;  %v2289_v29 = vshrl.u32 %v2039_v13, 16  ;;  %v2287_v54 = vrot.slane %v2285_v45, 5  ;;  %v8237_v46 = vrot.slane %v1568_v1, 9 }
 0x24c   : >> { %1945 = vrot.lane.b32.xlu1 %v1850_v34, %s9286_s6  ;;  %1943 = vrot.lane.b32.xlu0 %v1849_v26, %s9286_s6  ;;  %v1703_v10 = vrot.slane %v1701_v21, 4  ;;  %v8805_v39 = vld [vmem:[#allocation3 + $0x14c] sm:$0xf]  ;;  %v3332_v18 = vrot.slane %v3330_v61, 4  ;;  %v2282_v38 = vor.u32 %v2281_v31, %v2278_v12  ;;  %v8450_v51 = vld [vmem:[#allocation3 + $0x15c] sm:$0xf0] }
 0x24d   : >> { %v2552_v22 = vld [vmem:[#allocation2 + $0xc0] sm:$0xe]  ;;  %v2863_v20 = vld [vmem:[#allocation2 + $0x88] sm:$0xf]  ;;  %v1702_v26 = vsel %vm9855_vm15, %v8237_v46, %v1701_v21  ;;  %v8453_v1 = vor.u32 %v8805_v39, %v8450_v51  ;;  %v2291_v12 = vrot.slane %v2289_v29, 4 }
 0x24e   : >> { %v4763_v15 = vpop.f32.mrf.mxu2  ;;  %v4852_v0 = vpop.f32.mrf.mxu3  ;;  %v1705_v34 = vsel %vm9855_vm15, %v1703_v10, %v1704_v42  ;;  %v8448_v13 = vld [vmem:[#allocation3 + $0x148] sm:$0xf]  ;;  %v8260_v45 = vrot.slane %v2552_v22, 9  ;;  %2895 = vst.msk [vmem:[#allocation3 + $0x188] sm:$0xf] %vm170_vm0, %v2863_v20  ;;  %v2283_v61 = vrot.slane %v2282_v38, 4  ;;  %v3333_v22 = vor.u32 %v3332_v18, %v10616_v44 }
 0x24f   : >> { %v10667_v36 = vpop.permute.xlu1 %3376  ;;  %v8436_v59 = vld [vmem:[#allocation3 + $0x128] sm:$0xf]  ;;  %1804 = vst.msk [vmem:[#allocation3 + $0x158] sm:$0xf] %vm170_vm0, %v1705_v34  ;;  %4891 = vmatmul.bf16.gmra.mxu3 %v8453_v1  ;;  %v12893_v42 = vrot.slane %v10611_v11, 5  ;;  %v2292_v29 = vor.u32 %v2291_v12, %v2287_v54 }
 0x250   : >> { %v10671_v49 = vpop.permute.xlu0 %2753  ;;  %v4674_v4 = vpop.f32.mrf.mxu1  ;;  %1996 = vst.msk [vmem:[#allocation3 + $0x158] sm:$0xf] %vm1511_vm1, %v10641_v33  ;;  %v2040_v10 = vld [vmem:[#allocation2 + $0x80] sm:$0x1]  ;;  %v2288_v39 = vsel %vm9720_vm12, %v2283_v61, %v2287_v54  ;;  %v3492_v51 = vld [vmem:[#allocation2 + $0x78] sm:$0xe] }
 0x251   : >> { %v4675_v8 = vadd.f32 %v4674_v4, %v10370_v63  ;;  %v4941_v30 = vpop.f32.mrf.mxu0  ;;  %v8807_v63 = vld [vmem:[#allocation3 + $0x158] sm:$0xf0]  ;;  %v2711_v21 = vsel %vm9855_vm15, %v8260_v45, %v12893_v42  ;;  %1803 = vst.msk [vmem:[#allocation3 + $0x144] sm:$0xf] %vm170_vm0, %v1702_v26  ;;  %v2862_v4 = vld [vmem:[#allocation2 + $0x84] sm:$0xf] }
 0x252   : >> { %v8803_v46 = vld [vmem:[#allocation3 + $0x138] sm:$0xf0]  ;;  %v8449_v38 = vor.u32 %v8807_v63, %v8448_v13  ;;  %2493 = vst.msk [vmem:[#allocation3 + $0x170] sm:$0xf] %vm170_vm0, %v2288_v39  ;;  %v2293_v54 = vrot.slane %v2292_v29, 4  ;;  %v8269_v18 = vrot.slane %v3492_v51, 9 }
 0x253   : >> { %v4764_v31 = vadd.f32 %v4763_v15, %v4675_v8  ;;  %v2295_v15 = vshll.u32 %v2040_v10, 16  ;;  %v10689_v8 = vpop.permute.xlu2 %2755  ;;  %v8437_v33 = vor.u32 %v8803_v46, %v8436_v59  ;;  %2829 = vst.msk [vmem:[#allocation3 + $0x170] sm:$0xf] %vm1511_vm1, %v10607_v19  ;;  %2775 = vrot.lane.b32.xlu2 %v2711_v21, %s9286_s6  ;;  %v3493_v13 = vld [vmem:[#allocation2 + $0x7c] sm:$0xf]  ;;  %v3334_v21 = vrot.slane %v3333_v22, 4 }
 0x254   : >> { %4802 = vmatmul.bf16.gmra.mxu2 %v8449_v38  ;;  %1995 = vst.msk [vmem:[#allocation3 + $0x144] sm:$0xf] %vm1511_vm1, %v10646_v14  ;;  %v3494_v44 = vld [vmem:[#allocation2 + $0x80] sm:$0x1]  ;;  %v2955_v12 = vld [vmem:[#allocation2 + $0xd4] sm:$0x1] }
 0x255   : >> { %v4853_v11 = vadd.f32 %v4852_v0, %v4764_v31  ;;  %v2297_v26 = vrot.slane %v2295_v15, 5  ;;  %8749 = vmatmul.msk.bf16.gmra.mxu0 %vm4527_vm4, %v8437_v33  ;;  %v3622_v0 = vrot.slane %v3493_v13, 5  ;;  %3455 = vst.msk [vmem:[#allocation3 + $0x188] sm:$0xf] %vm1511_vm1, %v10656_v5  ;;  %v3625_v61 = vrot.slane %v3494_v44, 5 }
 0x256   : >> { %v4765_v20 = vpop.f32.mrf.mxu2  ;;  %v4854_v34 = vpop.f32.mrf.mxu3  ;;  %2894 = vst.msk [vmem:[#allocation3 + $0x174] sm:$0xf] %vm170_vm0, %v2862_v4  ;;  %v3336_v10 = vshll.u32 %v2955_v12, 16  ;;  %v2041_v39 = vld [vmem:[#allocation2 + $0x84] sm:$0xf] }
 0x257   : >> { %v10696_v1 = vpop.permute.xlu1 %1921  ;;  %v4942_v59 = vadd.f32 %v4941_v30, %v4853_v11  ;;  %v2298_v19 = vsel %vm9720_vm12, %v2293_v54, %v2297_v26  ;;  %v3624_v14 = vrot.slane %v3622_v0, 4  ;;  %3454 = vst.msk [vmem:[#allocation3 + $0x174] sm:$0xf] %vm1511_vm1, %v10667_v36  ;;  %v8442_v5 = vld [vmem:[#allocation3 + $0x154] sm:$0xf0]  ;;  %v3623_v46 = vsel %vm9855_vm15, %v8269_v18, %v3622_v0 }
 0x258   : >> { %v4676_v45 = vpop.f32.mrf.mxu1  ;;  %v10705_v31 = vpop.permute.xlu0 %1919  ;;  %2494 = vst.msk [vmem:[#allocation3 + $0x184] sm:$0xf] %vm170_vm0, %v2298_v19  ;;  %v3338_v15 = vrot.slane %v3336_v10, 5  ;;  %v10716_v33 = vld [vmem:[#allocation2 + $0x88] sm:$0xf]  ;;  %v2300_v4 = vshrl.u32 %v2041_v39, 16 }
 0x259   : >> { %v4677_v63 = vadd.f32 %v4676_v45, %v10407_v57  ;;  %v4943_v42 = vpop.f32.mrf.mxu0  ;;  %v5021_v30 = vmax.f32 %v4942_v59, 0.0  ;;  %v3626_v57 = vsel %vm9855_vm15, %v3624_v14, %v3625_v61  ;;  %2830 = vst.msk [vmem:[#allocation3 + $0x184] sm:$0xf] %vm1511_vm1, %v10671_v49  ;;  %v2303_v36 = vshll.u32 %v2041_v39, 16  ;;  %v1572_v51 = vld [vmem:[#allocation2 + $0x70] sm:$0xf] }
 0x25a   : >> { %v2309_v11 = vshll.u32 %v10716_v33, 16  ;;  %3724 = vst.msk [vmem:[#allocation3 + $0x150] sm:$0xf] %vm170_vm0, %v3623_v46  ;;  %v3339_v26 = vsel %vm9720_vm12, %v3334_v21, %v3338_v15  ;;  %v2302_v13 = vrot.slane %v2300_v4, 4  ;;  %v1573_v61 = vld [vmem:[#allocation2 + $0x74] sm:$0x1] }
 0x25b   : >> { %v4766_v38 = vadd.f32 %v4765_v20, %v4677_v63  ;;  %v5053_v29 = vpack.c.bf16 %v5021_v30, %v5021_v30  ;;  %v8804_v18 = vld [vmem:[#allocation3 + $0x144] sm:$0xf]  ;;  %3725 = vst.msk [vmem:[#allocation3 + $0x164] sm:$0xf] %vm170_vm0, %v3626_v57  ;;  %3402 = vrot.lane.b32.xlu2 %v3339_v26, %s9286_s6  ;;  %v2305_v49 = vrot.slane %v2303_v36, 5  ;;  %v1708_v12 = vrot.slane %v1572_v51, 5  ;;  %v10730_v30 = vpop.permute.xlu2 %3382 }
 0x25c   : >> { %v10726_v0 = vrot.slane %v2309_v11, 5  ;;  %v8445_v19 = vor.u32 %v8804_v18, %v8442_v5  ;;  %v1571_v63 = vld [vmem:[#allocation2 + $0x6c] sm:$0xe]  ;;  %v1711_v39 = vrot.slane %v1573_v61, 5  ;;  %v8470_v26 = vld [vmem:[#allocation3 + $0x184] sm:$0xf0] }
 0x25d   : >> { %v4855_v22 = vadd.f32 %v4854_v34, %v4766_v38  ;;  %v5086_v54 = vshrl.u32 %v5053_v29, 16  ;;  %v5089_v20 = vshll.u32 %v5053_v29, 16  ;;  %v5407_v10 = vld [vmem:[#allocation2 + $0xc] sm:$0xf]  ;;  %v2306_v46 = vor.u32 %v2305_v49, %v2302_v13 }
 0x25e   : >> { %v4768_v59 = vpop.f32.mrf.mxu2  ;;  %v4857_v44 = vpop.f32.mrf.mxu3  ;;  %v8238_v38 = vrot.slane %v1571_v63, 9  ;;  %4713 = vmatmul.bf16.gmra.mxu1 %v8445_v19  ;;  %v1710_v4 = vrot.slane %v1708_v12, 4  ;;  %v8810_v36 = vld [vmem:[#allocation3 + $0x174] sm:$0xf]  ;;  %v2313_v13 = vshrl.u32 %v10716_v33, 16 }
 0x25f   : >> { %v4944_v45 = vadd.f32 %v4943_v42, %v4855_v22  ;;  %v10728_v34 = vrot.slane %v5086_v54, 7  ;;  %v10738_v29 = vpop.permute.xlu1 %3380  ;;  %v2307_v51 = vrot.slane %v2306_v46, 4 }
 0x260   : >> { %v4679_v14 = vpop.f32.mrf.mxu1  ;;  %v1709_v22 = vsel %vm9855_vm15, %v8238_v38, %v1708_v12  ;;  %v10746_v18 = vpop.permute.xlu0 %2757  ;;  %v1712_v49 = vsel %vm9855_vm15, %v1710_v4, %v1711_v39  ;;  %v2043_v39 = vld [vmem:[#allocation2 + $0x8c] sm:$0x1] }
 0x261   : >> { %v5022_v42 = vmax.f32 %v4944_v45, 0.0  ;;  %v4946_v5 = vpop.f32.mrf.mxu0  ;;  %v5091_v57 = vor.u32 %v5089_v20, %v10728_v34  ;;  %v5092_v15 = vrot.slane %v10728_v34, 4  ;;  %v4680_v11 = vadd.f32 %v4679_v14, %v10442_v55  ;;  %1805 = vst.msk [vmem:[#allocation3 + $0x16c] sm:$0xf] %vm170_vm0, %v1709_v22  ;;  %v8468_v45 = vld [vmem:[#allocation3 + $0x170] sm:$0xf] }
 0x262   : >> { %v8812_v55 = vld [vmem:[#allocation3 + $0x180] sm:$0xf0]  ;;  %v8473_v34 = vor.u32 %v8810_v36, %v8470_v26  ;;  %v8456_v61 = vld [vmem:[#allocation3 + $0x150] sm:$0xf]  ;;  %v2312_v33 = vsel %vm9720_vm12, %v2307_v51, %v10726_v0  ;;  %v2315_v36 = vrot.slane %v2313_v13, 4  ;;  %v12904_v51 = vld [vmem:[#allocation8_spill] sm:$0xff] (%p912_p11) }
 0x263   : >> { %v5054_v54 = vpack.c.bf16 %v5022_v42, %v5022_v42  ;;  %v5408_v20 = vsel %vm10734_vm6, %v5091_v57, %v5407_v10  ;;  %v4769_v19 = vadd.f32 %v4768_v59, %v4680_v11  ;;  %v8469_v14 = vor.u32 %v8812_v55, %v8468_v45  ;;  %v8808_v46 = vld [vmem:[#allocation3 + $0x160] sm:$0xf0]  ;;  %2495 = vst.msk [vmem:[#allocation3 + $0x198] sm:$0xf] %vm170_vm0, %v2312_v33  ;;  %v5413_v10 = vld [vmem:[#allocation2 + $0x14] sm:$0x1] }
 0x264   : >> { %5409 = vst [vmem:[#allocation2 + $0xc] sm:$0xf] %v5408_v20  ;;  %4896 = vmatmul.bf16.gmra.mxu3 %v8473_v34  ;;  %v8457_v4 = vor.u32 %v8808_v46, %v8456_v61  ;;  %v2319_v11 = vshll.u32 %v2043_v39, 16  ;;  %v2865_v22 = vld [vmem:[#allocation2 + $0x94] sm:$0xf]  ;;  %v2316_v20 = vor.u32 %v2315_v36, %v10726_v0  ;;  %v10778_v46 = vpop.permute.xlu2 %2759  ;;  %9167 = vset.pattern.permute.xlu0 (%p912_p11), %v12904_v51 }
 0x265   : >> { %v5094_v12 = vshrl.u32 %v5054_v54, 16  ;;  %v5097_v63 = vshll.u32 %v5054_v54, 16  ;;  %v4858_v38 = vadd.f32 %v4857_v44, %v4769_v19  ;;  %2831 = vst.msk [vmem:[#allocation3 + $0x198] sm:$0xf] %vm1511_vm1, %v10689_v8  ;;  %4807 = vmatmul.bf16.gmra.mxu2 %v8469_v14  ;;  %v3495_v54 = vld [vmem:[#allocation2 + $0x84] sm:$0xe] }
 0x266   : >> { %v4770_v42 = vpop.f32.mrf.mxu2  ;;  %v4859_v57 = vpop.f32.mrf.mxu3  ;;  %1806 = vst.msk [vmem:[#allocation3 + $0x180] sm:$0xf] %vm170_vm0, %v1712_v49  ;;  %8750 = vmatmul.msk.bf16.gmra.mxu0 %vm4527_vm4, %v8457_v4  ;;  %v2321_v49 = vrot.slane %v2319_v11, 5  ;;  %v3496_v45 = vld [vmem:[#allocation2 + $0x88] sm:$0xf]  ;;  %v8270_v61 = vrot.slane %v3495_v54, 9 }
 0x267   : >> { %v5096_v59 = vrot.slane %v5094_v12, 7  ;;  %v4947_v44 = vadd.f32 %v4946_v5, %v4858_v38  ;;  %1998 = vst.msk [vmem:[#allocation3 + $0x180] sm:$0xf] %vm1511_vm1, %v10696_v1  ;;  %v2864_v34 = vld [vmem:[#allocation2 + $0x90] sm:$0xf]  ;;  %v2317_v0 = vrot.slane %v2316_v20, 4 }
 0x268   : >> { %v4681_v26 = vpop.f32.mrf.mxu1  ;;  %1997 = vst.msk [vmem:[#allocation3 + $0x16c] sm:$0xf] %vm1511_vm1, %v10705_v31  ;;  %v3497_v5 = vld [vmem:[#allocation2 + $0x8c] sm:$0x1]  ;;  %v2044_v14 = vld [vmem:[#allocation2 + $0x90] sm:$0xf]  ;;  %v10780_v31 = vpop.permute.xlu1 %1925 }
 0x269   : >> { %v5099_v8 = vor.u32 %v5097_v63, %v5096_v59  ;;  %v5101_v13 = vrot.slane %v5096_v59, 4  ;;  %v4948_v55 = vpop.f32.mrf.mxu0  ;;  %v5023_v19 = vmax.f32 %v4947_v44, 0.0  ;;  %v4682_v33 = vadd.f32 %v4681_v26, %v10483_v2  ;;  %2897 = vst.msk [vmem:[#allocation3 + $0x1b0] sm:$0xf] %vm170_vm0, %v2865_v22  ;;  %v10783_v2 = vld [vmem:[#allocation2 + $0x94] sm:$0xf]  ;;  %v10785_v11 = vpop.permute.xlu0 %1923 }
 0x26a   : >> { %v3629_v63 = vrot.slane %v3496_v45, 5  ;;  %v3632_v38 = vrot.slane %v3497_v5, 5  ;;  %v2324_v4 = vshrl.u32 %v2044_v14, 16  ;;  %v1575_v36 = vld [vmem:[#allocation2 + $0x7c] sm:$0xf]  ;;  %v2322_v22 = vsel %vm9720_vm12, %v2317_v0, %v2321_v49 }
 0x26b   : >> { %v5100_v12 = vsel %vm9510_vm8, %v5092_v15, %v5099_v8  ;;  %v5414_v1 = vsel %vm10762_vm7, %v5101_v13, %v5413_v10  ;;  %v5055_v39 = vpack.c.bf16 %v5023_v19, %v5023_v19  ;;  %v4771_v15 = vadd.f32 %v4770_v42, %v4682_v33  ;;  %3457 = vst.msk [vmem:[#allocation3 + $0x1b0] sm:$0xf] %vm1511_vm1, %v10730_v30  ;;  %v5416_v42 = vld [vmem:[#allocation2 + $0x18] sm:$0xf]  ;;  %v1576_v45 = vld [vmem:[#allocation2 + $0x80] sm:$0x1] }
 0x26c   : >> { %5410 = vst.msk [vmem:[#allocation2 + $0x10] sm:$0xf] %vm170_vm0, %v5100_v12  ;;  %v3631_v59 = vrot.slane %v3629_v63, 4  ;;  %v2327_v10 = vshll.u32 %v2044_v14, 16  ;;  %v2326_v54 = vrot.slane %v2324_v4, 4  ;;  %v2333_v26 = vshll.u32 %v10783_v2, 16 }
 0x26d   : >> { %5415 = vst [vmem:[#allocation2 + $0x14] sm:$0x1] %v5414_v1  ;;  %v5103_v44 = vshrl.u32 %v5055_v39, 16  ;;  %v1715_v19 = vrot.slane %v1575_v36, 5  ;;  %v4860_v5 = vadd.f32 %v4859_v57, %v4771_v15  ;;  %v5106_v33 = vshll.u32 %v5055_v39, 16 }
 0x26e   : >> { %v4773_v8 = vpop.f32.mrf.mxu2  ;;  %v4862_v13 = vpop.f32.mrf.mxu3  ;;  %2896 = vst.msk [vmem:[#allocation3 + $0x19c] sm:$0xf] %vm170_vm0, %v2864_v34  ;;  %v2329_v20 = vrot.slane %v2327_v10, 5  ;;  %v8462_v49 = vld [vmem:[#allocation3 + $0x17c] sm:$0xf0]  ;;  %v3630_v12 = vsel %vm9855_vm15, %v8270_v61, %v3629_v63  ;;  %v3633_v1 = vsel %vm9855_vm15, %v3631_v59, %v3632_v38  ;;  %v1718_v57 = vrot.slane %v1576_v45, 5 }
 0x26f   : >> { %3456 = vst.msk [vmem:[#allocation3 + $0x19c] sm:$0xf] %vm1511_vm1, %v10738_v29  ;;  %v10795_v30 = vrot.slane %v5103_v44, 7  ;;  %v8809_v34 = vld [vmem:[#allocation3 + $0x16c] sm:$0xf]  ;;  %v1717_v4 = vrot.slane %v1715_v19, 4  ;;  %v4949_v15 = vadd.f32 %v4948_v55, %v4860_v5  ;;  %v3387_v45 = vpop.permute.xlu2 %3386 }
 0x270   : >> { %v4684_v0 = vpop.f32.mrf.mxu1  ;;  %2496 = vst.msk [vmem:[#allocation3 + $0x1ac] sm:$0xf] %vm170_vm0, %v2322_v22  ;;  %v2330_v14 = vor.u32 %v2329_v20, %v2326_v54  ;;  %v8465_v39 = vor.u32 %v8809_v34, %v8462_v49  ;;  %v1574_v36 = vld [vmem:[#allocation2 + $0x78] sm:$0xe]  ;;  %v2335_v63 = vrot.slane %v2333_v26, 5  ;;  %v2337_v55 = vshrl.u32 %v10783_v2, 16  ;;  %v10815_v5 = vpop.permute.xlu1 %3384 }
 0x271   : >> { %v4951_v10 = vpop.f32.mrf.mxu0  ;;  %2832 = vst.msk [vmem:[#allocation3 + $0x1ac] sm:$0xf] %vm1511_vm1, %v10746_v18  ;;  %v5108_v29 = vor.u32 %v5106_v33, %v10795_v30  ;;  %v8239_v38 = vrot.slane %v1574_v36, 9  ;;  %v5024_v59 = vmax.f32 %v4949_v15, 0.0  ;;  %v4685_v18 = vadd.f32 %v4684_v0, %v10525_v60  ;;  %v8488_v0 = vld [vmem:[#allocation3 + $0x198] sm:$0xf] }
 0x272   : >> { %3726 = vst.msk [vmem:[#allocation3 + $0x178] sm:$0xf] %vm170_vm0, %v3630_v12  ;;  %v2331_v61 = vrot.slane %v2330_v14, 4  ;;  %4718 = vmatmul.bf16.gmra.mxu1 %v8465_v39  ;;  %v1719_v54 = vsel %vm9855_vm15, %v1717_v4, %v1718_v57  ;;  %v8490_v20 = vld [vmem:[#allocation3 + $0x1ac] sm:$0xf0]  ;;  %v5109_v60 = vrot.slane %v10795_v30, 4  ;;  %v10823_v14 = vpop.permute.xlu0 %2761 }
 0x273   : >> { %v5417_v22 = vsel %vm10734_vm6, %v5108_v29, %v5416_v42  ;;  %3727 = vst.msk [vmem:[#allocation3 + $0x18c] sm:$0xf] %vm170_vm0, %v3633_v1  ;;  %v5056_v26 = vpack.c.bf16 %v5024_v59, %v5024_v59  ;;  %v2046_v42 = vld [vmem:[#allocation2 + $0x98] sm:$0x1]  ;;  %v4774_v33 = vadd.f32 %v4773_v8, %v4685_v18  ;;  %v1716_v12 = vsel %vm9855_vm15, %v8239_v38, %v1715_v19  ;;  %v2867_v57 = vld [vmem:[#allocation2 + $0xa0] sm:$0xf] }
 0x274   : >> { %5418 = vst [vmem:[#allocation2 + $0x18] sm:$0xf] %v5417_v22  ;;  %v2336_v44 = vsel %vm9720_vm12, %v2331_v61, %v2335_v63  ;;  %v2339_v8 = vrot.slane %v2337_v55, 4  ;;  %v2343_v15 = vshll.u32 %v2046_v42, 16  ;;  %v5420_v38 = vld [vmem:[#allocation2 + $0x20] sm:$0x1] }
 0x275   : >> { %2497 = vst.msk [vmem:[#allocation3 + $0x1c0] sm:$0xf] %vm170_vm0, %v2336_v44  ;;  %v5111_v1 = vshrl.u32 %v5056_v26, 16  ;;  %v4863_v29 = vadd.f32 %v4862_v13, %v4774_v33  ;;  %v5114_v30 = vshll.u32 %v5056_v26, 16 }
 0x276   : >> { %v4775_v49 = vpop.f32.mrf.mxu2  ;;  %v4864_v2 = vpop.f32.mrf.mxu3  ;;  %2833 = vst.msk [vmem:[#allocation3 + $0x1c0] sm:$0xf] %vm1511_vm1, %v10778_v46  ;;  %v8815_v34 = vld [vmem:[#allocation3 + $0x19c] sm:$0xf]  ;;  %v2340_v22 = vor.u32 %v2339_v8, %v2335_v63 }
 0x277   : >> { %1808 = vst.msk [vmem:[#allocation3 + $0x1a8] sm:$0xf] %vm170_vm0, %v1719_v54  ;;  %v8493_v4 = vor.u32 %v8815_v34, %v8490_v20  ;;  %v5113_v46 = vrot.slane %v5111_v1, 7  ;;  %v4952_v18 = vadd.f32 %v4951_v10, %v4863_v29  ;;  %v2345_v54 = vrot.slane %v2343_v15, 5  ;;  %v3500_v1 = vld [vmem:[#allocation2 + $0x98] sm:$0x1] }
 0x278   : >> { %v4686_v39 = vpop.f32.mrf.mxu1  ;;  %2000 = vst.msk [vmem:[#allocation3 + $0x1a8] sm:$0xf] %vm1511_vm1, %v10780_v31  ;;  %v8817_v36 = vld [vmem:[#allocation3 + $0x1a8] sm:$0xf0]  ;;  %v2866_v31 = vld [vmem:[#allocation2 + $0x9c] sm:$0xf] }
 0x279   : >> { %v4687_v19 = vadd.f32 %v4686_v39, %v10566_v23  ;;  %v8476_v61 = vld [vmem:[#allocation3 + $0x178] sm:$0xf]  ;;  %1807 = vst.msk [vmem:[#allocation3 + $0x194] sm:$0xf] %vm170_vm0, %v1716_v12  ;;  %v8489_v59 = vor.u32 %v8817_v36, %v8488_v0  ;;  %4901 = vmatmul.bf16.gmra.mxu3 %v8493_v4  ;;  %v5116_v13 = vor.u32 %v5114_v30, %v5113_v46  ;;  %v5118_v44 = vrot.slane %v5113_v46, 4  ;;  %v4953_v20 = vpop.f32.mrf.mxu0  ;;  %v10842_v46 = vpop.permute.xlu2 %2763 }
 0x27a   : >> { %v8813_v55 = vld [vmem:[#allocation3 + $0x188] sm:$0xf0]  ;;  %1999 = vst.msk [vmem:[#allocation3 + $0x194] sm:$0xf] %vm1511_vm1, %v10785_v11  ;;  %v2341_v23 = vrot.slane %v2340_v22, 4  ;;  %v5025_v33 = vmax.f32 %v4952_v18, 0.0 }
 0x27b   : >> { %v4776_v26 = vadd.f32 %v4775_v49, %v4687_v19  ;;  %v8477_v42 = vor.u32 %v8813_v55, %v8476_v61  ;;  %4812 = vmatmul.bf16.gmra.mxu2 %v8489_v59  ;;  %2899 = vst.msk [vmem:[#allocation3 + $0x1d8] sm:$0xf] %vm170_vm0, %v2867_v57  ;;  %v3498_v12 = vld [vmem:[#allocation2 + $0x90] sm:$0xe]  ;;  %v5117_v10 = vsel %vm9510_vm8, %v5109_v60, %v5116_v13  ;;  %v3499_v11 = vld [vmem:[#allocation2 + $0x94] sm:$0xf] }
 0x27c   : >> { %v5421_v63 = vsel %vm10762_vm7, %v5118_v44, %v5420_v38  ;;  %3459 = vst.msk [vmem:[#allocation3 + $0x1d8] sm:$0xf] %vm1511_vm1, %v3387_v45  ;;  %v5057_v49 = vpack.c.bf16 %v5025_v33, %v5025_v33  ;;  %v8271_v34 = vrot.slane %v3498_v12, 9  ;;  %v3636_v4 = vrot.slane %v3499_v11, 5  ;;  %v2047_v57 = vld [vmem:[#allocation2 + $0x9c] sm:$0xf] }
 0x27d   : >> { %v4865_v0 = vadd.f32 %v4864_v2, %v4776_v26  ;;  %8751 = vmatmul.msk.bf16.gmra.mxu0 %vm4527_vm4, %v8477_v42  ;;  %5419 = vst.msk [vmem:[#allocation2 + $0x1c] sm:$0xf] %vm170_vm0, %v5117_v10  ;;  %v2346_v60 = vsel %vm9720_vm12, %v2341_v23, %v2345_v54  ;;  %v3639_v29 = vrot.slane %v3500_v1, 5  ;;  %v2048_v39 = vld [vmem:[#allocation2 + $0xa0] sm:$0xf]  ;;  %v2348_v45 = vshrl.u32 %v2047_v57, 16  ;;  %v10844_v2 = vpop.permute.xlu1 %1929  ;;  %v10851_v54 = vpop.permute.xlu0 %1927 }
 0x27e   : >> { %v4778_v8 = vpop.f32.mrf.mxu2  ;;  %v4867_v15 = vpop.f32.mrf.mxu3  ;;  %5422 = vst [vmem:[#allocation2 + $0x20] sm:$0x1] %v5421_v63  ;;  %v5120_v36 = vshrl.u32 %v5057_v49, 16  ;;  %v5123_v19 = vshll.u32 %v5057_v49, 16  ;;  %v3637_v38 = vsel %vm9855_vm15, %v8271_v34, %v3636_v4  ;;  %v5423_v22 = vld [vmem:[#allocation2 + $0x24] sm:$0xf] }
 0x27f   : >> { %v4954_v30 = vadd.f32 %v4953_v20, %v4865_v0  ;;  %2898 = vst.msk [vmem:[#allocation3 + $0x1c4] sm:$0xf] %vm170_vm0, %v2866_v31  ;;  %v8482_v61 = vld [vmem:[#allocation3 + $0x1a4] sm:$0xf0]  ;;  %v3638_v18 = vrot.slane %v3636_v4, 4  ;;  %v2350_v55 = vrot.slane %v2348_v45, 4 }
 0x280   : >> { %v4689_v59 = vpop.f32.mrf.mxu1  ;;  %3458 = vst.msk [vmem:[#allocation3 + $0x1c4] sm:$0xf] %vm1511_vm1, %v10815_v5  ;;  %v2351_v13 = vshll.u32 %v2047_v57, 16  ;;  %v2357_v44 = vshll.u32 %v2048_v39, 16  ;;  %v10854_v31 = vrot.slane %v5120_v36, 7  ;;  %v2361_v34 = vshrl.u32 %v2048_v39, 16 }
 0x281   : >> { %2498 = vst.msk [vmem:[#allocation3 + $0x1d4] sm:$0xf] %vm170_vm0, %v2346_v60  ;;  %v8814_v26 = vld [vmem:[#allocation3 + $0x194] sm:$0xf]  ;;  %v5026_v20 = vmax.f32 %v4954_v30, 0.0  ;;  %v4690_v42 = vadd.f32 %v4689_v59, %v10604_v41  ;;  %v3640_v5 = vsel %vm9855_vm15, %v3638_v18, %v3639_v29  ;;  %v4956_v57 = vpop.f32.mrf.mxu0 }
 0x282   : >> { %2834 = vst.msk [vmem:[#allocation3 + $0x1d4] sm:$0xf] %vm1511_vm1, %v10823_v14  ;;  %v8485_v23 = vor.u32 %v8814_v26, %v8482_v61  ;;  %v2353_v33 = vrot.slane %v2351_v13, 5  ;;  %v1578_v12 = vld [vmem:[#allocation2 + $0x88] sm:$0xf]  ;;  %v5125_v10 = vor.u32 %v5123_v19, %v10854_v31  ;;  %v10863_v63 = vrot.slane %v2357_v44, 5 }
 0x283   : >> { %3728 = vst.msk [vmem:[#allocation3 + $0x1a0] sm:$0xf] %vm170_vm0, %v3637_v38  ;;  %v1579_v11 = vld [vmem:[#allocation2 + $0x8c] sm:$0x1]  ;;  %v1722_v1 = vrot.slane %v1578_v12, 5  ;;  %v5058_v0 = vpack.c.bf16 %v5026_v20, %v5026_v20  ;;  %v4779_v4 = vadd.f32 %v4778_v8, %v4690_v42  ;;  %v5126_v61 = vrot.slane %v10854_v31, 4 }
 0x284   : >> { %4723 = vmatmul.bf16.gmra.mxu1 %v8485_v23  ;;  %3729 = vst.msk [vmem:[#allocation3 + $0x1b4] sm:$0xf] %vm170_vm0, %v3640_v5  ;;  %v2354_v41 = vor.u32 %v2353_v33, %v2350_v55  ;;  %v1725_v14 = vrot.slane %v1579_v11, 5  ;;  %v1577_v49 = vld [vmem:[#allocation2 + $0x84] sm:$0xe]  ;;  %v5424_v60 = vsel %vm10734_vm6, %v5125_v10, %v5423_v22  ;;  %v2363_v44 = vrot.slane %v2361_v34, 4  ;;  %v3391_v23 = vpop.permute.xlu2 %3390 }
 0x285   : >> { %v1724_v29 = vrot.slane %v1722_v1, 4  ;;  %v8240_v45 = vrot.slane %v1577_v49, 9  ;;  %v5128_v30 = vshrl.u32 %v5058_v0, 16  ;;  %5425 = vst [vmem:[#allocation2 + $0x24] sm:$0xf] %v5424_v60  ;;  %v5131_v59 = vshll.u32 %v5058_v0, 16  ;;  %v10875_v5 = vpop.permute.xlu1 %3388 }
 0x286   : >> { %v4780_v36 = vpop.f32.mrf.mxu2  ;;  %v4869_v19 = vpop.f32.mrf.mxu3  ;;  %v2355_v38 = vrot.slane %v2354_v41, 4  ;;  %v4868_v18 = vadd.f32 %v4867_v15, %v4779_v4  ;;  %v8510_v13 = vld [vmem:[#allocation3 + $0x1d4] sm:$0xf0]  ;;  %v5427_v20 = vld [vmem:[#allocation2 + $0x2c] sm:$0x1]  ;;  %v2364_v41 = vor.u32 %v2363_v44, %v10863_v63  ;;  %v8978_v21 = vld [vmem:[#allocation2 + $0x18] sm:$0xff] (%p912_p11)  }
 0x287   : >> { %v1726_v55 = vsel %vm9855_vm15, %v1724_v29, %v1725_v14  ;;  %v5130_v39 = vrot.slane %v5128_v30, 7  ;;  %v8820_v8 = vld [vmem:[#allocation3 + $0x1c4] sm:$0xf]  ;;  %v8508_v31 = vld [vmem:[#allocation3 + $0x1c0] sm:$0xf]  ;;  %v1723_v12 = vsel %vm9855_vm15, %v8240_v45, %v1722_v1  ;;  %v2766_v4 = vpop.permute.xlu0 %2765 }
 0x288   : >> { %v4691_v26 = vpop.f32.mrf.mxu1  ;;  %v2360_v22 = vsel %vm9720_vm12, %v2355_v38, %v10863_v63  ;;  %1810 = vst.msk [vmem:[#allocation3 + $0x1d0] sm:$0xf] %vm170_vm0, %v1726_v55  ;;  %v8513_v42 = vor.u32 %v8820_v8, %v8510_v13  ;;  %v4957_v15 = vadd.f32 %v4956_v57, %v4868_v18  ;;  %v2049_v34 = vld [vmem:[#allocation2 + $0xa4] sm:$0x1]  ;;  %v2868_v30 = vld [vmem:[#allocation2 + $0xa8] sm:$0xf] }
 0x289   : >> { %v4692_v33 = vadd.f32 %v4691_v26, %v10648_v58  ;;  %2499 = vst.msk [vmem:[#allocation3 + $0x1e8] sm:$0xf] %vm170_vm0, %v2360_v22  ;;  %v5133_v10 = vor.u32 %v5131_v59, %v5130_v39  ;;  %v5135_v11 = vrot.slane %v5130_v39, 4  ;;  %v8822_v0 = vld [vmem:[#allocation3 + $0x1d0] sm:$0xf0]  ;;  %v2367_v60 = vshll.u32 %v2049_v34, 16  ;;  %v4958_v13 = vpop.f32.mrf.mxu0 }
 0x28a   : >> { %v8496_v14 = vld [vmem:[#allocation3 + $0x1a0] sm:$0xf]  ;;  %2835 = vst.msk [vmem:[#allocation3 + $0x1e8] sm:$0xf] %vm1511_vm1, %v10842_v46  ;;  %v8509_v49 = vor.u32 %v8822_v0, %v8508_v31  ;;  %4906 = vmatmul.bf16.gmra.mxu3 %v8513_v42  ;;  %v2869_v46 = vld [vmem:[#allocation2 + $0xac] sm:$0xf] }
 0x28b   : >> { %v4781_v57 = vadd.f32 %v4780_v36, %v4692_v33  ;;  %v8818_v58 = vld [vmem:[#allocation3 + $0x1b0] sm:$0xf0]  ;;  %2002 = vst.msk [vmem:[#allocation3 + $0x1d0] sm:$0xf] %vm1511_vm1, %v10844_v2  ;;  %v5134_v1 = vsel %vm9510_vm8, %v5126_v61, %v5133_v10  ;;  %v5428_v63 = vsel %vm10762_vm7, %v5135_v11, %v5427_v20  ;;  %v5027_v45 = vmax.f32 %v4957_v15, 0.0 }
 0x28c   : >> { %v8497_v29 = vor.u32 %v8818_v58, %v8496_v14  ;;  %1809 = vst.msk [vmem:[#allocation3 + $0x1bc] sm:$0xf] %vm170_vm0, %v1723_v12  ;;  %4817 = vmatmul.bf16.gmra.mxu2 %v8509_v49  ;;  %v2365_v36 = vrot.slane %v2364_v41, 4  ;;  %v2369_v38 = vrot.slane %v2367_v60, 5  ;;  %v3501_v2 = vld [vmem:[#allocation2 + $0x9c] sm:$0xe]  ;;  %v2768_v49 = vpop.permute.xlu2 %2767 }
 0x28d   : >> { %2001 = vst.msk [vmem:[#allocation3 + $0x1bc] sm:$0xf] %vm1511_vm1, %v10851_v54  ;;  %v5059_v61 = vpack.c.bf16 %v5027_v45, %v5027_v45  ;;  %v3502_v55 = vld [vmem:[#allocation2 + $0xa0] sm:$0xf]  ;;  %v3503_v39 = vld [vmem:[#allocation2 + $0xa4] sm:$0x1]  ;;  %v4870_v8 = vadd.f32 %v4869_v19, %v4781_v57  ;;  %v10903_v34 = vpop.permute.xlu1 %1933 }
 0x28e   : >> { %v4783_v59 = vpop.f32.mrf.mxu2  ;;  %v4872_v18 = vpop.f32.mrf.mxu3  ;;  %8752 = vmatmul.msk.bf16.gmra.mxu0 %vm4527_vm4, %v8497_v29  ;;  %5426 = vst.msk [vmem:[#allocation2 + $0x28] sm:$0xf] %vm170_vm0, %v5134_v1  ;;  %v8272_v44 = vrot.slane %v3501_v2, 9  ;;  %v3643_v26 = vrot.slane %v3502_v55, 5  ;;  %v3646_v22 = vrot.slane %v3503_v39, 5  ;;  %v2370_v33 = vsel %vm9720_vm12, %v2365_v36, %v2369_v38 }
 0x28f   : >> { %5429 = vst [vmem:[#allocation2 + $0x2c] sm:$0x1] %v5428_v63  ;;  %v5137_v20 = vshrl.u32 %v5059_v61, 16  ;;  %v5140_v31 = vshll.u32 %v5059_v61, 16  ;;  %v2050_v42 = vld [vmem:[#allocation2 + $0xa8] sm:$0xf]  ;;  %v4959_v57 = vadd.f32 %v4958_v13, %v4870_v8  ;;  %v10911_v45 = vpop.permute.xlu0 %1931 }
 0x290   : >> { %v4694_v54 = vpop.f32.mrf.mxu1  ;;  %2901 = vst.msk [vmem:[#allocation3 + $0x200] sm:$0xf] %vm170_vm0, %v2869_v46  ;;  %v5430_v12 = vld [vmem:[#allocation2 + $0x30] sm:$0xf]  ;;  %v3645_v19 = vrot.slane %v3643_v26, 4  ;;  %v2372_v11 = vshrl.u32 %v2050_v42, 16 }
 0x291   : >> { %v4695_v15 = vadd.f32 %v4694_v54, %v10346_v16  ;;  %3461 = vst.msk [vmem:[#allocation3 + $0x200] sm:$0xf] %vm1511_vm1, %v3391_v23  ;;  %v2051_v10 = vld [vmem:[#allocation2 + $0xac] sm:$0xf]  ;;  %v10901_v0 = vrot.slane %v5137_v20, 7  ;;  %v2375_v14 = vshll.u32 %v2050_v42, 16  ;;  %v3644_v23 = vsel %vm9855_vm15, %v8272_v44, %v3643_v26  ;;  %v4961_v42 = vpop.f32.mrf.mxu0 }
 0x292   : >> { %2900 = vst.msk [vmem:[#allocation3 + $0x1ec] sm:$0xf] %vm170_vm0, %v2868_v30  ;;  %v8502_v41 = vld [vmem:[#allocation3 + $0x1cc] sm:$0xf0]  ;;  %v2374_v58 = vrot.slane %v2372_v11, 4  ;;  %v2381_v1 = vshll.u32 %v2051_v10, 16 }
 0x293   : >> { %v4784_v16 = vadd.f32 %v4783_v59, %v4695_v15  ;;  %3460 = vst.msk [vmem:[#allocation3 + $0x1ec] sm:$0xf] %vm1511_vm1, %v10875_v5  ;;  %v1581_v60 = vld [vmem:[#allocation2 + $0x94] sm:$0xf]  ;;  %v5142_v29 = vor.u32 %v5140_v31, %v10901_v0  ;;  %v2377_v46 = vrot.slane %v2375_v14, 5  ;;  %v3647_v5 = vsel %vm9855_vm15, %v3645_v19, %v3646_v22 }
 0x294   : >> { %2500 = vst.msk [vmem:[#allocation3 + $0x1fc] sm:$0xf] %vm170_vm0, %v2370_v33  ;;  %v8819_v63 = vld [vmem:[#allocation3 + $0x1bc] sm:$0xf]  ;;  %v1582_v36 = vld [vmem:[#allocation2 + $0x98] sm:$0x1] }
 0x295   : >> { %2836 = vst.msk [vmem:[#allocation3 + $0x1fc] sm:$0xf] %vm1511_vm1, %v2766_v4  ;;  %v8505_v30 = vor.u32 %v8819_v63, %v8502_v41  ;;  %v1729_v38 = vrot.slane %v1581_v60, 5  ;;  %v4873_v2 = vadd.f32 %v4872_v18, %v4784_v16  ;;  %v5431_v55 = vsel %vm10734_vm6, %v5142_v29, %v5430_v12  ;;  %v1580_v13 = vld [vmem:[#allocation2 + $0x90] sm:$0xe] }
 0x296   : >> { %v4785_v59 = vpop.f32.mrf.mxu2  ;;  %v4874_v61 = vpop.f32.mrf.mxu3  ;;  %3730 = vst.msk [vmem:[#allocation3 + $0x1c8] sm:$0xf] %vm170_vm0, %v3644_v23  ;;  %v2378_v39 = vor.u32 %v2377_v46, %v2374_v58  ;;  %v1732_v8 = vrot.slane %v1582_v36, 5  ;;  %v5028_v44 = vmax.f32 %v4959_v57, 0.0  ;;  %v2383_v4 = vrot.slane %v2381_v1, 5 }
 0x297   : >> { %5432 = vst [vmem:[#allocation2 + $0x30] sm:$0xf] %v5431_v55  ;;  %4728 = vmatmul.bf16.gmra.mxu1 %v8505_v30  ;;  %v1731_v26 = vrot.slane %v1729_v38, 4  ;;  %v8241_v54 = vrot.slane %v1580_v13, 9  ;;  %v2385_v31 = vshrl.u32 %v2051_v10, 16  ;;  %v5143_v33 = vrot.slane %v10901_v0, 4  ;;  %v3395_v30 = vpop.permute.xlu2 %3394 }
 0x298   : >> { %v4696_v22 = vpop.f32.mrf.mxu1  ;;  %3731 = vst.msk [vmem:[#allocation3 + $0x1dc] sm:$0xf] %vm170_vm0, %v3647_v5  ;;  %v2379_v18 = vrot.slane %v2378_v39, 4  ;;  %v5060_v20 = vpack.c.bf16 %v5028_v44, %v5028_v44  ;;  %v8530_v19 = vld [vmem:[#allocation3 + $0x1fc] sm:$0xf0]  ;;  %v4962_v11 = vadd.f32 %v4961_v42, %v4873_v2  ;;  %v3393_v5 = vpop.permute.xlu1 %3392 }
 0x299   : >> { %v4697_v15 = vadd.f32 %v4696_v22, %v10394_v32  ;;  %v1733_v12 = vsel %vm9855_vm15, %v1731_v26, %v1732_v8  ;;  %v8528_v16 = vld [vmem:[#allocation3 + $0x1e8] sm:$0xf]  ;;  %v1730_v32 = vsel %vm9855_vm15, %v8241_v54, %v1729_v38  ;;  %v5434_v0 = vld [vmem:[#allocation2 + $0x38] sm:$0x1]  ;;  %v2052_v1 = vld [vmem:[#allocation2 + $0xb0] sm:$0x1]  ;;  %v2770_v54 = vpop.permute.xlu0 %2769 }
 0x29a   : >> { %v2384_v41 = vsel %vm9720_vm12, %v2379_v18, %v2383_v4  ;;  %1812 = vst.msk [vmem:[#allocation3 + $0x1f8] sm:$0xf] %vm170_vm0, %v1733_v12  ;;  %v5145_v14 = vshrl.u32 %v5060_v20, 16  ;;  %v5148_v57 = vshll.u32 %v5060_v20, 16  ;;  %v8825_v23 = vld [vmem:[#allocation3 + $0x1ec] sm:$0xf] }
 0x29b   : >> { %v4786_v10 = vadd.f32 %v4785_v59, %v4697_v15  ;;  %2501 = vst.msk [vmem:[#allocation3 + $0x210] sm:$0xf] %vm170_vm0, %v2384_v41  ;;  %v8533_v58 = vor.u32 %v8825_v23, %v8530_v19  ;;  %v2387_v60 = vrot.slane %v2385_v31, 4  ;;  %v5029_v29 = vmax.f32 %v4962_v11, 0.0  ;;  %v2871_v55 = vld [vmem:[#allocation2 + $0xb8] sm:$0xf] }
 0x29c   : >> { %2837 = vst.msk [vmem:[#allocation3 + $0x210] sm:$0xf] %vm1511_vm1, %v2768_v49  ;;  %v5147_v63 = vrot.slane %v5145_v14, 7  ;;  %v8827_v46 = vld [vmem:[#allocation3 + $0x1f8] sm:$0xf0]  ;;  %v2391_v36 = vshll.u32 %v2052_v1, 16  ;;  %v4963_v14 = vpop.f32.mrf.mxu0 }
 0x29d   : >> { %v8516_v2 = vld [vmem:[#allocation3 + $0x1c8] sm:$0xf]  ;;  %2004 = vst.msk [vmem:[#allocation3 + $0x1f8] sm:$0xf] %vm1511_vm1, %v10903_v34  ;;  %v8529_v59 = vor.u32 %v8827_v46, %v8528_v16  ;;  %4911 = vmatmul.bf16.gmra.mxu3 %v8533_v58  ;;  %v2388_v38 = vor.u32 %v2387_v60, %v2383_v4  ;;  %v5061_v39 = vpack.c.bf16 %v5029_v29, %v5029_v29  ;;  %v3504_v22 = vld [vmem:[#allocation2 + $0xa8] sm:$0xe] }
 0x29e   : >> { %v4788_v8 = vpop.f32.mrf.mxu2  ;;  %v10933_v13 = vpop.f32.mrf.mxu3  ;;  %1811 = vst.msk [vmem:[#allocation3 + $0x1e4] sm:$0xf] %vm170_vm0, %v1730_v32  ;;  %v5150_v49 = vor.u32 %v5148_v57, %v5147_v63  ;;  %v5152_v44 = vrot.slane %v5147_v63, 4  ;;  %v2393_v26 = vrot.slane %v2391_v36, 5  ;;  %v4875_v18 = vadd.f32 %v4874_v61, %v4786_v10  ;;  %v2870_v34 = vld [vmem:[#allocation2 + $0xb4] sm:$0xf] }
 0x29f   : >> { %v8823_v20 = vld [vmem:[#allocation3 + $0x1d8] sm:$0xf0]  ;;  %2003 = vst.msk [vmem:[#allocation3 + $0x1e4] sm:$0xf] %vm1511_vm1, %v10911_v45  ;;  %4822 = vmatmul.bf16.gmra.mxu2 %v8529_v59  ;;  %v2389_v31 = vrot.slane %v2388_v38, 4  ;;  %v5154_v4 = vshrl.u32 %v5061_v39, 16 }
 0x2a0   : >> { %v8517_v42 = vor.u32 %v8823_v20, %v8516_v2  ;;  %v5151_v15 = vsel %vm9510_vm8, %v5143_v33, %v5150_v49  ;;  %v5435_v12 = vsel %vm10762_vm7, %v5152_v44, %v5434_v0  ;;  %2903 = vst.msk [vmem:[#allocation3 + $0x228] sm:$0xf] %vm170_vm0, %v2871_v55  ;;  %v5437_v19 = vld [vmem:[#allocation2 + $0x3c] sm:$0xf]  ;;  %v3505_v11 = vld [vmem:[#allocation2 + $0xac] sm:$0xf]  ;;  %v4964_v10 = vadd.f32 %v4963_v14, %v4875_v18  ;;  %v4699_v32 = vpop.f32.mrf.mxu1  ;;  %v2772_v20 = vpop.permute.xlu2 %2771 }
 0x2a1   : >> { %5433 = vst.msk [vmem:[#allocation2 + $0x34] sm:$0xf] %vm170_vm0, %v5151_v15  ;;  %v10944_v61 = vrot.slane %v5154_v4, 7  ;;  %v5157_v45 = vshll.u32 %v5061_v39, 16  ;;  %v3506_v41 = vld [vmem:[#allocation2 + $0xb0] sm:$0x1]  ;;  %v2394_v33 = vsel %vm9720_vm12, %v2389_v31, %v2393_v26  ;;  %v4700_v29 = vadd.f32 %v4699_v32, %v10419_v25  ;;  %v1938_v26 = vpop.permute.xlu1 %1937 }
 0x2a2   : >> { %8753 = vmatmul.msk.bf16.gmra.mxu0 %vm4527_vm4, %v8517_v42  ;;  %5436 = vst [vmem:[#allocation2 + $0x38] sm:$0x1] %v5435_v12  ;;  %v8273_v57 = vrot.slane %v3504_v22, 9  ;;  %v3650_v16 = vrot.slane %v3505_v11, 5  ;;  %v2053_v23 = vld [vmem:[#allocation2 + $0xb4] sm:$0xf] }
 0x2a3   : >> { %3463 = vst.msk [vmem:[#allocation3 + $0x228] sm:$0xf] %vm1511_vm1, %v3395_v30  ;;  %v5159_v0 = vor.u32 %v5157_v45, %v10944_v61  ;;  %v3653_v58 = vrot.slane %v3506_v41, 5  ;;  %v2054_v1 = vld [vmem:[#allocation2 + $0xb8] sm:$0xf]  ;;  %v2396_v60 = vshrl.u32 %v2053_v23, 16  ;;  %v4789_v38 = vadd.f32 %v4788_v8, %v4700_v29 }
 0x2a4   : >> { %2902 = vst.msk [vmem:[#allocation3 + $0x214] sm:$0xf] %vm170_vm0, %v2870_v34  ;;  %v8522_v63 = vld [vmem:[#allocation3 + $0x1f4] sm:$0xf0]  ;;  %v3652_v46 = vrot.slane %v3650_v16, 4  ;;  %v2399_v36 = vshll.u32 %v2053_v23, 16  ;;  %v3651_v25 = vsel %vm9855_vm15, %v8273_v57, %v3650_v16 }
 0x2a5   : >> { %3462 = vst.msk [vmem:[#allocation3 + $0x214] sm:$0xf] %vm1511_vm1, %v3393_v5  ;;  %v5438_v2 = vsel %vm10734_vm6, %v5159_v0, %v5437_v19  ;;  %v2398_v59 = vrot.slane %v2396_v60, 4  ;;  %v2405_v55 = vshll.u32 %v2054_v1, 16  ;;  %v1584_v30 = vld [vmem:[#allocation2 + $0xa0] sm:$0xf]  ;;  %v1936_v19 = vpop.permute.xlu0 %1935  ;;  %v4878_v11 = vadd.f32 %v10933_v13, %v4789_v38 }
 0x2a6   : >> { %2502 = vst.msk [vmem:[#allocation3 + $0x224] sm:$0xf] %vm170_vm0, %v2394_v33  ;;  %v8824_v39 = vld [vmem:[#allocation3 + $0x1e4] sm:$0xf]  ;;  %v2401_v49 = vrot.slane %v2399_v36, 5  ;;  %v1736_v44 = vrot.slane %v1584_v30, 5  ;;  %v4879_v22 = vpop.f32.mrf.mxu3  ;;  %v3654_v18 = vsel %vm9855_vm15, %v3652_v46, %v3653_v58  ;;  %v4790_v8 = vpop.f32.mrf.mxu2 }
 0x2a7   : >> { %2838 = vst.msk [vmem:[#allocation3 + $0x224] sm:$0xf] %vm1511_vm1, %v2770_v54  ;;  %v8525_v5 = vor.u32 %v8824_v39, %v8522_v63  ;;  %v1585_v34 = vld [vmem:[#allocation2 + $0xa4] sm:$0x1]  ;;  %v5030_v31 = vmax.f32 %v4964_v10, 0.0  ;;  %v2409_v41 = vshrl.u32 %v2054_v1, 16  ;;  %v4966_v32 = vpop.f32.mrf.mxu0 }
 0x2a8   : >> { %5439 = vst [vmem:[#allocation2 + $0x3c] sm:$0xf] %v5438_v2  ;;  %v2402_v4 = vor.u32 %v2401_v49, %v2398_v59  ;;  %v1738_v42 = vrot.slane %v1736_v44, 4  ;;  %v1739_v15 = vrot.slane %v1585_v34, 5  ;;  %v1583_v12 = vld [vmem:[#allocation2 + $0x9c] sm:$0xe]  ;;  %v4701_v16 = vpop.f32.mrf.mxu1 }
 0x2a9   : >> { %4733 = vmatmul.bf16.gmra.mxu1 %v8525_v5  ;;  %3732 = vst.msk [vmem:[#allocation3 + $0x1f0] sm:$0xf] %vm170_vm0, %v3651_v25  ;;  %v8242_v54 = vrot.slane %v1583_v12, 9  ;;  %v5062_v45 = vpack.c.bf16 %v5030_v31, %v5030_v31  ;;  %v2407_v33 = vrot.slane %v2405_v55, 5  ;;  %v5160_v23 = vrot.slane %v10944_v61, 4  ;;  %v3399_v12 = vpop.permute.xlu2 %3398 }
 0x2aa   : >> { %3733 = vst.msk [vmem:[#allocation3 + $0x204] sm:$0xf] %vm170_vm0, %v3654_v18  ;;  %v2403_v14 = vrot.slane %v2402_v4, 4  ;;  %v1740_v57 = vsel %vm9855_vm15, %v1738_v42, %v1739_v15  ;;  %v8550_v13 = vld [vmem:[#allocation3 + $0x224] sm:$0xf0]  ;;  %v4702_v0 = vadd.f32 %v4701_v16, %v10468_v40  ;;  %v4967_v61 = vadd.f32 %v4966_v32, %v4878_v11  ;;  %v3397_v18 = vpop.permute.xlu1 %3396 }
 0x2ab   : >> { %1814 = vst.msk [vmem:[#allocation3 + $0x220] sm:$0xf] %vm170_vm0, %v1740_v57  ;;  %v5162_v10 = vshrl.u32 %v5062_v45, 16  ;;  %v1737_v1 = vsel %vm9855_vm15, %v8242_v54, %v1736_v44  ;;  %v5165_v60 = vshll.u32 %v5062_v45, 16  ;;  %v5441_v29 = vld [vmem:[#allocation2 + $0x44] sm:$0x1] }
 0x2ac   : >> { %v2408_v58 = vsel %vm9720_vm12, %v2403_v14, %v2407_v33  ;;  %2006 = vst.msk [vmem:[#allocation3 + $0x220] sm:$0xf] %vm1511_vm1, %v1938_v26  ;;  %v8548_v63 = vld [vmem:[#allocation3 + $0x210] sm:$0xf]  ;;  %v8830_v46 = vld [vmem:[#allocation3 + $0x214] sm:$0xf]  ;;  %v4791_v40 = vadd.f32 %v4790_v8, %v4702_v0 }
 0x2ad   : >> { %2503 = vst.msk [vmem:[#allocation3 + $0x238] sm:$0xf] %vm170_vm0, %v2408_v58  ;;  %v5164_v36 = vrot.slane %v5162_v10, 7  ;;  %v8553_v2 = vor.u32 %v8830_v46, %v8550_v13  ;;  %v2873_v59 = vld [vmem:[#allocation2 + $0xc4] sm:$0xf]  ;;  %v2411_v55 = vrot.slane %v2409_v41, 4 }
 0x2ae   : >> { %2839 = vst.msk [vmem:[#allocation3 + $0x238] sm:$0xf] %vm1511_vm1, %v2772_v20  ;;  %v8832_v30 = vld [vmem:[#allocation3 + $0x220] sm:$0xf0]  ;;  %v2872_v5 = vld [vmem:[#allocation2 + $0xc0] sm:$0xf]  ;;  %v4880_v4 = vadd.f32 %v4879_v22, %v4791_v40  ;;  %v10979_v8 = vpop.f32.mrf.mxu3  ;;  %v2774_v22 = vpop.permute.xlu0 %2773 }
 0x2af   : >> { %v2055_v38 = vld [vmem:[#allocation2 + $0xbc] sm:$0x1]  ;;  %1813 = vst.msk [vmem:[#allocation3 + $0x20c] sm:$0xf] %vm170_vm0, %v1737_v1  ;;  %v5167_v39 = vor.u32 %v5165_v60, %v5164_v36  ;;  %v5169_v25 = vrot.slane %v5164_v36, 4  ;;  %v8549_v49 = vor.u32 %v8832_v30, %v8548_v63  ;;  %4916 = vmatmul.bf16.gmra.mxu3 %v8553_v2  ;;  %v2412_v44 = vor.u32 %v2411_v55, %v2407_v33  ;;  %v4968_v16 = vpop.f32.mrf.mxu0 }
 0x2b0   : >> { %v8536_v26 = vld [vmem:[#allocation3 + $0x1f0] sm:$0xf]  ;;  %2005 = vst.msk [vmem:[#allocation3 + $0x20c] sm:$0xf] %vm1511_vm1, %v1936_v19  ;;  %v2415_v34 = vshll.u32 %v2055_v38, 16  ;;  %v5031_v31 = vmax.f32 %v4967_v61, 0.0  ;;  %v4793_v19 = vpop.f32.mrf.mxu2  ;;  %v4969_v32 = vadd.f32 %v4968_v16, %v4880_v4 }
 0x2b1   : >> { %v8828_v20 = vld [vmem:[#allocation3 + $0x200] sm:$0xf0]  ;;  %v5168_v42 = vsel %vm9510_vm8, %v5160_v23, %v5167_v39  ;;  %v5442_v15 = vsel %vm10762_vm7, %v5169_v25, %v5441_v29  ;;  %4827 = vmatmul.bf16.gmra.mxu2 %v8549_v49  ;;  %2905 = vst.msk [vmem:[#allocation3 + $0x250] sm:$0xf] %vm170_vm0, %v2873_v59  ;;  %v2413_v11 = vrot.slane %v2412_v44, 4 }
 0x2b2   : >> { %v8537_v54 = vor.u32 %v8828_v20, %v8536_v26  ;;  %5440 = vst.msk [vmem:[#allocation2 + $0x40] sm:$0xf] %vm170_vm0, %v5168_v42  ;;  %v2417_v45 = vrot.slane %v2415_v34, 5  ;;  %v5063_v41 = vpack.c.bf16 %v5031_v31, %v5031_v31  ;;  %v3507_v14 = vld [vmem:[#allocation2 + $0xb4] sm:$0xe]  ;;  %v4704_v63 = vpop.f32.mrf.mxu1  ;;  %v5032_v36 = vmax.f32 %v4969_v32, 0.0  ;;  %v1942_v42 = vpop.permute.xlu1 %1941 }
 0x2b3   : >> { %5443 = vst [vmem:[#allocation2 + $0x44] sm:$0x1] %v5442_v15  ;;  %v8542_v33 = vld [vmem:[#allocation3 + $0x21c] sm:$0xf0]  ;;  %v3509_v13 = vld [vmem:[#allocation2 + $0xbc] sm:$0x1]  ;;  %v4705_v2 = vadd.f32 %v4704_v63, %v10497_v35 }
 0x2b4   : >> { %v3508_v57 = vld [vmem:[#allocation2 + $0xb8] sm:$0xf]  ;;  %8754 = vmatmul.msk.bf16.gmra.mxu0 %vm4527_vm4, %v8537_v54  ;;  %3465 = vst.msk [vmem:[#allocation3 + $0x250] sm:$0xf] %vm1511_vm1, %v3399_v12  ;;  %v2418_v23 = vsel %vm9720_vm12, %v2413_v11, %v2417_v45  ;;  %v5171_v10 = vshrl.u32 %v5063_v41, 16  ;;  %v5174_v0 = vshll.u32 %v5063_v41, 16  ;;  %v2776_v11 = vpop.permute.xlu2 %2775 }
 0x2b5   : >> { %2904 = vst.msk [vmem:[#allocation3 + $0x23c] sm:$0xf] %vm170_vm0, %v2872_v5  ;;  %v5444_v58 = vld [vmem:[#allocation2 + $0x48] sm:$0xf]  ;;  %v8274_v1 = vrot.slane %v3507_v14, 9  ;;  %v3657_v60 = vrot.slane %v3508_v57, 5  ;;  %v4794_v15 = vadd.f32 %v4793_v19, %v4705_v2 }
 0x2b6   : >> { %v3660_v29 = vrot.slane %v3509_v13, 5  ;;  %3464 = vst.msk [vmem:[#allocation3 + $0x23c] sm:$0xf] %vm1511_vm1, %v3397_v18  ;;  %v10993_v46 = vrot.slane %v5171_v10, 7  ;;  %v2056_v61 = vld [vmem:[#allocation2 + $0xc0] sm:$0xf]  ;;  %v5064_v18 = vpack.c.bf16 %v5032_v36, %v5032_v36  ;;  %v4884_v12 = vpop.f32.mrf.mxu3  ;;  %v1940_v57 = vpop.permute.xlu0 %1939 }
 0x2b7   : >> { %2504 = vst.msk [vmem:[#allocation3 + $0x24c] sm:$0xf] %vm170_vm0, %v2418_v23  ;;  %v8829_v59 = vld [vmem:[#allocation3 + $0x20c] sm:$0xf]  ;;  %v3658_v55 = vsel %vm9855_vm15, %v8274_v1, %v3657_v60  ;;  %v3659_v40 = vrot.slane %v3657_v60, 4  ;;  %v2420_v30 = vshrl.u32 %v2056_v61, 16 }
 0x2b8   : >> { %2840 = vst.msk [vmem:[#allocation3 + $0x24c] sm:$0xf] %vm1511_vm1, %v2774_v22  ;;  %v5176_v38 = vor.u32 %v5174_v0, %v10993_v46  ;;  %v8545_v39 = vor.u32 %v8829_v59, %v8542_v33  ;;  %v11001_v25 = vld [vmem:[#allocation2 + $0xc4] sm:$0xf]  ;;  %v2423_v49 = vshll.u32 %v2056_v61, 16  ;;  %v4795_v22 = vpop.f32.mrf.mxu2  ;;  %v5179_v16 = vshrl.u32 %v5064_v18, 16 }
 0x2b9   : >> { %v3661_v44 = vsel %vm9855_vm15, %v3659_v40, %v3660_v29  ;;  %3734 = vst.msk [vmem:[#allocation3 + $0x218] sm:$0xf] %vm170_vm0, %v3658_v55  ;;  %v2422_v35 = vrot.slane %v2420_v30, 4  ;;  %v2429_v26 = vshll.u32 %v11001_v25, 16  ;;  %v1587_v5 = vld [vmem:[#allocation2 + $0xac] sm:$0xf]  ;;  %v4883_v0 = vadd.f32 %v10979_v8, %v4794_v15 }
 0x2ba   : >> { %v5445_v34 = vsel %vm10734_vm6, %v5176_v38, %v5444_v58  ;;  %4738 = vmatmul.bf16.gmra.mxu1 %v8545_v39  ;;  %3735 = vst.msk [vmem:[#allocation3 + $0x22c] sm:$0xf] %vm170_vm0, %v3661_v44  ;;  %v2425_v31 = vrot.slane %v2423_v49, 5  ;;  %v1588_v4 = vld [vmem:[#allocation2 + $0xb0] sm:$0x1]  ;;  %v1743_v20 = vrot.slane %v1587_v5, 5  ;;  %v4706_v58 = vpop.f32.mrf.mxu1 }
 0x2bb   : >> { %5446 = vst [vmem:[#allocation2 + $0x48] sm:$0xf] %v5445_v34  ;;  %v1746_v54 = vrot.slane %v1588_v4, 5  ;;  %v1586_v45 = vld [vmem:[#allocation2 + $0xa8] sm:$0xe]  ;;  %v5177_v23 = vrot.slane %v10993_v46, 4  ;;  %v4707_v8 = vadd.f32 %v4706_v58, %v10548_v53 }
 0x2bc   : >> { %v2426_v41 = vor.u32 %v2425_v31, %v2422_v35  ;;  %v1745_v14 = vrot.slane %v1743_v20, 4  ;;  %v8243_v33 = vrot.slane %v1586_v45, 9  ;;  %v2431_v10 = vrot.slane %v2429_v26, 5  ;;  %v5448_v29 = vld [vmem:[#allocation2 + $0x50] sm:$0x1] }
 0x2bd   : >> { %v5182_v13 = vshll.u32 %v5064_v18, 16  ;;  %v8835_v32 = vld [vmem:[#allocation3 + $0x23c] sm:$0xf]  ;;  %v5181_v60 = vrot.slane %v5179_v16, 7  ;;  %v8570_v63 = vld [vmem:[#allocation3 + $0x24c] sm:$0xf0]  ;;  %v4796_v26 = vadd.f32 %v4795_v22, %v4707_v8 }
 0x2be   : >> { %v2427_v19 = vrot.slane %v2426_v41, 4  ;;  %v1747_v1 = vsel %vm9855_vm15, %v1745_v14, %v1746_v54  ;;  %v2433_v61 = vshrl.u32 %v11001_v25, 16  ;;  %v1744_v46 = vsel %vm9855_vm15, %v8243_v33, %v1743_v20  ;;  %v8568_v36 = vld [vmem:[#allocation3 + $0x238] sm:$0xf]  ;;  %v4971_v25 = vpop.f32.mrf.mxu0  ;;  %v2058_v44 = vld [vmem:[#allocation2 + $0xc8] sm:$0x1]  ;;  %v3401_v54 = vpop.permute.xlu1 %3400 }
 0x2bf   : >> { %1816 = vst.msk [vmem:[#allocation3 + $0x248] sm:$0xf] %vm170_vm0, %v1747_v1  ;;  %v8837_v2 = vld [vmem:[#allocation3 + $0x248] sm:$0xf0]  ;;  %v8573_v59 = vor.u32 %v8835_v32, %v8570_v63  ;;  %v5184_v30 = vor.u32 %v5182_v13, %v5181_v60  ;;  %v5186_v38 = vrot.slane %v5181_v60, 4  ;;  %v4972_v35 = vadd.f32 %v4971_v25, %v4883_v0  ;;  %v11026_v31 = vpop.f32.mrf.mxu3  ;;  %v3403_v33 = vpop.permute.xlu2 %3402 }
 0x2c0   : >> { %v8556_v55 = vld [vmem:[#allocation3 + $0x218] sm:$0xf]  ;;  %v2432_v40 = vsel %vm9720_vm12, %v2427_v19, %v2431_v10  ;;  %2008 = vst.msk [vmem:[#allocation3 + $0x248] sm:$0xf] %vm1511_vm1, %v1942_v42  ;;  %v8569_v39 = vor.u32 %v8837_v2, %v8568_v36  ;;  %v2435_v34 = vrot.slane %v2433_v61, 4  ;;  %v2439_v20 = vshll.u32 %v2058_v44, 16  ;;  %v2778_v19 = vpop.permute.xlu0 %2777 }
 0x2c1   : >> { %v8833_v49 = vld [vmem:[#allocation3 + $0x228] sm:$0xf0]  ;;  %2505 = vst.msk [vmem:[#allocation3 + $0x260] sm:$0xf] %vm170_vm0, %v2432_v40  ;;  %4921 = vmatmul.bf16.gmra.mxu3 %v8573_v59  ;;  %v5185_v53 = vsel %vm9510_vm8, %v5177_v23, %v5184_v30  ;;  %v2875_v18 = vld [vmem:[#allocation2 + $0xd0] sm:$0xf]  ;;  %v5449_v4 = vsel %vm10762_vm7, %v5186_v38, %v5448_v29  ;;  %v4885_v14 = vadd.f32 %v4884_v12, %v4796_v26  ;;  %v4798_v0 = vpop.f32.mrf.mxu2 }
 0x2c2   : >> { %v8557_v5 = vor.u32 %v8833_v49, %v8556_v55  ;;  %2841 = vst.msk [vmem:[#allocation3 + $0x260] sm:$0xf] %vm1511_vm1, %v2776_v11  ;;  %4832 = vmatmul.bf16.gmra.mxu2 %v8569_v39  ;;  %v5033_v42 = vmax.f32 %v4972_v35, 0.0  ;;  %v3510_v15 = vld [vmem:[#allocation2 + $0xc0] sm:$0xe]  ;;  %v2436_v45 = vor.u32 %v2435_v34, %v2431_v10  ;;  %v2441_v16 = vrot.slane %v2439_v20, 5 }
 0x2c3   : >> { %1815 = vst.msk [vmem:[#allocation3 + $0x234] sm:$0xf] %vm170_vm0, %v1744_v46  ;;  %v2874_v11 = vld [vmem:[#allocation2 + $0xcc] sm:$0xf]  ;;  %v3511_v22 = vld [vmem:[#allocation2 + $0xc4] sm:$0xf] }
 0x2c4   : >> { %8755 = vmatmul.msk.bf16.gmra.mxu0 %vm4527_vm4, %v8557_v5  ;;  %2007 = vst.msk [vmem:[#allocation3 + $0x234] sm:$0xf] %vm1511_vm1, %v1940_v57  ;;  %v3512_v41 = vld [vmem:[#allocation2 + $0xc8] sm:$0x1]  ;;  %v5065_v23 = vpack.c.bf16 %v5033_v42, %v5033_v42  ;;  %v8275_v13 = vrot.slane %v3510_v15, 9  ;;  %v3664_v32 = vrot.slane %v3511_v22, 5 }
 0x2c5   : >> { %5447 = vst.msk [vmem:[#allocation2 + $0x4c] sm:$0xf] %vm170_vm0, %v5185_v53  ;;  %v2437_v58 = vrot.slane %v2436_v45, 4  ;;  %v3667_v1 = vrot.slane %v3512_v41, 5  ;;  %v1590_v60 = vld [vmem:[#allocation2 + $0xb8] sm:$0xf] }
 0x2c6   : >> { %5450 = vst [vmem:[#allocation2 + $0x50] sm:$0x1] %v5449_v4  ;;  %v5188_v57 = vshrl.u32 %v5065_v23, 16  ;;  %v5191_v10 = vshll.u32 %v5065_v23, 16  ;;  %v3666_v63 = vrot.slane %v3664_v32, 4  ;;  %v1750_v46 = vrot.slane %v1590_v60, 5  ;;  %v4973_v36 = vpop.f32.mrf.mxu0 }
 0x2c7   : >> { %2907 = vst.msk [vmem:[#allocation3 + $0x278] sm:$0xf] %vm170_vm0, %v2875_v18  ;;  %v8562_v29 = vld [vmem:[#allocation3 + $0x244] sm:$0xf0]  ;;  %v2442_v12 = vsel %vm9720_vm12, %v2437_v58, %v2441_v16  ;;  %v1591_v61 = vld [vmem:[#allocation2 + $0xbc] sm:$0x1]  ;;  %v4974_v55 = vadd.f32 %v4973_v36, %v4885_v14  ;;  %v3665_v30 = vsel %vm9855_vm15, %v8275_v13, %v3664_v32  ;;  %v4889_v53 = vpop.f32.mrf.mxu3 }
 0x2c8   : >> { %3467 = vst.msk [vmem:[#allocation3 + $0x278] sm:$0xf] %vm1511_vm1, %v3403_v33  ;;  %v11039_v2 = vrot.slane %v5188_v57, 7  ;;  %v1753_v59 = vrot.slane %v1591_v61, 5  ;;  %v1589_v8 = vld [vmem:[#allocation2 + $0xb4] sm:$0xe]  ;;  %v4709_v50 = vpop.f32.mrf.mxu1  ;;  %v3668_v5 = vsel %vm9855_vm15, %v3666_v63, %v3667_v1  ;;  %v1944_v16 = vpop.permute.xlu0 %1943 }
 0x2c9   : >> { %2906 = vst.msk [vmem:[#allocation3 + $0x264] sm:$0xf] %vm170_vm0, %v2874_v11  ;;  %v5451_v40 = vld [vmem:[#allocation2 + $0x54] sm:$0xf]  ;;  %v1752_v38 = vrot.slane %v1750_v46, 4  ;;  %v8244_v49 = vrot.slane %v1589_v8, 9  ;;  %v4710_v35 = vadd.f32 %v4709_v50, %v10581_v9  ;;  %v1946_v9 = vpop.permute.xlu1 %1945  ;;  %v4800_v33 = vpop.f32.mrf.mxu2 }
 0x2ca   : >> { %3466 = vst.msk [vmem:[#allocation3 + $0x264] sm:$0xf] %vm1511_vm1, %v3401_v54  ;;  %v5193_v39 = vor.u32 %v5191_v10, %v11039_v2  ;;  %v5034_v44 = vmax.f32 %v4974_v55, 0.0  ;;  %v3513_v42 = vld [vmem:[#allocation2 + $0xcc] sm:$0xe]  ;;  %v5194_v63 = vrot.slane %v11039_v2, 4 }
 0x2cb   : >> { %2506 = vst.msk [vmem:[#allocation3 + $0x274] sm:$0xf] %vm170_vm0, %v2442_v12  ;;  %v8834_v25 = vld [vmem:[#allocation3 + $0x234] sm:$0xf]  ;;  %v1754_v34 = vsel %vm9855_vm15, %v1752_v38, %v1753_v59  ;;  %v4799_v20 = vadd.f32 %v4798_v0, %v4710_v35  ;;  %v3514_v15 = vld [vmem:[#allocation2 + $0xd0] sm:$0xf]  ;;  %v1751_v22 = vsel %vm9855_vm15, %v8244_v49, %v1750_v46 }
 0x2cc   : >> { %2842 = vst.msk [vmem:[#allocation3 + $0x274] sm:$0xf] %vm1511_vm1, %v2778_v19  ;;  %v8565_v26 = vor.u32 %v8834_v25, %v8562_v29  ;;  %v5452_v18 = vsel %vm10734_vm6, %v5193_v39, %v5451_v40  ;;  %v5066_v4 = vpack.c.bf16 %v5034_v44, %v5034_v44  ;;  %v3515_v11 = vld [vmem:[#allocation2 + $0xd4] sm:$0x1]  ;;  %v8276_v54 = vrot.slane %v3513_v42, 9 }
 0x2cd   : >> { %3736 = vst.msk [vmem:[#allocation3 + $0x240] sm:$0xf] %vm170_vm0, %v3665_v30  ;;  %v3671_v45 = vrot.slane %v3514_v15, 5  ;;  %v3674_v13 = vrot.slane %v3515_v11, 5  ;;  %v4888_v19 = vadd.f32 %v11026_v31, %v4799_v20  ;;  %v5455_v60 = vld [vmem:[#allocation2 + $0x5c] sm:$0x1] }
 0x2ce   : >> { %5453 = vst [vmem:[#allocation2 + $0x54] sm:$0xf] %v5452_v18  ;;  %4743 = vmatmul.bf16.gmra.mxu1 %v8565_v26  ;;  %v5196_v41 = vshrl.u32 %v5066_v4, 16  ;;  %v5199_v0 = vshll.u32 %v5066_v4, 16  ;;  %v8588_v57 = vld [vmem:[#allocation3 + $0x260] sm:$0xf] }
 0x2cf   : >> { %3737 = vst.msk [vmem:[#allocation3 + $0x254] sm:$0xf] %vm170_vm0, %v3668_v5  ;;  %v8590_v14 = vld [vmem:[#allocation3 + $0x274] sm:$0xf0]  ;;  %v3673_v23 = vrot.slane %v3671_v45, 4  ;;  %v3672_v1 = vsel %vm9855_vm15, %v8276_v54, %v3671_v45  ;;  %vm8121_vm12 = vcmask (%p912_p11), 1046534  }
 0x2d0   : >> { %1818 = vst.msk [vmem:[#allocation3 + $0x270] sm:$0xf] %vm170_vm0, %v1754_v34  ;;  %v5198_v32 = vrot.slane %v5196_v41, 7  ;;  %v4711_v12 = vpop.f32.mrf.mxu1  ;;  %v5458_v15 = vld [vmem:[#allocation2 + $0x60] sm:$0xf] }
 0x2d1   : >> { %2010 = vst.msk [vmem:[#allocation3 + $0x270] sm:$0xf] %vm1511_vm1, %v1946_v9  ;;  %v8840_v58 = vld [vmem:[#allocation3 + $0x264] sm:$0xf]  ;;  %v3675_v29 = vsel %vm9855_vm15, %v3673_v23, %v3674_v13  ;;  %v4712_v31 = vadd.f32 %v4711_v12, %v10639_v56  ;;  %v5928_v62 = vld [vmem:[#allocation2 + $0x18] sm:$0xe] (%p912_p11) }
 0x2d2   : >> { %1817 = vst.msk [vmem:[#allocation3 + $0x25c] sm:$0xf] %vm170_vm0, %v1751_v22  ;;  %v8593_v10 = vor.u32 %v8840_v58, %v8590_v14  ;;  %v5201_v61 = vor.u32 %v5199_v0, %v5198_v32  ;;  %v5203_v46 = vrot.slane %v5198_v32, 4  ;;  %v4976_v55 = vpop.f32.mrf.mxu0  ;;  %v4892_v56 = vpop.f32.mrf.mxu3 }
 0x2d3   : >> { %2009 = vst.msk [vmem:[#allocation3 + $0x25c] sm:$0xf] %vm1511_vm1, %v1944_v16  ;;  %v8842_v36 = vld [vmem:[#allocation3 + $0x270] sm:$0xf0]  ;;  %v4977_v2 = vadd.f32 %v4976_v55, %v4888_v19  ;;  %v4801_v30 = vadd.f32 %v4800_v33, %v4712_v31 }
 0x2d4   : >> { %v8576_v59 = vld [vmem:[#allocation3 + $0x240] sm:$0xf]  ;;  %v8589_v8 = vor.u32 %v8842_v36, %v8588_v57  ;;  %4926 = vmatmul.bf16.gmra.mxu3 %v8593_v10  ;;  %3738 = vst.msk [vmem:[#allocation3 + $0x268] sm:$0xf] %vm170_vm0, %v3672_v1  ;;  %v5202_v7 = vsel %vm9510_vm8, %v5194_v63, %v5201_v61  ;;  %v5456_v40 = vsel %vm10762_vm7, %v5203_v46, %v5455_v60  ;;  %v5462_v60 = vld [vmem:[#allocation2 + $0x68] sm:$0x1] }
 0x2d5   : >> { %3739 = vst.msk [vmem:[#allocation3 + $0x27c] sm:$0xf] %vm170_vm0, %v3675_v29  ;;  %v5035_v39 = vmax.f32 %v4977_v2, 0.0  ;;  %v4890_v44 = vadd.f32 %v4889_v53, %v4801_v30 }
 0x2d6   : >> { %v8838_v38 = vld [vmem:[#allocation3 + $0x250] sm:$0xf0]  ;;  %5454 = vst.msk [vmem:[#allocation2 + $0x58] sm:$0xf] %vm170_vm0, %v5202_v7  ;;  %4837 = vmatmul.bf16.gmra.mxu2 %v8589_v8 }
 0x2d7   : >> { %v8577_v50 = vor.u32 %v8838_v38, %v8576_v59  ;;  %5457 = vst [vmem:[#allocation2 + $0x5c] sm:$0x1] %v5456_v40  ;;  %v5067_v49 = vpack.c.bf16 %v5035_v39, %v5035_v39  ;;  %v4803_v35 = vpop.f32.mrf.mxu2 }
 0x2d8   : >> { %v8582_v25 = vld [vmem:[#allocation3 + $0x26c] sm:$0xf0] }
 0x2d9   : >> { %8756 = vmatmul.msk.bf16.gmra.mxu0 %vm4527_vm4, %v8577_v50  ;;  %v5205_v5 = vshrl.u32 %v5067_v49, 16  ;;  %v5208_v20 = vshll.u32 %v5067_v49, 16 }
 0x2da   : >> { %v8839_v26 = vld [vmem:[#allocation3 + $0x25c] sm:$0xf]  ;;  %v4978_v34 = vpop.f32.mrf.mxu0  ;;  %v4894_v11 = vpop.f32.mrf.mxu3 }
 0x2db   : >> { %v8585_v18 = vor.u32 %v8839_v26, %v8582_v25  ;;  %v5207_v4 = vrot.slane %v5205_v5, 7  ;;  %v4979_v42 = vadd.f32 %v4978_v34, %v4890_v44  ;;  %v4714_v9 = vpop.f32.mrf.mxu1  ;;  %v8596_v16 = vld [vmem:[#allocation3 + $0x268] sm:$0xf] }
 0x2dc   : >> { %v4715_v22 = vadd.f32 %v4714_v9, %v10330_v48  ;;  %v8843_v23 = vld [vmem:[#allocation3 + $0x278] sm:$0xf0] }
 0x2dd   : >> { %v5210_v54 = vor.u32 %v5208_v20, %v5207_v4  ;;  %v5036_v45 = vmax.f32 %v4979_v42, 0.0  ;;  %v8597_v0 = vor.u32 %v8843_v23, %v8596_v16  ;;  %v5211_v29 = vrot.slane %v5207_v4, 4  ;;  %v5469_v42 = vld [vmem:[#allocation2 + $0x74] sm:$0x1] }
 0x2de   : >> { %4748 = vmatmul.bf16.gmra.mxu1 %v8585_v18  ;;  %v4804_v14 = vadd.f32 %v4803_v35, %v4715_v22 }
 0x2df   : >> { %v5459_v41 = vsel %vm10734_vm6, %v5210_v54, %v5458_v15  ;;  %v5068_v53 = vpack.c.bf16 %v5036_v45, %v5036_v45  ;;  %v4805_v33 = vpop.f32.mrf.mxu2 }
 0x2e0   : >> { %5460 = vst [vmem:[#allocation2 + $0x60] sm:$0xf] %v5459_v41  ;;  %v4893_v32 = vadd.f32 %v4892_v56, %v4804_v14  ;;  %v5465_v56 = vld [vmem:[#allocation2 + $0x6c] sm:$0xf] }
 0x2e1   : >> { %v5213_v13 = vshrl.u32 %v5068_v53, 16  ;;  %v5216_v19 = vshll.u32 %v5068_v53, 16 }
 0x2e3   : >> { %v5215_v58 = vrot.slane %v5213_v13, 7  ;;  %v4981_v1 = vpop.f32.mrf.mxu0  ;;  %v4716_v10 = vpop.f32.mrf.mxu1 }
 0x2e4   : >> { %v4982_v57 = vadd.f32 %v4981_v1, %v4893_v32  ;;  %v4717_v63 = vadd.f32 %v4716_v10, %v10383_v17 }
 0x2e5   : >> { %v5218_v48 = vor.u32 %v5216_v19, %v5215_v58  ;;  %v5220_v12 = vrot.slane %v5215_v58, 4 }
 0x2e6   : >> { %v5037_v61 = vmax.f32 %v4982_v57, 0.0  ;;  %v4806_v59 = vadd.f32 %v4805_v33, %v4717_v63 }
 0x2e7   : >> { %v4897_v46 = vpop.f32.mrf.mxu3  ;;  %v5219_v36 = vsel %vm9510_vm8, %v5211_v29, %v5218_v48  ;;  %v5463_v31 = vsel %vm10762_vm7, %v5220_v12, %v5462_v60  ;;  %v5472_v29 = vld [vmem:[#allocation2 + $0x78] sm:$0xf] }
 0x2e8   : >> { %5461 = vst.msk [vmem:[#allocation2 + $0x64] sm:$0xf] %vm170_vm0, %v5219_v36  ;;  %v5069_v8 = vpack.c.bf16 %v5037_v61, %v5037_v61  ;;  %v4808_v55 = vpop.f32.mrf.mxu2  ;;  %v4895_v7 = vadd.f32 %v4894_v11, %v4806_v59 }
 0x2e9   : >> { %8757 = vmatmul.msk.bf16.gmra.mxu0 %vm4527_vm4, %v8597_v0  ;;  %5464 = vst [vmem:[#allocation2 + $0x68] sm:$0x1] %v5463_v31 }
 0x2ea   : >> { %v5222_v40 = vshrl.u32 %v5069_v8, 16  ;;  %v5225_v30 = vshll.u32 %v5069_v8, 16 }
 0x2eb   : >> { %v4983_v2 = vpop.f32.mrf.mxu0 }
 0x2ec   : >> { %v5224_v17 = vrot.slane %v5222_v40, 7  ;;  %v4984_v38 = vadd.f32 %v4983_v2, %v4895_v7 }
 0x2ee   : >> { %v5227_v50 = vor.u32 %v5225_v30, %v5224_v17  ;;  %v5038_v39 = vmax.f32 %v4984_v38, 0.0  ;;  %v5228_v9 = vrot.slane %v5224_v17, 4  ;;  %v5476_v17 = vld [vmem:[#allocation2 + $0x80] sm:$0x1] }
 0x2ef   : >> { %v4719_v25 = vpop.f32.mrf.mxu1  ;;  %v4899_v26 = vpop.f32.mrf.mxu3 }
 0x2f0   : >> { %v4720_v49 = vadd.f32 %v4719_v25, %v10412_v24  ;;  %v5466_v44 = vsel %vm10734_vm6, %v5227_v50, %v5465_v56  ;;  %v5070_v35 = vpack.c.bf16 %v5038_v39, %v5038_v39  ;;  %v4810_v34 = vpop.f32.mrf.mxu2 }
 0x2f1   : >> { %5467 = vst [vmem:[#allocation2 + $0x6c] sm:$0xf] %v5466_v44 }
 0x2f2   : >> { %v4809_v5 = vadd.f32 %v4808_v55, %v4720_v49  ;;  %v5230_v18 = vshrl.u32 %v5070_v35, 16  ;;  %v5233_v20 = vshll.u32 %v5070_v35, 16 }
 0x2f4   : >> { %v5232_v4 = vrot.slane %v5230_v18, 7  ;;  %v4898_v15 = vadd.f32 %v4897_v46, %v4809_v5 }
 0x2f6   : >> { %v5235_v11 = vor.u32 %v5233_v20, %v5232_v4  ;;  %v5237_v54 = vrot.slane %v5232_v4, 4 }
 0x2f7   : >> { %v4721_v45 = vpop.f32.mrf.mxu1 }
 0x2f8   : >> { %v4722_v22 = vadd.f32 %v4721_v45, %v10462_v3  ;;  %v5236_v24 = vsel %vm9510_vm8, %v5228_v9, %v5235_v11  ;;  %v5470_v41 = vsel %vm10762_vm7, %v5237_v54, %v5469_v42  ;;  %v5479_v9 = vld [vmem:[#allocation2 + $0x84] sm:$0xf] }
 0x2f9   : >> { %5468 = vst.msk [vmem:[#allocation2 + $0x70] sm:$0xf] %vm170_vm0, %v5236_v24 }
 0x2fa   : >> { %v4986_v53 = vpop.f32.mrf.mxu0  ;;  %v4811_v33 = vadd.f32 %v4810_v34, %v4722_v22  ;;  %5471 = vst [vmem:[#allocation2 + $0x74] sm:$0x1] %v5470_v41 }
 0x2fb   : >> { %v4987_v14 = vadd.f32 %v4986_v53, %v4898_v15 }
 0x2fc   : >> { %v4902_v16 = vpop.f32.mrf.mxu3  ;;  %v4900_v0 = vadd.f32 %v4899_v26, %v4811_v33 }
 0x2fd   : >> { %v5039_v23 = vmax.f32 %v4987_v14, 0.0 }
 0x2fe   : >> { %v4813_v13 = vpop.f32.mrf.mxu2 }
 0x2ff   : >> { %v5071_v32 = vpack.c.bf16 %v5039_v23, %v5039_v23 }
 0x301   : >> { %v5239_v58 = vshrl.u32 %v5071_v32, 16  ;;  %v4724_v19 = vpop.f32.mrf.mxu1  ;;  %v5242_v57 = vshll.u32 %v5071_v32, 16 }
 0x302   : >> { %v4988_v3 = vpop.f32.mrf.mxu0  ;;  %v4725_v1 = vadd.f32 %v4724_v19, %v10501_v28 }
 0x303   : >> { %v5241_v60 = vrot.slane %v5239_v58, 7  ;;  %v4989_v10 = vadd.f32 %v4988_v3, %v4900_v0  ;;  %v5483_v0 = vld [vmem:[#allocation2 + $0x8c] sm:$0x1] }
 0x304   : >> { %v4814_v48 = vadd.f32 %v4813_v13, %v4725_v1  ;;  %v4904_v46 = vpop.f32.mrf.mxu3 }
 0x305   : >> { %v5244_v12 = vor.u32 %v5242_v57, %v5241_v60  ;;  %v5040_v63 = vmax.f32 %v4989_v10, 0.0  ;;  %v5245_v56 = vrot.slane %v5241_v60, 4 }
 0x306   : >> { %v4815_v61 = vpop.f32.mrf.mxu2  ;;  %v4903_v59 = vadd.f32 %v4902_v16, %v4814_v48 }
 0x307   : >> { %v5473_v36 = vsel %vm10734_vm6, %v5244_v12, %v5472_v29  ;;  %v5072_v31 = vpack.c.bf16 %v5040_v63, %v5040_v63 }
 0x308   : >> { %5474 = vst [vmem:[#allocation2 + $0x78] sm:$0xf] %v5473_v36 }
 0x309   : >> { %v5247_v8 = vshrl.u32 %v5072_v31, 16  ;;  %v4726_v55 = vpop.f32.mrf.mxu1  ;;  %v5250_v40 = vshll.u32 %v5072_v31, 16 }
 0x30a   : >> { %v4727_v7 = vadd.f32 %v4726_v55, %v10550_v27 }
 0x30b   : >> { %v5249_v28 = vrot.slane %v5247_v8, 7  ;;  %v4991_v2 = vpop.f32.mrf.mxu0 }
 0x30c   : >> { %v4992_v30 = vadd.f32 %v4991_v2, %v4903_v59  ;;  %v4816_v38 = vadd.f32 %v4815_v61, %v4727_v7 }
 0x30d   : >> { %v5252_v50 = vor.u32 %v5250_v40, %v5249_v28  ;;  %v5254_v39 = vrot.slane %v5249_v28, 4  ;;  %v4907_v5 = vpop.f32.mrf.mxu3  ;;  %v5486_v28 = vld [vmem:[#allocation2 + $0x90] sm:$0xf] }
 0x30e   : >> { %v5041_v25 = vmax.f32 %v4992_v30, 0.0  ;;  %v4905_v26 = vadd.f32 %v4904_v46, %v4816_v38 }
 0x30f   : >> { %v5253_v49 = vsel %vm9510_vm8, %v5245_v56, %v5252_v50  ;;  %v5477_v44 = vsel %vm10762_vm7, %v5254_v39, %v5476_v17  ;;  %v4818_v35 = vpop.f32.mrf.mxu2 }
 0x310   : >> { %5475 = vst.msk [vmem:[#allocation2 + $0x7c] sm:$0xf] %vm170_vm0, %v5253_v49  ;;  %v5073_v27 = vpack.c.bf16 %v5041_v25, %v5041_v25 }
 0x311   : >> { %5478 = vst [vmem:[#allocation2 + $0x80] sm:$0x1] %v5477_v44 }
 0x312   : >> { %v5256_v18 = vshrl.u32 %v5073_v27, 16  ;;  %v5259_v20 = vshll.u32 %v5073_v27, 16 }
 0x313   : >> { %v4993_v34 = vpop.f32.mrf.mxu0 }
 0x314   : >> { %v5258_v4 = vrot.slane %v5256_v18, 7  ;;  %v4994_v42 = vadd.f32 %v4993_v34, %v4905_v26  ;;  %v4729_v15 = vpop.f32.mrf.mxu1  ;;  %v5490_v26 = vld [vmem:[#allocation2 + $0x98] sm:$0x1] }
 0x315   : >> { %v4730_v11 = vadd.f32 %v4729_v15, %v10579_v37  ;;  %v4909_v33 = vpop.f32.mrf.mxu3 }
 0x316   : >> { %v5261_v54 = vor.u32 %v5259_v20, %v5258_v4  ;;  %v5042_v45 = vmax.f32 %v4994_v42, 0.0  ;;  %v5262_v19 = vrot.slane %v5258_v4, 4 }
 0x317   : >> { %v4819_v41 = vadd.f32 %v4818_v35, %v4730_v11  ;;  %v4820_v53 = vpop.f32.mrf.mxu2 }
 0x318   : >> { %v5480_v22 = vsel %vm10734_vm6, %v5261_v54, %v5479_v9  ;;  %v5074_v24 = vpack.c.bf16 %v5042_v45, %v5042_v45 }
 0x319   : >> { %5481 = vst [vmem:[#allocation2 + $0x84] sm:$0xf] %v5480_v22  ;;  %v4908_v13 = vadd.f32 %v4907_v5, %v4819_v41 }
 0x31a   : >> { %v5264_v14 = vshrl.u32 %v5074_v24, 16  ;;  %v5267_v23 = vshll.u32 %v5074_v24, 16 }
 0x31c   : >> { %v5266_v16 = vrot.slane %v5264_v14, 7  ;;  %v4731_v32 = vpop.f32.mrf.mxu1 }
 0x31d   : >> { %v4732_v58 = vadd.f32 %v4731_v32, %v10627_v6 }
 0x31e   : >> { %v5269_v37 = vor.u32 %v5267_v23, %v5266_v16  ;;  %v5271_v3 = vrot.slane %v5266_v16, 4 }
 0x31f   : >> { %v4996_v1 = vpop.f32.mrf.mxu0  ;;  %v4821_v29 = vadd.f32 %v4820_v53, %v4732_v58 }
 0x320   : >> { %v5270_v60 = vsel %vm9510_vm8, %v5262_v19, %v5269_v37  ;;  %v5484_v57 = vsel %vm10762_vm7, %v5271_v3, %v5483_v0  ;;  %v4997_v10 = vadd.f32 %v4996_v1, %v4908_v13  ;;  %v4912_v6 = vpop.f32.mrf.mxu3  ;;  %v5493_v13 = vld [vmem:[#allocation2 + $0x9c] sm:$0xf] }
 0x321   : >> { %5482 = vst.msk [vmem:[#allocation2 + $0x88] sm:$0xf] %vm170_vm0, %v5270_v60  ;;  %v4910_v61 = vadd.f32 %v4909_v33, %v4821_v29 }
 0x322   : >> { %5485 = vst [vmem:[#allocation2 + $0x8c] sm:$0x1] %v5484_v57  ;;  %v5043_v48 = vmax.f32 %v4997_v10, 0.0  ;;  %v4823_v12 = vpop.f32.mrf.mxu2  ;;  %v12898_v57 = vld [vmem:[#allocation9_spill] sm:$0xff] }
 0x324   : >> { %v5075_v63 = vpack.c.bf16 %v5043_v48, %v5043_v48 }
 0x326   : >> { %v5273_v46 = vshrl.u32 %v5075_v63, 16  ;;  %v4734_v36 = vpop.f32.mrf.mxu1  ;;  %v5276_v55 = vshll.u32 %v5075_v63, 16 }
 0x327   : >> { %v4998_v31 = vpop.f32.mrf.mxu0  ;;  %v4735_v59 = vadd.f32 %v4734_v36, %v10362_v47 }
 0x328   : >> { %v5275_v8 = vrot.slane %v5273_v46, 7  ;;  %v4999_v7 = vadd.f32 %v4998_v31, %v4910_v61  ;;  %v4914_v25 = vpop.f32.mrf.mxu3 }
 0x329   : >> { %v4824_v17 = vadd.f32 %v4823_v12, %v4735_v59 }
 0x32a   : >> { %v5278_v40 = vor.u32 %v5276_v55, %v5275_v8  ;;  %v5044_v2 = vmax.f32 %v4999_v7, 0.0  ;;  %v4825_v30 = vpop.f32.mrf.mxu2  ;;  %v5279_v27 = vrot.slane %v5275_v8, 4 }
 0x32b   : >> { %v4913_v39 = vadd.f32 %v4912_v6, %v4824_v17  ;;  %v5497_v6 = vld [vmem:[#allocation2 + $0xa4] sm:$0x1] }
 0x32c   : >> { %v5487_v38 = vsel %vm10734_vm6, %v5278_v40, %v5486_v28  ;;  %v5076_v56 = vpack.c.bf16 %v5044_v2, %v5044_v2 }
 0x32d   : >> { %5488 = vst [vmem:[#allocation2 + $0x90] sm:$0xf] %v5487_v38 }
 0x32e   : >> { %v5281_v50 = vshrl.u32 %v5076_v56, 16  ;;  %v4736_v49 = vpop.f32.mrf.mxu1  ;;  %v5284_v35 = vshll.u32 %v5076_v56, 16 }
 0x32f   : >> { %v4737_v44 = vadd.f32 %v4736_v49, %v10401_v43 }
 0x330   : >> { %v5283_v47 = vrot.slane %v5281_v50, 7  ;;  %v5500_v50 = vld [vmem:[#allocation2 + $0xa8] sm:$0xf] }
 0x331   : >> { %v5001_v5 = vpop.f32.mrf.mxu0  ;;  %v4826_v20 = vadd.f32 %v4825_v30, %v4737_v44 }
 0x332   : >> { %v5286_v18 = vor.u32 %v5284_v35, %v5283_v47  ;;  %v5288_v34 = vrot.slane %v5283_v47, 4  ;;  %v5002_v4 = vadd.f32 %v5001_v5, %v4913_v39  ;;  %v4917_v24 = vpop.f32.mrf.mxu3  ;;  %v12899_v47 = vld [vmem:[#allocation10_spill] sm:$0xff] }
 0x333   : >> { %v4915_v54 = vadd.f32 %v4914_v25, %v4826_v20 }
 0x334   : >> { %v5287_v42 = vsel %vm9510_vm8, %v5279_v27, %v5286_v18  ;;  %v5491_v15 = vsel %vm10762_vm7, %v5288_v34, %v5490_v26  ;;  %v5045_v9 = vmax.f32 %v5002_v4, 0.0  ;;  %v4828_v11 = vpop.f32.mrf.mxu2 }
 0x335   : >> { %5489 = vst.msk [vmem:[#allocation2 + $0x94] sm:$0xf] %vm170_vm0, %v5287_v42  ;;  %v5504_v42 = vld [vmem:[#allocation2 + $0xb0] sm:$0x1] }
 0x336   : >> { %5492 = vst [vmem:[#allocation2 + $0x98] sm:$0x1] %v5491_v15  ;;  %v5077_v43 = vpack.c.bf16 %v5045_v9, %v5045_v9 }
 0x337   : >> { %v4739_v45 = vpop.f32.mrf.mxu1 }
 0x338   : >> { %v5290_v22 = vshrl.u32 %v5077_v43, 16  ;;  %v4740_v41 = vadd.f32 %v4739_v45, %v10438_v52  ;;  %v5293_v33 = vshll.u32 %v5077_v43, 16  ;;  %v12900_v45 = vld [vmem:[#allocation11_spill] sm:$0xff] }
 0x339   : >> { %v5003_v53 = vpop.f32.mrf.mxu0 }
 0x33a   : >> { %v5292_v14 = vrot.slane %v5290_v22, 7  ;;  %v5004_v16 = vadd.f32 %v5003_v53, %v4915_v54  ;;  %v4829_v23 = vadd.f32 %v4828_v11, %v4740_v41  ;;  %v4919_v63 = vpop.f32.mrf.mxu3 }
 0x33c   : >> { %v5295_v32 = vor.u32 %v5293_v33, %v5292_v14  ;;  %v5046_v0 = vmax.f32 %v5004_v16, 0.0  ;;  %v4918_v37 = vadd.f32 %v4917_v24, %v4829_v23  ;;  %v4830_v3 = vpop.f32.mrf.mxu2  ;;  %v5296_v46 = vrot.slane %v5292_v14, 4 }
 0x33e   : >> { %v5494_v58 = vsel %vm10734_vm6, %v5295_v32, %v5493_v13  ;;  %v5078_v19 = vpack.c.bf16 %v5046_v0, %v5046_v0 }
 0x33f   : >> { %5495 = vst [vmem:[#allocation2 + $0x9c] sm:$0xf] %v5494_v58  ;;  %v4741_v1 = vpop.f32.mrf.mxu1 }
 0x340   : >> { %v5298_v60 = vshrl.u32 %v5078_v19, 16  ;;  %v4742_v10 = vadd.f32 %v4741_v1, %v12898_v57  ;;  %v5301_v48 = vshll.u32 %v5078_v19, 16  ;;  %v12901_v19 = vld [vmem:[#allocation12_spill] sm:$0xff] }
 0x341   : >> { %v5006_v52 = vpop.f32.mrf.mxu0 }
 0x342   : >> { %v5300_v29 = vrot.slane %v5298_v60, 7  ;;  %v5007_v12 = vadd.f32 %v5006_v52, %v4918_v37  ;;  %v4831_v61 = vadd.f32 %v4830_v3, %v4742_v10 }
 0x344   : >> { %v5303_v36 = vor.u32 %v5301_v48, %v5300_v29  ;;  %v5305_v31 = vrot.slane %v5300_v29, 4  ;;  %v5047_v59 = vmax.f32 %v5007_v12, 0.0  ;;  %v4920_v28 = vadd.f32 %v4919_v63, %v4831_v61  ;;  %v4922_v44 = vpop.f32.mrf.mxu3  ;;  %v5507_v29 = vld [vmem:[#allocation2 + $0xb4] sm:$0xf] }
 0x345   : >> { %v4833_v2 = vpop.f32.mrf.mxu2 }
 0x346   : >> { %v5304_v8 = vsel %vm9510_vm8, %v5296_v46, %v5303_v36  ;;  %v5498_v55 = vsel %vm10762_vm7, %v5305_v31, %v5497_v6  ;;  %v5079_v7 = vpack.c.bf16 %v5047_v59, %v5047_v59  ;;  %v12902_v31 = vld [vmem:[#allocation13_spill] sm:$0xff] }
 0x347   : >> { %5496 = vst.msk [vmem:[#allocation2 + $0xa0] sm:$0xf] %vm170_vm0, %v5304_v8 }
 0x348   : >> { %5499 = vst [vmem:[#allocation2 + $0xa4] sm:$0x1] %v5498_v55  ;;  %v5307_v40 = vshrl.u32 %v5079_v7, 16  ;;  %v5310_v38 = vshll.u32 %v5079_v7, 16 }
 0x349   : >> { %v5008_v17 = vpop.f32.mrf.mxu0 }
 0x34a   : >> { %v5309_v30 = vrot.slane %v5307_v40, 7  ;;  %v5009_v56 = vadd.f32 %v5008_v17, %v4920_v28 }
 0x34b   : >> { %v4744_v39 = vpop.f32.mrf.mxu1 }
 0x34c   : >> { %v5312_v25 = vor.u32 %v5310_v38, %v5309_v30  ;;  %v5048_v49 = vmax.f32 %v5009_v56, 0.0  ;;  %v4745_v35 = vadd.f32 %v4744_v39, %v12899_v47  ;;  %v5313_v11 = vrot.slane %v5309_v30, 4  ;;  %v4924_v14 = vpop.f32.mrf.mxu3  ;;  %v5511_v30 = vld [vmem:[#allocation2 + $0xbc] sm:$0x1] }
 0x34d   : >> { %v4835_v20 = vpop.f32.mrf.mxu2 }
 0x34e   : >> { %v5501_v27 = vsel %vm10734_vm6, %v5312_v25, %v5500_v50  ;;  %v5080_v26 = vpack.c.bf16 %v5048_v49, %v5048_v49  ;;  %v4834_v5 = vadd.f32 %v4833_v2, %v4745_v35 }
 0x34f   : >> { %5502 = vst [vmem:[#allocation2 + $0xa8] sm:$0xf] %v5501_v27 }
 0x350   : >> { %v5315_v18 = vshrl.u32 %v5080_v26, 16  ;;  %v5318_v4 = vshll.u32 %v5080_v26, 16  ;;  %v4923_v15 = vadd.f32 %v4922_v44, %v4834_v5 }
 0x352   : >> { %v5317_v34 = vrot.slane %v5315_v18, 7 }
 0x353   : >> { %v4746_v9 = vpop.f32.mrf.mxu1 }
 0x354   : >> { %v5320_v43 = vor.u32 %v5318_v4, %v5317_v34  ;;  %v5322_v54 = vrot.slane %v5317_v34, 4  ;;  %v4747_v22 = vadd.f32 %v4746_v9, %v12900_v45  ;;  %v5514_v4 = vld [vmem:[#allocation2 + $0xc0] sm:$0xf]  ;;  %v5518_v45 = vld [vmem:[#allocation2 + $0xc8] sm:$0x1] }
 0x356   : >> { %v5321_v24 = vsel %vm9510_vm8, %v5313_v11, %v5320_v43  ;;  %v5505_v41 = vsel %vm10762_vm7, %v5322_v54, %v5504_v42  ;;  %v5011_v53 = vpop.f32.mrf.mxu0  ;;  %v4836_v16 = vadd.f32 %v4835_v20, %v4747_v22 }
 0x357   : >> { %5503 = vst.msk [vmem:[#allocation2 + $0xac] sm:$0xf] %vm170_vm0, %v5321_v24  ;;  %v5012_v33 = vadd.f32 %v5011_v53, %v4923_v15  ;;  %v4927_v48 = vpop.f32.mrf.mxu3 }
 0x358   : >> { %5506 = vst [vmem:[#allocation2 + $0xb0] sm:$0x1] %v5505_v41  ;;  %v4925_v32 = vadd.f32 %v4924_v14, %v4836_v16  ;;  %v12903_v16 = vld [vmem:[#allocation7_spill] sm:$0xff] (%p912_p11) }
 0x359   : >> { %v5049_v23 = vmax.f32 %v5012_v33, 0.0  ;;  %v4838_v58 = vpop.f32.mrf.mxu2  ;;  %v11163_v33 = vld [vmem:[%s12849_s2] ss:$0 sm:$0xff] (%p912_p11)  ;;  %9166 = vset.pattern.permute.xlu2 (%p912_p11), %v12903_v16  ;;  %9168 = vset.pattern.permute.xlu1 (%p912_p11), %v12903_v16 }
 0x35b   : >> { %v5081_v13 = vpack.c.bf16 %v5049_v23, %v5049_v23  ;;  %v4749_v0 = vpop.f32.mrf.mxu1  ;;  %v11167_v23 = vunpack.c.l.bf16 (%p912_p11), %v8978_v21 }
 0x35c   : >> { %v4750_v37 = vadd.f32 %v4749_v0, %v12901_v19  ;;  %v5944_v0 = vunpack.c.l.bf16 (%p912_p11), %v5928_v62  ;;  %v6205_v19 = vld [vmem:[#allocation2 + $0x24] sm:$0xff] (%p912_p11)  }
 0x35d   : >> { %v5324_v3 = vshrl.u32 %v5081_v13, 16  ;;  %v5327_v57 = vshll.u32 %v5081_v13, 16  ;;  %v11169_v13 = vunpack.c.h.bf16 (%p912_p11), %v8978_v21 }
 0x35e   : >> { %v5013_v1 = vpop.f32.mrf.mxu0  ;;  %v4839_v52 = vadd.f32 %v4838_v58, %v4750_v37  ;;  %v11180_v58 = vld [vmem:[%s12849_s2 + $0x2] ss:$0 sm:$0xff] (%p912_p11) }
 0x35f   : >> { %v5326_v60 = vrot.slane %v5324_v3, 7  ;;  %v5014_v10 = vadd.f32 %v5013_v1, %v4925_v32  ;;  %v4929_v25 = vpop.f32.mrf.mxu3  ;;  %v11174_v32 = vld [vmem:[%s12849_s2 + $0x1] ss:$0 sm:$0xff] (%p912_p11)  ;;  %v6237_v1 = vunpack.c.l.bf16 (%p912_p11), %v6205_v19 }
 0x360   : >> { %v4928_v46 = vadd.f32 %v4927_v48, %v4839_v52  ;;  %v5691_v37 = vmul.f32 (%p912_p11), %v11174_v32, %v11167_v23  ;;  %v11186_v3 = vmul.f32 (%p912_p11), %v11174_v32, %v11169_v13  ;;  %v11198_v52 = vmul.f32 (%p912_p11), %v11180_v58, %v11169_v13  ;;  %v11205_v48 = vld [vmem:[%s12849_s2 + $0x4] ss:$0 sm:$0xff] (%p912_p11) }
 0x361   : >> { %v5329_v12 = vor.u32 %v5327_v57, %v5326_v60  ;;  %v5050_v63 = vmax.f32 %v5014_v10, 0.0  ;;  %v4840_v7 = vpop.f32.mrf.mxu2  ;;  %v5330_v38 = vrot.slane %v5326_v60, 4  ;;  %v11191_v60 = vld [vmem:[%s12849_s2 + $0x3] ss:$0 sm:$0xff] (%p912_p11)  ;;  %v5591_v57 = vmul.f32 (%p912_p11), %v11163_v33, %v11167_v23 }
 0x362   : > { %v5966_v10 = vmul.f32 (%p912_p11), %v11180_v58, %v5944_v0 }
 0x363   : >> { %v5508_v61 = vsel %vm10734_vm6, %v5329_v12, %v5507_v29  ;;  %v5082_v6 = vpack.c.bf16 %v5050_v63, %v5050_v63  ;;  %v4751_v36 = vpop.f32.mrf.mxu1  ;;  %v11200_v29 = vunpack.c.h.bf16 (%p912_p11), %v6205_v19  ;;  %v6607_v12 = vld [vmem:[#allocation2 + $0x24] sm:$0xe] (%p912_p11)  ;;  %v5792_v63 = vrot.slane (%p912_p11), %v5691_v37, 1 }
 0x364   : >> { %5509 = vst [vmem:[#allocation2 + $0xb4] sm:$0xf] %v5508_v61  ;;  %v4752_v59 = vadd.f32 %v4751_v36, %v12902_v31  ;;  %v5793_v61 = vrot.slane (%p912_p11), %v11186_v3, 1  ;;  %v11212_v36 = vld [vmem:[%s12849_s2 + $0x5] ss:$0 sm:$0xff] (%p912_p11)  ;;  %v8993_v31 = vld [vmem:[#allocation2 + $0x30] sm:$0xff] (%p912_p11)  }
 0x365   : >> { %v5332_v8 = vshrl.u32 %v5082_v6, 16  ;;  %v5335_v40 = vshll.u32 %v5082_v6, 16  ;;  %v6271_v6 = vmul.f32 (%p912_p11), %v11191_v60, %v6237_v1 }
 0x366   : >> { %v5016_v55 = vpop.f32.mrf.mxu0  ;;  %v4841_v17 = vadd.f32 %v4840_v7, %v4752_v59  ;;  %v6067_v59 = vrot.slane (%p912_p11), %v5966_v10, 2  ;;  %v11218_v7 = vmul.f32 (%p912_p11), %v11205_v48, %v11200_v29 }
 0x367   : >> { %v5334_v28 = vrot.slane %v5332_v8, 7  ;;  %v5017_v2 = vadd.f32 %v5016_v55, %v4928_v46  ;;  %v6623_v46 = vunpack.c.l.bf16 (%p912_p11), %v6607_v12  ;;  %v6068_v8 = vrot.slane (%p912_p11), %v11198_v52, 2 }
 0x368   : >> { %v4930_v35 = vadd.f32 %v4929_v25, %v4841_v17  ;;  %v6371_v55 = vmul.f32 (%p912_p11), %v11205_v48, %v6237_v1  ;;  %v6606_v1 = vld [vmem:[#allocation2 + $0x18] sm:$0xe] (%p912_p11) }
 0x369   : >> { %v5337_v56 = vor.u32 %v5335_v40, %v5334_v28  ;;  %v5339_v50 = vrot.slane %v5334_v28, 4  ;;  %v5051_v39 = vmax.f32 %v5017_v2, 0.0  ;;  %v11223_v28 = vld [vmem:[%s12849_s2 + $0x6] ss:$0 sm:$0xff] (%p912_p11)  ;;  %v5523_v40 = vld [vmem:[#allocation2 + $0xc] sm:$0xff] (%p912_p11)   ;;  %v5794_v2 = vsel (%p912_p11), %vm5781_vm9, %v5792_v63, %v5793_v61 }
 0x36a   : > { %v6645_v17 = vmul.f32 (%p912_p11), %v11212_v36, %v6623_v46  ;;  %v6269_v63 = vmul.f32 (%p912_p11), %v11191_v60, %v11167_v23 }
 0x36b   : >> { %v5338_v49 = vsel %vm9510_vm8, %v5330_v38, %v5337_v56  ;;  %v5512_v44 = vsel %vm10762_vm7, %v5339_v50, %v5511_v30  ;;  %v5083_v47 = vpack.c.bf16 %v5051_v39, %v5051_v39  ;;  %v11231_v30 = vmul.f32 (%p912_p11), %v11212_v36, %v11200_v29  ;;  %v11238_v56 = vld [vmem:[%s12849_s2 + $0x7] ss:$0 sm:$0xff] (%p912_p11)  ;;  %v7286_v50 = vld [vmem:[#allocation2 + $0x30] sm:$0xe] (%p912_p11) }
 0x36c   : >> { %5510 = vst.msk [vmem:[#allocation2 + $0xb8] sm:$0xf] %vm170_vm0, %v5338_v49  ;;  %v11233_v38 = vunpack.c.l.bf16 (%p912_p11), %v8993_v31  ;;  %v5898_v39 = vadd.f32 (%p912_p11), %v5794_v2, %v5591_v57  ;;  %v6471_v49 = vrot.slane (%p912_p11), %v6371_v55, 1  ;;  %v11300_v2 = vmul.f32 (%p912_p11), %v11205_v48, %v11169_v13 }
 0x36d   : >> { %5513 = vst [vmem:[#allocation2 + $0xbc] sm:$0x1] %v5512_v44  ;;  %v5341_v27 = vshrl.u32 %v5083_v47, 16  ;;  %v5344_v18 = vshll.u32 %v5083_v47, 16  ;;  %v6472_v44 = vrot.slane (%p912_p11), %v11218_v7, 1 }
 0x36e   : >> { %v5018_v26 = vpop.f32.mrf.mxu0  ;;  %v11247_v47 = vld [vmem:[%s12849_s2 + $0x8] ss:$0 sm:$0xff] (%p912_p11) }
 0x36f   : >> { %v5343_v5 = vrot.slane %v5341_v27, 7  ;;  %v5019_v34 = vadd.f32 %v5018_v26, %v4930_v35  ;;  %v6745_v35 = vrot.slane (%p912_p11), %v6645_v17, 2  ;;  %v12872_v27 = vrot.slane (%p912_p11), %v11231_v30, 2 }
 0x370   : > { %v11250_v26 = vunpack.c.h.bf16 (%p912_p11), %v8993_v31  ;;  %v6622_v17 = vunpack.c.l.bf16 (%p912_p11), %v6606_v1 }
 0x371   : >> { %v5346_v20 = vor.u32 %v5344_v18, %v5343_v5  ;;  %v5052_v42 = vmax.f32 %v5019_v34, 0.0  ;;  %v5347_v22 = vrot.slane %v5343_v5, 4  ;;  %v6950_v5 = vmul.f32 (%p912_p11), %v11223_v28, %v11233_v38 }
 0x372   : > { %v6473_v34 = vsel (%p912_p11), %vm5781_vm9, %v6471_v49, %v6472_v44 }
 0x373   : >> { %v5515_v15 = vsel %vm10734_vm6, %v5346_v20, %v5514_v4  ;;  %v5084_v9 = vpack.c.bf16 %v5052_v42, %v5052_v42  ;;  %v7050_v4 = vmul.f32 (%p912_p11), %v11238_v56, %v11233_v38  ;;  %v7302_v20 = vunpack.c.l.bf16 (%p912_p11), %v7286_v50  ;;  %v6882_v50 = vld [vmem:[#allocation2 + $0x24] sm:$0xff] (%p912_p11)  }
 0x374   : >> { %5516 = vst [vmem:[#allocation2 + $0xc0] sm:$0xf] %v5515_v15  ;;  %v11264_v15 = vmul.f32 (%p912_p11), %v11238_v56, %v11250_v26 }
 0x375   : >> { %v5349_v11 = vshrl.u32 %v5084_v9, 16  ;;  %v5352_v54 = vshll.u32 %v5084_v9, 16  ;;  %v11268_v9 = vmul.f32 (%p912_p11), %v11247_v47, %v11250_v26 }
 0x376   : > { %v12906_v7 = vrot.slane (%p912_p11), %v11264_v15, 1 }
 0x377   : >> { %v5351_v43 = vrot.slane %v5349_v11, 7  ;;  %v5555_v11 = vunpack.c.l.bf16 (%p912_p11), %v5523_v40 }
 0x379   : >> { %v5354_v24 = vor.u32 %v5352_v54, %v5351_v43  ;;  %v5356_v41 = vrot.slane %v5351_v43, 4  ;;  %914 = sbr.rel (!%p912_p11) target bundleno = 233 (0xe9), region = 78  ;;  %v5927_v43 = vld [vmem:[#allocation2 + $0xc] sm:$0xe] (%p912_p11)  ;;  %v5688_v21 = vmul.f32 (%p912_p11), %v11174_v32, %v5555_v11 }
 0x37a   : > { %v5943_v37 = vunpack.c.l.bf16 (%p912_p11), %v5927_v43 }
 0x37b   : >> { %v5355_v53 = vsel %vm9510_vm8, %v5347_v22, %v5354_v24  ;;  %v5519_v14 = vsel %vm10762_vm7, %v5356_v41, %v5518_v45  ;;  %v7150_v45 = vrot.slane (%p912_p11), %v7050_v4, 1  ;;  %v7324_v22 = vmul.f32 (%p912_p11), %v11247_v47, %v7302_v20 }
 0x37c   : >> { %5517 = vst.msk [vmem:[#allocation2 + $0xc4] sm:$0xf] %vm170_vm0, %v5355_v53  ;;  %vm6056_vm0 = vcmask (%p912_p11), 1045504   ;;  %v11271_v24 = vunpack.c.h.bf16 (%p912_p11), %v5523_v40  ;;  %v12871_v41 = vrot.slane (%p912_p11), %v11264_v15, 1  ;;  %v12869_v53 = vrot.slane (%p912_p11), %v11268_v9, 2 }
 0x37d   : >> { %5520 = vst [vmem:[#allocation2 + $0xc8] sm:$0x1] %v5519_v14  ;;  %v6069_v25 = vsel (%p912_p11), %vm6056_vm0, %v6067_v59, %v6068_v8  ;;  %v6747_v42 = vsel (%p912_p11), %vm6056_vm0, %v6745_v35, %v12872_v27  ;;  %v5589_v14 = vmul.f32 (%p912_p11), %v11163_v33, %v5555_v11  ;;  %v7424_v0 = vrot.slane (%p912_p11), %v7324_v22, 2 }
 0x37e   : > { %v6173_v18 = vadd.f32 %v6069_v25, %v5898_v39  ;;  %v11279_v19 = vmul.f32 %v11174_v32, %v11271_v24  ;;  %v7152_v57 = vsel %vm5781_vm9, %v7150_v45, %v12871_v41  ;;  %v5787_v10 = vrot.slane %v5688_v21, 1 }
 0x37f   : > { %v11286_v12 = vmul.f32 %v11180_v58, %v11271_v24  ;;  %v7426_v46 = vsel %vm6056_vm0, %v7424_v0, %v12869_v53  ;;  %v5963_v59 = vmul.f32 %v11180_v58, %v5943_v37  ;;  %v6368_v40 = vmul.f32 %v11205_v48, %v11167_v23 }
 0x380   : > { %v6303_v54 = vadd.f32 %v6271_v6, %v6173_v18  ;;  %v12867_v31 = vrot.slane %v11279_v19, 1  ;;  %v11307_v35 = vmul.f32 %v11212_v36, %v11169_v13  ;;  %v12861_v4 = vrot.slane %v11300_v2, 1 }
 0x381   : > { %v12865_v55 = vrot.slane %v11286_v12, 2  ;;  %v6062_v49 = vrot.slane %v5963_v59, 2  ;;  %v6642_v20 = vmul.f32 %v11212_v36, %v6622_v17  ;;  %v11318_v21 = vunpack.c.h.bf16 %v6882_v50  ;;  %v5926_v17 = vld [vmem:[#allocation2] sm:$0xe] }
 0x382   : > { %v6577_v62 = vadd.f32 %v6473_v34, %v6303_v54  ;;  %v5789_v25 = vsel %vm5781_vm9, %v5787_v10, %v12867_v31  ;;  %v6466_v34 = vrot.slane %v6368_v40, 1  ;;  %v12860_v43 = vrot.slane %v11307_v35, 2 }
 0x383   : > { %v5896_v18 = vadd.f32 %v5789_v25, %v5589_v14  ;;  %v6914_v54 = vunpack.c.l.bf16 %v6882_v50  ;;  %v6740_v14 = vrot.slane %v6642_v20, 2  ;;  %v11327_v59 = vmul.f32 %v11238_v56, %v11318_v21  ;;  %v6201_v20 = vld [vmem:[#allocation2 + $0xc] sm:$0xff]  }
 0x384   : > { %v6851_v6 = vadd.f32 %v6747_v42, %v6577_v62  ;;  %v7285_v42 = vld [vmem:[#allocation2 + $0x24] sm:$0xe]  ;;  %v6468_v22 = vsel %vm5781_vm9, %v6466_v34, %v12861_v4  ;;  %v11331_v40 = vmul.f32 %v11247_v47, %v11318_v21  ;;  %vm8115_vm8 = vcmask 1043459  }
 0x385   : > { %v8883_v62 = vld [vmem:[#allocation2] sm:$0xff]   ;;  %v6948_v37 = vmul.f32 %v11223_v28, %v6914_v54  ;;  %v7047_v1 = vmul.f32 %v11238_v56, %v6914_v54  ;;  %v5942_v54 = vunpack.c.l.bf16 %v5926_v17 }
 0x386   : > { %v6982_v39 = vadd.f32 %v6950_v5, %v6851_v6  ;;  %v6064_v5 = vsel %vm6056_vm0, %v6062_v49, %v12865_v55  ;;  %v6742_v6 = vsel %vm6056_vm0, %v6740_v14, %v12860_v43  ;;  %v8884_v25 = vunpack.c.l.bf16 %v8883_v62 }
 0x387   : > { %v6171_v45 = vadd.f32 %v6064_v5, %v5896_v18  ;;  %v7145_v50 = vrot.slane %v7047_v1, 1  ;;  %v12859_v49 = vrot.slane %v11327_v59, 1  ;;  %v12863_v18 = vrot.slane %v11331_v40, 2 }
 0x388   : > { %v7256_v11 = vadd.f32 %v7152_v57, %v6982_v39  ;;  %v7301_v57 = vunpack.c.l.bf16 %v7285_v42  ;;  %v11337_v34 = vunpack.c.h.bf16 %v8883_v62  ;;  %v5685_v5 = vmul.f32 %v11174_v32, %v8884_v25 }
 0x389   : > { %v6301_v10 = vadd.f32 %v6269_v63, %v6171_v45  ;;  %v7147_v14 = vsel %vm5781_vm9, %v7145_v50, %v12859_v49 }
 0x38a   : > { %v7530_v0 = vadd.f32 %v7426_v46, %v7256_v11  ;;  %v7321_v39 = vmul.f32 %v11247_v47, %v7301_v57  ;;  %v5587_v11 = vmul.f32 %v11163_v33, %v8884_v25  ;;  %v11350_v62 = vmul.f32 %v11180_v58, %v11337_v34 }
 0x38b   : > { %v6575_v63 = vadd.f32 %v6468_v22, %v6301_v10  ;;  %v11346_v22 = vmul.f32 %v11174_v32, %v11337_v34  ;;  %v5782_v57 = vrot.slane %v5685_v5, 1  ;;  %v5960_v10 = vmul.f32 %v11180_v58, %v5942_v54 }
 0x38c   : > { %v7571_v46 = vsel %vm4527_vm4, %v7530_v0, 0.0  ;;  %v7419_v42 = vrot.slane %v7321_v39, 2  ;;  %v6605_v0 = vld [vmem:[#allocation2 + $0xc] sm:$0xe]  ;;  %v12864_v50 = vrot.slane %v11350_v62, 2  ;;  %v11358_v39 = vunpack.c.h.bf16 %v6201_v20 }
 0x38d   : > { %7572 = vadd.xlane.f32.xlu2 %v7571_v46  ;;  %v6849_v45 = vadd.f32 %v6742_v6, %v6575_v63  ;;  %v6233_v6 = vunpack.c.l.bf16 %v6201_v20  ;;  %v12862_v46 = vrot.slane %v11346_v22, 1  ;;  %v6057_v25 = vrot.slane %v5960_v10, 2 }
 0x38e   : > { %v7421_v1 = vsel %vm6056_vm0, %v7419_v42, %v12863_v18  ;;  %v6621_v43 = vunpack.c.l.bf16 %v6605_v0  ;;  %v11371_v5 = vmul.f32 %v11212_v36, %v11358_v39  ;;  %v7284_v0 = vld [vmem:[#allocation2 + $0x18] sm:$0xe] }
 0x38f   : > { %v6980_v17 = vadd.f32 %v6948_v37, %v6849_v45  ;;  %v6267_v63 = vmul.f32 %v11191_v60, %v6233_v6  ;;  %v6365_v49 = vmul.f32 %v11205_v48, %v6233_v6  ;;  %v5784_v42 = vsel %vm5781_vm9, %v5782_v57, %v12862_v46 }
 0x390   : > { %v11367_v37 = vmul.f32 %v11205_v48, %v11358_v39  ;;  %v5894_v20 = vadd.f32 %v5784_v42, %v5587_v11  ;;  %v6059_v54 = vsel %vm6056_vm0, %v6057_v25, %v12864_v50  ;;  %v12868_v6 = vrot.slane %v11371_v5, 2 }
 0x391   : > { %v7254_v4 = vadd.f32 %v7147_v14, %v6980_v17  ;;  %v6461_v45 = vrot.slane %v6365_v49, 1  ;;  %v6639_v14 = vmul.f32 %v11212_v36, %v6621_v43  ;;  %v6946_v17 = vmul.f32 %v11223_v28, %v11167_v23  ;;  %v5653_v49 = vld [vmem:[#allocation2 + $0x20] sm:$0x1] }
 0x392   : > { %v12866_v57 = vrot.slane %v11367_v37, 1  ;;  %v6169_v46 = vadd.f32 %v6059_v54, %v5894_v20  ;;  %v7044_v11 = vmul.f32 %v11238_v56, %v11167_v23  ;;  %v11385_v25 = vmul.f32 %v11238_v56, %v11169_v13  ;;  %v6333_v20 = vld [vmem:[#allocation2 + $0x2c] sm:$0x1] }
 0x393   : > { %v7528_v10 = vadd.f32 %v7421_v1, %v7254_v4  ;;  %v6735_v18 = vrot.slane %v6639_v14, 2  ;;  %v7300_v1 = vunpack.c.l.bf16 %v7284_v0  ;;  %v11393_v42 = vmul.f32 %v11247_v47, %v11169_v13 }
 0x394   : > { %v6463_v4 = vsel %vm5781_vm9, %v6461_v45, %v12866_v57  ;;  %v6299_v54 = vadd.f32 %v6267_v63, %v6169_v46  ;;  %v7140_v14 = vrot.slane %v7044_v11, 1  ;;  %v12870_v50 = vrot.slane %v11385_v25, 1  ;;  %v7012_v57 = vld [vmem:[#allocation2 + $0x38] sm:$0x1] }
 0x395   : > { %v7565_v43 = vsel %vm4527_vm4, %v7528_v10, 0.0  ;;  %v6737_v23 = vsel %vm6056_vm0, %v6735_v18, %v12868_v6  ;;  %v7318_v10 = vmul.f32 %v11247_v47, %v7300_v1  ;;  %v12873_v55 = vrot.slane %v11393_v42, 2 }
 0x396   : > { %7566 = vadd.xlane.f32.xlu1 %v7565_v43  ;;  %v5592_v45 = vmul.f32 %v11163_v33, %v11169_v13  ;;  %v5669_v0 = vunpack.c.l.bf16 %v5653_v49  ;;  %v6573_v31 = vadd.f32 %v6463_v4, %v6299_v54  ;;  %v7142_v46 = vsel %vm5781_vm9, %v7140_v14, %v12870_v50  ;;  %v5652_v14 = vld [vmem:[#allocation2 + $0x14] sm:$0x1] }
 0x397   : > { %v6272_v18 = vmul.f32 %v11191_v60, %v11200_v29  ;;  %v6349_v63 = vunpack.c.l.bf16 %v6333_v20  ;;  %v7414_v11 = vrot.slane %v7318_v10, 2  ;;  %v11412_v6 = vmul.f32 %v11223_v28, %v11250_v26 }
 0x398   : > { %v5693_v43 = vmul.f32 %v11174_v32, %v5669_v0  ;;  %v5968_v1 = vmul.f32 %v11180_v58, %v5669_v0  ;;  %v6847_v49 = vadd.f32 %v6737_v23, %v6573_v31  ;;  %v7028_v53 = vunpack.c.l.bf16 %v7012_v57 }
 0x399   : > { %v6373_v4 = vmul.f32 %v11205_v48, %v6349_v63  ;;  %v6647_v54 = vmul.f32 %v11212_v36, %v6349_v63  ;;  %v7416_v29 = vsel %vm6056_vm0, %v7414_v11, %v12873_v55  ;;  %v5590_v0 = vmul.f32 %v11163_v33, %v11271_v24 }
 0x39a   : > { %v5795_v20 = vrot.slane %v5693_v43, 1  ;;  %v6070_v10 = vrot.slane %v5968_v1, 2  ;;  %v6978_v50 = vadd.f32 %v6946_v17, %v6847_v49  ;;  %v7052_v31 = vmul.f32 %v11238_v56, %v7028_v53  ;;  %v6332_v43 = vld [vmem:[#allocation2 + $0x20] sm:$0x1] }
 0x39b   : > { %v6474_v41 = vrot.slane %v6373_v4, 1  ;;  %v6748_v27 = vrot.slane %v6647_v54, 2  ;;  %v7326_v63 = vmul.f32 %v11247_v47, %v7028_v53  ;;  %v5668_v11 = vunpack.c.l.bf16 %v5652_v14 }
 0x39c   : > { %v5796_v23 = vsel %vm5781_vm9, %v5793_v61, %v5795_v20  ;;  %v6071_v57 = vsel %vm6056_vm0, %v6068_v8, %v6070_v10  ;;  %v7252_v1 = vadd.f32 %v7142_v46, %v6978_v50  ;;  %v12905_v17 = vrot.slane %v11231_v30, 2  ;;  %v7011_v46 = vld [vmem:[#allocation2 + $0x2c] sm:$0x1]  ;;  %v5651_v10 = vld [vmem:[#allocation2 + $0x8] sm:$0x1] }
 0x39d   : > { %v5899_v55 = vadd.f32 %v5796_v23, %v5592_v45  ;;  %v6475_v24 = vsel %vm5781_vm9, %v6472_v44, %v6474_v41  ;;  %v7153_v49 = vrot.slane %v7052_v31, 1  ;;  %v7427_v61 = vrot.slane %v7326_v63, 2 }
 0x39e   : > { %v6749_v3 = vsel %vm6056_vm0, %v12905_v17, %v6748_v27  ;;  %v5690_v52 = vmul.f32 %v11174_v32, %v5668_v11  ;;  %v5965_v8 = vmul.f32 %v11180_v58, %v5668_v11  ;;  %v7526_v4 = vadd.f32 %v7416_v29, %v7252_v1 }
 0x39f   : > { %v6174_v53 = vadd.f32 %v6071_v57, %v5899_v55  ;;  %v6270_v50 = vmul.f32 %v11191_v60, %v11169_v13  ;;  %v6348_v45 = vunpack.c.l.bf16 %v6332_v43  ;;  %v7154_v44 = vsel %vm5781_vm9, %v12906_v7, %v7153_v49 }
 0x3a0   : > { %v12907_v30 = vrot.slane %v11268_v9, 2  ;;  %v5790_v41 = vrot.slane %v5690_v52, 1  ;;  %v6065_v54 = vrot.slane %v5965_v8, 2  ;;  %v7559_v14 = vsel %vm4527_vm4, %v7526_v4, 0.0  ;;  %v6331_v52 = vld [vmem:[#allocation2 + $0x14] sm:$0x1] }
 0x3a1   : > { %v6304_v20 = vadd.f32 %v6272_v18, %v6174_v53  ;;  %v6370_v55 = vmul.f32 %v11205_v48, %v6348_v45  ;;  %v6644_v29 = vmul.f32 %v11212_v36, %v6348_v45  ;;  %7560 = vadd.xlane.f32.xlu0 %v7559_v14  ;;  %v12908_v31 = vrot.slane %v11279_v19, 1 }
 0x3a2   : > { %v7428_v27 = vsel %vm6056_vm0, %v12907_v30, %v7427_v61  ;;  %v12909_v23 = vrot.slane %v11286_v12, 2  ;;  %v6949_v57 = vmul.f32 %v11223_v28, %v11318_v21  ;;  %v7027_v63 = vunpack.c.l.bf16 %v7011_v46 }
 0x3a3   : > { %v5791_v15 = vsel %vm5781_vm9, %v12908_v31, %v5790_v41  ;;  %v6578_v11 = vadd.f32 %v6475_v24, %v6304_v20  ;;  %v6469_v43 = vrot.slane %v6370_v55, 1  ;;  %v6743_v1 = vrot.slane %v6644_v29, 2 }
 0x3a4   : > { %v6066_v9 = vsel %vm6056_vm0, %v12909_v23, %v6065_v54  ;;  %v5897_v18 = vadd.f32 %v5791_v15, %v5590_v0  ;;  %v7049_v17 = vmul.f32 %v11238_v56, %v7027_v63  ;;  %v7323_v49 = vmul.f32 %v11247_v47, %v7027_v63 }
 0x3a5   : > { %v5588_v19 = vmul.f32 %v11163_v33, %v11337_v34  ;;  %v5667_v61 = vunpack.c.l.bf16 %v5651_v10  ;;  %v6852_v12 = vadd.f32 %v6749_v3, %v6578_v11  ;;  %v12910_v4 = vrot.slane %v11300_v2, 1  ;;  %v7010_v2 = vld [vmem:[#allocation2 + $0x20] sm:$0x1] }
 0x3a6   : > { %v6172_v8 = vadd.f32 %v6066_v9, %v5897_v18  ;;  %v12911_v24 = vrot.slane %v11307_v35, 2  ;;  %v7148_v53 = vrot.slane %v7049_v17, 1  ;;  %v7422_v45 = vrot.slane %v7323_v49, 2  ;;  %v5930_v49 = vld [vmem:[#allocation2 + $0x30] sm:$0xe] }
 0x3a7   : > { %v6470_v21 = vsel %vm5781_vm9, %v12910_v4, %v6469_v43  ;;  %v5687_v46 = vmul.f32 %v11174_v32, %v5667_v61  ;;  %v5962_v7 = vmul.f32 %v11180_v58, %v5667_v61  ;;  %v6983_v34 = vadd.f32 %v11412_v6, %v6852_v12 }
 0x3a8   : > { %v6744_v0 = vsel %vm6056_vm0, %v12911_v24, %v6743_v1  ;;  %v6302_v30 = vadd.f32 %v6270_v50, %v6172_v8  ;;  %v6268_v3 = vmul.f32 %v11191_v60, %v11358_v39  ;;  %v6347_v41 = vunpack.c.l.bf16 %v6331_v52 }
 0x3a9   : > { %v12912_v54 = vrot.slane %v11327_v59, 1  ;;  %v12913_v14 = vrot.slane %v11331_v40, 2  ;;  %v5785_v55 = vrot.slane %v5687_v46, 1  ;;  %v6060_v29 = vrot.slane %v5962_v7, 2 }
 0x3aa   : > { %v7257_v10 = vadd.f32 %v7154_v44, %v6983_v34  ;;  %v6576_v31 = vadd.f32 %v6470_v21, %v6302_v30  ;;  %v6367_v6 = vmul.f32 %v11205_v48, %v6347_v41  ;;  %v6641_v50 = vmul.f32 %v11212_v36, %v6347_v41 }
 0x3ab   : > { %v7149_v35 = vsel %vm5781_vm9, %v12912_v54, %v7148_v53  ;;  %v7423_v20 = vsel %vm6056_vm0, %v12913_v14, %v7422_v45  ;;  %v12914_v39 = vrot.slane %v11346_v22, 1  ;;  %v12915_v59 = vrot.slane %v11350_v62, 2  ;;  %v6609_v45 = vld [vmem:[#allocation2 + $0x3c] sm:$0xe] }
 0x3ac   : > { %v6947_v40 = vmul.f32 %v11223_v28, %v11169_v13  ;;  %v7026_v9 = vunpack.c.l.bf16 %v7010_v2  ;;  %v7531_v63 = vadd.f32 %v7428_v27, %v7257_v10  ;;  %v6850_v11 = vadd.f32 %v6744_v0, %v6576_v31 }
 0x3ad   : > { %v5786_v15 = vsel %vm5781_vm9, %v12914_v39, %v5785_v55  ;;  %v6061_v23 = vsel %vm6056_vm0, %v12915_v59, %v6060_v29  ;;  %v6464_v18 = vrot.slane %v6367_v6, 1  ;;  %v6738_v43 = vrot.slane %v6641_v50, 2 }
 0x3ae   : > { %v5895_v44 = vadd.f32 %v5786_v15, %v5588_v19  ;;  %v7046_v1 = vmul.f32 %v11238_v56, %v7026_v9  ;;  %v7320_v17 = vmul.f32 %v11247_v47, %v7026_v9  ;;  %v5595_v22 = vmul.f32 %v11163_v33, %v11233_v38 }
 0x3af   : > { %v7574_v62 = vsel %vm4527_vm4, %v7531_v63, 0.0  ;;  %v6981_v61 = vadd.f32 %v6949_v57, %v6850_v11  ;;  %v12916_v13 = vrot.slane %v11367_v37, 1  ;;  %v12917_v19 = vrot.slane %v11371_v5, 2  ;;  %v6209_v37 = vld [vmem:[#allocation2 + $0x3c] sm:$0xff]  }
 0x3b0   : > { %v6170_v52 = vadd.f32 %v6061_v23, %v5895_v44  ;;  %7575 = vadd.xlane.f32.xlu2 %v7574_v62  ;;  %v7143_v8 = vrot.slane %v7046_v1, 1  ;;  %v7417_v4 = vrot.slane %v7320_v17, 2  ;;  %v5697_v21 = vmul.f32 %v11174_v32, %v11233_v38  ;;  %v7288_v17 = vld [vmem:[#allocation2 + $0x48] sm:$0xe] }
 0x3b1   : > { %v6465_v27 = vsel %vm5781_vm9, %v12916_v13, %v6464_v18  ;;  %v6739_v12 = vsel %vm6056_vm0, %v12917_v19, %v6738_v43  ;;  %v7255_v24 = vadd.f32 %v7149_v35, %v6981_v61  ;;  %v11502_v57 = vmul.f32 %v11174_v32, %v11250_v26  ;;  %v11543_v61 = vld [vmem:[#allocation2 + $0x24] sm:$0xff]  }
 0x3b2   : > { %v6300_v0 = vadd.f32 %v6268_v3, %v6170_v52  ;;  %v5946_v53 = vunpack.c.l.bf16 %v5930_v49  ;;  %v12918_v46 = vrot.slane %v11385_v25, 1  ;;  %v12919_v7 = vrot.slane %v11393_v42, 2 }
 0x3b3   : > { %v5802_v30 = vrot.slane %v5697_v21, 1  ;;  %v11512_v41 = vmul.f32 %v11180_v58, %v11250_v26  ;;  %v7529_v3 = vadd.f32 %v7423_v20, %v7255_v24  ;;  %v5803_v54 = vrot.slane %v11502_v57, 1  ;;  %v8994_v20 = vld [vmem:[#allocation2 + $0x48] sm:$0xff]  }
 0x3b4   : > { %v7144_v5 = vsel %vm5781_vm9, %v12918_v46, %v7143_v8  ;;  %v7418_v34 = vsel %vm6056_vm0, %v12919_v7, %v7417_v4  ;;  %v6574_v2 = vadd.f32 %v6465_v27, %v6300_v0  ;;  %v5972_v35 = vmul.f32 %v11180_v58, %v5946_v53 }
 0x3b5   : > { %v6078_v14 = vrot.slane %v11512_v41, 2  ;;  %v6241_v25 = vunpack.c.l.bf16 %v6209_v37  ;;  %v11517_v55 = vunpack.c.h.bf16 %v6209_v37  ;;  %v6625_v29 = vunpack.c.l.bf16 %v6609_v45 }
 0x3b6   : > { %v7568_v42 = vsel %vm4527_vm4, %v7529_v3, 0.0  ;;  %v6848_v10 = vadd.f32 %v6739_v12, %v6574_v2  ;;  %v5804_v31 = vsel %vm5781_vm9, %v5802_v30, %v5803_v54  ;;  %v6077_v6 = vrot.slane %v5972_v35, 2  ;;  %v5654_v12 = vld [vmem:[#allocation2 + $0x2c] sm:$0x1] }
 0x3b7   : > { %7569 = vadd.xlane.f32.xlu1 %v7568_v42  ;;  %v5902_v50 = vadd.f32 %v5804_v31, %v5595_v22  ;;  %v6275_v39 = vmul.f32 %v11191_v60, %v6241_v25  ;;  %v6377_v15 = vmul.f32 %v11205_v48, %v6241_v25  ;;  %v11527_v59 = vmul.f32 %v11205_v48, %v11517_v55  ;;  %v6334_v25 = vld [vmem:[#allocation2 + $0x38] sm:$0x1] }
 0x3b8   : > { %v6979_v23 = vadd.f32 %v6947_v40, %v6848_v10  ;;  %v6079_v9 = vsel %vm6056_vm0, %v6077_v6, %v6078_v14  ;;  %v6651_v63 = vmul.f32 %v11212_v36, %v6625_v29  ;;  %v11535_v11 = vmul.f32 %v11212_v36, %v11517_v55 }
 0x3b9   : > { %v6177_v44 = vadd.f32 %v6079_v9, %v5902_v50  ;;  %v6481_v18 = vrot.slane %v6377_v15, 1  ;;  %v6482_v43 = vrot.slane %v11527_v59, 1  ;;  %v11538_v1 = vunpack.c.l.bf16 %v8994_v20  ;;  %v11583_v15 = vld [vmem:[#allocation2 + $0x3c] sm:$0xff]  }
 0x3ba   : > { %v7253_v22 = vadd.f32 %v7144_v5, %v6979_v23  ;;  %v6755_v49 = vrot.slane %v6651_v63, 2  ;;  %v6756_v40 = vrot.slane %v11535_v11, 2  ;;  %v11541_v62 = vunpack.c.h.bf16 %v8994_v20 }
 0x3bb   : > { %v6307_v52 = vadd.f32 %v6275_v39, %v6177_v44  ;;  %v6483_v13 = vsel %vm5781_vm9, %v6481_v18, %v6482_v43  ;;  %v6954_v27 = vmul.f32 %v11223_v28, %v11538_v1  ;;  %v7056_v19 = vmul.f32 %v11238_v56, %v11538_v1 }
 0x3bc   : > { %v7527_v8 = vadd.f32 %v7418_v34, %v7253_v22  ;;  %v6757_v4 = vsel %vm6056_vm0, %v6755_v49, %v6756_v40  ;;  %v11557_v21 = vmul.f32 %v11238_v56, %v11541_v62  ;;  %v7304_v24 = vunpack.c.l.bf16 %v7288_v17 }
 0x3bd   : > { %v6581_v0 = vadd.f32 %v6483_v13, %v6307_v52  ;;  %v7160_v53 = vrot.slane %v7056_v19, 1  ;;  %v11561_v37 = vmul.f32 %v11247_v47, %v11541_v62  ;;  %v5560_v45 = vunpack.c.h.bf16 %v11543_v61 }
 0x3be   : > { %v7562_v46 = vsel %vm4527_vm4, %v7527_v8, 0.0  ;;  %v7161_v5 = vrot.slane %v11557_v21, 1  ;;  %v7330_v7 = vmul.f32 %v11247_v47, %v7304_v24  ;;  %v5670_v34 = vunpack.c.l.bf16 %v5654_v12  ;;  %v7013_v12 = vld [vmem:[#allocation2 + $0x44] sm:$0x1] }
 0x3bf   : > { %7563 = vadd.xlane.f32.xlu0 %v7562_v46  ;;  %v6855_v30 = vadd.f32 %v6757_v4, %v6581_v0  ;;  %v7435_v3 = vrot.slane %v11561_v37, 2  ;;  %v5594_v2 = vmul.f32 %v11163_v33, %v5560_v45  ;;  %v11570_v35 = vmul.f32 %v11174_v32, %v5560_v45 }
 0x3c0   : > { %v7162_v29 = vsel %vm5781_vm9, %v7160_v53, %v7161_v5  ;;  %v7434_v42 = vrot.slane %v7330_v7, 2  ;;  %v5696_v10 = vmul.f32 %v11174_v32, %v5670_v34  ;;  %v11577_v31 = vmul.f32 %v11180_v58, %v5560_v45 }
 0x3c1   : > { %v6986_v6 = vadd.f32 %v6954_v27, %v6855_v30  ;;  %v5798_v20 = vrot.slane %v11570_v35, 1  ;;  %v5971_v50 = vmul.f32 %v11180_v58, %v5670_v34  ;;  %v6274_v39 = vmul.f32 %v11191_v60, %v11250_v26 }
 0x3c2   : > { %v7436_v23 = vsel %vm6056_vm0, %v7434_v42, %v7435_v3  ;;  %v5800_v9 = vrot.slane %v5696_v10, 1  ;;  %v6073_v63 = vrot.slane %v11577_v31, 2  ;;  %v6350_v44 = vunpack.c.l.bf16 %v6334_v25 }
 0x3c3   : > { %v7260_v18 = vadd.f32 %v7162_v29, %v6986_v6  ;;  %v6075_v17 = vrot.slane %v5971_v50, 2  ;;  %v6375_v22 = vmul.f32 %v11205_v48, %v11250_v26  ;;  %v11593_v49 = vmul.f32 %v11212_v36, %v11250_v26  ;;  %v5929_v29 = vld [vmem:[#allocation2 + $0x24] sm:$0xe] }
 0x3c4   : > { %v5801_v52 = vsel %vm5781_vm9, %v5798_v20, %v5800_v9  ;;  %v6376_v13 = vmul.f32 %v11205_v48, %v6350_v44  ;;  %v6650_v27 = vmul.f32 %v11212_v36, %v6350_v44  ;;  %v6919_v19 = vunpack.c.h.bf16 %v11583_v15  ;;  %v6608_v44 = vld [vmem:[#allocation2 + $0x30] sm:$0xe] }
 0x3c5   : > { %v7534_v8 = vadd.f32 %v7436_v23, %v7260_v18  ;;  %v5901_v4 = vadd.f32 %v5801_v52, %v5594_v2  ;;  %v6076_v24 = vsel %vm6056_vm0, %v6073_v63, %v6075_v17  ;;  %v6477_v0 = vrot.slane %v6375_v22, 1 }
 0x3c6   : > { %v6479_v53 = vrot.slane %v6376_v13, 1  ;;  %v6751_v45 = vrot.slane %v11593_v49, 2  ;;  %v6753_v46 = vrot.slane %v6650_v27, 2  ;;  %v6953_v7 = vmul.f32 %v11223_v28, %v6919_v19 }
 0x3c7   : > { %v7583_v34 = vsel %vm4527_vm4, %v7534_v8, 0.0  ;;  %v6176_v30 = vadd.f32 %v6076_v24, %v5901_v4  ;;  %v7029_v35 = vunpack.c.l.bf16 %v7013_v12  ;;  %v7054_v25 = vmul.f32 %v11238_v56, %v6919_v19 }
 0x3c8   : > { %7584 = vadd.xlane.f32.xlu2 %v7583_v34  ;;  %v6480_v42 = vsel %vm5781_vm9, %v6477_v0, %v6479_v53  ;;  %v6754_v2 = vsel %vm6056_vm0, %v6751_v45, %v6753_v46  ;;  %v11607_v10 = vmul.f32 %v11247_v47, %v6919_v19  ;;  %v5559_v31 = vunpack.c.l.bf16 %v11543_v61  ;;  %v7287_v34 = vld [vmem:[#allocation2 + $0x3c] sm:$0xe] }
 0x3c9   : > { %v6306_v6 = vadd.f32 %v6274_v39, %v6176_v30  ;;  %v7055_v50 = vmul.f32 %v11238_v56, %v7029_v35  ;;  %v7156_v23 = vrot.slane %v7054_v25, 1  ;;  %v7329_v9 = vmul.f32 %v11247_v47, %v7029_v35 }
 0x3ca   : > { %v7430_v18 = vrot.slane %v11607_v10, 2  ;;  %v5593_v17 = vmul.f32 %v11163_v33, %v5559_v31  ;;  %v5694_v22 = vmul.f32 %v11174_v32, %v5559_v31  ;;  %v5945_v49 = vunpack.c.l.bf16 %v5929_v29 }
 0x3cb   : > { %v6580_v52 = vadd.f32 %v6480_v42, %v6306_v6  ;;  %v7158_v13 = vrot.slane %v7055_v50, 1  ;;  %v7432_v27 = vrot.slane %v7329_v9, 2  ;;  %v6273_v61 = vmul.f32 %v11191_v60, %v11233_v38  ;;  %v11625_v42 = vld [vmem:[#allocation2 + $0x3c] sm:$0xff]   ;;  %v5656_v6 = vld [vmem:[#allocation2 + $0x44] sm:$0x1] }
 0x3cc   : > { %v5797_v39 = vrot.slane %v5694_v22, 1  ;;  %v5969_v19 = vmul.f32 %v11180_v58, %v5945_v49  ;;  %v6374_v12 = vmul.f32 %v11205_v48, %v11233_v38  ;;  %v6624_v8 = vunpack.c.l.bf16 %v6608_v44 }
 0x3cd   : > { %v6854_v4 = vadd.f32 %v6754_v2, %v6580_v52  ;;  %v7159_v24 = vsel %vm5781_vm9, %v7156_v23, %v7158_v13  ;;  %v7433_v53 = vsel %vm6056_vm0, %v7430_v18, %v7432_v27  ;;  %v6918_v46 = vunpack.c.l.bf16 %v11583_v15 }
 0x3ce   : > { %v5799_v30 = vsel %vm5781_vm9, %v5797_v39, %v5798_v20  ;;  %v6072_v35 = vrot.slane %v5969_v19, 2  ;;  %v6476_v25 = vrot.slane %v6374_v12, 1  ;;  %v6648_v29 = vmul.f32 %v11212_v36, %v6624_v8  ;;  %v6336_v39 = vld [vmem:[#allocation2 + $0x50] sm:$0x1] }
 0x3cf   : > { %v6985_v10 = vadd.f32 %v6953_v7, %v6854_v4  ;;  %v5900_v31 = vadd.f32 %v5799_v30, %v5593_v17  ;;  %v6952_v38 = vmul.f32 %v11223_v28, %v6918_v46  ;;  %v7053_v2 = vmul.f32 %v11238_v56, %v6918_v46 }
 0x3d0   : > { %v6074_v50 = vsel %vm6056_vm0, %v6072_v35, %v6073_v63  ;;  %v6478_v15 = vsel %vm5781_vm9, %v6476_v25, %v6477_v0  ;;  %v6750_v9 = vrot.slane %v6648_v29, 2  ;;  %v7303_v44 = vunpack.c.l.bf16 %v7287_v34 }
 0x3d1   : > { %v7259_v20 = vadd.f32 %v7159_v24, %v6985_v10  ;;  %v6175_v22 = vadd.f32 %v6074_v50, %v5900_v31  ;;  %v7155_v49 = vrot.slane %v7053_v2, 1  ;;  %v5564_v52 = vunpack.c.h.bf16 %v11625_v42 }
 0x3d2   : > { %v6752_v13 = vsel %vm6056_vm0, %v6750_v9, %v6751_v45  ;;  %v7327_v7 = vmul.f32 %v11247_v47, %v7303_v44  ;;  %v5672_v17 = vunpack.c.l.bf16 %v5656_v6  ;;  %v6278_v27 = vmul.f32 %v11191_v60, %v11541_v62  ;;  %v7015_v44 = vld [vmem:[#allocation2 + $0x5c] sm:$0x1] }
 0x3d3   : > { %v7533_v19 = vadd.f32 %v7433_v53, %v7259_v20  ;;  %v6305_v63 = vadd.f32 %v6273_v61, %v6175_v22  ;;  %v7157_v0 = vsel %vm5781_vm9, %v7155_v49, %v7156_v23  ;;  %v5598_v12 = vmul.f32 %v11163_v33, %v5564_v52  ;;  %v11647_v61 = vld [vmem:[#allocation2 + $0x54] sm:$0xff]  }
 0x3d4   : > { %v7429_v8 = vrot.slane %v7327_v7, 2  ;;  %v11639_v4 = vmul.f32 %v11174_v32, %v5564_v52  ;;  %v5702_v24 = vmul.f32 %v11174_v32, %v5672_v17  ;;  %v11643_v45 = vmul.f32 %v11180_v58, %v5564_v52 }
 0x3d5   : > { %v7580_v46 = vsel %vm4527_vm4, %v7533_v19, 0.0  ;;  %v6579_v34 = vadd.f32 %v6478_v15, %v6305_v63  ;;  %v5977_v30 = vmul.f32 %v11180_v58, %v5672_v17  ;;  %v6352_v53 = vunpack.c.l.bf16 %v6336_v39 }
 0x3d6   : > { %7581 = vadd.xlane.f32.xlu1 %v7580_v46  ;;  %v7431_v23 = vsel %vm6056_vm0, %v7429_v8, %v7430_v18  ;;  %v5808_v35 = vrot.slane %v11639_v4, 1  ;;  %v5810_v25 = vrot.slane %v5702_v24, 1  ;;  %v6083_v29 = vrot.slane %v11643_v45, 2 }
 0x3d7   : > { %v6853_v10 = vadd.f32 %v6752_v13, %v6579_v34  ;;  %v6085_v31 = vrot.slane %v5977_v30, 2  ;;  %v6381_v2 = vmul.f32 %v11205_v48, %v11541_v62  ;;  %v6382_v6 = vmul.f32 %v11205_v48, %v6352_v53  ;;  %v5931_v34 = vld [vmem:[#allocation2 + $0x3c] sm:$0xe] }
 0x3d8   : > { %v5811_v50 = vsel %vm5781_vm9, %v5808_v35, %v5810_v25  ;;  %v11658_v15 = vmul.f32 %v11212_v36, %v11541_v62  ;;  %v6656_v18 = vmul.f32 %v11212_v36, %v6352_v53  ;;  %v6923_v9 = vunpack.c.h.bf16 %v11647_v61 }
 0x3d9   : > { %v6984_v20 = vadd.f32 %v6952_v38, %v6853_v10  ;;  %v5905_v22 = vadd.f32 %v5811_v50, %v5598_v12  ;;  %v6086_v49 = vsel %vm6056_vm0, %v6083_v29, %v6085_v31  ;;  %v6487_v52 = vrot.slane %v6381_v2, 1  ;;  %v6610_v50 = vld [vmem:[#allocation2 + $0x48] sm:$0xe] }
 0x3da   : > { %v6489_v13 = vrot.slane %v6382_v6, 1  ;;  %v6761_v7 = vrot.slane %v11658_v15, 2  ;;  %v6763_v17 = vrot.slane %v6656_v18, 2  ;;  %v6957_v39 = vmul.f32 %v11223_v28, %v6923_v9 }
 0x3db   : > { %v7258_v19 = vadd.f32 %v7157_v0, %v6984_v20  ;;  %v6180_v63 = vadd.f32 %v6086_v49, %v5905_v22  ;;  %v7031_v8 = vunpack.c.l.bf16 %v7015_v44  ;;  %v7060_v4 = vmul.f32 %v11238_v56, %v6923_v9 }
 0x3dc   : > { %v6490_v24 = vsel %vm5781_vm9, %v6487_v52, %v6489_v13  ;;  %v6764_v38 = vsel %vm6056_vm0, %v6761_v7, %v6763_v17  ;;  %v11671_v12 = vmul.f32 %v11247_v47, %v6923_v9  ;;  %v5563_v46 = vunpack.c.l.bf16 %v11625_v42  ;;  %v7289_v13 = vld [vmem:[#allocation2 + $0x54] sm:$0xe] }
 0x3dd   : > { %v7532_v30 = vadd.f32 %v7431_v23, %v7258_v19  ;;  %v6310_v53 = vadd.f32 %v6278_v27, %v6180_v63  ;;  %v7061_v25 = vmul.f32 %v11238_v56, %v7031_v8  ;;  %v7166_v10 = vrot.slane %v7060_v4, 1 }
 0x3de   : > { %v7335_v0 = vmul.f32 %v11247_v47, %v7031_v8  ;;  %v7440_v31 = vrot.slane %v11671_v12, 2  ;;  %v5597_v2 = vmul.f32 %v11163_v33, %v5563_v46  ;;  %v5700_v6 = vmul.f32 %v11174_v32, %v5563_v46 }
 0x3df   : > { %v7577_v15 = vsel %vm4527_vm4, %v7532_v30, 0.0  ;;  %v6584_v18 = vadd.f32 %v6490_v24, %v6310_v53  ;;  %v7168_v9 = vrot.slane %v7061_v25, 1  ;;  %v5947_v42 = vunpack.c.l.bf16 %v5931_v34  ;;  %v6335_v53 = vld [vmem:[#allocation2 + $0x44] sm:$0x1] }
 0x3e0   : > { %7578 = vadd.xlane.f32.xlu0 %v7577_v15  ;;  %v7442_v23 = vrot.slane %v7335_v0, 2  ;;  %v5807_v27 = vrot.slane %v5700_v6, 1  ;;  %v6277_v44 = vmul.f32 %v11191_v60, %v11538_v1  ;;  %v6380_v20 = vmul.f32 %v11205_v48, %v11538_v1  ;;  %v5655_v48 = vld [vmem:[#allocation2 + $0x38] sm:$0x1] }
 0x3e1   : > { %v6858_v22 = vadd.f32 %v6764_v38, %v6584_v18  ;;  %v7169_v33 = vsel %vm5781_vm9, %v7166_v10, %v7168_v9  ;;  %v5975_v32 = vmul.f32 %v11180_v58, %v5947_v42  ;;  %v6626_v49 = vunpack.c.l.bf16 %v6610_v50 }
 0x3e2   : > { %v7443_v17 = vsel %vm6056_vm0, %v7440_v31, %v7442_v23  ;;  %v5809_v19 = vsel %vm5781_vm9, %v5807_v27, %v5808_v35  ;;  %v6486_v63 = vrot.slane %v6380_v20, 1  ;;  %v6922_v8 = vunpack.c.l.bf16 %v11647_v61  ;;  %v7014_v27 = vld [vmem:[#allocation2 + $0x50] sm:$0x1] }
 0x3e3   : > { %v6989_v4 = vadd.f32 %v6957_v39, %v6858_v22  ;;  %v5904_v24 = vadd.f32 %v5809_v19, %v5597_v2  ;;  %v6082_v12 = vrot.slane %v5975_v32, 2  ;;  %v6654_v46 = vmul.f32 %v11212_v36, %v6626_v49  ;;  %v11699_v39 = vld [vmem:[%s12849_s2] ss:$0 sm:$0xff]  ;;  %v5535_v22 = vld [vmem:[#allocation2 + $0x54] sm:$0xff]  }
 0x3e4   : > { %v6488_v38 = vsel %vm5781_vm9, %v6486_v63, %v6487_v52  ;;  %v6956_v34 = vmul.f32 %v11223_v28, %v6922_v8  ;;  %v7059_v58 = vmul.f32 %v11238_v56, %v6922_v8  ;;  %v7305_v30 = vunpack.c.l.bf16 %v7289_v13 }
 0x3e5   : > { %v7263_v25 = vadd.f32 %v7169_v33, %v6989_v4  ;;  %v6084_v35 = vsel %vm6056_vm0, %v6082_v12, %v6083_v29  ;;  %v6760_v61 = vrot.slane %v6654_v46, 2  ;;  %v5596_v52 = vmul.f32 %v11699_v39, %v11250_v26  ;;  %v11711_v26 = vld [vmem:[%s12849_s2 + $0x1] ss:$0 sm:$0xff]  ;;  %v5933_v46 = vld [vmem:[#allocation2 + $0x54] sm:$0xe] }
 0x3e6   : > { %v6179_v0 = vadd.f32 %v6084_v35, %v5904_v24  ;;  %v7165_v2 = vrot.slane %v7059_v58, 1  ;;  %v7333_v56 = vmul.f32 %v11247_v47, %v7305_v30  ;;  %v5671_v6 = vunpack.c.l.bf16 %v5655_v48  ;;  %v8988_v35 = vld [vmem:[#allocation2 + $0x60] sm:$0xff]  }
 0x3e7   : > { %v7537_v50 = vadd.f32 %v7443_v17, %v7263_v25  ;;  %v6762_v15 = vsel %vm6056_vm0, %v6760_v61, %v6761_v7  ;;  %v6276_v45 = vmul.f32 %v11191_v60, %v11517_v55  ;;  %v6351_v29 = vunpack.c.l.bf16 %v6335_v53  ;;  %v11718_v7 = vld [vmem:[%s12849_s2 + $0x2] ss:$0 sm:$0xff]  ;;  %v11724_v55 = vld [vmem:[%s12849_s2 + $0x4] ss:$0 sm:$0xff] }
 0x3e8   : > { %v6309_v18 = vadd.f32 %v6277_v44, %v6179_v0  ;;  %v7167_v9 = vsel %vm5781_vm9, %v7165_v2, %v7166_v10  ;;  %v7439_v42 = vrot.slane %v7333_v56, 2  ;;  %v5699_v23 = vmul.f32 %v11711_v26, %v5671_v6  ;;  %v6612_v2 = vld [vmem:[#allocation2 + $0x60] sm:$0xe] }
 0x3e9   : > { %v7592_v20 = vsel %vm4527_vm4, %v7537_v50, 0.0  ;;  %v5974_v60 = vmul.f32 %v11718_v7, %v5671_v6  ;;  %v6379_v10 = vmul.f32 %v11724_v55, %v6351_v29  ;;  %v6653_v44 = vmul.f32 %v11212_v36, %v6351_v29 }
 0x3ea   : > { %7593 = vadd.xlane.f32.xlu2 %v7592_v20  ;;  %v6583_v33 = vadd.f32 %v6488_v38, %v6309_v18  ;;  %v7441_v32 = vsel %vm6056_vm0, %v7439_v42, %v7440_v31  ;;  %v5805_v49 = vrot.slane %v5699_v23, 1  ;;  %v6955_v13 = vmul.f32 %v11223_v28, %v11541_v62  ;;  %v11785_v20 = vld [vmem:[%s12849_s2 + $0x3] ss:$0 sm:$0xff] }
 0x3eb   : > { %v6080_v17 = vrot.slane %v5974_v60, 2  ;;  %v6484_v19 = vrot.slane %v6379_v10, 1  ;;  %v6758_v63 = vrot.slane %v6653_v44, 2  ;;  %v7030_v8 = vunpack.c.l.bf16 %v7014_v27  ;;  %v6894_v27 = vld [vmem:[#allocation2 + $0x6c] sm:$0xff]  }
 0x3ec   : > { %v6857_v4 = vadd.f32 %v6762_v15, %v6583_v33  ;;  %v5806_v24 = vsel %vm5781_vm9, %v5803_v54, %v5805_v49  ;;  %v5567_v12 = vunpack.c.l.bf16 %v5535_v22  ;;  %v11734_v36 = vunpack.c.h.bf16 %v5535_v22  ;;  %v11748_v54 = vld [vmem:[%s12849_s2 + $0x7] ss:$0 sm:$0xff]  ;;  %v11798_v33 = vld [vmem:[%s12849_s2 + $0x5] ss:$0 sm:$0xff] }
 0x3ed   : > { %v5903_v48 = vadd.f32 %v5806_v24, %v5596_v52  ;;  %v6081_v31 = vsel %vm6056_vm0, %v6078_v14, %v6080_v17  ;;  %v6485_v28 = vsel %vm5781_vm9, %v6482_v43, %v6484_v19  ;;  %v6759_v38 = vsel %vm6056_vm0, %v6756_v40, %v6758_v63 }
 0x3ee   : > { %v6988_v57 = vadd.f32 %v6956_v34, %v6857_v4  ;;  %v7058_v58 = vmul.f32 %v11748_v54, %v7030_v8  ;;  %v7332_v41 = vmul.f32 %v11247_v47, %v7030_v8  ;;  %v5601_v14 = vmul.f32 %v11699_v39, %v5567_v12  ;;  %v7291_v4 = vld [vmem:[#allocation2 + $0x6c] sm:$0xe] }
 0x3ef   : > { %v6178_v30 = vadd.f32 %v6081_v31, %v5903_v48  ;;  %v5706_v59 = vmul.f32 %v11711_v26, %v5567_v12  ;;  %v11756_v11 = vmul.f32 %v11711_v26, %v11734_v36  ;;  %v5949_v43 = vunpack.c.l.bf16 %v5933_v46 }
 0x3f0   : > { %v7262_v40 = vadd.f32 %v7167_v9, %v6988_v57  ;;  %v7163_v34 = vrot.slane %v7058_v58, 1  ;;  %v7437_v53 = vrot.slane %v7332_v41, 2  ;;  %v11760_v25 = vmul.f32 %v11718_v7, %v11734_v36  ;;  %v5657_v58 = vld [vmem:[#allocation2 + $0x50] sm:$0x1] }
 0x3f1   : > { %v6308_v61 = vadd.f32 %v6276_v45, %v6178_v30  ;;  %v5817_v47 = vrot.slane %v5706_v59, 1  ;;  %v5818_v52 = vrot.slane %v11756_v11, 1  ;;  %v5981_v0 = vmul.f32 %v11718_v7, %v5949_v43  ;;  %v11829_v59 = vld [vmem:[%s12849_s2 + $0x8] ss:$0 sm:$0xff] }
 0x3f2   : > { %v7536_v56 = vadd.f32 %v7441_v32, %v7262_v40  ;;  %v7164_v6 = vsel %vm5781_vm9, %v7161_v5, %v7163_v34  ;;  %v7438_v50 = vsel %vm6056_vm0, %v7435_v3, %v7437_v53  ;;  %v6093_v15 = vrot.slane %v11760_v25, 2 }
 0x3f3   : > { %v6582_v29 = vadd.f32 %v6485_v28, %v6308_v61  ;;  %v5819_v45 = vsel %vm5781_vm9, %v5817_v47, %v5818_v52  ;;  %v6092_v18 = vrot.slane %v5981_v0, 2  ;;  %v11774_v9 = vunpack.c.l.bf16 %v8988_v35  ;;  %v11812_v28 = vld [vmem:[%s12849_s2 + $0x6] ss:$0 sm:$0xff] }
 0x3f4   : > { %v7589_v42 = vsel %vm4527_vm4, %v7536_v56, 0.0  ;;  %v5908_v23 = vadd.f32 %v5819_v45, %v5601_v14  ;;  %v11777_v21 = vunpack.c.h.bf16 %v8988_v35  ;;  %v6628_v5 = vunpack.c.l.bf16 %v6612_v2  ;;  %v11840_v56 = vld [vmem:[#allocation2 + $0x54] sm:$0xff]  }
 0x3f5   : > { %7590 = vadd.xlane.f32.xlu1 %v7589_v42  ;;  %v6856_v37 = vadd.f32 %v6759_v38, %v6582_v29  ;;  %v6094_v3 = vsel %vm6056_vm0, %v6092_v18, %v6093_v15  ;;  %v6281_v60 = vmul.f32 %v11785_v20, %v11774_v9  ;;  %v6386_v10 = vmul.f32 %v11724_v55, %v11774_v9 }
 0x3f6   : > { %v6183_v44 = vadd.f32 %v6094_v3, %v5908_v23  ;;  %v11793_v22 = vmul.f32 %v11724_v55, %v11777_v21  ;;  %v6660_v32 = vmul.f32 %v11798_v33, %v6628_v5  ;;  %v11803_v49 = vmul.f32 %v11798_v33, %v11777_v21 }
 0x3f7   : > { %v6987_v17 = vadd.f32 %v6955_v13, %v6856_v37  ;;  %v6496_v19 = vrot.slane %v6386_v10, 1  ;;  %v6926_v63 = vunpack.c.l.bf16 %v6894_v27  ;;  %v11805_v8 = vunpack.c.h.bf16 %v6894_v27 }
 0x3f8   : > { %v6313_v24 = vadd.f32 %v6281_v60, %v6183_v44  ;;  %v6497_v12 = vrot.slane %v11793_v22, 1  ;;  %v6770_v46 = vrot.slane %v6660_v32, 2  ;;  %v6771_v48 = vrot.slane %v11803_v49, 2 }
 0x3f9   : > { %v7261_v31 = vadd.f32 %v7164_v6, %v6987_v17  ;;  %v6960_v38 = vmul.f32 %v11812_v28, %v6926_v63  ;;  %v7065_v13 = vmul.f32 %v11748_v54, %v6926_v63  ;;  %v11818_v57 = vmul.f32 %v11748_v54, %v11805_v8  ;;  %v6337_v6 = vld [vmem:[#allocation2 + $0x5c] sm:$0x1] }
 0x3fa   : > { %v6498_v41 = vsel %vm5781_vm9, %v6496_v19, %v6497_v12  ;;  %v6772_v14 = vsel %vm6056_vm0, %v6770_v46, %v6771_v48  ;;  %v7307_v30 = vunpack.c.l.bf16 %v7291_v4  ;;  %v11833_v43 = vmul.f32 %v11829_v59, %v11805_v8  ;;  %v7016_v46 = vld [vmem:[#allocation2 + $0x68] sm:$0x1] }
 0x3fb   : > { %v7535_v40 = vadd.f32 %v7438_v50, %v7261_v31  ;;  %v6587_v34 = vadd.f32 %v6498_v41, %v6313_v24  ;;  %v7175_v53 = vrot.slane %v7065_v13, 1  ;;  %v7176_v35 = vrot.slane %v11818_v57, 1 }
 0x3fc   : > { %v7339_v61 = vmul.f32 %v11829_v59, %v7307_v30  ;;  %v7450_v47 = vrot.slane %v11833_v43, 2  ;;  %v5600_v0 = vmul.f32 %v11699_v39, %v11541_v62  ;;  %v5673_v2 = vunpack.c.l.bf16 %v5657_v58 }
 0x3fd   : > { %v7586_v29 = vsel %vm4527_vm4, %v7535_v40, 0.0  ;;  %v6861_v45 = vadd.f32 %v6772_v14, %v6587_v34  ;;  %v7177_v50 = vsel %vm5781_vm9, %v7175_v53, %v7176_v35  ;;  %v5704_v18 = vmul.f32 %v11711_v26, %v11541_v62 }
 0x3fe   : > { %7587 = vadd.xlane.f32.xlu0 %v7586_v29  ;;  %v7449_v42 = vrot.slane %v7339_v61, 2  ;;  %v5705_v23 = vmul.f32 %v11711_v26, %v5673_v2  ;;  %v11851_v5 = vmul.f32 %v11718_v7, %v11541_v62  ;;  %v5980_v27 = vmul.f32 %v11718_v7, %v5673_v2 }
 0x3ff   : > { %v6992_v37 = vadd.f32 %v6960_v38, %v6861_v45  ;;  %v5813_v3 = vrot.slane %v5704_v18, 1  ;;  %v6246_v60 = vunpack.c.h.bf16 %v11840_v56  ;;  %v6353_v10 = vunpack.c.l.bf16 %v6337_v6  ;;  %v5932_v18 = vld [vmem:[#allocation2 + $0x48] sm:$0xe] }
 0x400   : > { %v7451_v44 = vsel %vm6056_vm0, %v7449_v42, %v7450_v47  ;;  %v5815_v32 = vrot.slane %v5705_v23, 1  ;;  %v6088_v17 = vrot.slane %v11851_v5, 2  ;;  %v6090_v19 = vrot.slane %v5980_v27, 2  ;;  %v6611_v27 = vld [vmem:[#allocation2 + $0x54] sm:$0xe] }
 0x401   : > { %v7266_v63 = vadd.f32 %v7177_v50, %v6992_v37  ;;  %v6280_v4 = vmul.f32 %v11785_v20, %v6246_v60  ;;  %v11861_v62 = vmul.f32 %v11724_v55, %v6246_v60  ;;  %v6385_v24 = vmul.f32 %v11724_v55, %v6353_v10 }
 0x402   : > { %v5816_v31 = vsel %vm5781_vm9, %v5813_v3, %v5815_v32  ;;  %v6091_v38 = vsel %vm6056_vm0, %v6088_v17, %v6090_v19  ;;  %v6658_v13 = vmul.f32 %v11798_v33, %v6246_v60  ;;  %v6659_v58 = vmul.f32 %v11798_v33, %v6353_v10 }
 0x403   : > { %v7540_v41 = vadd.f32 %v7451_v44, %v7266_v63  ;;  %v5907_v14 = vadd.f32 %v5816_v31, %v5600_v0  ;;  %v6492_v30 = vrot.slane %v11861_v62, 1  ;;  %v6494_v40 = vrot.slane %v6385_v24, 1 }
 0x404   : > { %v6766_v34 = vrot.slane %v6658_v13, 2  ;;  %v6768_v53 = vrot.slane %v6659_v58, 2  ;;  %v6959_v61 = vmul.f32 %v11812_v28, %v11777_v21  ;;  %v7032_v2 = vunpack.c.l.bf16 %v7016_v46 }
 0x405   : > { %v7601_v6 = vsel %vm4527_vm4, %v7540_v41, 0.0  ;;  %v6182_v29 = vadd.f32 %v6091_v38, %v5907_v14  ;;  %v6495_v45 = vsel %vm5781_vm9, %v6492_v30, %v6494_v40  ;;  %v7063_v50 = vmul.f32 %v11748_v54, %v11777_v21  ;;  %v7290_v14 = vld [vmem:[#allocation2 + $0x60] sm:$0xe] }
 0x406   : > { %7602 = vadd.xlane.f32.xlu2 %v7601_v6  ;;  %v6769_v0 = vsel %vm6056_vm0, %v6766_v34, %v6768_v53  ;;  %v7064_v42 = vmul.f32 %v11748_v54, %v7032_v2  ;;  %v7337_v23 = vmul.f32 %v11829_v59, %v11777_v21  ;;  %v7338_v5 = vmul.f32 %v11829_v59, %v7032_v2  ;;  %v5659_v6 = vld [vmem:[#allocation2 + $0x68] sm:$0x1] }
 0x407   : > { %v6312_v37 = vadd.f32 %v6280_v4, %v6182_v29  ;;  %v7171_v60 = vrot.slane %v7063_v50, 1  ;;  %v5599_v10 = vmul.f32 %v11699_v39, %v11538_v1  ;;  %v5703_v44 = vmul.f32 %v11711_v26, %v11538_v1 }
 0x408   : > { %v7173_v32 = vrot.slane %v7064_v42, 1  ;;  %v7445_v19 = vrot.slane %v7337_v23, 2  ;;  %v7447_v63 = vrot.slane %v7338_v5, 2  ;;  %v5948_v62 = vunpack.c.l.bf16 %v5932_v18 }
 0x409   : > { %v6586_v24 = vadd.f32 %v6495_v45, %v6312_v37  ;;  %v5812_v46 = vrot.slane %v5703_v44, 1  ;;  %v6245_v31 = vunpack.c.l.bf16 %v11840_v56  ;;  %v6627_v38 = vunpack.c.l.bf16 %v6611_v27 }
 0x40a   : > { %v7174_v13 = vsel %vm5781_vm9, %v7171_v60, %v7173_v32  ;;  %v7448_v4 = vsel %vm6056_vm0, %v7445_v19, %v7447_v63  ;;  %v5978_v58 = vmul.f32 %v11718_v7, %v5948_v62  ;;  %v6958_v41 = vmul.f32 %v11812_v28, %v11774_v9  ;;  %v11901_v62 = vld [vmem:[#allocation2 + $0x6c] sm:$0xff]  }
 0x40b   : > { %v6860_v1 = vadd.f32 %v6769_v0, %v6586_v24  ;;  %v5814_v40 = vsel %vm5781_vm9, %v5812_v46, %v5813_v3  ;;  %v6279_v53 = vmul.f32 %v11785_v20, %v6245_v31  ;;  %v6383_v2 = vmul.f32 %v11724_v55, %v6245_v31 }
 0x40c   : > { %v5906_v56 = vadd.f32 %v5814_v40, %v5599_v10  ;;  %v6087_v29 = vrot.slane %v5978_v58, 2  ;;  %v6657_v45 = vmul.f32 %v11798_v33, %v6627_v38  ;;  %v7062_v50 = vmul.f32 %v11748_v54, %v11774_v9  ;;  %v6339_v58 = vld [vmem:[#allocation2 + $0x74] sm:$0x1] }
 0x40d   : > { %v6991_v18 = vadd.f32 %v6959_v61, %v6860_v1  ;;  %v6491_v42 = vrot.slane %v6383_v2, 1  ;;  %v7306_v23 = vunpack.c.l.bf16 %v7290_v14  ;;  %v5604_v0 = vmul.f32 %v11699_v39, %v11777_v21 }
 0x40e   : > { %v6089_v3 = vsel %vm6056_vm0, %v6087_v29, %v6088_v17  ;;  %v6765_v5 = vrot.slane %v6657_v45, 2  ;;  %v7170_v27 = vrot.slane %v7062_v50, 1  ;;  %v5675_v37 = vunpack.c.l.bf16 %v5659_v6 }
 0x40f   : > { %v7265_v44 = vadd.f32 %v7174_v13, %v6991_v18  ;;  %v6181_v32 = vadd.f32 %v6089_v3, %v5906_v56  ;;  %v6493_v10 = vsel %vm5781_vm9, %v6491_v42, %v6492_v30  ;;  %v7336_v63 = vmul.f32 %v11829_v59, %v7306_v23 }
 0x410   : > { %v6767_v61 = vsel %vm6056_vm0, %v6765_v5, %v6766_v34  ;;  %v7172_v24 = vsel %vm5781_vm9, %v7170_v27, %v7171_v60  ;;  %v11907_v46 = vmul.f32 %v11711_v26, %v11777_v21  ;;  %v5711_v17 = vmul.f32 %v11711_v26, %v5675_v37 }
 0x411   : > { %v7539_v31 = vadd.f32 %v7448_v4, %v7265_v44  ;;  %v6311_v38 = vadd.f32 %v6279_v53, %v6181_v32  ;;  %v7444_v13 = vrot.slane %v7336_v63, 2  ;;  %v11912_v30 = vmul.f32 %v11718_v7, %v11777_v21  ;;  %v8996_v53 = vld [vmem:[#allocation2 + $0x78] sm:$0xff]  }
 0x412   : > { %v5823_v14 = vrot.slane %v11907_v46, 1  ;;  %v5825_v1 = vrot.slane %v5711_v17, 1  ;;  %v5986_v34 = vmul.f32 %v11718_v7, %v5675_v37  ;;  %v6250_v60 = vunpack.c.h.bf16 %v11901_v62 }
 0x413   : > { %v7598_v40 = vsel %vm4527_vm4, %v7539_v31, 0.0  ;;  %v6585_v2 = vadd.f32 %v6493_v10, %v6311_v38  ;;  %v7446_v6 = vsel %vm6056_vm0, %v7444_v13, %v7445_v19  ;;  %v6098_v4 = vrot.slane %v11912_v30, 2  ;;  %v7018_v19 = vld [vmem:[#allocation2 + $0x80] sm:$0x1]  ;;  %v7017_v30 = vld [vmem:[#allocation2 + $0x74] sm:$0x1] }
 0x414   : > { %7599 = vadd.xlane.f32.xlu1 %v7598_v40  ;;  %v5826_v56 = vsel %vm5781_vm9, %v5823_v14, %v5825_v1  ;;  %v6100_v29 = vrot.slane %v5986_v34, 2  ;;  %v6284_v45 = vmul.f32 %v11785_v20, %v6250_v60  ;;  %v6355_v50 = vunpack.c.l.bf16 %v6339_v58 }
 0x415   : > { %v6859_v18 = vadd.f32 %v6767_v61, %v6585_v2  ;;  %v5911_v42 = vadd.f32 %v5826_v56, %v5604_v0  ;;  %v11925_v23 = vmul.f32 %v11724_v55, %v6250_v60  ;;  %v11928_v3 = vmul.f32 %v11798_v33, %v6250_v60  ;;  %v5934_v56 = vld [vmem:[#allocation2 + $0x60] sm:$0xe] }
 0x416   : > { %v6101_v5 = vsel %vm6056_vm0, %v6098_v4, %v6100_v29  ;;  %v6391_v27 = vmul.f32 %v11724_v55, %v6355_v50  ;;  %v6665_v37 = vmul.f32 %v11798_v33, %v6355_v50  ;;  %v11935_v44 = vunpack.c.h.bf16 %v8996_v53 }
 0x417   : > { %v6990_v32 = vadd.f32 %v6958_v41, %v6859_v18  ;;  %v6186_v10 = vadd.f32 %v6101_v5, %v5911_v42  ;;  %v6502_v0 = vrot.slane %v11925_v23, 1  ;;  %v6776_v63 = vrot.slane %v11928_v3, 2 }
 0x418   : > { %v6504_v61 = vrot.slane %v6391_v27, 1  ;;  %v6778_v17 = vrot.slane %v6665_v37, 2  ;;  %v6963_v31 = vmul.f32 %v11812_v28, %v11935_v44  ;;  %v7034_v38 = vunpack.c.l.bf16 %v7018_v19 }
 0x419   : > { %v7264_v13 = vadd.f32 %v7172_v24, %v6990_v32  ;;  %v6316_v58 = vadd.f32 %v6284_v45, %v6186_v10  ;;  %v7069_v1 = vmul.f32 %v11748_v54, %v11935_v44  ;;  %v7343_v34 = vmul.f32 %v11829_v59, %v11935_v44  ;;  %v6613_v45 = vld [vmem:[#allocation2 + $0x6c] sm:$0xe]  ;;  %v7292_v10 = vld [vmem:[#allocation2 + $0x78] sm:$0xe] }
 0x41a   : > { %v6505_v41 = vsel %vm5781_vm9, %v6502_v0, %v6504_v61  ;;  %v6779_v60 = vsel %vm6056_vm0, %v6776_v63, %v6778_v17  ;;  %v7070_v40 = vmul.f32 %v11748_v54, %v7034_v38  ;;  %v7344_v2 = vmul.f32 %v11829_v59, %v7034_v38 }
 0x41b   : > { %v7538_v29 = vadd.f32 %v7446_v6, %v7264_v13  ;;  %v6590_v50 = vadd.f32 %v6505_v41, %v6316_v58  ;;  %v7181_v18 = vrot.slane %v7069_v1, 1  ;;  %v7455_v24 = vrot.slane %v7343_v34, 2 }
 0x41c   : > { %v7183_v42 = vrot.slane %v7070_v40, 1  ;;  %v7457_v23 = vrot.slane %v7344_v2, 2  ;;  %v5603_v3 = vmul.f32 %v11699_v39, %v11774_v9  ;;  %v5709_v19 = vmul.f32 %v11711_v26, %v11774_v9 }
 0x41d   : > { %v7595_v5 = vsel %vm4527_vm4, %v7538_v29, 0.0  ;;  %v6864_v27 = vadd.f32 %v6779_v60, %v6590_v50  ;;  %v5950_v37 = vunpack.c.l.bf16 %v5934_v56  ;;  %v6249_v32 = vunpack.c.l.bf16 %v11901_v62 }
 0x41e   : > { %7596 = vadd.xlane.f32.xlu0 %v7595_v5  ;;  %v7184_v6 = vsel %vm5781_vm9, %v7181_v18, %v7183_v42  ;;  %v7458_v61 = vsel %vm6056_vm0, %v7455_v24, %v7457_v23  ;;  %v5822_v17 = vrot.slane %v5709_v19, 1  ;;  %v6629_v38 = vunpack.c.l.bf16 %v6613_v45  ;;  %v5658_v42 = vld [vmem:[#allocation2 + $0x5c] sm:$0x1] }
 0x41f   : > { %v6995_v13 = vadd.f32 %v6963_v31, %v6864_v27  ;;  %v5984_v58 = vmul.f32 %v11718_v7, %v5950_v37  ;;  %v6283_v1 = vmul.f32 %v11785_v20, %v6249_v32  ;;  %v6389_v9 = vmul.f32 %v11724_v55, %v6249_v32 }
 0x420   : > { %v5824_v34 = vsel %vm5781_vm9, %v5822_v17, %v5823_v14  ;;  %v6663_v62 = vmul.f32 %v11798_v33, %v6629_v38  ;;  %v11964_v41 = vunpack.c.l.bf16 %v8996_v53  ;;  %v7308_v60 = vunpack.c.l.bf16 %v7292_v10  ;;  %v6338_v14 = vld [vmem:[#allocation2 + $0x68] sm:$0x1] }
 0x421   : > { %v7269_v40 = vadd.f32 %v7184_v6, %v6995_v13  ;;  %v5910_v2 = vadd.f32 %v5824_v34, %v5603_v3  ;;  %v6097_v56 = vrot.slane %v5984_v58, 2  ;;  %v6501_v29 = vrot.slane %v6389_v9, 1 }
 0x422   : > { %v6775_v31 = vrot.slane %v6663_v62, 2  ;;  %v6962_v50 = vmul.f32 %v11812_v28, %v11964_v41  ;;  %v7068_v45 = vmul.f32 %v11748_v54, %v11964_v41  ;;  %v7342_v46 = vmul.f32 %v11829_v59, %v7308_v60 }
 0x423   : > { %v7543_v23 = vadd.f32 %v7458_v61, %v7269_v40  ;;  %v6099_v53 = vsel %vm6056_vm0, %v6097_v56, %v6098_v4  ;;  %v6503_v3 = vsel %vm5781_vm9, %v6501_v29, %v6502_v0  ;;  %v5602_v19 = vmul.f32 %v11699_v39, %v11734_v36 }
 0x424   : > { %v6185_v5 = vadd.f32 %v6099_v53, %v5910_v2  ;;  %v6777_v27 = vsel %vm6056_vm0, %v6775_v31, %v6776_v63  ;;  %v7180_v37 = vrot.slane %v7068_v45, 1  ;;  %v7454_v32 = vrot.slane %v7342_v46, 2  ;;  %v5936_v31 = vld [vmem:[#allocation2 + $0x78] sm:$0xe] }
 0x425   : > { %v7610_v10 = vsel %vm4527_vm4, %v7543_v23, 0.0  ;;  %v5674_v6 = vunpack.c.l.bf16 %v5658_v42  ;;  %v6282_v61 = vmul.f32 %v11785_v20, %v11777_v21  ;;  %v6354_v17 = vunpack.c.l.bf16 %v6338_v14 }
 0x426   : > { %7611 = vadd.xlane.f32.xlu2 %v7610_v10  ;;  %v6315_v4 = vadd.f32 %v6283_v1, %v6185_v5  ;;  %v7182_v0 = vsel %vm5781_vm9, %v7180_v37, %v7181_v18  ;;  %v7456_v38 = vsel %vm6056_vm0, %v7454_v32, %v7455_v24  ;;  %v11985_v36 = vmul.f32 %v11812_v28, %v11805_v8 }
 0x427   : > { %v5708_v63 = vmul.f32 %v11711_v26, %v5674_v6  ;;  %v5983_v13 = vmul.f32 %v11718_v7, %v5674_v6  ;;  %v6388_v58 = vmul.f32 %v11724_v55, %v6354_v17  ;;  %v6662_v21 = vmul.f32 %v11798_v33, %v6354_v17 }
 0x428   : > { %v6589_v9 = vadd.f32 %v6503_v3, %v6315_v4  ;;  %v7033_v34 = vunpack.c.l.bf16 %v7017_v30  ;;  %v5607_v1 = vmul.f32 %v11699_v39, %v11964_v41  ;;  %v5715_v18 = vmul.f32 %v11711_v26, %v11964_v41 }
 0x429   : > { %v5820_v24 = vrot.slane %v5708_v63, 1  ;;  %v6095_v62 = vrot.slane %v5983_v13, 2  ;;  %v6499_v8 = vrot.slane %v6388_v58, 1  ;;  %v6773_v60 = vrot.slane %v6662_v21, 2 }
 0x42a   : > { %v6863_v40 = vadd.f32 %v6777_v27, %v6589_v9  ;;  %v7067_v2 = vmul.f32 %v11748_v54, %v7033_v34  ;;  %v7341_v56 = vmul.f32 %v11829_v59, %v7033_v34  ;;  %v11999_v29 = vmul.f32 %v11711_v26, %v11935_v44  ;;  %v6221_v27 = vld [vmem:[#allocation2 + $0x84] sm:$0xff]  }
 0x42b   : > { %v5821_v45 = vsel %vm5781_vm9, %v5818_v52, %v5820_v24  ;;  %v6096_v46 = vsel %vm6056_vm0, %v6093_v15, %v6095_v62  ;;  %v6500_v42 = vsel %vm5781_vm9, %v6497_v12, %v6499_v8  ;;  %v6774_v14 = vsel %vm6056_vm0, %v6771_v48, %v6773_v60  ;;  %v6615_v48 = vld [vmem:[#allocation2 + $0x84] sm:$0xe] }
 0x42c   : > { %v6994_v23 = vadd.f32 %v6962_v50, %v6863_v40  ;;  %v5909_v53 = vadd.f32 %v5821_v45, %v5602_v19  ;;  %v7178_v3 = vrot.slane %v7067_v2, 1  ;;  %v7452_v5 = vrot.slane %v7341_v56, 2 }
 0x42d   : > { %v5832_v11 = vrot.slane %v5715_v18, 1  ;;  %v5833_v52 = vrot.slane %v11999_v29, 1  ;;  %v5952_v37 = vunpack.c.l.bf16 %v5936_v31  ;;  %v12016_v25 = vmul.f32 %v11718_v7, %v11935_v44  ;;  %v12056_v31 = vld [vmem:[#allocation2 + $0x6c] sm:$0xff]  }
 0x42e   : > { %v7268_v15 = vadd.f32 %v7182_v0, %v6994_v23  ;;  %v6184_v22 = vadd.f32 %v6096_v46, %v5909_v53  ;;  %v7179_v49 = vsel %vm5781_vm9, %v7176_v35, %v7178_v3  ;;  %v7453_v12 = vsel %vm6056_vm0, %v7450_v47, %v7452_v5  ;;  %v8997_v35 = vld [vmem:[#allocation2 + $0x90] sm:$0xff]  }
 0x42f   : > { %v5834_v50 = vsel %vm5781_vm9, %v5832_v11, %v5833_v52  ;;  %v5990_v19 = vmul.f32 %v11718_v7, %v5952_v37  ;;  %v6108_v32 = vrot.slane %v12016_v25, 2  ;;  %v6253_v10 = vunpack.c.l.bf16 %v6221_v27  ;;  %v5660_v23 = vld [vmem:[#allocation2 + $0x74] sm:$0x1] }
 0x430   : > { %v7542_v6 = vadd.f32 %v7456_v38, %v7268_v15  ;;  %v6314_v17 = vadd.f32 %v6282_v61, %v6184_v22  ;;  %v5914_v30 = vadd.f32 %v5834_v50, %v5607_v1  ;;  %v12029_v57 = vunpack.c.h.bf16 %v6221_v27  ;;  %v7294_v1 = vld [vmem:[#allocation2 + $0x90] sm:$0xe] }
 0x431   : > { %v6107_v4 = vrot.slane %v5990_v19, 2  ;;  %v6287_v43 = vmul.f32 %v11785_v20, %v6253_v10  ;;  %v6395_v47 = vmul.f32 %v11724_v55, %v6253_v10  ;;  %v6631_v0 = vunpack.c.l.bf16 %v6615_v48 }
 0x432   : > { %v7607_v63 = vsel %vm4527_vm4, %v7542_v6, 0.0  ;;  %v6588_v13 = vadd.f32 %v6500_v42, %v6314_v17  ;;  %v12036_v58 = vmul.f32 %v11724_v55, %v12029_v57  ;;  %v12040_v61 = vmul.f32 %v11798_v33, %v12029_v57 }
 0x433   : > { %7608 = vadd.xlane.f32.xlu1 %v7607_v63  ;;  %v6109_v38 = vsel %vm6056_vm0, %v6107_v4, %v6108_v32  ;;  %v6511_v21 = vrot.slane %v6395_v47, 1  ;;  %v6669_v9 = vmul.f32 %v11798_v33, %v6631_v0  ;;  %v12046_v34 = vunpack.c.l.bf16 %v8997_v35 }
 0x434   : > { %v6862_v18 = vadd.f32 %v6774_v14, %v6588_v13  ;;  %v6189_v24 = vadd.f32 %v6109_v38, %v5914_v30  ;;  %v6512_v62 = vrot.slane %v12036_v58, 1  ;;  %v6786_v8 = vrot.slane %v12040_v61, 2  ;;  %v12095_v38 = vld [vmem:[#allocation2 + $0x84] sm:$0xff]  }
 0x435   : > { %v6785_v60 = vrot.slane %v6669_v9, 2  ;;  %v12050_v40 = vunpack.c.h.bf16 %v8997_v35  ;;  %v6966_v2 = vmul.f32 %v11812_v28, %v12046_v34  ;;  %v7074_v56 = vmul.f32 %v11748_v54, %v12046_v34  ;;  %v6340_v35 = vld [vmem:[#allocation2 + $0x80] sm:$0x1] }
 0x436   : > { %v6993_v45 = vadd.f32 %v11985_v36, %v6862_v18  ;;  %v6319_v46 = vadd.f32 %v6287_v43, %v6189_v24  ;;  %v6513_v42 = vsel %vm5781_vm9, %v6511_v21, %v6512_v62  ;;  %v7310_v14 = vunpack.c.l.bf16 %v7294_v1 }
 0x437   : > { %v6787_v53 = vsel %vm6056_vm0, %v6785_v60, %v6786_v8  ;;  %v12067_v3 = vmul.f32 %v11748_v54, %v12050_v40  ;;  %v7190_v5 = vrot.slane %v7074_v56, 1  ;;  %v12071_v27 = vmul.f32 %v11829_v59, %v12050_v40 }
 0x438   : > { %v7267_v36 = vadd.f32 %v7179_v49, %v6993_v45  ;;  %v6593_v11 = vadd.f32 %v6513_v42, %v6319_v46  ;;  %v7348_v37 = vmul.f32 %v11829_v59, %v7310_v14  ;;  %v5572_v15 = vunpack.c.h.bf16 %v12056_v31 }
 0x439   : > { %v7191_v22 = vrot.slane %v12067_v3, 1  ;;  %v7465_v48 = vrot.slane %v12071_v27, 2  ;;  %v5676_v50 = vunpack.c.l.bf16 %v5660_v23  ;;  %v6286_v19 = vmul.f32 %v11785_v20, %v11935_v44  ;;  %v7019_v23 = vld [vmem:[#allocation2 + $0x8c] sm:$0x1] }
 0x43a   : > { %v7541_v10 = vadd.f32 %v7453_v12, %v7267_v36  ;;  %v6867_v6 = vadd.f32 %v6787_v53, %v6593_v11  ;;  %v7464_v17 = vrot.slane %v7348_v37, 2  ;;  %v5606_v30 = vmul.f32 %v11699_v39, %v5572_v15 }
 0x43b   : > { %v7192_v49 = vsel %vm5781_vm9, %v7190_v5, %v7191_v22  ;;  %v12084_v4 = vmul.f32 %v11711_v26, %v5572_v15  ;;  %v5714_v43 = vmul.f32 %v11711_v26, %v5676_v50  ;;  %v12088_v47 = vmul.f32 %v11718_v7, %v5572_v15 }
 0x43c   : > { %v7604_v0 = vsel %vm4527_vm4, %v7541_v10, 0.0  ;;  %v6998_v12 = vadd.f32 %v6966_v2, %v6867_v6  ;;  %v7466_v63 = vsel %vm6056_vm0, %v7464_v17, %v7465_v48  ;;  %v5989_v13 = vmul.f32 %v11718_v7, %v5676_v50 }
 0x43d   : > { %7605 = vadd.xlane.f32.xlu0 %v7604_v0  ;;  %v5828_v21 = vrot.slane %v12084_v4, 1  ;;  %v5830_v9 = vrot.slane %v5714_v43, 1  ;;  %v6103_v1 = vrot.slane %v12088_v47, 2  ;;  %v6356_v18 = vunpack.c.l.bf16 %v6340_v35  ;;  %v5935_v4 = vld [vmem:[#allocation2 + $0x6c] sm:$0xe] }
 0x43e   : > { %v7272_v24 = vadd.f32 %v7192_v49, %v6998_v12  ;;  %v6105_v60 = vrot.slane %v5989_v13, 2  ;;  %v6393_v2 = vmul.f32 %v11724_v55, %v11935_v44  ;;  %v12103_v56 = vmul.f32 %v11798_v33, %v11935_v44 }
 0x43f   : > { %v5831_v45 = vsel %vm5781_vm9, %v5828_v21, %v5830_v9  ;;  %v6394_v46 = vmul.f32 %v11724_v55, %v6356_v18  ;;  %v6668_v42 = vmul.f32 %v11798_v33, %v6356_v18  ;;  %v6931_v14 = vunpack.c.h.bf16 %v12095_v38  ;;  %v6614_v18 = vld [vmem:[#allocation2 + $0x78] sm:$0xe] }
 0x440   : > { %v7546_v53 = vadd.f32 %v7466_v63, %v7272_v24  ;;  %v5913_v5 = vadd.f32 %v5831_v45, %v5606_v30  ;;  %v6106_v36 = vsel %vm6056_vm0, %v6103_v1, %v6105_v60  ;;  %v6507_v11 = vrot.slane %v6393_v2, 1 }
 0x441   : > { %v6509_v37 = vrot.slane %v6394_v46, 1  ;;  %v6781_v15 = vrot.slane %v12103_v56, 2  ;;  %v6783_v50 = vrot.slane %v6668_v42, 2  ;;  %v6965_v10 = vmul.f32 %v11812_v28, %v6931_v14 }
 0x442   : > { %v7619_v6 = vsel %vm4527_vm4, %v7546_v53, 0.0  ;;  %v6188_v17 = vadd.f32 %v6106_v36, %v5913_v5  ;;  %v7035_v35 = vunpack.c.l.bf16 %v7019_v23  ;;  %v7072_v49 = vmul.f32 %v11748_v54, %v6931_v14 }
 0x443   : > { %7620 = vadd.xlane.f32.xlu2 %v7619_v6  ;;  %v6510_v43 = vsel %vm5781_vm9, %v6507_v11, %v6509_v37  ;;  %v6784_v30 = vsel %vm6056_vm0, %v6781_v15, %v6783_v50  ;;  %v12117_v47 = vmul.f32 %v11829_v59, %v6931_v14  ;;  %v5571_v0 = vunpack.c.l.bf16 %v12056_v31  ;;  %v7293_v6 = vld [vmem:[#allocation2 + $0x84] sm:$0xe] }
 0x444   : > { %v6318_v12 = vadd.f32 %v6286_v19, %v6188_v17  ;;  %v7073_v63 = vmul.f32 %v11748_v54, %v7035_v35  ;;  %v7186_v13 = vrot.slane %v7072_v49, 1  ;;  %v7347_v9 = vmul.f32 %v11829_v59, %v7035_v35 }
 0x445   : > { %v7460_v24 = vrot.slane %v12117_v47, 2  ;;  %v5605_v60 = vmul.f32 %v11699_v39, %v5571_v0  ;;  %v5712_v2 = vmul.f32 %v11711_v26, %v5571_v0  ;;  %v5951_v56 = vunpack.c.l.bf16 %v5935_v4 }
 0x446   : > { %v6592_v45 = vadd.f32 %v6510_v43, %v6318_v12  ;;  %v7188_v46 = vrot.slane %v7073_v63, 1  ;;  %v7462_v42 = vrot.slane %v7347_v9, 2  ;;  %v6285_v31 = vmul.f32 %v11785_v20, %v11964_v41  ;;  %v12135_v43 = vld [vmem:[#allocation2 + $0x84] sm:$0xff]   ;;  %v5662_v12 = vld [vmem:[#allocation2 + $0x8c] sm:$0x1] }
 0x447   : > { %v5827_v19 = vrot.slane %v5712_v2, 1  ;;  %v5987_v14 = vmul.f32 %v11718_v7, %v5951_v56  ;;  %v6392_v23 = vmul.f32 %v11724_v55, %v11964_v41  ;;  %v6630_v53 = vunpack.c.l.bf16 %v6614_v18 }
 0x448   : > { %v6866_v5 = vadd.f32 %v6784_v30, %v6592_v45  ;;  %v7189_v36 = vsel %vm5781_vm9, %v7186_v13, %v7188_v46  ;;  %v7463_v37 = vsel %vm6056_vm0, %v7460_v24, %v7462_v42  ;;  %v6930_v50 = vunpack.c.l.bf16 %v12095_v38 }
 0x449   : > { %v5829_v17 = vsel %vm5781_vm9, %v5827_v19, %v5828_v21  ;;  %v6102_v35 = vrot.slane %v5987_v14, 2  ;;  %v6506_v49 = vrot.slane %v6392_v23, 1  ;;  %v6666_v4 = vmul.f32 %v11798_v33, %v6630_v53  ;;  %v6342_v19 = vld [vmem:[#allocation2 + $0x98] sm:$0x1] }
 0x44a   : > { %v6997_v47 = vadd.f32 %v6965_v10, %v6866_v5  ;;  %v5912_v0 = vadd.f32 %v5829_v17, %v5605_v60  ;;  %v6964_v41 = vmul.f32 %v11812_v28, %v6930_v50  ;;  %v7071_v30 = vmul.f32 %v11748_v54, %v6930_v50 }
 0x44b   : > { %v6104_v63 = vsel %vm6056_vm0, %v6102_v35, %v6103_v1  ;;  %v6508_v38 = vsel %vm5781_vm9, %v6506_v49, %v6507_v11  ;;  %v6780_v9 = vrot.slane %v6666_v4, 2  ;;  %v7309_v18 = vunpack.c.l.bf16 %v7293_v6 }
 0x44c   : > { %v7271_v21 = vadd.f32 %v7189_v36, %v6997_v47  ;;  %v6187_v2 = vadd.f32 %v6104_v63, %v5912_v0  ;;  %v7185_v56 = vrot.slane %v7071_v30, 1  ;;  %v5576_v45 = vunpack.c.h.bf16 %v12135_v43 }
 0x44d   : > { %v6782_v46 = vsel %vm6056_vm0, %v6780_v9, %v6781_v15  ;;  %v7345_v10 = vmul.f32 %v11829_v59, %v7309_v18  ;;  %v5678_v60 = vunpack.c.l.bf16 %v5662_v12  ;;  %v6290_v42 = vmul.f32 %v11785_v20, %v12050_v40 }
 0x44e   : > { %v7545_v14 = vadd.f32 %v7463_v37, %v7271_v21  ;;  %v6317_v1 = vadd.f32 %v6285_v31, %v6187_v2  ;;  %v7187_v11 = vsel %vm5781_vm9, %v7185_v56, %v7186_v13  ;;  %v5610_v23 = vmul.f32 %v11699_v39, %v5576_v45  ;;  %v12157_v31 = vld [vmem:[#allocation2 + $0x9c] sm:$0xff]  }
 0x44f   : > { %v7459_v53 = vrot.slane %v7345_v10, 2  ;;  %v12149_v5 = vmul.f32 %v11711_v26, %v5576_v45  ;;  %v5720_v36 = vmul.f32 %v11711_v26, %v5678_v60  ;;  %v12153_v15 = vmul.f32 %v11718_v7, %v5576_v45 }
 0x450   : > { %v7616_v50 = vsel %vm4527_vm4, %v7545_v14, 0.0  ;;  %v6591_v6 = vadd.f32 %v6508_v38, %v6317_v1  ;;  %v5995_v17 = vmul.f32 %v11718_v7, %v5678_v60  ;;  %v6358_v37 = vunpack.c.l.bf16 %v6342_v19  ;;  %v7021_v38 = vld [vmem:[#allocation2 + $0xa4] sm:$0x1] }
 0x451   : > { %7617 = vadd.xlane.f32.xlu1 %v7616_v50  ;;  %v7461_v39 = vsel %vm6056_vm0, %v7459_v53, %v7460_v24  ;;  %v5838_v13 = vrot.slane %v12149_v5, 1  ;;  %v5840_v35 = vrot.slane %v5720_v36, 1  ;;  %v6113_v49 = vrot.slane %v12153_v15, 2  ;;  %v5937_v5 = vld [vmem:[#allocation2 + $0x84] sm:$0xe] }
 0x452   : > { %v6865_v4 = vadd.f32 %v6782_v46, %v6591_v6  ;;  %v6115_v47 = vrot.slane %v5995_v17, 2  ;;  %v6399_v0 = vmul.f32 %v11724_v55, %v12050_v40  ;;  %v6400_v30 = vmul.f32 %v11724_v55, %v6358_v37 }
 0x453   : > { %v5841_v7 = vsel %vm5781_vm9, %v5838_v13, %v5840_v35  ;;  %v12168_v12 = vmul.f32 %v11798_v33, %v12050_v40  ;;  %v6674_v24 = vmul.f32 %v11798_v33, %v6358_v37  ;;  %v6935_v63 = vunpack.c.h.bf16 %v12157_v31  ;;  %v12190_v35 = vld [vmem:[%s12849_s2] ss:$0 sm:$0xff] }
 0x454   : > { %v6996_v9 = vadd.f32 %v6964_v41, %v6865_v4  ;;  %v5917_v18 = vadd.f32 %v5841_v7, %v5610_v23  ;;  %v6116_v21 = vsel %vm6056_vm0, %v6113_v49, %v6115_v47  ;;  %v6517_v2 = vrot.slane %v6399_v0, 1 }
 0x455   : > { %v6519_v56 = vrot.slane %v6400_v30, 1  ;;  %v6791_v55 = vrot.slane %v12168_v12, 2  ;;  %v6793_v45 = vrot.slane %v6674_v24, 2  ;;  %v6969_v46 = vmul.f32 %v11812_v28, %v6935_v63 }
 0x456   : > { %v7270_v10 = vadd.f32 %v7187_v11, %v6996_v9  ;;  %v6192_v60 = vadd.f32 %v6116_v21, %v5917_v18  ;;  %v7037_v19 = vunpack.c.l.bf16 %v7021_v38  ;;  %v7078_v14 = vmul.f32 %v11748_v54, %v6935_v63  ;;  %v12208_v18 = vld [vmem:[%s12849_s2 + $0x2] ss:$0 sm:$0xff] }
 0x457   : > { %v6520_v1 = vsel %vm5781_vm9, %v6517_v2, %v6519_v56  ;;  %v6794_v41 = vsel %vm6056_vm0, %v6791_v55, %v6793_v45  ;;  %v12181_v23 = vmul.f32 %v11829_v59, %v6935_v63  ;;  %v5575_v53 = vunpack.c.l.bf16 %v12135_v43  ;;  %v6616_v43 = vld [vmem:[#allocation2 + $0x90] sm:$0xe]  ;;  %v12200_v63 = vld [vmem:[%s12849_s2 + $0x4] ss:$0 sm:$0xff]  ;;  %v7295_v45 = vld [vmem:[#allocation2 + $0x9c] sm:$0xe] }
 0x458   : > { %v7544_v36 = vadd.f32 %v7461_v39, %v7270_v10  ;;  %v6322_v50 = vadd.f32 %v6290_v42, %v6192_v60  ;;  %v7079_v6 = vmul.f32 %v11748_v54, %v7037_v19  ;;  %v7196_v17 = vrot.slane %v7078_v14, 1 }
 0x459   : > { %v7353_v11 = vmul.f32 %v11829_v59, %v7037_v19  ;;  %v7470_v37 = vrot.slane %v12181_v23, 2  ;;  %v5609_v4 = vmul.f32 %v12190_v35, %v5575_v53  ;;  %v5718_v47 = vmul.f32 %v11711_v26, %v5575_v53 }
 0x45a   : > { %v7613_v39 = vsel %vm4527_vm4, %v7544_v36, 0.0  ;;  %v6596_v42 = vadd.f32 %v6520_v1, %v6322_v50  ;;  %v7198_v0 = vrot.slane %v7079_v6, 1  ;;  %v5953_v30 = vunpack.c.l.bf16 %v5937_v5  ;;  %v5661_v5 = vld [vmem:[#allocation2 + $0x80] sm:$0x1] }
 0x45b   : > { %7614 = vadd.xlane.f32.xlu0 %v7613_v39  ;;  %v7472_v7 = vrot.slane %v7353_v11, 2  ;;  %v5837_v12 = vrot.slane %v5718_v47, 1  ;;  %v6289_v24 = vmul.f32 %v11785_v20, %v12046_v34  ;;  %v6398_v26 = vmul.f32 %v12200_v63, %v12046_v34  ;;  %v6341_v47 = vld [vmem:[#allocation2 + $0x8c] sm:$0x1] }
 0x45c   : > { %v6870_v38 = vadd.f32 %v6794_v41, %v6596_v42  ;;  %v7199_v9 = vsel %vm5781_vm9, %v7196_v17, %v7198_v0  ;;  %v5993_v21 = vmul.f32 %v12208_v18, %v5953_v30  ;;  %v6632_v56 = vunpack.c.l.bf16 %v6616_v43 }
 0x45d   : > { %v7473_v10 = vsel %vm6056_vm0, %v7470_v37, %v7472_v7  ;;  %v5839_v60 = vsel %vm5781_vm9, %v5837_v12, %v5838_v13  ;;  %v6516_v19 = vrot.slane %v6398_v26, 1  ;;  %v6934_v14 = vunpack.c.l.bf16 %v12157_v31 }
 0x45e   : > { %v7001_v1 = vadd.f32 %v6969_v46, %v6870_v38  ;;  %v5916_v41 = vadd.f32 %v5839_v60, %v5609_v4  ;;  %v6112_v23 = vrot.slane %v5993_v21, 2  ;;  %v6672_v53 = vmul.f32 %v11798_v33, %v6632_v56  ;;  %v7020_v38 = vld [vmem:[#allocation2 + $0x98] sm:$0x1] }
 0x45f   : > { %v6518_v36 = vsel %vm5781_vm9, %v6516_v19, %v6517_v2  ;;  %v6968_v50 = vmul.f32 %v11812_v28, %v6934_v14  ;;  %v7077_v6 = vmul.f32 %v11748_v54, %v6934_v14  ;;  %v7311_v11 = vunpack.c.l.bf16 %v7295_v45 }
 0x460   : > { %v7275_v43 = vadd.f32 %v7199_v9, %v7001_v1  ;;  %v6114_v13 = vsel %vm6056_vm0, %v6112_v23, %v6113_v49  ;;  %v6790_v31 = vrot.slane %v6672_v53, 2  ;;  %v5608_v46 = vmul.f32 %v12190_v35, %v11935_v44  ;;  %v12231_v44 = vld [vmem:[%s12849_s2 + $0x1] ss:$0 sm:$0xff]  ;;  %v5939_v53 = vld [vmem:[#allocation2 + $0x9c] sm:$0xe] }
 0x461   : > { %v6191_v4 = vadd.f32 %v6114_v13, %v5916_v41  ;;  %v7195_v39 = vrot.slane %v7077_v6, 1  ;;  %v7351_v42 = vmul.f32 %v11829_v59, %v7311_v11  ;;  %v5677_v2 = vunpack.c.l.bf16 %v5661_v5  ;;  %v8991_v13 = vld [vmem:[#allocation2 + $0xa8] sm:$0xff]  }
 0x462   : > { %v7549_v0 = vadd.f32 %v7473_v10, %v7275_v43  ;;  %v6792_v30 = vsel %vm6056_vm0, %v6790_v31, %v6791_v55  ;;  %v6288_v54 = vmul.f32 %v11785_v20, %v12029_v57  ;;  %v6357_v7 = vunpack.c.l.bf16 %v6341_v47  ;;  %v5547_v57 = vld [vmem:[#allocation2 + $0x9c] sm:$0xff]  }
 0x463   : > { %v6321_v12 = vadd.f32 %v6289_v24, %v6191_v4  ;;  %v7197_v15 = vsel %vm5781_vm9, %v7195_v39, %v7196_v17  ;;  %v7469_v49 = vrot.slane %v7351_v42, 2  ;;  %v5717_v26 = vmul.f32 %v12231_v44, %v5677_v2  ;;  %v6618_v39 = vld [vmem:[#allocation2 + $0xa8] sm:$0xe] }
 0x464   : > { %v7628_v9 = vsel %vm4527_vm4, %v7549_v0, 0.0  ;;  %v5992_v55 = vmul.f32 %v12208_v18, %v5677_v2  ;;  %v6397_v21 = vmul.f32 %v12200_v63, %v6357_v7  ;;  %v6671_v20 = vmul.f32 %v11798_v33, %v6357_v7 }
 0x465   : > { %7629 = vadd.xlane.f32.xlu2 %v7628_v9  ;;  %v6595_v17 = vadd.f32 %v6518_v36, %v6321_v12  ;;  %v7471_v24 = vsel %vm6056_vm0, %v7469_v49, %v7470_v37  ;;  %v5835_v56 = vrot.slane %v5717_v26, 1  ;;  %v6967_v45 = vmul.f32 %v11812_v28, %v12050_v40  ;;  %v12295_v9 = vld [vmem:[%s12849_s2 + $0x3] ss:$0 sm:$0xff] }
 0x466   : > { %v6110_v10 = vrot.slane %v5992_v55, 2  ;;  %v6514_v60 = vrot.slane %v6397_v21, 1  ;;  %v6788_v19 = vrot.slane %v6671_v20, 2  ;;  %v7036_v14 = vunpack.c.l.bf16 %v7020_v38  ;;  %v6906_v38 = vld [vmem:[#allocation2 + $0xb4] sm:$0xff]  }
 0x467   : > { %v6869_v1 = vadd.f32 %v6792_v30, %v6595_v17  ;;  %v5836_v41 = vsel %vm5781_vm9, %v5833_v52, %v5835_v56  ;;  %v5579_v23 = vunpack.c.l.bf16 %v5547_v57  ;;  %v12244_v33 = vunpack.c.h.bf16 %v5547_v57  ;;  %v12258_v52 = vld [vmem:[%s12849_s2 + $0x7] ss:$0 sm:$0xff]  ;;  %v12308_v17 = vld [vmem:[%s12849_s2 + $0x5] ss:$0 sm:$0xff] }
 0x468   : > { %v5915_v5 = vadd.f32 %v5836_v41, %v5608_v46  ;;  %v6111_v37 = vsel %vm6056_vm0, %v6108_v32, %v6110_v10  ;;  %v6515_v28 = vsel %vm5781_vm9, %v6512_v62, %v6514_v60  ;;  %v6789_v36 = vsel %vm6056_vm0, %v6786_v8, %v6788_v19 }
 0x469   : > { %v7000_v29 = vadd.f32 %v6968_v50, %v6869_v1  ;;  %v7076_v6 = vmul.f32 %v12258_v52, %v7036_v14  ;;  %v7350_v25 = vmul.f32 %v11829_v59, %v7036_v14  ;;  %v5613_v32 = vmul.f32 %v12190_v35, %v5579_v23  ;;  %v7297_v1 = vld [vmem:[#allocation2 + $0xb4] sm:$0xe] }
 0x46a   : > { %v6190_v11 = vadd.f32 %v6111_v37, %v5915_v5  ;;  %v5724_v58 = vmul.f32 %v12231_v44, %v5579_v23  ;;  %v12266_v61 = vmul.f32 %v12231_v44, %v12244_v33  ;;  %v5955_v62 = vunpack.c.l.bf16 %v5939_v53 }
 0x46b   : > { %v7274_v8 = vadd.f32 %v7197_v15, %v7000_v29  ;;  %v7193_v50 = vrot.slane %v7076_v6, 1  ;;  %v7467_v47 = vrot.slane %v7350_v25, 2  ;;  %v12270_v43 = vmul.f32 %v12208_v18, %v12244_v33  ;;  %v5663_v6 = vld [vmem:[#allocation2 + $0x98] sm:$0x1] }
 0x46c   : > { %v6320_v31 = vadd.f32 %v6288_v54, %v6190_v11  ;;  %v5847_v59 = vrot.slane %v5724_v58, 1  ;;  %v5848_v46 = vrot.slane %v12266_v61, 1  ;;  %v5999_v4 = vmul.f32 %v12208_v18, %v5955_v62  ;;  %v12339_v58 = vld [vmem:[%s12849_s2 + $0x8] ss:$0 sm:$0xff] }
 0x46d   : > { %v7548_v42 = vadd.f32 %v7471_v24, %v7274_v8  ;;  %v7194_v2 = vsel %vm5781_vm9, %v7191_v22, %v7193_v50  ;;  %v7468_v0 = vsel %vm6056_vm0, %v7465_v48, %v7467_v47  ;;  %v6123_v30 = vrot.slane %v12270_v43, 2 }
 0x46e   : > { %v6594_v7 = vadd.f32 %v6515_v28, %v6320_v31  ;;  %v5849_v54 = vsel %vm5781_vm9, %v5847_v59, %v5848_v46  ;;  %v6122_v12 = vrot.slane %v5999_v4, 2  ;;  %v12284_v15 = vunpack.c.l.bf16 %v8991_v13  ;;  %v12322_v28 = vld [vmem:[%s12849_s2 + $0x6] ss:$0 sm:$0xff] }
 0x46f   : > { %v7625_v49 = vsel %vm4527_vm4, %v7548_v42, 0.0  ;;  %v5920_v26 = vadd.f32 %v5849_v54, %v5613_v32  ;;  %v12287_v3 = vunpack.c.h.bf16 %v8991_v13  ;;  %v6634_v22 = vunpack.c.l.bf16 %v6618_v39  ;;  %v12350_v42 = vld [vmem:[#allocation2 + $0x9c] sm:$0xff]  }
 0x470   : > { %7626 = vadd.xlane.f32.xlu1 %v7625_v49  ;;  %v6868_v27 = vadd.f32 %v6789_v36, %v6594_v7  ;;  %v6124_v48 = vsel %vm6056_vm0, %v6122_v12, %v6123_v30  ;;  %v6293_v55 = vmul.f32 %v12295_v9, %v12284_v15  ;;  %v6404_v21 = vmul.f32 %v12200_v63, %v12284_v15 }
 0x471   : > { %v6195_v20 = vadd.f32 %v6124_v48, %v5920_v26  ;;  %v12303_v57 = vmul.f32 %v12200_v63, %v12287_v3  ;;  %v6678_v24 = vmul.f32 %v12308_v17, %v6634_v22  ;;  %v12313_v56 = vmul.f32 %v12308_v17, %v12287_v3 }
 0x472   : > { %v6999_v10 = vadd.f32 %v6967_v45, %v6868_v27  ;;  %v6526_v60 = vrot.slane %v6404_v21, 1  ;;  %v6938_v19 = vunpack.c.l.bf16 %v6906_v38  ;;  %v12315_v14 = vunpack.c.h.bf16 %v6906_v38 }
 0x473   : > { %v6325_v41 = vadd.f32 %v6293_v55, %v6195_v20  ;;  %v6527_v23 = vrot.slane %v12303_v57, 1  ;;  %v6800_v53 = vrot.slane %v6678_v24, 2  ;;  %v6801_v5 = vrot.slane %v12313_v56, 2  ;;  %v6346_v57 = vld [vmem:[#allocation2 + $0xc8] sm:$0x1] }
 0x474   : > { %v7273_v37 = vadd.f32 %v7194_v2, %v6999_v10  ;;  %v6972_v36 = vmul.f32 %v12322_v28, %v6938_v19  ;;  %v7083_v45 = vmul.f32 %v12258_v52, %v6938_v19  ;;  %v12328_v29 = vmul.f32 %v12258_v52, %v12315_v14  ;;  %v6343_v2 = vld [vmem:[#allocation2 + $0xa4] sm:$0x1] }
 0x475   : > { %v6528_v25 = vsel %vm5781_vm9, %v6526_v60, %v6527_v23  ;;  %v6802_v32 = vsel %vm6056_vm0, %v6800_v53, %v6801_v5  ;;  %v7313_v11 = vunpack.c.l.bf16 %v7297_v1  ;;  %v12343_v62 = vmul.f32 %v12339_v58, %v12315_v14  ;;  %v7022_v53 = vld [vmem:[#allocation2 + $0xb0] sm:$0x1] }
 0x476   : > { %v7547_v8 = vadd.f32 %v7468_v0, %v7273_v37  ;;  %v6599_v50 = vadd.f32 %v6528_v25, %v6325_v41  ;;  %v7205_v47 = vrot.slane %v7083_v45, 1  ;;  %v7206_v13 = vrot.slane %v12328_v29, 1 }
 0x477   : > { %v7357_v31 = vmul.f32 %v12339_v58, %v7313_v11  ;;  %v7480_v59 = vrot.slane %v12343_v62, 2  ;;  %v5612_v4 = vmul.f32 %v12190_v35, %v12050_v40  ;;  %v5679_v39 = vunpack.c.l.bf16 %v5663_v6 }
 0x478   : > { %v7622_v7 = vsel %vm4527_vm4, %v7547_v8, 0.0  ;;  %v6873_v54 = vadd.f32 %v6802_v32, %v6599_v50  ;;  %v7207_v0 = vsel %vm5781_vm9, %v7205_v47, %v7206_v13  ;;  %v5722_v12 = vmul.f32 %v12231_v44, %v12050_v40 }
 0x479   : > { %7623 = vadd.xlane.f32.xlu0 %v7622_v7  ;;  %v7479_v49 = vrot.slane %v7357_v31, 2  ;;  %v5723_v26 = vmul.f32 %v12231_v44, %v5679_v39  ;;  %v12361_v22 = vmul.f32 %v12208_v18, %v12050_v40  ;;  %v5998_v38 = vmul.f32 %v12208_v18, %v5679_v39 }
 0x47a   : > { %v7004_v27 = vadd.f32 %v6972_v36, %v6873_v54  ;;  %v5843_v48 = vrot.slane %v5722_v12, 1  ;;  %v6258_v55 = vunpack.c.h.bf16 %v12350_v42  ;;  %v6359_v21 = vunpack.c.l.bf16 %v6343_v2  ;;  %v5938_v12 = vld [vmem:[#allocation2 + $0x90] sm:$0xe] }
 0x47b   : > { %v7481_v20 = vsel %vm6056_vm0, %v7479_v49, %v7480_v59  ;;  %v5845_v24 = vrot.slane %v5723_v26, 1  ;;  %v6118_v10 = vrot.slane %v12361_v22, 2  ;;  %v6120_v60 = vrot.slane %v5998_v38, 2  ;;  %v6617_v38 = vld [vmem:[#allocation2 + $0x9c] sm:$0xe] }
 0x47c   : > { %v7278_v19 = vadd.f32 %v7207_v0, %v7004_v27  ;;  %v6292_v1 = vmul.f32 %v12295_v9, %v6258_v55  ;;  %v12371_v40 = vmul.f32 %v12200_v63, %v6258_v55  ;;  %v6403_v41 = vmul.f32 %v12200_v63, %v6359_v21 }
 0x47d   : > { %v5846_v37 = vsel %vm5781_vm9, %v5843_v48, %v5845_v24  ;;  %v6121_v36 = vsel %vm6056_vm0, %v6118_v10, %v6120_v60  ;;  %v6676_v45 = vmul.f32 %v12308_v17, %v6258_v55  ;;  %v6677_v6 = vmul.f32 %v12308_v17, %v6359_v21 }
 0x47e   : > { %v7552_v25 = vadd.f32 %v7481_v20, %v7278_v19  ;;  %v5919_v32 = vadd.f32 %v5846_v37, %v5612_v4  ;;  %v6522_v11 = vrot.slane %v12371_v40, 1  ;;  %v6524_v8 = vrot.slane %v6403_v41, 1 }
 0x47f   : > { %v6796_v50 = vrot.slane %v6676_v45, 2  ;;  %v6798_v47 = vrot.slane %v6677_v6, 2  ;;  %v6971_v31 = vmul.f32 %v12322_v28, %v12287_v3  ;;  %v7038_v39 = vunpack.c.l.bf16 %v7022_v53 }
 0x480   : > { %v7637_v2 = vsel %vm4527_vm4, %v7552_v25, 0.0  ;;  %v6194_v7 = vadd.f32 %v6121_v36, %v5919_v32  ;;  %v6525_v54 = vsel %vm5781_vm9, %v6522_v11, %v6524_v8  ;;  %v7081_v0 = vmul.f32 %v12258_v52, %v12287_v3  ;;  %v7296_v32 = vld [vmem:[#allocation2 + $0xa8] sm:$0xe] }
 0x481   : > { %7638 = vadd.xlane.f32.xlu2 %v7637_v2  ;;  %v6799_v4 = vsel %vm6056_vm0, %v6796_v50, %v6798_v47  ;;  %v7082_v49 = vmul.f32 %v12258_v52, %v7038_v39  ;;  %v7355_v26 = vmul.f32 %v12339_v58, %v12287_v3  ;;  %v7356_v22 = vmul.f32 %v12339_v58, %v7038_v39  ;;  %v5665_v2 = vld [vmem:[#allocation2 + $0xb0] sm:$0x1] }
 0x482   : > { %v6324_v27 = vadd.f32 %v6292_v1, %v6194_v7  ;;  %v7201_v55 = vrot.slane %v7081_v0, 1  ;;  %v5611_v21 = vmul.f32 %v12190_v35, %v12046_v34  ;;  %v5721_v20 = vmul.f32 %v12231_v44, %v12046_v34 }
 0x483   : > { %v7203_v24 = vrot.slane %v7082_v49, 1  ;;  %v7475_v60 = vrot.slane %v7355_v26, 2  ;;  %v7477_v19 = vrot.slane %v7356_v22, 2  ;;  %v5954_v40 = vunpack.c.l.bf16 %v5938_v12 }
 0x484   : > { %v6598_v41 = vadd.f32 %v6525_v54, %v6324_v27  ;;  %v5842_v53 = vrot.slane %v5721_v20, 1  ;;  %v6257_v37 = vunpack.c.l.bf16 %v12350_v42  ;;  %v6633_v36 = vunpack.c.l.bf16 %v6617_v38 }
 0x485   : > { %v7204_v45 = vsel %vm5781_vm9, %v7201_v55, %v7203_v24  ;;  %v7478_v1 = vsel %vm6056_vm0, %v7475_v60, %v7477_v19  ;;  %v5996_v6 = vmul.f32 %v12208_v18, %v5954_v40  ;;  %v6970_v25 = vmul.f32 %v12322_v28, %v12284_v15  ;;  %v12411_v40 = vld [vmem:[#allocation2 + $0xb4] sm:$0xff]  }
 0x486   : > { %v6872_v34 = vadd.f32 %v6799_v4, %v6598_v41  ;;  %v5844_v8 = vsel %vm5781_vm9, %v5842_v53, %v5843_v48  ;;  %v6291_v47 = vmul.f32 %v12295_v9, %v6257_v37  ;;  %v6401_v39 = vmul.f32 %v12200_v63, %v6257_v37 }
 0x487   : > { %v5918_v42 = vadd.f32 %v5844_v8, %v5611_v21  ;;  %v6117_v7 = vrot.slane %v5996_v6, 2  ;;  %v6675_v54 = vmul.f32 %v12308_v17, %v6633_v36  ;;  %v7080_v0 = vmul.f32 %v12258_v52, %v12284_v15  ;;  %v6345_v6 = vld [vmem:[#allocation2 + $0xbc] sm:$0x1] }
 0x488   : > { %v7003_v12 = vadd.f32 %v6971_v31, %v6872_v34  ;;  %v6521_v49 = vrot.slane %v6401_v39, 1  ;;  %v7312_v26 = vunpack.c.l.bf16 %v7296_v32  ;;  %v5616_v4 = vmul.f32 %v12190_v35, %v12287_v3 }
 0x489   : > { %v6119_v48 = vsel %vm6056_vm0, %v6117_v7, %v6118_v10  ;;  %v6795_v22 = vrot.slane %v6675_v54, 2  ;;  %v7200_v38 = vrot.slane %v7080_v0, 1  ;;  %v5681_v27 = vunpack.c.l.bf16 %v5665_v2 }
 0x48a   : > { %v7277_v20 = vadd.f32 %v7204_v45, %v7003_v12  ;;  %v6193_v24 = vadd.f32 %v6119_v48, %v5918_v42  ;;  %v6523_v21 = vsel %vm5781_vm9, %v6521_v49, %v6522_v11  ;;  %v7354_v19 = vmul.f32 %v12339_v58, %v7312_v26 }
 0x48b   : > { %v6797_v31 = vsel %vm6056_vm0, %v6795_v22, %v6796_v50  ;;  %v7202_v41 = vsel %vm5781_vm9, %v7200_v38, %v7201_v55  ;;  %v12417_v53 = vmul.f32 %v12231_v44, %v12287_v3  ;;  %v5729_v10 = vmul.f32 %v12231_v44, %v5681_v27 }
 0x48c   : > { %v7551_v37 = vadd.f32 %v7478_v1, %v7277_v20  ;;  %v6323_v36 = vadd.f32 %v6291_v47, %v6193_v24  ;;  %v7474_v45 = vrot.slane %v7354_v19, 2  ;;  %v12422_v11 = vmul.f32 %v12208_v18, %v12287_v3  ;;  %v8999_v47 = vld [vmem:[#allocation2 + $0xc0] sm:$0xff]  }
 0x48d   : > { %v5853_v32 = vrot.slane %v12417_v53, 1  ;;  %v5855_v34 = vrot.slane %v5729_v10, 1  ;;  %v6004_v50 = vmul.f32 %v12208_v18, %v5681_v27  ;;  %v6262_v55 = vunpack.c.h.bf16 %v12411_v40  ;;  %v5664_v53 = vld [vmem:[#allocation2 + $0xa4] sm:$0x1] }
 0x48e   : > { %v7634_v8 = vsel %vm4527_vm4, %v7551_v37, 0.0  ;;  %v6597_v39 = vadd.f32 %v6523_v21, %v6323_v36  ;;  %v7476_v2 = vsel %vm6056_vm0, %v7474_v45, %v7475_v60  ;;  %v6128_v1 = vrot.slane %v12422_v11, 2  ;;  %v7024_v60 = vld [vmem:[#allocation2 + $0xc8] sm:$0x1]  ;;  %v7023_v11 = vld [vmem:[#allocation2 + $0xbc] sm:$0x1] }
 0x48f   : > { %7635 = vadd.xlane.f32.xlu1 %v7634_v8  ;;  %v5856_v42 = vsel %vm5781_vm9, %v5853_v32, %v5855_v34  ;;  %v6130_v7 = vrot.slane %v6004_v50, 2  ;;  %v6296_v54 = vmul.f32 %v12295_v9, %v6262_v55  ;;  %v6361_v0 = vunpack.c.l.bf16 %v6345_v6 }
 0x490   : > { %v6871_v12 = vadd.f32 %v6797_v31, %v6597_v39  ;;  %v5923_v49 = vadd.f32 %v5856_v42, %v5616_v4  ;;  %v12435_v26 = vmul.f32 %v12200_v63, %v6262_v55  ;;  %v12438_v48 = vmul.f32 %v12308_v17, %v6262_v55  ;;  %v5940_v42 = vld [vmem:[#allocation2 + $0xa8] sm:$0xe] }
 0x491   : > { %v6131_v22 = vsel %vm6056_vm0, %v6128_v1, %v6130_v7  ;;  %v6409_v38 = vmul.f32 %v12200_v63, %v6361_v0  ;;  %v6683_v27 = vmul.f32 %v12308_v17, %v6361_v0  ;;  %v12445_v20 = vunpack.c.h.bf16 %v8999_v47 }
 0x492   : > { %v7002_v24 = vadd.f32 %v6970_v25, %v6871_v12  ;;  %v6198_v21 = vadd.f32 %v6131_v22, %v5923_v49  ;;  %v6532_v4 = vrot.slane %v12435_v26, 1  ;;  %v6806_v19 = vrot.slane %v12438_v48, 2 }
 0x493   : > { %v6534_v31 = vrot.slane %v6409_v38, 1  ;;  %v6808_v10 = vrot.slane %v6683_v27, 2  ;;  %v6975_v37 = vmul.f32 %v12322_v28, %v12445_v20  ;;  %v7040_v36 = vunpack.c.l.bf16 %v7024_v60 }
 0x494   : > { %v7276_v45 = vadd.f32 %v7202_v41, %v7002_v24  ;;  %v6328_v6 = vadd.f32 %v6296_v54, %v6198_v21  ;;  %v7087_v34 = vmul.f32 %v12258_v52, %v12445_v20  ;;  %v7361_v50 = vmul.f32 %v12339_v58, %v12445_v20  ;;  %v6619_v54 = vld [vmem:[#allocation2 + $0xb4] sm:$0xe]  ;;  %v7298_v21 = vld [vmem:[#allocation2 + $0xc0] sm:$0xe] }
 0x495   : > { %v6535_v25 = vsel %vm5781_vm9, %v6532_v4, %v6534_v31  ;;  %v6809_v55 = vsel %vm6056_vm0, %v6806_v19, %v6808_v10  ;;  %v7088_v8 = vmul.f32 %v12258_v52, %v7040_v36  ;;  %v7362_v39 = vmul.f32 %v12339_v58, %v7040_v36 }
 0x496   : > { %v7550_v7 = vadd.f32 %v7476_v2, %v7276_v45  ;;  %v6602_v0 = vadd.f32 %v6535_v25, %v6328_v6  ;;  %v7211_v12 = vrot.slane %v7087_v34, 1  ;;  %v7485_v41 = vrot.slane %v7361_v50, 2 }
 0x497   : > { %v7213_v49 = vrot.slane %v7088_v8, 1  ;;  %v7487_v26 = vrot.slane %v7362_v39, 2  ;;  %v5615_v48 = vmul.f32 %v12190_v35, %v12284_v15  ;;  %v5727_v60 = vmul.f32 %v12231_v44, %v12284_v15 }
 0x498   : > { %v7631_v22 = vsel %vm4527_vm4, %v7550_v7, 0.0  ;;  %v6876_v38 = vadd.f32 %v6809_v55, %v6602_v0  ;;  %v5956_v27 = vunpack.c.l.bf16 %v5940_v42  ;;  %v6261_v24 = vunpack.c.l.bf16 %v12411_v40 }
 0x499   : > { %7632 = vadd.xlane.f32.xlu0 %v7631_v22  ;;  %v7214_v2 = vsel %vm5781_vm9, %v7211_v12, %v7213_v49  ;;  %v5852_v31 = vrot.slane %v5727_v60, 1  ;;  %v6635_v10 = vunpack.c.l.bf16 %v6619_v54  ;;  %v7488_v45 = vsel %vm6056_vm0, %v7485_v41, %v7487_v26  ;;  %v6344_v49 = vld [vmem:[#allocation2 + $0xb0] sm:$0x1] }
 0x49a   : > { %v7007_v36 = vadd.f32 %v6975_v37, %v6876_v38  ;;  %v6002_v6 = vmul.f32 %v12208_v18, %v5956_v27  ;;  %v6407_v34 = vmul.f32 %v12200_v63, %v6261_v24  ;;  %v12473_v40 = vunpack.c.l.bf16 %v8999_v47 }
 0x49b   : > { %v5854_v15 = vsel %vm5781_vm9, %v5852_v31, %v5853_v32  ;;  %v6681_v50 = vmul.f32 %v12308_v17, %v6635_v10  ;;  %v7314_v25 = vunpack.c.l.bf16 %v7298_v21  ;;  %v6295_v37 = vmul.f32 %v12295_v9, %v6261_v24  ;;  %v12489_v10 = vld [vmem:[#allocation2 + $0xb4] sm:$0xff]  }
 0x49c   : > { %v7281_v55 = vadd.f32 %v7214_v2, %v7007_v36  ;;  %v5922_v8 = vadd.f32 %v5854_v15, %v5615_v48  ;;  %v6127_v39 = vrot.slane %v6002_v6, 2  ;;  %v6531_v42 = vrot.slane %v6407_v34, 1 }
 0x49d   : > { %v6805_v7 = vrot.slane %v6681_v50, 2  ;;  %v7086_v0 = vmul.f32 %v12258_v52, %v12473_v40  ;;  %v7360_v54 = vmul.f32 %v12339_v58, %v7314_v25  ;;  %v6974_v48 = vmul.f32 %v12322_v28, %v12473_v40 }
 0x49e   : > { %v7555_v32 = vadd.f32 %v7488_v45, %v7281_v55  ;;  %v6129_v47 = vsel %vm6056_vm0, %v6127_v39, %v6128_v1  ;;  %v6533_v26 = vsel %vm5781_vm9, %v6531_v42, %v6532_v4  ;;  %v5614_v27 = vmul.f32 %v12190_v35, %v12244_v33  ;;  %v5666_v1 = vld [vmem:[#allocation2 + $0xbc] sm:$0x1] }
 0x49f   : > { %v6197_v60 = vadd.f32 %v6129_v47, %v5922_v8  ;;  %v7210_v22 = vrot.slane %v7086_v0, 1  ;;  %v7484_v38 = vrot.slane %v7360_v54, 2  ;;  %v6807_v21 = vsel %vm6056_vm0, %v6805_v7, %v6806_v19 }
 0x4a0   : > { %v7646_v24 = vsel %vm4527_vm4, %v7555_v32, 0.0  ;;  %v5680_v2 = vunpack.c.l.bf16 %v5664_v53  ;;  %v6360_v31 = vunpack.c.l.bf16 %v6344_v49  ;;  %v6294_v6 = vmul.f32 %v12295_v9, %v12287_v3 }
 0x4a1   : > { %7647 = vadd.xlane.f32.xlu2 %v7646_v24  ;;  %v6327_v4 = vadd.f32 %v6295_v37, %v6197_v60  ;;  %v7212_v36 = vsel %vm5781_vm9, %v7210_v22, %v7211_v12  ;;  %v7486_v45 = vsel %vm6056_vm0, %v7484_v38, %v7485_v41  ;;  %v7039_v25 = vunpack.c.l.bf16 %v7023_v11 }
 0x4a2   : > { %v5726_v33 = vmul.f32 %v12231_v44, %v5680_v2  ;;  %v6001_v34 = vmul.f32 %v12208_v18, %v5680_v2  ;;  %v6406_v19 = vmul.f32 %v12200_v63, %v6360_v31  ;;  %v6680_v15 = vmul.f32 %v12308_v17, %v6360_v31 }
 0x4a3   : > { %v6601_v50 = vadd.f32 %v6533_v26, %v6327_v4  ;;  %v5584_v55 = vunpack.c.h.bf16 %v12489_v10  ;;  %v5682_v8 = vunpack.c.l.bf16 %v5666_v1  ;;  %v6973_v3 = vmul.f32 %v12322_v28, %v12315_v14  ;;  %v12532_v1 = vld [vmem:[#allocation2 + $0xcc] sm:$0xff]  }
 0x4a4   : > { %v5850_v39 = vrot.slane %v5726_v33, 1  ;;  %v6125_v12 = vrot.slane %v6001_v34, 2  ;;  %v6529_v42 = vrot.slane %v6406_v19, 1  ;;  %v6803_v41 = vrot.slane %v6680_v15, 2 }
 0x4a5   : > { %v6875_v37 = vadd.f32 %v6807_v21, %v6601_v50  ;;  %v7085_v7 = vmul.f32 %v12258_v52, %v7039_v25  ;;  %v7359_v0 = vmul.f32 %v12339_v58, %v7039_v25  ;;  %v5618_v32 = vmul.f32 %v12190_v35, %v5584_v55 }
 0x4a6   : > { %v5851_v54 = vsel %vm5781_vm9, %v5848_v46, %v5850_v39  ;;  %v6126_v53 = vsel %vm6056_vm0, %v6123_v30, %v6125_v12  ;;  %v6530_v49 = vsel %vm5781_vm9, %v6527_v23, %v6529_v42  ;;  %v6804_v26 = vsel %vm6056_vm0, %v6801_v5, %v6803_v41 }
 0x4a7   : > { %v7006_v47 = vadd.f32 %v6974_v48, %v6875_v37  ;;  %v5921_v14 = vadd.f32 %v5851_v54, %v5614_v27  ;;  %v7208_v60 = vrot.slane %v7085_v7, 1  ;;  %v12518_v61 = vmul.f32 %v12231_v44, %v5584_v55 }
 0x4a8   : > { %v5732_v43 = vmul.f32 %v12231_v44, %v5682_v8  ;;  %v12522_v46 = vmul.f32 %v12208_v18, %v5584_v55  ;;  %v6007_v30 = vmul.f32 %v12208_v18, %v5682_v8  ;;  %v7482_v48 = vrot.slane %v7359_v0, 2 }
 0x4a9   : > { %v7280_v23 = vadd.f32 %v7212_v36, %v7006_v47  ;;  %v6196_v22 = vadd.f32 %v6126_v53, %v5921_v14  ;;  %v7209_v56 = vsel %vm5781_vm9, %v7206_v13, %v7208_v60  ;;  %v5858_v5 = vrot.slane %v12518_v61, 1 }
 0x4aa   : > { %v5860_v38 = vrot.slane %v5732_v43, 1  ;;  %v6133_v27 = vrot.slane %v12522_v46, 2  ;;  %v6135_v24 = vrot.slane %v6007_v30, 2  ;;  %v6298_v31 = vmul.f32 %v12295_v9, %v12445_v20 }
 0x4ab   : > { %v7554_v21 = vadd.f32 %v7486_v45, %v7280_v23  ;;  %v6326_v2 = vadd.f32 %v6294_v6, %v6196_v22  ;;  %v6362_v11 = vunpack.c.l.bf16 %v6346_v57  ;;  %v12542_v4 = vmul.f32 %v12200_v63, %v12445_v20  ;;  %v7025_v45 = vld [vmem:[#allocation2 + $0xd4] sm:$0x1]  ;;  %v6620_v22 = vld [vmem:[#allocation2 + $0xc0] sm:$0xe] }
 0x4ac   : > { %v5861_v29 = vsel %vm5781_vm9, %v5858_v5, %v5860_v38  ;;  %v6136_v13 = vsel %vm6056_vm0, %v6133_v27, %v6135_v24  ;;  %v12546_v36 = vmul.f32 %v12308_v17, %v12445_v20  ;;  %v6943_v55 = vunpack.c.h.bf16 %v12532_v1 }
 0x4ad   : > { %v7643_v6 = vsel %vm4527_vm4, %v7554_v21, 0.0  ;;  %v6600_v33 = vadd.f32 %v6530_v49, %v6326_v2  ;;  %v5925_v34 = vadd.f32 %v5861_v29, %v5618_v32  ;;  %v6412_v19 = vmul.f32 %v12200_v63, %v6362_v11  ;;  %v5941_v32 = vld [vmem:[#allocation2 + $0xb4] sm:$0xe] }
 0x4ae   : > { %7644 = vadd.xlane.f32.xlu1 %v7643_v6  ;;  %v6537_v15 = vrot.slane %v12542_v4, 1  ;;  %v6686_v50 = vmul.f32 %v12308_v17, %v6362_v11  ;;  %v6811_v25 = vrot.slane %v12546_v36, 2  ;;  %v7041_v12 = vunpack.c.l.bf16 %v7025_v45  ;;  %v12583_v45 = vld [vmem:[%s9367_s28] sm:$0xff] }
 0x4af   : > { %v6874_v8 = vadd.f32 %v6804_v26, %v6600_v33  ;;  %v6200_v39 = vadd.f32 %v6136_v13, %v5925_v34  ;;  %v6539_v20 = vrot.slane %v6412_v19, 1  ;;  %v7483_v42 = vsel %vm6056_vm0, %v7480_v59, %v7482_v48  ;;  %v7299_v13 = vld [vmem:[#allocation2 + $0xcc] sm:$0xe] }
 0x4b0   : > { %v6813_v41 = vrot.slane %v6686_v50, 2  ;;  %v12558_v37 = vmul.f32 %v12258_v52, %v6943_v55  ;;  %v12561_v7 = vmul.f32 %v12339_v58, %v6943_v55  ;;  %v7091_v49 = vmul.f32 %v12258_v52, %v7041_v12 }
 0x4b1   : > { %v7005_v0 = vadd.f32 %v6973_v3, %v6874_v8  ;;  %v6330_v54 = vadd.f32 %v6298_v31, %v6200_v39  ;;  %v6540_v53 = vsel %vm5781_vm9, %v6537_v15, %v6539_v20  ;;  %v6977_v59 = vmul.f32 %v12322_v28, %v6943_v55 }
 0x4b2   : > { %v6814_v62 = vsel %vm6056_vm0, %v6811_v25, %v6813_v41  ;;  %v7216_v47 = vrot.slane %v12558_v37, 1  ;;  %v7365_v14 = vmul.f32 %v12339_v58, %v7041_v12  ;;  %v7218_v60 = vrot.slane %v7091_v49, 1 }
 0x4b3   : > { %v7279_v26 = vadd.f32 %v7209_v56, %v7005_v0  ;;  %v6604_v3 = vadd.f32 %v6540_v53, %v6330_v54  ;;  %v5583_v43 = vunpack.c.l.bf16 %v12489_v10  ;;  %v7490_v30 = vrot.slane %v12561_v7, 2 }
 0x4b4   : > { %v7492_v57 = vrot.slane %v7365_v14, 2  ;;  %v5957_v23 = vunpack.c.l.bf16 %v5941_v32  ;;  %v6410_v24 = vmul.f32 %v12200_v63, %v12473_v40  ;;  %v7219_v21 = vsel %vm5781_vm9, %v7216_v47, %v7218_v60 }
 0x4b5   : > { %v7553_v48 = vadd.f32 %v7483_v42, %v7279_v26  ;;  %v6878_v38 = vadd.f32 %v6814_v62, %v6604_v3  ;;  %v5730_v2 = vmul.f32 %v12231_v44, %v5583_v43  ;;  %v5617_v11 = vmul.f32 %v12190_v35, %v5583_v43  ;;  %v12628_v26 = vpop.xlane.xlu1 %7566 }
 0x4b6   : > { %v6005_v56 = vmul.f32 %v12208_v18, %v5957_v23  ;;  %v6636_v29 = vunpack.c.l.bf16 %v6620_v22  ;;  %v7493_v6 = vsel %vm6056_vm0, %v7490_v30, %v7492_v57  ;;  %v6942_v34 = vunpack.c.l.bf16 %v12532_v1 }
 0x4b7   : > { %v7640_v31 = vsel %vm4527_vm4, %v7553_v48, 0.0  ;;  %v7009_v10 = vadd.f32 %v6977_v59, %v6878_v38  ;;  %v5857_v33 = vrot.slane %v5730_v2, 1  ;;  %v6536_v44 = vrot.slane %v6410_v24, 1  ;;  %v12621_v59 = vpop.xlane.xlu0 %7560 }
 0x4b8   : > { %7641 = vadd.xlane.f32.xlu0 %v7640_v31  ;;  %v6132_v63 = vrot.slane %v6005_v56, 2  ;;  %v6684_v18 = vmul.f32 %v12308_v17, %v6636_v29  ;;  %v7315_v55 = vunpack.c.l.bf16 %v7299_v13  ;;  %v7659_v8 = vperm.slane %v12583_v45, 0 }
 0x4b9   : > { %v7283_v19 = vadd.f32 %v7219_v21, %v7009_v10  ;;  %v5859_v50 = vsel %vm5781_vm9, %v5857_v33, %v5858_v5  ;;  %v6297_v1 = vmul.f32 %v12295_v9, %v12473_v40  ;;  %v7089_v42 = vmul.f32 %v12258_v52, %v6942_v34 }
 0x4ba   : > { %v6134_v35 = vsel %vm6056_vm0, %v6132_v63, %v6133_v27  ;;  %v5924_v20 = vadd.f32 %v5859_v50, %v5617_v11  ;;  %v6810_v12 = vrot.slane %v6684_v18, 2  ;;  %7664 = vperm.xlu2 %9166, %v7659_v8   ;;  %v6538_v46 = vsel %vm5781_vm9, %v6536_v44, %v6537_v15 }
 0x4bb   : > { %v7557_v39 = vadd.f32 %v7493_v6, %v7283_v19  ;;  %v7363_v5 = vmul.f32 %v12339_v58, %v7315_v55  ;;  %v7215_v9 = vrot.slane %v7089_v42, 1  ;;  %v6976_v52 = vmul.f32 %v12322_v28, %v6942_v34  ;;  %v12613_v28 = vpop.xlane.xlu2 %7572 }
 0x4bc   : > { %v6199_v61 = vadd.f32 %v6134_v35, %v5924_v20  ;;  %v6812_v41 = vsel %vm6056_vm0, %v6810_v12, %v6811_v25  ;;  %v7672_v53 = vperm.slane %v12583_v45, 1  ;;  %v7685_v25 = vperm.slane %v12583_v45, 2 }
 0x4bd   : > { %v7652_v17 = vsel %vm4527_vm4, %v7557_v39, 0.0  ;;  %v7489_v37 = vrot.slane %v7363_v5, 2  ;;  %v7217_v0 = vsel %vm5781_vm9, %v7215_v9, %v7216_v47  ;;  %v7698_v32 = vperm.slane %v12583_v45, 3  ;;  %v12624_v47 = vld [vmem:[%s9367_s28 + $0x8] sm:$0xff]  ;;  %v12637_v57 = vpop.xlane.xlu1 %7569  ;;  %s8881_s28 = sshll.u32 %s9330_s16, 4  ;;  %s8138_s16 = scalar_lea.sflag [#allocation5], %s161_s29 }
 0x4be   : > { %7653 = vadd.xlane.f32.xlu1 %v7652_v17  ;;  %v6329_v27 = vadd.f32 %v6297_v1, %v6199_v61  ;;  %v7737_v62 = vperm.slane %v12583_v45, 6  ;;  %v7802_v3 = vperm.slane %v12624_v47, 3  ;;  %v7711_v43 = vperm.slane %v12583_v45, 4  ;;  %s8149_s7 = scalar_lea.hbm %s12850_s3, %s8881_s28 }
 0x4bf   : > { %v7491_v15 = vsel %vm6056_vm0, %v7489_v37, %v7490_v30  ;;  %v12632_v60 = vpop.xlane.xlu0 %7563  ;;  %v7724_v22 = vperm.slane %v12583_v45, 5  ;;  %v7776_v21 = vperm.slane %v12624_v47, 1  ;;  %v7750_v31 = vperm.slane %v12583_v45, 7  ;;  %s8152_s9 = sshll.u32 %s8149_s7, 4  ;;  %s8153_s9 = int_to_ptr.hbm [resolvable:$true] %s8152_s9 }
 0x4c0   : > { %v6603_v40 = vadd.f32 %v6538_v46, %v6329_v27  ;;  %v7841_v10 = vperm.slane %v12624_v47, 6  ;;  %v7763_v13 = vperm.slane %v12624_v47, 0  ;;  %v12920_v63 = vmov 0   ;;  %s9227_s10 = sshra.s32 %s8153_s9, 4  ;;  %s9228_s10 = int_to_ptr.hbm [resolvable:$true] %s9227_s10 }
 0x4c1   : > { %v7789_v35 = vperm.slane %v12624_v47, 2  ;;  %v7815_v1 = vperm.slane %v12624_v47, 4  ;;  %v7828_v17 = vperm.slane %v12624_v47, 5  ;;  %s9229_s11 = scalar_lea.hbm %s9228_s10, 16  ;;  %p9234_p1 = scmp.lt.s32.totalorder %s9228_s10, %s12850_s3 }
 0x4c2   : > { %v6877_v7 = vadd.f32 %v6812_v41, %v6603_v40  ;;  %9169 = vset.pattern.permute.xlu2 %v12904_v51  ;;  %p9230_p12 = scmp.ne.s32.totalorder %s9228_s10, %s9229_s11  ;;  %p9235_p2 = scmp.lt.s32.totalorder %s9233_s20, %s9229_s11 }
 0x4c3   : > { %v12617_v49 = vpop.xlane.xlu2 %7575 }
 0x4c4   : > { %v7008_v4 = vadd.f32 %v6976_v52, %v6877_v7  ;;  %p9231_p13 = pnand %p9230_p12, %p9347_p5  ;;  %p9236_p3 = por %p9235_p2, %p9234_p1 }
 0x4c5   : > { %v12646_v38 = vpop.xlane.xlu1 %7581 }
 0x4c6   : > { %v7282_v54 = vadd.f32 %v7217_v0, %v7008_v4  ;;  %v7854_v0 = vperm.slane %v12624_v47, 7  ;;  %p9232_p0 = pneg %p9231_p13 }
 0x4c7   : > { %v12641_v23 = vpop.xlane.xlu0 %7578 }
 0x4c8   : > { %v7556_v58 = vadd.f32 %v7491_v15, %v7282_v54  ;;  %p9237_p4 = pnand %p9236_p3, %p9232_p0 }
 0x4ca   : > { %v7649_v36 = vsel %vm4527_vm4, %v7556_v58, 0.0  ;;  %7683 = vperm.xlu2 %9169, %v7672_v53  }
 0x4cb   : > { %7650 = vadd.xlane.f32.xlu0 %v7649_v36  ;;  %v12626_v14 = vpop.xlane.xlu2 %7584 }
 0x4cd   : > { %v12654_v56 = vpop.xlane.xlu1 %7590 }
 0x4cf   : > { %v12648_v24 = vpop.xlane.xlu0 %7587 }
 0x4d2   : > { %9170 = vset.pattern.permute.xlu2 %v12903_v16 }
 0x4d3   : > { %v12635_v30 = vpop.xlane.xlu2 %7593 }
 0x4d5   : > { %v12664_v6 = vpop.xlane.xlu1 %7599 }
 0x4d7   : > { %7677 = vperm.xlu1 %9168, %v7672_v53   ;;  %v12658_v11 = vpop.xlane.xlu0 %7596 }
 0x4da   : > { %7690 = vperm.xlu2 %9170, %v7685_v25  }
 0x4db   : > { %v12644_v48 = vpop.xlane.xlu2 %7602 }
 0x4dd   : > { %v12672_v34 = vpop.xlane.xlu1 %7608 }
 0x4df   : > { %9171 = vset.pattern.permute.xlu1 %v12904_v51  ;;  %7670 = vperm.xlu0 %9167, %v7659_v8   ;;  %v12666_v33 = vpop.xlane.xlu0 %7605 }
 0x4e2   : > { %7703 = vperm.xlu2 %9170, %v7698_v32  }
 0x4e3   : > { %v12652_v2 = vpop.xlane.xlu2 %7611 }
 0x4e5   : > { %v12678_v18 = vpop.xlane.xlu1 %7617 }
 0x4e7   : > { %7696 = vperm.xlu1 %9171, %v7685_v25   ;;  %7748 = vperm.xlu0 %9167, %v7737_v62   ;;  %v12674_v19 = vpop.xlane.xlu0 %7614 }
 0x4ea   : > { %9172 = vset.pattern.permute.xlu2 %v12904_v51 }
 0x4eb   : > { %v12661_v29 = vpop.xlane.xlu2 %7620 }
 0x4ed   : > { %v12686_v8 = vpop.xlane.xlu1 %7626 }
 0x4ef   : > { %7709 = vperm.xlu1 %9171, %v7698_v32   ;;  %7813 = vperm.xlu0 %9167, %v7802_v3   ;;  %v12681_v50 = vpop.xlane.xlu0 %7623 }
 0x4f2   : > { %7722 = vperm.xlu2 %9172, %v7711_v43  }
 0x4f3   : > { %v12669_v45 = vpop.xlane.xlu2 %7629 }
 0x4f7   : > { %9173 = vset.pattern.permute.xlu1 %v12903_v16  ;;  %9178 = vset.pattern.permute.xlu0 %v12903_v16 }
 0x4fa   : > { %7735 = vperm.xlu2 %9172, %v7724_v22  }
 0x4fb   : > { %v12676_v44 = vpop.xlane.xlu2 %7638 }
 0x4ff   : > { %7729 = vperm.xlu1 %9173, %v7724_v22   ;;  %7716 = vperm.xlu0 %9178, %v7711_v43  }
 0x502   : > { %9174 = vset.pattern.permute.xlu2 %v12903_v16  ;;  %v12692_v12 = vpop.xlane.xlu1 %7635 }
 0x507   : > { %7742 = vperm.xlu1 %9173, %v7737_v62   ;;  %7781 = vperm.xlu0 %9178, %v7776_v21  }
 0x50a   : > { %7755 = vperm.xlu2 %9174, %v7750_v31  }
 0x50c   : > { %v12688_v39 = vpop.xlane.xlu0 %7632 }
 0x50f   : > { %9175 = vset.pattern.permute.xlu1 %v12904_v51  ;;  %7846 = vperm.xlu0 %9178, %v7841_v10  }
 0x512   : > { %7768 = vperm.xlu2 %9174, %v7763_v13  }
 0x514   : > { %v12684_v55 = vpop.xlane.xlu2 %7647 }
 0x517   : > { %7761 = vperm.xlu1 %9175, %v7750_v31   ;;  %9184 = vset.pattern.permute.xlu0 %v12920_v63 }
 0x51a   : > { %9176 = vset.pattern.permute.xlu2 %v12904_v51 }
 0x51c   : > { %v7665_v20 = vpop.permute.xlu2 %7664 }
 0x51d   : > { %v7899_v58 = vadd.f32 %v7665_v20, %v12621_v59 }
 0x51f   : > { %7774 = vperm.xlu1 %9175, %v7763_v13  }
 0x521   : > { %v12698_v46 = vpop.xlane.xlu1 %7644 }
 0x522   : > { %7787 = vperm.xlu2 %9176, %v7776_v21  }
 0x524   : > { %v7684_v61 = vpop.permute.xlu2 %7683 }
 0x525   : > { %v7902_v25 = vadd.f32 %v7684_v61, %v12637_v57 }
 0x527   : > { %9177 = vset.pattern.permute.xlu1 %v12903_v16 }
 0x52a   : > { %7800 = vperm.xlu2 %9176, %v7789_v35  }
 0x52b   : > { %v12694_v42 = vpop.xlane.xlu0 %7641 }
 0x52f   : > { %7794 = vperm.xlu1 %9177, %v7789_v35  }
 0x531   : > { %v12703_v41 = vpop.xlane.xlu1 %7653 }
 0x532   : > { %9179 = vset.pattern.permute.xlu2 %v12903_v16 }
 0x534   : > { %v7691_v27 = vpop.permute.xlu2 %7690 }
 0x535   : > { %v7903_v36 = vadd.f32 %v7691_v27, %v12613_v28 }
 0x537   : > { %7807 = vperm.xlu1 %9177, %v7802_v3  }
 0x53a   : > { %7820 = vperm.xlu2 %9179, %v7815_v1  }
 0x53c   : > { %v7704_v52 = vpop.permute.xlu2 %7703 }
 0x53d   : > { %v7905_v7 = vadd.f32 %v7704_v52, %v12641_v23 }
 0x53e   : > { %v12700_v5 = vpop.xlane.xlu0 %7650 }
 0x53f   : > { %9180 = vset.pattern.permute.xlu1 %v12904_v51 }
 0x542   : > { %7833 = vperm.xlu2 %9179, %v7828_v17  }
 0x547   : > { %7826 = vperm.xlu1 %9180, %v7815_v1  }
 0x549   : > { %v7678_v37 = vpop.permute.xlu1 %7677 }
 0x54a   : > { %9181 = vset.pattern.permute.xlu2 %v12904_v51  ;;  %v7901_v54 = vadd.f32 %v7678_v37, %v12628_v26 }
 0x54c   : > { %v7723_v4 = vpop.permute.xlu2 %7722 }
 0x54d   : > { %v7908_v15 = vadd.f32 %v7723_v4, %v12648_v24 }
 0x54f   : > { %7839 = vperm.xlu1 %9180, %v7828_v17  }
 0x551   : > { %v7671_v9 = vpop.permute.xlu0 %7670 }
 0x552   : > { %v7900_v40 = vadd.f32 %v7671_v9, %v12632_v60  ;;  %7852 = vperm.xlu2 %9181, %v7841_v10  }
 0x554   : > { %7967 = vperm.xlu0 %9184, %v7900_v40   ;;  %v7736_v32 = vpop.permute.xlu2 %7735 }
 0x557   : > { %9182 = vset.pattern.permute.xlu1 %v12903_v16 }
 0x559   : > { %v7697_v51 = vpop.permute.xlu1 %7696  ;;  %v7749_v16 = vpop.permute.xlu0 %7748 }
 0x55a   : > { %7865 = vperm.xlu2 %9181, %v7854_v0   ;;  %v7904_v3 = vadd.f32 %v7697_v51, %v12617_v49  ;;  %v7912_v22 = vadd.f32 %v7749_v16, %v12664_v6 }
 0x55c   : > { %7982 = vperm.xlu0 %9184, %v7905_v7  }
 0x55f   : > { %7859 = vperm.xlu1 %9182, %v7854_v0  }
 0x561   : > { %v7710_v53 = vpop.permute.xlu1 %7709  ;;  %v7814_v47 = vpop.permute.xlu0 %7813 }
 0x562   : > { %9185 = vset.pattern.permute.xlu2 %v12920_v63  ;;  %v7906_v26 = vadd.f32 %v7710_v53, %v12646_v38  ;;  %v7910_v38 = vadd.f32 %v7736_v32, %v12635_v30 }
 0x563   : > { %7970 = vperm.xlu2 %9185, %v7901_v54  }
 0x564   : > { %7991 = vperm.xlu0 %9184, %v7908_v15   ;;  %v7756_v59 = vpop.permute.xlu2 %7755 }
 0x567   : > { %9183 = vset.pattern.permute.xlu1 %v12920_v63 }
 0x568   : > { %7964 = vperm.xlu1 %9183, %v7899_v58  }
 0x56b   : > { %7976 = vperm.xlu2 %9185, %v7903_v36  }
 0x56c   : > { %v7769_v24 = vpop.permute.xlu2 %7768 }
 0x56d   : > { %v7915_v31 = vadd.f32 %v7769_v24, %v12672_v34 }
 0x570   : > { %7973 = vperm.xlu1 %9183, %v7902_v25  }
 0x571   : > { %v7730_v62 = vpop.permute.xlu1 %7729  ;;  %v7717_v23 = vpop.permute.xlu0 %7716 }
 0x572   : > { %v7909_v28 = vadd.f32 %v7730_v62, %v12654_v56  ;;  %v7907_v57 = vadd.f32 %v7717_v23, %v12626_v14  ;;  %v7913_v56 = vadd.f32 %v7756_v59, %v12644_v48 }
 0x573   : > { %7985 = vperm.xlu2 %9185, %v7906_v26  }
 0x578   : > { %7979 = vperm.xlu1 %9183, %v7904_v3  }
 0x579   : > { %v7743_v60 = vpop.permute.xlu1 %7742 }
 0x57a   : > { %v7911_v43 = vadd.f32 %v7743_v60, %v12658_v11  ;;  %v7782_v11 = vpop.permute.xlu0 %7781 }
 0x57b   : > { %7994 = vperm.xlu2 %9185, %v7909_v28   ;;  %v7917_v14 = vadd.f32 %v7782_v11, %v12674_v19 }
 0x57c   : > { %8000 = vperm.xlu0 %9184, %v7911_v43   ;;  %v7788_v10 = vpop.permute.xlu2 %7787 }
 0x57d   : > { %v7918_v13 = vadd.f32 %v7788_v10, %v12678_v18  ;;  %v7922_v18 = vadd.f32 %v7814_v47, %v12669_v45 }
 0x580   : > { %7988 = vperm.xlu1 %9183, %v7907_v57  }
 0x583   : > { %8003 = vperm.xlu2 %9185, %v7912_v22  }
 0x584   : > { %v7801_v30 = vpop.permute.xlu2 %7800 }
 0x588   : > { %7997 = vperm.xlu1 %9183, %v7910_v38  }
 0x589   : > { %v7762_v49 = vpop.permute.xlu1 %7761 }
 0x58a   : > { %v7914_v21 = vadd.f32 %v7762_v49, %v12666_v33  ;;  %v7920_v33 = vadd.f32 %v7801_v30, %v12681_v50 }
 0x58b   : > { %8012 = vperm.xlu2 %9185, %v7915_v31  }
 0x58c   : > { %8009 = vperm.xlu0 %9184, %v7914_v21  }
 0x590   : > { %8006 = vperm.xlu1 %9183, %v7913_v56  }
 0x591   : > { %v7775_v6 = vpop.permute.xlu1 %7774 }
 0x592   : > { %v7916_v63 = vadd.f32 %v7775_v6, %v12652_v2 }
 0x593   : > { %8021 = vperm.xlu2 %9185, %v7918_v13  }
 0x594   : > { %8018 = vperm.xlu0 %9184, %v7917_v14   ;;  %v7821_v34 = vpop.permute.xlu2 %7820 }
 0x595   : > { %v7923_v35 = vadd.f32 %v7821_v34, %v12688_v39 }
 0x598   : > { %8015 = vperm.xlu1 %9183, %v7916_v63  }
 0x59c   : > { %8027 = vperm.xlu0 %9184, %v7920_v33   ;;  %v7834_v2 = vpop.permute.xlu2 %7833 }
 0x59d   : > { %v7925_v50 = vadd.f32 %v7834_v2, %v12676_v44 }
 0x5a1   : > { %v7795_v48 = vpop.permute.xlu1 %7794 }
 0x5a2   : > { %v7919_v20 = vadd.f32 %v7795_v48, %v12661_v29  ;;  %v7847_v29 = vpop.permute.xlu0 %7846 }
 0x5a3   : > { %v7927_v45 = vadd.f32 %v7847_v29, %v12698_v46 }
 0x5a4   : > { %8024 = vperm.xlu1 %9183, %v7919_v20   ;;  %8036 = vperm.xlu0 %9184, %v7923_v35  }
 0x5a9   : > { %v7808_v19 = vpop.permute.xlu1 %7807 }
 0x5aa   : > { %v7921_v1 = vadd.f32 %v7808_v19, %v12686_v8 }
 0x5ac   : > { %8033 = vperm.xlu1 %9183, %v7922_v18   ;;  %8030 = vperm.xlu2 %9185, %v7921_v1   ;;  %v7853_v17 = vpop.permute.xlu2 %7852 }
 0x5ad   : > { %v7928_v61 = vadd.f32 %v7853_v17, %v12684_v55 }
 0x5b4   : > { %8042 = vperm.xlu1 %9183, %v7925_v50   ;;  %v7866_v40 = vpop.permute.xlu2 %7865 }
 0x5b5   : > { %v7930_v44 = vadd.f32 %v7866_v40, %v12703_v41 }
 0x5b9   : > { %v7827_v39 = vpop.permute.xlu1 %7826 }
 0x5ba   : > { %v7924_v27 = vadd.f32 %v7827_v39, %v12692_v12 }
 0x5bc   : > { %8039 = vperm.xlu2 %9185, %v7924_v27   ;;  %8051 = vperm.xlu1 %9183, %v7928_v61  }
 0x5bd   : > { %v7971_v52 = vpop.permute.xlu2 %7970 }
 0x5c1   : > { %v7840_v9 = vpop.permute.xlu1 %7839 }
 0x5c2   : > { %v7926_v8 = vadd.f32 %v7840_v9, %v12694_v42  ;;  %v12921_v42 = vlaneseq }
 0x5c4   : > { %8045 = vperm.xlu0 %9184, %v7926_v8   ;;  %8048 = vperm.xlu2 %9185, %v7927_v45   ;;  %v12742_v58 = vand.u32 127, %v12921_v42 }
 0x5c5   : > { %v7977_v12 = vpop.permute.xlu2 %7976 }
 0x5c6   : > { %v7968_v0 = vpop.permute.xlu0 %7967  ;;  %v12745_v41 = vadd.s32 4294967288, %v12742_v58  ;;  %v8066_v25 = vperm.slane %v7971_v52, %v12742_v58  ;;  %v8069_v26 = vperm.slane %v7977_v12, %v12742_v58 }
 0x5c8   : > { %v8063_v3 = vperm.slane %v7968_v0, %v12745_v41 }
 0x5cc   : > { %8057 = vperm.xlu2 %9185, %v7930_v44  }
 0x5cd   : > { %v7986_v51 = vpop.permute.xlu2 %7985 }
 0x5ce   : > { %v7983_v15 = vpop.permute.xlu0 %7982  ;;  %v8073_v57 = vperm.slane %v7986_v51, %v12745_v41 }
 0x5cf   : > { %v8072_v49 = vperm.slane %v7983_v15, %v12742_v58 }
 0x5d1   : > { %v7860_v37 = vpop.permute.xlu1 %7859  ;;  %v8074_v56 = vsel %vm8064_vm2, %v8073_v57, %v8072_v49 }
 0x5d2   : > { %v7929_v55 = vadd.f32 %v7860_v37, %v12700_v5 }
 0x5d4   : > { %8054 = vperm.xlu0 %9184, %v7929_v55  }
 0x5d5   : > { %v7995_v54 = vpop.permute.xlu2 %7994 }
 0x5d6   : > { %v7992_v16 = vpop.permute.xlu0 %7991  ;;  %v8078_v21 = vperm.slane %v7995_v54, %v12742_v58 }
 0x5d7   : > { %v8076_v24 = vperm.slane %v7992_v16, %v12745_v41 }
 0x5da   : > { %v7965_v7 = vpop.permute.xlu1 %7964 }
 0x5db   : > { %v8061_v32 = vperm.slane %v7965_v7, %v12742_v58 }
 0x5dd   : > { %v8004_v47 = vpop.permute.xlu2 %8003  ;;  %v8065_v28 = vsel %vm8064_vm2, %v8063_v3, %v8061_v32 }
 0x5de   : > { %v8082_v13 = vperm.slane %v8004_v47, %v12745_v41 }
 0x5e2   : > { %v7974_v4 = vpop.permute.xlu1 %7973 }
 0x5e3   : > { %v8067_v36 = vperm.slane %v7974_v4, %v12745_v41 }
 0x5e5   : > { %v8068_v59 = vsel %vm8064_vm2, %v8067_v36, %v8066_v25  ;;  %v8013_v63 = vpop.permute.xlu2 %8012 }
 0x5e6   : > { %v8112_v38 = vsel %vm8111_vm3, %v8068_v59, %v8065_v28  ;;  %v8087_v29 = vperm.slane %v8013_v63, %v12742_v58 }
 0x5ea   : > { %v7980_v46 = vpop.permute.xlu1 %7979 }
 0x5eb   : > { %v8070_v5 = vperm.slane %v7980_v46, %v12745_v41 }
 0x5ed   : > { %v8071_v60 = vsel %vm8064_vm2, %v8070_v5, %v8069_v26  ;;  %v8022_v17 = vpop.permute.xlu2 %8021 }
 0x5ee   : > { %v8001_v62 = vpop.permute.xlu0 %8000  ;;  %v8114_v31 = vsel %vm8113_vm5, %v8071_v60, %v8112_v38  ;;  %v8091_v8 = vperm.slane %v8022_v17, %v12745_v41 }
 0x5ef   : > { %v8116_v6 = vsel %vm8115_vm8, %v8074_v56, %v8114_v31  ;;  %v8081_v33 = vperm.slane %v8001_v62, %v12742_v58 }
 0x5f1   : > { %v8083_v19 = vsel %vm8064_vm2, %v8082_v13, %v8081_v33 }
 0x5f2   : > { %v7989_v53 = vpop.permute.xlu1 %7988 }
 0x5f3   : > { %v8075_v43 = vperm.slane %v7989_v53, %v12742_v58 }
 0x5f5   : > { %v8077_v10 = vsel %vm8064_vm2, %v8076_v24, %v8075_v43 }
 0x5f6   : > { %v8118_v30 = vsel %vm8117_vm10, %v8077_v10, %v8116_v6 }
 0x5fa   : > { %v7998_v23 = vpop.permute.xlu1 %7997 }
 0x5fb   : > { %v8079_v22 = vperm.slane %v7998_v23, %v12745_v41 }
 0x5fd   : > { %v8080_v11 = vsel %vm8064_vm2, %v8079_v22, %v8078_v21 }
 0x5fe   : > { %v8010_v14 = vpop.permute.xlu0 %8009  ;;  %v8120_v34 = vsel %vm8119_vm11, %v8080_v11, %v8118_v30 }
 0x5ff   : > { %v8085_v48 = vperm.slane %v8010_v14, %v12745_v41  ;;  %v8122_v1 = vsel %vm8121_vm12, %v8083_v19, %v8120_v34 }
 0x602   : > { %v8007_v35 = vpop.permute.xlu1 %8006 }
 0x603   : > { %v8084_v20 = vperm.slane %v8007_v35, %v12742_v58 }
 0x605   : > { %v8086_v18 = vsel %vm8064_vm2, %v8085_v48, %v8084_v20 }
 0x606   : > { %v8124_v2 = vsel %vm8123_vm13, %v8086_v18, %v8122_v1  ;;  %v8019_v50 = vpop.permute.xlu0 %8018  ;;  %v8031_v45 = vpop.permute.xlu2 %8030 }
 0x607   : > { %8135 = vst.msk [vmem:[%s9711_s4] sm:$0xff] %vm8134_vm14, %v8124_v2  ;;  %v8090_v9 = vperm.slane %v8019_v50, %v12742_v58  ;;  %v8096_v54 = vperm.slane %v8031_v45, %v12742_v58 }
 0x609   : > { %v8092_v55 = vsel %vm8064_vm2, %v8091_v8, %v8090_v9 }
 0x60a   : > { %v8016_v61 = vpop.permute.xlu1 %8015 }
 0x60b   : > { %v8088_v39 = vperm.slane %v8016_v61, %v12745_v41 }
 0x60d   : > { %v8089_v40 = vsel %vm8064_vm2, %v8088_v39, %v8087_v29 }
 0x60e   : > { %v8028_v27 = vpop.permute.xlu0 %8027  ;;  %v8125_v12 = vsel %vm8111_vm3, %v8092_v55, %v8089_v40 }
 0x60f   : > { %v8094_v52 = vperm.slane %v8028_v27, %v12745_v41 }
 0x616   : > { %v8025_v44 = vpop.permute.xlu1 %8024  ;;  %v8037_v4 = vpop.permute.xlu0 %8036 }
 0x617   : > { %v8093_v37 = vperm.slane %v8025_v44, %v12742_v58  ;;  %v8040_v51 = vpop.permute.xlu2 %8039  ;;  %v8099_v15 = vperm.slane %v8037_v4, %v12742_v58 }
 0x618   : > { %v8100_v16 = vperm.slane %v8040_v51, %v12745_v41 }
 0x619   : > { %v8095_v7 = vsel %vm8064_vm2, %v8094_v52, %v8093_v37 }
 0x61a   : > { %v8126_v0 = vsel %vm8113_vm5, %v8095_v7, %v8125_v12  ;;  %v8101_v36 = vsel %vm8064_vm2, %v8100_v16, %v8099_v15 }
 0x61e   : > { %v8034_v46 = vpop.permute.xlu1 %8033 }
 0x61f   : > { %v8097_v42 = vperm.slane %v8034_v46, %v12745_v41  ;;  %v8049_v47 = vpop.permute.xlu2 %8048 }
 0x620   : > { %v8105_v43 = vperm.slane %v8049_v47, %v12742_v58 }
 0x621   : > { %v8098_v53 = vsel %vm8064_vm2, %v8097_v42, %v8096_v54 }
 0x622   : > { %v8127_v5 = vsel %vm8115_vm8, %v8098_v53, %v8126_v0 }
 0x623   : > { %v8128_v25 = vsel %vm8117_vm10, %v8101_v36, %v8127_v5 }
 0x626   : > { %v8043_v32 = vpop.permute.xlu1 %8042 }
 0x627   : > { %v8102_v59 = vperm.slane %v8043_v32, %v12742_v58  ;;  %v8058_v24 = vpop.permute.xlu2 %8057 }
 0x628   : > { %v8109_v49 = vperm.slane %v8058_v24, %v12745_v41 }
 0x62e   : > { %v8052_v62 = vpop.permute.xlu1 %8051 }
 0x62f   : > { %v8106_v26 = vperm.slane %v8052_v62, %v12745_v41 }
 0x631   : > { %v8107_v28 = vsel %vm8064_vm2, %v8106_v26, %v8105_v43 }
 0x636   : > { %v8046_v3 = vpop.permute.xlu0 %8045 }
 0x637   : > { %v8103_v60 = vperm.slane %v8046_v3, %v12745_v41 }
 0x639   : > { %v8104_v23 = vsel %vm8064_vm2, %v8103_v60, %v8102_v59 }
 0x63a   : > { %v8129_v57 = vsel %vm8119_vm11, %v8104_v23, %v8128_v25 }
 0x63b   : > { %v8130_v22 = vsel %vm8121_vm12, %v8107_v28, %v8129_v57 }
 0x646   : > { %v8055_v38 = vpop.permute.xlu0 %8054 }
 0x647   : > { %v8108_v21 = vperm.slane %v8055_v38, %v12742_v58 }
 0x649   : > { %v8110_v31 = vsel %vm8064_vm2, %v8109_v49, %v8108_v21 }
 0x64a   : > { %v8131_v10 = vsel %vm8123_vm13, %v8110_v31, %v8130_v22 }
 0x64b   : > { %8136 = vst.msk [vmem:[%s9711_s4 + $0x8] sm:$0xff] %vm8134_vm14, %v8131_v10 }
 0x64c   : > { %9240 = shalt.err (!%p9237_p4)
}
 0x64d   : > { %s9287_s29 = smov 128   ;;  %s9288_s4 = smov 8  }
 0x64e   : > { %9024 = dma.vmem_to_hbm [thread:$0]  (%p9347_p5), %s8151_s8, 256, %s8153_s9, %s8138_s16, %s9287_s29, %s9287_s29, %s9288_s4  }
 0x64f PF: > { %p9030_p7 = scmp.ge.s32.totalorder %s9279_s15, 2  ;;  %s8167_s26 = sand.u32 1, %s9267_s12  }
 0x650   : > { %s8168_s27 = scalar_lea.sflag [#allocation5], %s8167_s26 }
 0x651   : > { %p9027_p8 = pnand %p9030_p7, %p9351_p6 }
 0x653   : > { %p9028_p9 = pneg %p9027_p8 }
 0x655   : > { %9262 = dma.done.wait (%p9028_p9), %s8168_s27, 256  }
 0x656   : > { %9264 = vsyncadd (%p9028_p9), %s8168_s27, 4294967040  ;;  %p13_p10 = scmp.ge.s32.totalorder %s9334_s18, 4   ;;  %s12922_s12 = smov %s9271_s13 }
 0x657   : > { %s12923_s13 = smov %s9275_s14  ;;  %s12924_s14 = smov %s9345_s21 }
 0x658   : > { %s12925_s15 = smov %s9334_s18  ;;  %15 = sbr.rel (!%p13_p10) target bundleno = 3 (0x3), region = 89 }
 0x65d   :  { %8174 = vsyncpa [#allocation5], 1 }
 0x65e   :  { %8176 = vsyncpa [#allocation5 + $0x1], 1 }

</bundles_post_ra>
